<compile_context>
chip_gen: v7x
topology: tpu7x:2x2x1
jax: 0.10.0
libtpu: 0.0.40
codegen_flags: <defaults>
</compile_context>

<pallas_src>
import functools

import jax
import jax.numpy as jnp
from jax import lax
from jax.experimental import pallas as pl
from jax.experimental.pallas import tpu as pltpu

KSIZE = 7
PAD = (KSIZE - 1) // 2
WPG = 2 * KSIZE * KSIZE          # weights per gate: [max-channel 49 | mean-channel 49]
BN_EPS = 1e-5


def _chunk_size(nc):
    """Largest channel-chunk size <= 8 that divides nc."""
    for t in (8, 4, 2):
        if nc % t == 0:
            return t
    return 1


def _conv7x7_2to1(pmax, pmean, w_ref, w_off, oh, ow, wt_transposed=False):
    """7x7 'same' conv of the 2-channel pooled map [max|mean] -> 1 channel, no bias.

    pmax / pmean are already zero-padded to (oh+6, ow+6) VMEM values.
    wt_transposed=True uses kernel weights with (kh, kw) swapped, which is what
    the gate-2 conv needs when it runs on the transposed (C, H) pooled map.
    """
    # Adaptive accumulator count: 4 for tiny maps, 2 once the map spans > ~8 vregs.
    n_acc = 4 if oh * ow <= 8 * 1024 else 2
    acc = [jnp.zeros((oh, ow), jnp.float32) for _ in range(n_acc)]
    idx = 0
    for kw in range(KSIZE):
        col_max = pmax[:, kw:kw + ow]        # (oh+6, ow) — lane shift hoisted out of kh loop
        col_mean = pmean[:, kw:kw + ow]
        for kh in range(KSIZE):
            wi = (kw * KSIZE + kh) if wt_transposed else (kh * KSIZE + kw)
            wm = w_ref[w_off + wi]                        # max-channel weight (SMEM scalar)
            we = w_ref[w_off + KSIZE * KSIZE + wi]        # mean-channel weight
            a = idx % n_acc                               # round-robin over accumulators
            acc[a] = acc[a] + wm * col_max[kh:kh + oh, :] + we * col_mean[kh:kh + oh, :]
            idx += 1
    out = acc[0]
    for extra in acc[1:]:
        out = out + extra
    return out


def _bn_sigmoid(v, bn_ref, g):
    gamma = bn_ref[4 * g + 0]
    beta = bn_ref[4 * g + 1]
    rmean = bn_ref[4 * g + 2]
    rvar = bn_ref[4 * g + 3]
    return jax.nn.sigmoid((v - rmean) * jax.lax.rsqrt(rvar + BN_EPS) * gamma + beta)


def _zero_halo(pad_ref, rows, cols):
    """Zero only the 3-wide halo strips of a (2, rows+6, cols+6) scratch buffer."""
    full_h = rows + 2 * PAD
    full_w = cols + 2 * PAD
    zrow = jnp.zeros((2, PAD, full_w), jnp.float32)
    pad_ref[:, 0:PAD, :] = zrow
    pad_ref[:, PAD + rows:full_h, :] = zrow
    zcol = jnp.zeros((2, full_h, PAD), jnp.float32)
    pad_ref[:, :, 0:PAD] = zcol
    pad_ref[:, :, PAD + cols:full_w] = zcol


def _cda_kernel(w_ref, bn_ref, x_ref, o_ref,
                pad1_ref, pad2_ref, pad3_ref, s1_ref, s2t_ref, s3t_ref,
                *, nc, nh, nw, tc):
    # w_ref   : SMEM (3*98,)   conv weights [gateH | gateW | gateSpatial]
    # bn_ref  : SMEM (3*4,)    per gate (gamma, beta, running_mean, running_var)
    # x_ref   : VMEM (C, H, W) input block (batch dim squeezed; read from HBM once)
    # o_ref   : VMEM (C, H, W) output block (written once)
    # pad1_ref: VMEM (2, C+6, W+6) zero-padded pooled maps for gate 1 (pool over H)
    # pad2_ref: VMEM (2, C+6, H+6) zero-padded pooled maps for gate 2 (pool over W, (C,H) layout)
    # pad3_ref: VMEM (2, H+6, W+6) zero-padded pooled maps for gate 3 (pool over C)
    # s1_ref  : VMEM (C, W) gate-1 scale
    # s2t_ref : VMEM (C, H) gate-2 scale, transposed layout (row c = s2[:, c])
    # s3t_ref : VMEM (H, W) gate-3 scale, pre-scaled by 1/3

    # ---- pass 1: block-dense pooling (whole-array reductions, one store per map) ----
    x3 = x_ref[...].astype(jnp.float32)                       # (C, H, W)
    inv_h = jnp.float32(1.0 / nh)
    inv_w = jnp.float32(1.0 / nw)
    inv_c = jnp.float32(1.0 / nc)

    p1max = jnp.max(x3, axis=1)                               # (C, W)  pool over H
    p1mean = jnp.sum(x3, axis=1) * inv_h
    p2max = jnp.max(x3, axis=2)                               # (C, H)  pool over W
    p2mean = jnp.sum(x3, axis=2) * inv_w
    p3max = jnp.max(x3, axis=0)                               # (H, W)  pool over C
    p3mean = jnp.sum(x3, axis=0) * inv_c

    # Zero only the conv halos (interior fully rewritten below). Not gated on
    # program_id: scratch is per-core under megacore sharding.
    _zero_halo(pad1_ref, nc, nw)
    _zero_halo(pad2_ref, nc, nh)
    _zero_halo(pad3_ref, nh, nw)

    pad1_ref[0, PAD:PAD + nc, PAD:PAD + nw] = p1max
    pad1_ref[1, PAD:PAD + nc, PAD:PAD + nw] = p1mean
    pad2_ref[0, PAD:PAD + nc, PAD:PAD + nh] = p2max
    pad2_ref[1, PAD:PAD + nc, PAD:PAD + nh] = p2mean
    pad3_ref[0, PAD:PAD + nh, PAD:PAD + nw] = p3max
    pad3_ref[1, PAD:PAD + nh, PAD:PAD + nw] = p3mean

    # ---- conv 7x7 + BN(eval) + sigmoid; gate maps materialized in VMEM scratch ----
    third = jnp.float32(1.0 / 3.0)
    s1_ref[...] = _bn_sigmoid(
        _conv7x7_2to1(pad1_ref[0], pad1_ref[1], w_ref, 0 * WPG, nc, nw, False), bn_ref, 0)
    # gate 2 runs on the (C, H)-layout pooled map with transposed kernel weights,
    # so its output is already s2^T (row per channel).
    s2t_ref[...] = _bn_sigmoid(
        _conv7x7_2to1(pad2_ref[0], pad2_ref[1], w_ref, 1 * WPG, nc, nh, True), bn_ref, 1)
    s3t_ref[...] = _bn_sigmoid(
        _conv7x7_2to1(pad3_ref[0], pad3_ref[1], w_ref, 2 * WPG, nh, nw, False), bn_ref, 2) * third

    # Identity for the lane->sublane relayout of s2 columns via an MXU NT-matmul.
    eye_h = (lax.broadcasted_iota(jnp.int32, (nh, nh), 0)
             == lax.broadcasted_iota(jnp.int32, (nh, nh), 1)).astype(jnp.float32)

    n_chunks = nc // tc

    # ---- pass 2: fused gating + combine, channel-chunked fori_loop ----
    def chunk_body(ci, carry):
        c0 = pl.multiple_of(ci * tc, tc)
        x_chunk = x_ref[pl.ds(c0, tc), :, :]                  # (tc, H, W)
        s1_chunk = s1_ref[pl.ds(c0, tc), :]                   # (tc, W)
        s2_chunk = s2t_ref[pl.ds(c0, tc), :]                  # (tc, H)
        s3t = s3t_ref[...]                                    # (H, W)  (= s3 / 3)
        s1t_chunk = s1_chunk * third                          # hoisted 1/3 scale (tiny op)
        # g2cols[h, j] = s2_chunk[j, h]  -> (H, tc) via NT matmul against identity.
        g2cols = lax.dot_general(eye_h, s2_chunk,
                                 (((1,), (1,)), ((), ())),
                                 preferred_element_type=jnp.float32)
        for j in range(tc):
            xc = x_chunk[j].astype(jnp.float32)               # (H, W)
            g1 = s1_chunk[j:j + 1, :]                         # (1, W) -> broadcast along H
            g1t = s1t_chunk[j:j + 1, :]                       # (1, W)  (= g1 / 3)
            g2 = g2cols[:, j:j + 1]                           # (H, 1) -> broadcast along W
            # combo = (s1*s2 + (s1+s2)*s3) / 3
            combo = g2 * (g1t + s3t) + g1 * s3t
            out_plane = (xc * xc * combo).astype(o_ref.dtype)
            o_ref[pl.ds(c0 + j, 1), :, :] = out_plane.reshape(1, nh, nw)
        return carry

    lax.fori_loop(0, n_chunks, chunk_body, 0)


def cda_forward(x, params):
    """CDA.forward on NCHW input x of shape (B, C, H, W) — one fused Pallas call."""
    b, c, h, w = x.shape
    w_all = jnp.concatenate([params["h_w"], params["w_w"], params["s_w"]])      # (294,)
    bn_all = jnp.concatenate([params["h_bn"], params["w_bn"], params["s_bn"]])  # (12,)
    tc = _chunk_size(c)
    kern = functools.partial(_cda_kernel, nc=c, nh=h, nw=w, tc=tc)
    return pl.pallas_call(
        kern,
        out_shape=jax.ShapeDtypeStruct((b, c, h, w), x.dtype),
        grid=(b,),
        in_specs=[
            pl.BlockSpec(memory_space=pltpu.MemorySpace.SMEM),       # conv weights (scalars)
            pl.BlockSpec(memory_space=pltpu.MemorySpace.SMEM),       # bn params (scalars)
            pl.BlockSpec((None, c, h, w), lambda i: (i, 0, 0, 0)),   # x: batch dim squeezed
        ],
        out_specs=pl.BlockSpec((None, c, h, w), lambda i: (i, 0, 0, 0)),
        scratch_shapes=[
            pltpu.VMEM((2, c + 2 * PAD, w + 2 * PAD), jnp.float32),  # gate 1 padded pools (C,W)
            pltpu.VMEM((2, c + 2 * PAD, h + 2 * PAD), jnp.float32),  # gate 2 padded pools (C,H)
            pltpu.VMEM((2, h + 2 * PAD, w + 2 * PAD), jnp.float32),  # gate 3 padded pools (H,W)
            pltpu.VMEM((c, w), jnp.float32),                         # s1 gate map
            pltpu.VMEM((c, h), jnp.float32),                         # s2^T gate map
            pltpu.VMEM((h, w), jnp.float32),                         # s3/3 gate map
        ],
        compiler_params=pltpu.CompilerParams(
            dimension_semantics=("parallel",),       # batch axis shards across v7x cores
            vmem_limit_bytes=32 * 1024 * 1024,
        ),
    )(w_all, bn_all, x)


# ----------------------------- pure-JAX reference -----------------------------
def _spatial_gate_ref(y, w_flat, bn):
    mx = jnp.max(y, axis=1, keepdims=True)
    mn = jnp.mean(y, axis=1, keepdims=True)
    pooled = jnp.concatenate([mx, mn], axis=1)
    wk = w_flat.reshape(1, 2, KSIZE, KSIZE)
    conv = jax.lax.conv_general_dilated(
        pooled, wk, window_strides=(1, 1), padding=((PAD, PAD), (PAD, PAD)),
        dimension_numbers=("NCHW", "OIHW", "NCHW"))
    xn = (conv - bn[2]) * jax.lax.rsqrt(bn[3] + BN_EPS) * bn[0] + bn[1]
    return y * jax.nn.sigmoid(xn)


def cda_reference(x, params):
    x1 = jnp.transpose(
        _spatial_gate_ref(jnp.transpose(x, (0, 2, 1, 3)), params["h_w"], params["h_bn"]),
        (0, 2, 1, 3))
    x2 = jnp.transpose(
        _spatial_gate_ref(jnp.transpose(x, (0, 3, 2, 1)), params["w_w"], params["w_bn"]),
        (0, 3, 2, 1))
    x3 = _spatial_gate_ref(x, params["s_w"], params["s_bn"])
    return (x1 * x2 + x2 * x3 + x1 * x3) / 3.0


def _make_conv_weight(key):
    # nn.Conv2d(2, 1, 7, bias=False) weight (1, 2, 7, 7) flattened to (98,) as
    # [out0/in0 (max-pool channel) 49 | out0/in1 (mean channel) 49], kh-major.
    w = jax.random.normal(key, (1, 2, KSIZE, KSIZE), jnp.float32) * 0.1
    return w.reshape(-1)


if __name__ == "__main__":
    key = jax.random.PRNGKey(0)
    kx, kgh, kgw, kgs = jax.random.split(key, 4)

    B, C, H, W = 2, 4, 16, 16
    x = jax.random.normal(kx, (B, C, H, W), jnp.float32)

    # BatchNorm2d(1) fresh-module defaults: gamma=1, beta=0, running_mean=0, running_var=1.
    bn_default = jnp.array([1.0, 0.0, 0.0, 1.0], jnp.float32)
    params = {
        "h_w": _make_conv_weight(kgh), "h_bn": bn_default,
        "w_w": _make_conv_weight(kgw), "w_bn": bn_default,
        "s_w": _make_conv_weight(kgs), "s_bn": bn_default,
    }

    out = jax.jit(cda_forward)(x, params)
    jax.block_until_ready(out)
    assert out.shape == (B, C, H, W) and out.dtype == jnp.float32

    ref = cda_reference(x, params)
    err = float(jnp.max(jnp.abs(out - ref)))
    if not err < 2e-4:
        raise AssertionError(f"kernel mismatch vs reference: max abs err = {err}")

    print("KERNEL_OK")
</pallas_src>

<mosaic_0001>
module attributes {stable_mosaic.version = 11 : i64} {
  func.func @_cda_kernel(%arg0: i32, %arg1: memref<294xf32, #tpu.memory_space<smem>>, %arg2: memref<12xf32, #tpu.memory_space<smem>>, %arg3: memref<1x4x16x16xf32, #tpu.memory_space<vmem>>, %arg4: memref<1x4x16x16xf32, #tpu.memory_space<vmem>>, %arg5: memref<2x10x22xf32, #tpu.memory_space<vmem>>, %arg6: memref<2x10x22xf32, #tpu.memory_space<vmem>>, %arg7: memref<2x22x22xf32, #tpu.memory_space<vmem>>, %arg8: memref<4x16xf32, #tpu.memory_space<vmem>>, %arg9: memref<4x16xf32, #tpu.memory_space<vmem>>, %arg10: memref<16x16xf32, #tpu.memory_space<vmem>>) attributes {dimension_semantics = [#tpu.dimension_semantics<parallel>], iteration_bounds = array<i64: 2>, scalar_prefetch = 0 : i64, scratch_operands = 6 : i64, tpu.core_type = #tpu.core_type<tc>, window_params = [{transform_indices = @transform_0, window_bounds = array<i64: 294>}, {transform_indices = @transform_1, window_bounds = array<i64: 12>}, {transform_indices = @transform_2, window_bounds = array<i64: 1, 4, 16, 16>}, {transform_indices = @transform_3, window_bounds = array<i64: 1, 4, 16, 16>}]} {
    %c0 = arith.constant 0 : index
    %c0_0 = arith.constant 0 : index
    %c0_1 = arith.constant 0 : index
    %c0_2 = arith.constant 0 : index
    %0 = vector.load %arg3[%c0, %c0_0, %c0_1, %c0_2] : memref<1x4x16x16xf32, #tpu.memory_space<vmem>>, vector<1x4x16x16xf32>
    %1 = vector.shape_cast %0 : vector<1x4x16x16xf32> to vector<4x16x16xf32>
    %cst = arith.constant dense<0xFF800000> : vector<4x16xf32>
    %2 = vector.multi_reduction <maximumf>, %1, %cst [1] : vector<4x16x16xf32> to vector<4x16xf32>
    %cst_3 = arith.constant dense<0.000000e+00> : vector<4x16xf32>
    %3 = vector.multi_reduction <add>, %1, %cst_3 [1] : vector<4x16x16xf32> to vector<4x16xf32>
    %cst_4 = arith.constant 6.250000e-02 : f32
    %4 = vector.broadcast %cst_4 : f32 to vector<4x16xf32>
    %5 = arith.mulf %3, %4 : vector<4x16xf32>
    %cst_5 = arith.constant dense<0xFF800000> : vector<4x16xf32>
    %6 = vector.multi_reduction <maximumf>, %1, %cst_5 [2] : vector<4x16x16xf32> to vector<4x16xf32>
    %cst_6 = arith.constant dense<0.000000e+00> : vector<4x16xf32>
    %7 = vector.multi_reduction <add>, %1, %cst_6 [2] : vector<4x16x16xf32> to vector<4x16xf32>
    %cst_7 = arith.constant 6.250000e-02 : f32
    %8 = vector.broadcast %cst_7 : f32 to vector<4x16xf32>
    %9 = arith.mulf %7, %8 : vector<4x16xf32>
    %cst_8 = arith.constant dense<0xFF800000> : vector<16x16xf32>
    %10 = vector.multi_reduction <maximumf>, %1, %cst_8 [0] : vector<4x16x16xf32> to vector<16x16xf32>
    %cst_9 = arith.constant dense<0.000000e+00> : vector<16x16xf32>
    %11 = vector.multi_reduction <add>, %1, %cst_9 [0] : vector<4x16x16xf32> to vector<16x16xf32>
    %cst_10 = arith.constant 2.500000e-01 : f32
    %12 = vector.broadcast %cst_10 : f32 to vector<16x16xf32>
    %13 = arith.mulf %11, %12 : vector<16x16xf32>
    %cst_11 = arith.constant 0.000000e+00 : f32
    %14 = vector.broadcast %cst_11 : f32 to vector<2x3x22xf32>
    %c0_12 = arith.constant 0 : index
    %c0_13 = arith.constant 0 : index
    %c0_14 = arith.constant 0 : index
    %15 = vector.load %arg5[%c0_12, %c0_13, %c0_14] : memref<2x10x22xf32, #tpu.memory_space<vmem>>, vector<2x3x22xf32>
    tpu.vector_store %arg5[%c0_12, %c0_13, %c0_14], %14 {strides = array<i32>} : memref<2x10x22xf32, #tpu.memory_space<vmem>>, vector<2x3x22xf32>,
    %c0_15 = arith.constant 0 : index
    %c7 = arith.constant 7 : index
    %c0_16 = arith.constant 0 : index
    %16 = vector.load %arg5[%c0_15, %c7, %c0_16] : memref<2x10x22xf32, #tpu.memory_space<vmem>>, vector<2x3x22xf32>
    tpu.vector_store %arg5[%c0_15, %c7, %c0_16], %14 {strides = array<i32>} : memref<2x10x22xf32, #tpu.memory_space<vmem>>, vector<2x3x22xf32>,
    %cst_17 = arith.constant 0.000000e+00 : f32
    %17 = vector.broadcast %cst_17 : f32 to vector<2x10x3xf32>
    %c0_18 = arith.constant 0 : index
    %c0_19 = arith.constant 0 : index
    %c0_20 = arith.constant 0 : index
    %18 = vector.load %arg5[%c0_18, %c0_19, %c0_20] : memref<2x10x22xf32, #tpu.memory_space<vmem>>, vector<2x10x3xf32>
    tpu.vector_store %arg5[%c0_18, %c0_19, %c0_20], %17 {strides = array<i32>} : memref<2x10x22xf32, #tpu.memory_space<vmem>>, vector<2x10x3xf32>,
    %c0_21 = arith.constant 0 : index
    %c0_22 = arith.constant 0 : index
    %c19 = arith.constant 19 : index
    %19 = vector.load %arg5[%c0_21, %c0_22, %c19] : memref<2x10x22xf32, #tpu.memory_space<vmem>>, vector<2x10x3xf32>
    tpu.vector_store %arg5[%c0_21, %c0_22, %c19], %17 {strides = array<i32>} : memref<2x10x22xf32, #tpu.memory_space<vmem>>, vector<2x10x3xf32>,
    %cst_23 = arith.constant 0.000000e+00 : f32
    %20 = vector.broadcast %cst_23 : f32 to vector<2x3x22xf32>
    %c0_24 = arith.constant 0 : index
    %c0_25 = arith.constant 0 : index
    %c0_26 = arith.constant 0 : index
    %21 = vector.load %arg6[%c0_24, %c0_25, %c0_26] : memref<2x10x22xf32, #tpu.memory_space<vmem>>, vector<2x3x22xf32>
    tpu.vector_store %arg6[%c0_24, %c0_25, %c0_26], %20 {strides = array<i32>} : memref<2x10x22xf32, #tpu.memory_space<vmem>>, vector<2x3x22xf32>,
    %c0_27 = arith.constant 0 : index
    %c7_28 = arith.constant 7 : index
    %c0_29 = arith.constant 0 : index
    %22 = vector.load %arg6[%c0_27, %c7_28, %c0_29] : memref<2x10x22xf32, #tpu.memory_space<vmem>>, vector<2x3x22xf32>
    tpu.vector_store %arg6[%c0_27, %c7_28, %c0_29], %20 {strides = array<i32>} : memref<2x10x22xf32, #tpu.memory_space<vmem>>, vector<2x3x22xf32>,
    %cst_30 = arith.constant 0.000000e+00 : f32
    %23 = vector.broadcast %cst_30 : f32 to vector<2x10x3xf32>
    %c0_31 = arith.constant 0 : index
    %c0_32 = arith.constant 0 : index
    %c0_33 = arith.constant 0 : index
    %24 = vector.load %arg6[%c0_31, %c0_32, %c0_33] : memref<2x10x22xf32, #tpu.memory_space<vmem>>, vector<2x10x3xf32>
    tpu.vector_store %arg6[%c0_31, %c0_32, %c0_33], %23 {strides = array<i32>} : memref<2x10x22xf32, #tpu.memory_space<vmem>>, vector<2x10x3xf32>,
    %c0_34 = arith.constant 0 : index
    %c0_35 = arith.constant 0 : index
    %c19_36 = arith.constant 19 : index
    %25 = vector.load %arg6[%c0_34, %c0_35, %c19_36] : memref<2x10x22xf32, #tpu.memory_space<vmem>>, vector<2x10x3xf32>
    tpu.vector_store %arg6[%c0_34, %c0_35, %c19_36], %23 {strides = array<i32>} : memref<2x10x22xf32, #tpu.memory_space<vmem>>, vector<2x10x3xf32>,
    %cst_37 = arith.constant 0.000000e+00 : f32
    %26 = vector.broadcast %cst_37 : f32 to vector<2x3x22xf32>
    %c0_38 = arith.constant 0 : index
    %c0_39 = arith.constant 0 : index
    %c0_40 = arith.constant 0 : index
    %27 = vector.load %arg7[%c0_38, %c0_39, %c0_40] : memref<2x22x22xf32, #tpu.memory_space<vmem>>, vector<2x3x22xf32>
    tpu.vector_store %arg7[%c0_38, %c0_39, %c0_40], %26 {strides = array<i32>} : memref<2x22x22xf32, #tpu.memory_space<vmem>>, vector<2x3x22xf32>,
    %c0_41 = arith.constant 0 : index
    %c19_42 = arith.constant 19 : index
    %c0_43 = arith.constant 0 : index
    %28 = vector.load %arg7[%c0_41, %c19_42, %c0_43] : memref<2x22x22xf32, #tpu.memory_space<vmem>>, vector<2x3x22xf32>
    tpu.vector_store %arg7[%c0_41, %c19_42, %c0_43], %26 {strides = array<i32>} : memref<2x22x22xf32, #tpu.memory_space<vmem>>, vector<2x3x22xf32>,
    %cst_44 = arith.constant 0.000000e+00 : f32
    %29 = vector.broadcast %cst_44 : f32 to vector<2x22x3xf32>
    %c0_45 = arith.constant 0 : index
    %c0_46 = arith.constant 0 : index
    %c0_47 = arith.constant 0 : index
    %30 = vector.load %arg7[%c0_45, %c0_46, %c0_47] : memref<2x22x22xf32, #tpu.memory_space<vmem>>, vector<2x22x3xf32>
    tpu.vector_store %arg7[%c0_45, %c0_46, %c0_47], %29 {strides = array<i32>} : memref<2x22x22xf32, #tpu.memory_space<vmem>>, vector<2x22x3xf32>,
    %c0_48 = arith.constant 0 : index
    %c0_49 = arith.constant 0 : index
    %c19_50 = arith.constant 19 : index
    %31 = vector.load %arg7[%c0_48, %c0_49, %c19_50] : memref<2x22x22xf32, #tpu.memory_space<vmem>>, vector<2x22x3xf32>
    tpu.vector_store %arg7[%c0_48, %c0_49, %c19_50], %29 {strides = array<i32>} : memref<2x22x22xf32, #tpu.memory_space<vmem>>, vector<2x22x3xf32>,
    %c0_51 = arith.constant 0 : index
    %c3 = arith.constant 3 : index
    %c3_52 = arith.constant 3 : index
    %32 = vector.load %arg5[%c0_51, %c3, %c3_52] : memref<2x10x22xf32, #tpu.memory_space<vmem>>, vector<1x4x16xf32>
    %33 = vector.shape_cast %32 : vector<1x4x16xf32> to vector<4x16xf32>
    %34 = vector.shape_cast %2 : vector<4x16xf32> to vector<1x4x16xf32>
    tpu.vector_store %arg5[%c0_51, %c3, %c3_52], %34 {strides = array<i32>} : memref<2x10x22xf32, #tpu.memory_space<vmem>>, vector<1x4x16xf32>,
    %c1 = arith.constant 1 : index
    %c3_53 = arith.constant 3 : index
    %c3_54 = arith.constant 3 : index
    %35 = vector.load %arg5[%c1, %c3_53, %c3_54] : memref<2x10x22xf32, #tpu.memory_space<vmem>>, vector<1x4x16xf32>
    %36 = vector.shape_cast %35 : vector<1x4x16xf32> to vector<4x16xf32>
    %37 = vector.shape_cast %5 : vector<4x16xf32> to vector<1x4x16xf32>
    tpu.vector_store %arg5[%c1, %c3_53, %c3_54], %37 {strides = array<i32>} : memref<2x10x22xf32, #tpu.memory_space<vmem>>, vector<1x4x16xf32>,
    %c0_55 = arith.constant 0 : index
    %c3_56 = arith.constant 3 : index
    %c3_57 = arith.constant 3 : index
    %38 = vector.load %arg6[%c0_55, %c3_56, %c3_57] : memref<2x10x22xf32, #tpu.memory_space<vmem>>, vector<1x4x16xf32>
    %39 = vector.shape_cast %38 : vector<1x4x16xf32> to vector<4x16xf32>
    %40 = vector.shape_cast %6 : vector<4x16xf32> to vector<1x4x16xf32>
    tpu.vector_store %arg6[%c0_55, %c3_56, %c3_57], %40 {strides = array<i32>} : memref<2x10x22xf32, #tpu.memory_space<vmem>>, vector<1x4x16xf32>,
    %c1_58 = arith.constant 1 : index
    %c3_59 = arith.constant 3 : index
    %c3_60 = arith.constant 3 : index
    %41 = vector.load %arg6[%c1_58, %c3_59, %c3_60] : memref<2x10x22xf32, #tpu.memory_space<vmem>>, vector<1x4x16xf32>
    %42 = vector.shape_cast %41 : vector<1x4x16xf32> to vector<4x16xf32>
    %43 = vector.shape_cast %9 : vector<4x16xf32> to vector<1x4x16xf32>
    tpu.vector_store %arg6[%c1_58, %c3_59, %c3_60], %43 {strides = array<i32>} : memref<2x10x22xf32, #tpu.memory_space<vmem>>, vector<1x4x16xf32>,
    %c0_61 = arith.constant 0 : index
    %c3_62 = arith.constant 3 : index
    %c3_63 = arith.constant 3 : index
    %44 = vector.load %arg7[%c0_61, %c3_62, %c3_63] : memref<2x22x22xf32, #tpu.memory_space<vmem>>, vector<1x16x16xf32>
    %45 = vector.shape_cast %44 : vector<1x16x16xf32> to vector<16x16xf32>
    %46 = vector.shape_cast %10 : vector<16x16xf32> to vector<1x16x16xf32>
    tpu.vector_store %arg7[%c0_61, %c3_62, %c3_63], %46 {strides = array<i32>} : memref<2x22x22xf32, #tpu.memory_space<vmem>>, vector<1x16x16xf32>,
    %c1_64 = arith.constant 1 : index
    %c3_65 = arith.constant 3 : index
    %c3_66 = arith.constant 3 : index
    %47 = vector.load %arg7[%c1_64, %c3_65, %c3_66] : memref<2x22x22xf32, #tpu.memory_space<vmem>>, vector<1x16x16xf32>
    %48 = vector.shape_cast %47 : vector<1x16x16xf32> to vector<16x16xf32>
    %49 = vector.shape_cast %13 : vector<16x16xf32> to vector<1x16x16xf32>
    tpu.vector_store %arg7[%c1_64, %c3_65, %c3_66], %49 {strides = array<i32>} : memref<2x22x22xf32, #tpu.memory_space<vmem>>, vector<1x16x16xf32>,
    %c0_67 = arith.constant 0 : index
    %c0_68 = arith.constant 0 : index
    %c0_69 = arith.constant 0 : index
    %50 = vector.load %arg5[%c0_67, %c0_68, %c0_69] : memref<2x10x22xf32, #tpu.memory_space<vmem>>, vector<1x10x22xf32>
    %51 = vector.shape_cast %50 : vector<1x10x22xf32> to vector<10x22xf32>
    %c1_70 = arith.constant 1 : index
    %c0_71 = arith.constant 0 : index
    %c0_72 = arith.constant 0 : index
    %52 = vector.load %arg5[%c1_70, %c0_71, %c0_72] : memref<2x10x22xf32, #tpu.memory_space<vmem>>, vector<1x10x22xf32>
    %53 = vector.shape_cast %52 : vector<1x10x22xf32> to vector<10x22xf32>
    %cst_73 = arith.constant 0.000000e+00 : f32
    %54 = vector.broadcast %cst_73 : f32 to vector<4x16xf32>
    %cst_74 = arith.constant 0.000000e+00 : f32
    %55 = vector.broadcast %cst_74 : f32 to vector<4x16xf32>
    %cst_75 = arith.constant 0.000000e+00 : f32
    %56 = vector.broadcast %cst_75 : f32 to vector<4x16xf32>
    %cst_76 = arith.constant 0.000000e+00 : f32
    %57 = vector.broadcast %cst_76 : f32 to vector<4x16xf32>
    %58 = vector.extract_strided_slice %51 {offsets = [0, 0], sizes = [10, 16], strides = [1, 1]} : vector<10x22xf32> to vector<10x16xf32>
    %59 = vector.extract_strided_slice %53 {offsets = [0, 0], sizes = [10, 16], strides = [1, 1]} : vector<10x22xf32> to vector<10x16xf32>
    %c0_77 = arith.constant 0 : index
    %60 = memref.load %arg1[%c0_77] : memref<294xf32, #tpu.memory_space<smem>>
    %c49 = arith.constant 49 : index
    %61 = memref.load %arg1[%c49] : memref<294xf32, #tpu.memory_space<smem>>
    %62 = vector.extract_strided_slice %58 {offsets = [0, 0], sizes = [4, 16], strides = [1, 1]} : vector<10x16xf32> to vector<4x16xf32>
    %63 = vector.broadcast %60 : f32 to vector<4x16xf32>
    %64 = arith.mulf %63, %62 : vector<4x16xf32>
    %65 = arith.addf %54, %64 : vector<4x16xf32>
    %66 = vector.extract_strided_slice %59 {offsets = [0, 0], sizes = [4, 16], strides = [1, 1]} : vector<10x16xf32> to vector<4x16xf32>
    %67 = vector.broadcast %61 : f32 to vector<4x16xf32>
    %68 = arith.mulf %67, %66 : vector<4x16xf32>
    %69 = arith.addf %65, %68 : vector<4x16xf32>
    %c7_78 = arith.constant 7 : index
    %70 = memref.load %arg1[%c7_78] : memref<294xf32, #tpu.memory_space<smem>>
    %c56 = arith.constant 56 : index
    %71 = memref.load %arg1[%c56] : memref<294xf32, #tpu.memory_space<smem>>
    %72 = vector.extract_strided_slice %58 {offsets = [1, 0], sizes = [4, 16], strides = [1, 1]} : vector<10x16xf32> to vector<4x16xf32>
    %73 = vector.broadcast %70 : f32 to vector<4x16xf32>
    %74 = arith.mulf %73, %72 : vector<4x16xf32>
    %75 = arith.addf %55, %74 : vector<4x16xf32>
    %76 = vector.extract_strided_slice %59 {offsets = [1, 0], sizes = [4, 16], strides = [1, 1]} : vector<10x16xf32> to vector<4x16xf32>
    %77 = vector.broadcast %71 : f32 to vector<4x16xf32>
    %78 = arith.mulf %77, %76 : vector<4x16xf32>
    %79 = arith.addf %75, %78 : vector<4x16xf32>
    %c14 = arith.constant 14 : index
    %80 = memref.load %arg1[%c14] : memref<294xf32, #tpu.memory_space<smem>>
    %c63 = arith.constant 63 : index
    %81 = memref.load %arg1[%c63] : memref<294xf32, #tpu.memory_space<smem>>
    %82 = vector.extract_strided_slice %58 {offsets = [2, 0], sizes = [4, 16], strides = [1, 1]} : vector<10x16xf32> to vector<4x16xf32>
    %83 = vector.broadcast %80 : f32 to vector<4x16xf32>
    %84 = arith.mulf %83, %82 : vector<4x16xf32>
    %85 = arith.addf %56, %84 : vector<4x16xf32>
    %86 = vector.extract_strided_slice %59 {offsets = [2, 0], sizes = [4, 16], strides = [1, 1]} : vector<10x16xf32> to vector<4x16xf32>
    %87 = vector.broadcast %81 : f32 to vector<4x16xf32>
    %88 = arith.mulf %87, %86 : vector<4x16xf32>
    %89 = arith.addf %85, %88 : vector<4x16xf32>
    %c21 = arith.constant 21 : index
    %90 = memref.load %arg1[%c21] : memref<294xf32, #tpu.memory_space<smem>>
    %c70 = arith.constant 70 : index
    %91 = memref.load %arg1[%c70] : memref<294xf32, #tpu.memory_space<smem>>
    %92 = vector.extract_strided_slice %58 {offsets = [3, 0], sizes = [4, 16], strides = [1, 1]} : vector<10x16xf32> to vector<4x16xf32>
    %93 = vector.broadcast %90 : f32 to vector<4x16xf32>
    %94 = arith.mulf %93, %92 : vector<4x16xf32>
    %95 = arith.addf %57, %94 : vector<4x16xf32>
    %96 = vector.extract_strided_slice %59 {offsets = [3, 0], sizes = [4, 16], strides = [1, 1]} : vector<10x16xf32> to vector<4x16xf32>
    %97 = vector.broadcast %91 : f32 to vector<4x16xf32>
    %98 = arith.mulf %97, %96 : vector<4x16xf32>
    %99 = arith.addf %95, %98 : vector<4x16xf32>
    %c28 = arith.constant 28 : index
    %100 = memref.load %arg1[%c28] : memref<294xf32, #tpu.memory_space<smem>>
    %c77 = arith.constant 77 : index
    %101 = memref.load %arg1[%c77] : memref<294xf32, #tpu.memory_space<smem>>
    %102 = vector.extract_strided_slice %58 {offsets = [4, 0], sizes = [4, 16], strides = [1, 1]} : vector<10x16xf32> to vector<4x16xf32>
    %103 = vector.broadcast %100 : f32 to vector<4x16xf32>
    %104 = arith.mulf %103, %102 : vector<4x16xf32>
    %105 = arith.addf %69, %104 : vector<4x16xf32>
    %106 = vector.extract_strided_slice %59 {offsets = [4, 0], sizes = [4, 16], strides = [1, 1]} : vector<10x16xf32> to vector<4x16xf32>
    %107 = vector.broadcast %101 : f32 to vector<4x16xf32>
    %108 = arith.mulf %107, %106 : vector<4x16xf32>
    %109 = arith.addf %105, %108 : vector<4x16xf32>
    %c35 = arith.constant 35 : index
    %110 = memref.load %arg1[%c35] : memref<294xf32, #tpu.memory_space<smem>>
    %c84 = arith.constant 84 : index
    %111 = memref.load %arg1[%c84] : memref<294xf32, #tpu.memory_space<smem>>
    %112 = vector.extract_strided_slice %58 {offsets = [5, 0], sizes = [4, 16], strides = [1, 1]} : vector<10x16xf32> to vector<4x16xf32>
    %113 = vector.broadcast %110 : f32 to vector<4x16xf32>
    %114 = arith.mulf %113, %112 : vector<4x16xf32>
    %115 = arith.addf %79, %114 : vector<4x16xf32>
    %116 = vector.extract_strided_slice %59 {offsets = [5, 0], sizes = [4, 16], strides = [1, 1]} : vector<10x16xf32> to vector<4x16xf32>
    %117 = vector.broadcast %111 : f32 to vector<4x16xf32>
    %118 = arith.mulf %117, %116 : vector<4x16xf32>
    %119 = arith.addf %115, %118 : vector<4x16xf32>
    %c42 = arith.constant 42 : index
    %120 = memref.load %arg1[%c42] : memref<294xf32, #tpu.memory_space<smem>>
    %c91 = arith.constant 91 : index
    %121 = memref.load %arg1[%c91] : memref<294xf32, #tpu.memory_space<smem>>
    %122 = vector.extract_strided_slice %58 {offsets = [6, 0], sizes = [4, 16], strides = [1, 1]} : vector<10x16xf32> to vector<4x16xf32>
    %123 = vector.broadcast %120 : f32 to vector<4x16xf32>
    %124 = arith.mulf %123, %122 : vector<4x16xf32>
    %125 = arith.addf %89, %124 : vector<4x16xf32>
    %126 = vector.extract_strided_slice %59 {offsets = [6, 0], sizes = [4, 16], strides = [1, 1]} : vector<10x16xf32> to vector<4x16xf32>
    %127 = vector.broadcast %121 : f32 to vector<4x16xf32>
    %128 = arith.mulf %127, %126 : vector<4x16xf32>
    %129 = arith.addf %125, %128 : vector<4x16xf32>
    %130 = vector.extract_strided_slice %51 {offsets = [0, 1], sizes = [10, 16], strides = [1, 1]} : vector<10x22xf32> to vector<10x16xf32>
    %131 = vector.extract_strided_slice %53 {offsets = [0, 1], sizes = [10, 16], strides = [1, 1]} : vector<10x22xf32> to vector<10x16xf32>
    %c1_79 = arith.constant 1 : index
    %132 = memref.load %arg1[%c1_79] : memref<294xf32, #tpu.memory_space<smem>>
    %c50 = arith.constant 50 : index
    %133 = memref.load %arg1[%c50] : memref<294xf32, #tpu.memory_space<smem>>
    %134 = vector.extract_strided_slice %130 {offsets = [0, 0], sizes = [4, 16], strides = [1, 1]} : vector<10x16xf32> to vector<4x16xf32>
    %135 = vector.broadcast %132 : f32 to vector<4x16xf32>
    %136 = arith.mulf %135, %134 : vector<4x16xf32>
    %137 = arith.addf %99, %136 : vector<4x16xf32>
    %138 = vector.extract_strided_slice %131 {offsets = [0, 0], sizes = [4, 16], strides = [1, 1]} : vector<10x16xf32> to vector<4x16xf32>
    %139 = vector.broadcast %133 : f32 to vector<4x16xf32>
    %140 = arith.mulf %139, %138 : vector<4x16xf32>
    %141 = arith.addf %137, %140 : vector<4x16xf32>
    %c8 = arith.constant 8 : index
    %142 = memref.load %arg1[%c8] : memref<294xf32, #tpu.memory_space<smem>>
    %c57 = arith.constant 57 : index
    %143 = memref.load %arg1[%c57] : memref<294xf32, #tpu.memory_space<smem>>
    %144 = vector.extract_strided_slice %130 {offsets = [1, 0], sizes = [4, 16], strides = [1, 1]} : vector<10x16xf32> to vector<4x16xf32>
    %145 = vector.broadcast %142 : f32 to vector<4x16xf32>
    %146 = arith.mulf %145, %144 : vector<4x16xf32>
    %147 = arith.addf %109, %146 : vector<4x16xf32>
    %148 = vector.extract_strided_slice %131 {offsets = [1, 0], sizes = [4, 16], strides = [1, 1]} : vector<10x16xf32> to vector<4x16xf32>
    %149 = vector.broadcast %143 : f32 to vector<4x16xf32>
    %150 = arith.mulf %149, %148 : vector<4x16xf32>
    %151 = arith.addf %147, %150 : vector<4x16xf32>
    %c15 = arith.constant 15 : index
    %152 = memref.load %arg1[%c15] : memref<294xf32, #tpu.memory_space<smem>>
    %c64 = arith.constant 64 : index
    %153 = memref.load %arg1[%c64] : memref<294xf32, #tpu.memory_space<smem>>
    %154 = vector.extract_strided_slice %130 {offsets = [2, 0], sizes = [4, 16], strides = [1, 1]} : vector<10x16xf32> to vector<4x16xf32>
    %155 = vector.broadcast %152 : f32 to vector<4x16xf32>
    %156 = arith.mulf %155, %154 : vector<4x16xf32>
    %157 = arith.addf %119, %156 : vector<4x16xf32>
    %158 = vector.extract_strided_slice %131 {offsets = [2, 0], sizes = [4, 16], strides = [1, 1]} : vector<10x16xf32> to vector<4x16xf32>
    %159 = vector.broadcast %153 : f32 to vector<4x16xf32>
    %160 = arith.mulf %159, %158 : vector<4x16xf32>
    %161 = arith.addf %157, %160 : vector<4x16xf32>
    %c22 = arith.constant 22 : index
    %162 = memref.load %arg1[%c22] : memref<294xf32, #tpu.memory_space<smem>>
    %c71 = arith.constant 71 : index
    %163 = memref.load %arg1[%c71] : memref<294xf32, #tpu.memory_space<smem>>
    %164 = vector.extract_strided_slice %130 {offsets = [3, 0], sizes = [4, 16], strides = [1, 1]} : vector<10x16xf32> to vector<4x16xf32>
    %165 = vector.broadcast %162 : f32 to vector<4x16xf32>
    %166 = arith.mulf %165, %164 : vector<4x16xf32>
    %167 = arith.addf %129, %166 : vector<4x16xf32>
    %168 = vector.extract_strided_slice %131 {offsets = [3, 0], sizes = [4, 16], strides = [1, 1]} : vector<10x16xf32> to vector<4x16xf32>
    %169 = vector.broadcast %163 : f32 to vector<4x16xf32>
    %170 = arith.mulf %169, %168 : vector<4x16xf32>
    %171 = arith.addf %167, %170 : vector<4x16xf32>
    %c29 = arith.constant 29 : index
    %172 = memref.load %arg1[%c29] : memref<294xf32, #tpu.memory_space<smem>>
    %c78 = arith.constant 78 : index
    %173 = memref.load %arg1[%c78] : memref<294xf32, #tpu.memory_space<smem>>
    %174 = vector.extract_strided_slice %130 {offsets = [4, 0], sizes = [4, 16], strides = [1, 1]} : vector<10x16xf32> to vector<4x16xf32>
    %175 = vector.broadcast %172 : f32 to vector<4x16xf32>
    %176 = arith.mulf %175, %174 : vector<4x16xf32>
    %177 = arith.addf %141, %176 : vector<4x16xf32>
    %178 = vector.extract_strided_slice %131 {offsets = [4, 0], sizes = [4, 16], strides = [1, 1]} : vector<10x16xf32> to vector<4x16xf32>
    %179 = vector.broadcast %173 : f32 to vector<4x16xf32>
    %180 = arith.mulf %179, %178 : vector<4x16xf32>
    %181 = arith.addf %177, %180 : vector<4x16xf32>
    %c36 = arith.constant 36 : index
    %182 = memref.load %arg1[%c36] : memref<294xf32, #tpu.memory_space<smem>>
    %c85 = arith.constant 85 : index
    %183 = memref.load %arg1[%c85] : memref<294xf32, #tpu.memory_space<smem>>
    %184 = vector.extract_strided_slice %130 {offsets = [5, 0], sizes = [4, 16], strides = [1, 1]} : vector<10x16xf32> to vector<4x16xf32>
    %185 = vector.broadcast %182 : f32 to vector<4x16xf32>
    %186 = arith.mulf %185, %184 : vector<4x16xf32>
    %187 = arith.addf %151, %186 : vector<4x16xf32>
    %188 = vector.extract_strided_slice %131 {offsets = [5, 0], sizes = [4, 16], strides = [1, 1]} : vector<10x16xf32> to vector<4x16xf32>
    %189 = vector.broadcast %183 : f32 to vector<4x16xf32>
    %190 = arith.mulf %189, %188 : vector<4x16xf32>
    %191 = arith.addf %187, %190 : vector<4x16xf32>
    %c43 = arith.constant 43 : index
    %192 = memref.load %arg1[%c43] : memref<294xf32, #tpu.memory_space<smem>>
    %c92 = arith.constant 92 : index
    %193 = memref.load %arg1[%c92] : memref<294xf32, #tpu.memory_space<smem>>
    %194 = vector.extract_strided_slice %130 {offsets = [6, 0], sizes = [4, 16], strides = [1, 1]} : vector<10x16xf32> to vector<4x16xf32>
    %195 = vector.broadcast %192 : f32 to vector<4x16xf32>
    %196 = arith.mulf %195, %194 : vector<4x16xf32>
    %197 = arith.addf %161, %196 : vector<4x16xf32>
    %198 = vector.extract_strided_slice %131 {offsets = [6, 0], sizes = [4, 16], strides = [1, 1]} : vector<10x16xf32> to vector<4x16xf32>
    %199 = vector.broadcast %193 : f32 to vector<4x16xf32>
    %200 = arith.mulf %199, %198 : vector<4x16xf32>
    %201 = arith.addf %197, %200 : vector<4x16xf32>
    %202 = vector.extract_strided_slice %51 {offsets = [0, 2], sizes = [10, 16], strides = [1, 1]} : vector<10x22xf32> to vector<10x16xf32>
    %203 = vector.extract_strided_slice %53 {offsets = [0, 2], sizes = [10, 16], strides = [1, 1]} : vector<10x22xf32> to vector<10x16xf32>
    %c2 = arith.constant 2 : index
    %204 = memref.load %arg1[%c2] : memref<294xf32, #tpu.memory_space<smem>>
    %c51 = arith.constant 51 : index
    %205 = memref.load %arg1[%c51] : memref<294xf32, #tpu.memory_space<smem>>
    %206 = vector.extract_strided_slice %202 {offsets = [0, 0], sizes = [4, 16], strides = [1, 1]} : vector<10x16xf32> to vector<4x16xf32>
    %207 = vector.broadcast %204 : f32 to vector<4x16xf32>
    %208 = arith.mulf %207, %206 : vector<4x16xf32>
    %209 = arith.addf %171, %208 : vector<4x16xf32>
    %210 = vector.extract_strided_slice %203 {offsets = [0, 0], sizes = [4, 16], strides = [1, 1]} : vector<10x16xf32> to vector<4x16xf32>
    %211 = vector.broadcast %205 : f32 to vector<4x16xf32>
    %212 = arith.mulf %211, %210 : vector<4x16xf32>
    %213 = arith.addf %209, %212 : vector<4x16xf32>
    %c9 = arith.constant 9 : index
    %214 = memref.load %arg1[%c9] : memref<294xf32, #tpu.memory_space<smem>>
    %c58 = arith.constant 58 : index
    %215 = memref.load %arg1[%c58] : memref<294xf32, #tpu.memory_space<smem>>
    %216 = vector.extract_strided_slice %202 {offsets = [1, 0], sizes = [4, 16], strides = [1, 1]} : vector<10x16xf32> to vector<4x16xf32>
    %217 = vector.broadcast %214 : f32 to vector<4x16xf32>
    %218 = arith.mulf %217, %216 : vector<4x16xf32>
    %219 = arith.addf %181, %218 : vector<4x16xf32>
    %220 = vector.extract_strided_slice %203 {offsets = [1, 0], sizes = [4, 16], strides = [1, 1]} : vector<10x16xf32> to vector<4x16xf32>
    %221 = vector.broadcast %215 : f32 to vector<4x16xf32>
    %222 = arith.mulf %221, %220 : vector<4x16xf32>
    %223 = arith.addf %219, %222 : vector<4x16xf32>
    %c16 = arith.constant 16 : index
    %224 = memref.load %arg1[%c16] : memref<294xf32, #tpu.memory_space<smem>>
    %c65 = arith.constant 65 : index
    %225 = memref.load %arg1[%c65] : memref<294xf32, #tpu.memory_space<smem>>
    %226 = vector.extract_strided_slice %202 {offsets = [2, 0], sizes = [4, 16], strides = [1, 1]} : vector<10x16xf32> to vector<4x16xf32>
    %227 = vector.broadcast %224 : f32 to vector<4x16xf32>
    %228 = arith.mulf %227, %226 : vector<4x16xf32>
    %229 = arith.addf %191, %228 : vector<4x16xf32>
    %230 = vector.extract_strided_slice %203 {offsets = [2, 0], sizes = [4, 16], strides = [1, 1]} : vector<10x16xf32> to vector<4x16xf32>
    %231 = vector.broadcast %225 : f32 to vector<4x16xf32>
    %232 = arith.mulf %231, %230 : vector<4x16xf32>
    %233 = arith.addf %229, %232 : vector<4x16xf32>
    %c23 = arith.constant 23 : index
    %234 = memref.load %arg1[%c23] : memref<294xf32, #tpu.memory_space<smem>>
    %c72 = arith.constant 72 : index
    %235 = memref.load %arg1[%c72] : memref<294xf32, #tpu.memory_space<smem>>
    %236 = vector.extract_strided_slice %202 {offsets = [3, 0], sizes = [4, 16], strides = [1, 1]} : vector<10x16xf32> to vector<4x16xf32>
    %237 = vector.broadcast %234 : f32 to vector<4x16xf32>
    %238 = arith.mulf %237, %236 : vector<4x16xf32>
    %239 = arith.addf %201, %238 : vector<4x16xf32>
    %240 = vector.extract_strided_slice %203 {offsets = [3, 0], sizes = [4, 16], strides = [1, 1]} : vector<10x16xf32> to vector<4x16xf32>
    %241 = vector.broadcast %235 : f32 to vector<4x16xf32>
    %242 = arith.mulf %241, %240 : vector<4x16xf32>
    %243 = arith.addf %239, %242 : vector<4x16xf32>
    %c30 = arith.constant 30 : index
    %244 = memref.load %arg1[%c30] : memref<294xf32, #tpu.memory_space<smem>>
    %c79 = arith.constant 79 : index
    %245 = memref.load %arg1[%c79] : memref<294xf32, #tpu.memory_space<smem>>
    %246 = vector.extract_strided_slice %202 {offsets = [4, 0], sizes = [4, 16], strides = [1, 1]} : vector<10x16xf32> to vector<4x16xf32>
    %247 = vector.broadcast %244 : f32 to vector<4x16xf32>
    %248 = arith.mulf %247, %246 : vector<4x16xf32>
    %249 = arith.addf %213, %248 : vector<4x16xf32>
    %250 = vector.extract_strided_slice %203 {offsets = [4, 0], sizes = [4, 16], strides = [1, 1]} : vector<10x16xf32> to vector<4x16xf32>
    %251 = vector.broadcast %245 : f32 to vector<4x16xf32>
    %252 = arith.mulf %251, %250 : vector<4x16xf32>
    %253 = arith.addf %249, %252 : vector<4x16xf32>
    %c37 = arith.constant 37 : index
    %254 = memref.load %arg1[%c37] : memref<294xf32, #tpu.memory_space<smem>>
    %c86 = arith.constant 86 : index
    %255 = memref.load %arg1[%c86] : memref<294xf32, #tpu.memory_space<smem>>
    %256 = vector.extract_strided_slice %202 {offsets = [5, 0], sizes = [4, 16], strides = [1, 1]} : vector<10x16xf32> to vector<4x16xf32>
    %257 = vector.broadcast %254 : f32 to vector<4x16xf32>
    %258 = arith.mulf %257, %256 : vector<4x16xf32>
    %259 = arith.addf %223, %258 : vector<4x16xf32>
    %260 = vector.extract_strided_slice %203 {offsets = [5, 0], sizes = [4, 16], strides = [1, 1]} : vector<10x16xf32> to vector<4x16xf32>
    %261 = vector.broadcast %255 : f32 to vector<4x16xf32>
    %262 = arith.mulf %261, %260 : vector<4x16xf32>
    %263 = arith.addf %259, %262 : vector<4x16xf32>
    %c44 = arith.constant 44 : index
    %264 = memref.load %arg1[%c44] : memref<294xf32, #tpu.memory_space<smem>>
    %c93 = arith.constant 93 : index
    %265 = memref.load %arg1[%c93] : memref<294xf32, #tpu.memory_space<smem>>
    %266 = vector.extract_strided_slice %202 {offsets = [6, 0], sizes = [4, 16], strides = [1, 1]} : vector<10x16xf32> to vector<4x16xf32>
    %267 = vector.broadcast %264 : f32 to vector<4x16xf32>
    %268 = arith.mulf %267, %266 : vector<4x16xf32>
    %269 = arith.addf %233, %268 : vector<4x16xf32>
    %270 = vector.extract_strided_slice %203 {offsets = [6, 0], sizes = [4, 16], strides = [1, 1]} : vector<10x16xf32> to vector<4x16xf32>
    %271 = vector.broadcast %265 : f32 to vector<4x16xf32>
    %272 = arith.mulf %271, %270 : vector<4x16xf32>
    %273 = arith.addf %269, %272 : vector<4x16xf32>
    %274 = vector.extract_strided_slice %51 {offsets = [0, 3], sizes = [10, 16], strides = [1, 1]} : vector<10x22xf32> to vector<10x16xf32>
    %275 = vector.extract_strided_slice %53 {offsets = [0, 3], sizes = [10, 16], strides = [1, 1]} : vector<10x22xf32> to vector<10x16xf32>
    %c3_80 = arith.constant 3 : index
    %276 = memref.load %arg1[%c3_80] : memref<294xf32, #tpu.memory_space<smem>>
    %c52 = arith.constant 52 : index
    %277 = memref.load %arg1[%c52] : memref<294xf32, #tpu.memory_space<smem>>
    %278 = vector.extract_strided_slice %274 {offsets = [0, 0], sizes = [4, 16], strides = [1, 1]} : vector<10x16xf32> to vector<4x16xf32>
    %279 = vector.broadcast %276 : f32 to vector<4x16xf32>
    %280 = arith.mulf %279, %278 : vector<4x16xf32>
    %281 = arith.addf %243, %280 : vector<4x16xf32>
    %282 = vector.extract_strided_slice %275 {offsets = [0, 0], sizes = [4, 16], strides = [1, 1]} : vector<10x16xf32> to vector<4x16xf32>
    %283 = vector.broadcast %277 : f32 to vector<4x16xf32>
    %284 = arith.mulf %283, %282 : vector<4x16xf32>
    %285 = arith.addf %281, %284 : vector<4x16xf32>
    %c10 = arith.constant 10 : index
    %286 = memref.load %arg1[%c10] : memref<294xf32, #tpu.memory_space<smem>>
    %c59 = arith.constant 59 : index
    %287 = memref.load %arg1[%c59] : memref<294xf32, #tpu.memory_space<smem>>
    %288 = vector.extract_strided_slice %274 {offsets = [1, 0], sizes = [4, 16], strides = [1, 1]} : vector<10x16xf32> to vector<4x16xf32>
    %289 = vector.broadcast %286 : f32 to vector<4x16xf32>
    %290 = arith.mulf %289, %288 : vector<4x16xf32>
    %291 = arith.addf %253, %290 : vector<4x16xf32>
    %292 = vector.extract_strided_slice %275 {offsets = [1, 0], sizes = [4, 16], strides = [1, 1]} : vector<10x16xf32> to vector<4x16xf32>
    %293 = vector.broadcast %287 : f32 to vector<4x16xf32>
    %294 = arith.mulf %293, %292 : vector<4x16xf32>
    %295 = arith.addf %291, %294 : vector<4x16xf32>
    %c17 = arith.constant 17 : index
    %296 = memref.load %arg1[%c17] : memref<294xf32, #tpu.memory_space<smem>>
    %c66 = arith.constant 66 : index
    %297 = memref.load %arg1[%c66] : memref<294xf32, #tpu.memory_space<smem>>
    %298 = vector.extract_strided_slice %274 {offsets = [2, 0], sizes = [4, 16], strides = [1, 1]} : vector<10x16xf32> to vector<4x16xf32>
    %299 = vector.broadcast %296 : f32 to vector<4x16xf32>
    %300 = arith.mulf %299, %298 : vector<4x16xf32>
    %301 = arith.addf %263, %300 : vector<4x16xf32>
    %302 = vector.extract_strided_slice %275 {offsets = [2, 0], sizes = [4, 16], strides = [1, 1]} : vector<10x16xf32> to vector<4x16xf32>
    %303 = vector.broadcast %297 : f32 to vector<4x16xf32>
    %304 = arith.mulf %303, %302 : vector<4x16xf32>
    %305 = arith.addf %301, %304 : vector<4x16xf32>
    %c24 = arith.constant 24 : index
    %306 = memref.load %arg1[%c24] : memref<294xf32, #tpu.memory_space<smem>>
    %c73 = arith.constant 73 : index
    %307 = memref.load %arg1[%c73] : memref<294xf32, #tpu.memory_space<smem>>
    %308 = vector.extract_strided_slice %274 {offsets = [3, 0], sizes = [4, 16], strides = [1, 1]} : vector<10x16xf32> to vector<4x16xf32>
    %309 = vector.broadcast %306 : f32 to vector<4x16xf32>
    %310 = arith.mulf %309, %308 : vector<4x16xf32>
    %311 = arith.addf %273, %310 : vector<4x16xf32>
    %312 = vector.extract_strided_slice %275 {offsets = [3, 0], sizes = [4, 16], strides = [1, 1]} : vector<10x16xf32> to vector<4x16xf32>
    %313 = vector.broadcast %307 : f32 to vector<4x16xf32>
    %314 = arith.mulf %313, %312 : vector<4x16xf32>
    %315 = arith.addf %311, %314 : vector<4x16xf32>
    %c31 = arith.constant 31 : index
    %316 = memref.load %arg1[%c31] : memref<294xf32, #tpu.memory_space<smem>>
    %c80 = arith.constant 80 : index
    %317 = memref.load %arg1[%c80] : memref<294xf32, #tpu.memory_space<smem>>
    %318 = vector.extract_strided_slice %274 {offsets = [4, 0], sizes = [4, 16], strides = [1, 1]} : vector<10x16xf32> to vector<4x16xf32>
    %319 = vector.broadcast %316 : f32 to vector<4x16xf32>
    %320 = arith.mulf %319, %318 : vector<4x16xf32>
    %321 = arith.addf %285, %320 : vector<4x16xf32>
    %322 = vector.extract_strided_slice %275 {offsets = [4, 0], sizes = [4, 16], strides = [1, 1]} : vector<10x16xf32> to vector<4x16xf32>
    %323 = vector.broadcast %317 : f32 to vector<4x16xf32>
    %324 = arith.mulf %323, %322 : vector<4x16xf32>
    %325 = arith.addf %321, %324 : vector<4x16xf32>
    %c38 = arith.constant 38 : index
    %326 = memref.load %arg1[%c38] : memref<294xf32, #tpu.memory_space<smem>>
    %c87 = arith.constant 87 : index
    %327 = memref.load %arg1[%c87] : memref<294xf32, #tpu.memory_space<smem>>
    %328 = vector.extract_strided_slice %274 {offsets = [5, 0], sizes = [4, 16], strides = [1, 1]} : vector<10x16xf32> to vector<4x16xf32>
    %329 = vector.broadcast %326 : f32 to vector<4x16xf32>
    %330 = arith.mulf %329, %328 : vector<4x16xf32>
    %331 = arith.addf %295, %330 : vector<4x16xf32>
    %332 = vector.extract_strided_slice %275 {offsets = [5, 0], sizes = [4, 16], strides = [1, 1]} : vector<10x16xf32> to vector<4x16xf32>
    %333 = vector.broadcast %327 : f32 to vector<4x16xf32>
    %334 = arith.mulf %333, %332 : vector<4x16xf32>
    %335 = arith.addf %331, %334 : vector<4x16xf32>
    %c45 = arith.constant 45 : index
    %336 = memref.load %arg1[%c45] : memref<294xf32, #tpu.memory_space<smem>>
    %c94 = arith.constant 94 : index
    %337 = memref.load %arg1[%c94] : memref<294xf32, #tpu.memory_space<smem>>
    %338 = vector.extract_strided_slice %274 {offsets = [6, 0], sizes = [4, 16], strides = [1, 1]} : vector<10x16xf32> to vector<4x16xf32>
    %339 = vector.broadcast %336 : f32 to vector<4x16xf32>
    %340 = arith.mulf %339, %338 : vector<4x16xf32>
    %341 = arith.addf %305, %340 : vector<4x16xf32>
    %342 = vector.extract_strided_slice %275 {offsets = [6, 0], sizes = [4, 16], strides = [1, 1]} : vector<10x16xf32> to vector<4x16xf32>
    %343 = vector.broadcast %337 : f32 to vector<4x16xf32>
    %344 = arith.mulf %343, %342 : vector<4x16xf32>
    %345 = arith.addf %341, %344 : vector<4x16xf32>
    %346 = vector.extract_strided_slice %51 {offsets = [0, 4], sizes = [10, 16], strides = [1, 1]} : vector<10x22xf32> to vector<10x16xf32>
    %347 = vector.extract_strided_slice %53 {offsets = [0, 4], sizes = [10, 16], strides = [1, 1]} : vector<10x22xf32> to vector<10x16xf32>
    %c4 = arith.constant 4 : index
    %348 = memref.load %arg1[%c4] : memref<294xf32, #tpu.memory_space<smem>>
    %c53 = arith.constant 53 : index
    %349 = memref.load %arg1[%c53] : memref<294xf32, #tpu.memory_space<smem>>
    %350 = vector.extract_strided_slice %346 {offsets = [0, 0], sizes = [4, 16], strides = [1, 1]} : vector<10x16xf32> to vector<4x16xf32>
    %351 = vector.broadcast %348 : f32 to vector<4x16xf32>
    %352 = arith.mulf %351, %350 : vector<4x16xf32>
    %353 = arith.addf %315, %352 : vector<4x16xf32>
    %354 = vector.extract_strided_slice %347 {offsets = [0, 0], sizes = [4, 16], strides = [1, 1]} : vector<10x16xf32> to vector<4x16xf32>
    %355 = vector.broadcast %349 : f32 to vector<4x16xf32>
    %356 = arith.mulf %355, %354 : vector<4x16xf32>
    %357 = arith.addf %353, %356 : vector<4x16xf32>
    %c11 = arith.constant 11 : index
    %358 = memref.load %arg1[%c11] : memref<294xf32, #tpu.memory_space<smem>>
    %c60 = arith.constant 60 : index
    %359 = memref.load %arg1[%c60] : memref<294xf32, #tpu.memory_space<smem>>
    %360 = vector.extract_strided_slice %346 {offsets = [1, 0], sizes = [4, 16], strides = [1, 1]} : vector<10x16xf32> to vector<4x16xf32>
    %361 = vector.broadcast %358 : f32 to vector<4x16xf32>
    %362 = arith.mulf %361, %360 : vector<4x16xf32>
    %363 = arith.addf %325, %362 : vector<4x16xf32>
    %364 = vector.extract_strided_slice %347 {offsets = [1, 0], sizes = [4, 16], strides = [1, 1]} : vector<10x16xf32> to vector<4x16xf32>
    %365 = vector.broadcast %359 : f32 to vector<4x16xf32>
    %366 = arith.mulf %365, %364 : vector<4x16xf32>
    %367 = arith.addf %363, %366 : vector<4x16xf32>
    %c18 = arith.constant 18 : index
    %368 = memref.load %arg1[%c18] : memref<294xf32, #tpu.memory_space<smem>>
    %c67 = arith.constant 67 : index
    %369 = memref.load %arg1[%c67] : memref<294xf32, #tpu.memory_space<smem>>
    %370 = vector.extract_strided_slice %346 {offsets = [2, 0], sizes = [4, 16], strides = [1, 1]} : vector<10x16xf32> to vector<4x16xf32>
    %371 = vector.broadcast %368 : f32 to vector<4x16xf32>
    %372 = arith.mulf %371, %370 : vector<4x16xf32>
    %373 = arith.addf %335, %372 : vector<4x16xf32>
    %374 = vector.extract_strided_slice %347 {offsets = [2, 0], sizes = [4, 16], strides = [1, 1]} : vector<10x16xf32> to vector<4x16xf32>
    %375 = vector.broadcast %369 : f32 to vector<4x16xf32>
    %376 = arith.mulf %375, %374 : vector<4x16xf32>
    %377 = arith.addf %373, %376 : vector<4x16xf32>
    %c25 = arith.constant 25 : index
    %378 = memref.load %arg1[%c25] : memref<294xf32, #tpu.memory_space<smem>>
    %c74 = arith.constant 74 : index
    %379 = memref.load %arg1[%c74] : memref<294xf32, #tpu.memory_space<smem>>
    %380 = vector.extract_strided_slice %346 {offsets = [3, 0], sizes = [4, 16], strides = [1, 1]} : vector<10x16xf32> to vector<4x16xf32>
    %381 = vector.broadcast %378 : f32 to vector<4x16xf32>
    %382 = arith.mulf %381, %380 : vector<4x16xf32>
    %383 = arith.addf %345, %382 : vector<4x16xf32>
    %384 = vector.extract_strided_slice %347 {offsets = [3, 0], sizes = [4, 16], strides = [1, 1]} : vector<10x16xf32> to vector<4x16xf32>
    %385 = vector.broadcast %379 : f32 to vector<4x16xf32>
    %386 = arith.mulf %385, %384 : vector<4x16xf32>
    %387 = arith.addf %383, %386 : vector<4x16xf32>
    %c32 = arith.constant 32 : index
    %388 = memref.load %arg1[%c32] : memref<294xf32, #tpu.memory_space<smem>>
    %c81 = arith.constant 81 : index
    %389 = memref.load %arg1[%c81] : memref<294xf32, #tpu.memory_space<smem>>
    %390 = vector.extract_strided_slice %346 {offsets = [4, 0], sizes = [4, 16], strides = [1, 1]} : vector<10x16xf32> to vector<4x16xf32>
    %391 = vector.broadcast %388 : f32 to vector<4x16xf32>
    %392 = arith.mulf %391, %390 : vector<4x16xf32>
    %393 = arith.addf %357, %392 : vector<4x16xf32>
    %394 = vector.extract_strided_slice %347 {offsets = [4, 0], sizes = [4, 16], strides = [1, 1]} : vector<10x16xf32> to vector<4x16xf32>
    %395 = vector.broadcast %389 : f32 to vector<4x16xf32>
    %396 = arith.mulf %395, %394 : vector<4x16xf32>
    %397 = arith.addf %393, %396 : vector<4x16xf32>
    %c39 = arith.constant 39 : index
    %398 = memref.load %arg1[%c39] : memref<294xf32, #tpu.memory_space<smem>>
    %c88 = arith.constant 88 : index
    %399 = memref.load %arg1[%c88] : memref<294xf32, #tpu.memory_space<smem>>
    %400 = vector.extract_strided_slice %346 {offsets = [5, 0], sizes = [4, 16], strides = [1, 1]} : vector<10x16xf32> to vector<4x16xf32>
    %401 = vector.broadcast %398 : f32 to vector<4x16xf32>
    %402 = arith.mulf %401, %400 : vector<4x16xf32>
    %403 = arith.addf %367, %402 : vector<4x16xf32>
    %404 = vector.extract_strided_slice %347 {offsets = [5, 0], sizes = [4, 16], strides = [1, 1]} : vector<10x16xf32> to vector<4x16xf32>
    %405 = vector.broadcast %399 : f32 to vector<4x16xf32>
    %406 = arith.mulf %405, %404 : vector<4x16xf32>
    %407 = arith.addf %403, %406 : vector<4x16xf32>
    %c46 = arith.constant 46 : index
    %408 = memref.load %arg1[%c46] : memref<294xf32, #tpu.memory_space<smem>>
    %c95 = arith.constant 95 : index
    %409 = memref.load %arg1[%c95] : memref<294xf32, #tpu.memory_space<smem>>
    %410 = vector.extract_strided_slice %346 {offsets = [6, 0], sizes = [4, 16], strides = [1, 1]} : vector<10x16xf32> to vector<4x16xf32>
    %411 = vector.broadcast %408 : f32 to vector<4x16xf32>
    %412 = arith.mulf %411, %410 : vector<4x16xf32>
    %413 = arith.addf %377, %412 : vector<4x16xf32>
    %414 = vector.extract_strided_slice %347 {offsets = [6, 0], sizes = [4, 16], strides = [1, 1]} : vector<10x16xf32> to vector<4x16xf32>
    %415 = vector.broadcast %409 : f32 to vector<4x16xf32>
    %416 = arith.mulf %415, %414 : vector<4x16xf32>
    %417 = arith.addf %413, %416 : vector<4x16xf32>
    %418 = vector.extract_strided_slice %51 {offsets = [0, 5], sizes = [10, 16], strides = [1, 1]} : vector<10x22xf32> to vector<10x16xf32>
    %419 = vector.extract_strided_slice %53 {offsets = [0, 5], sizes = [10, 16], strides = [1, 1]} : vector<10x22xf32> to vector<10x16xf32>
    %c5 = arith.constant 5 : index
    %420 = memref.load %arg1[%c5] : memref<294xf32, #tpu.memory_space<smem>>
    %c54 = arith.constant 54 : index
    %421 = memref.load %arg1[%c54] : memref<294xf32, #tpu.memory_space<smem>>
    %422 = vector.extract_strided_slice %418 {offsets = [0, 0], sizes = [4, 16], strides = [1, 1]} : vector<10x16xf32> to vector<4x16xf32>
    %423 = vector.broadcast %420 : f32 to vector<4x16xf32>
    %424 = arith.mulf %423, %422 : vector<4x16xf32>
    %425 = arith.addf %387, %424 : vector<4x16xf32>
    %426 = vector.extract_strided_slice %419 {offsets = [0, 0], sizes = [4, 16], strides = [1, 1]} : vector<10x16xf32> to vector<4x16xf32>
    %427 = vector.broadcast %421 : f32 to vector<4x16xf32>
    %428 = arith.mulf %427, %426 : vector<4x16xf32>
    %429 = arith.addf %425, %428 : vector<4x16xf32>
    %c12 = arith.constant 12 : index
    %430 = memref.load %arg1[%c12] : memref<294xf32, #tpu.memory_space<smem>>
    %c61 = arith.constant 61 : index
    %431 = memref.load %arg1[%c61] : memref<294xf32, #tpu.memory_space<smem>>
    %432 = vector.extract_strided_slice %418 {offsets = [1, 0], sizes = [4, 16], strides = [1, 1]} : vector<10x16xf32> to vector<4x16xf32>
    %433 = vector.broadcast %430 : f32 to vector<4x16xf32>
    %434 = arith.mulf %433, %432 : vector<4x16xf32>
    %435 = arith.addf %397, %434 : vector<4x16xf32>
    %436 = vector.extract_strided_slice %419 {offsets = [1, 0], sizes = [4, 16], strides = [1, 1]} : vector<10x16xf32> to vector<4x16xf32>
    %437 = vector.broadcast %431 : f32 to vector<4x16xf32>
    %438 = arith.mulf %437, %436 : vector<4x16xf32>
    %439 = arith.addf %435, %438 : vector<4x16xf32>
    %c19_81 = arith.constant 19 : index
    %440 = memref.load %arg1[%c19_81] : memref<294xf32, #tpu.memory_space<smem>>
    %c68 = arith.constant 68 : index
    %441 = memref.load %arg1[%c68] : memref<294xf32, #tpu.memory_space<smem>>
    %442 = vector.extract_strided_slice %418 {offsets = [2, 0], sizes = [4, 16], strides = [1, 1]} : vector<10x16xf32> to vector<4x16xf32>
    %443 = vector.broadcast %440 : f32 to vector<4x16xf32>
    %444 = arith.mulf %443, %442 : vector<4x16xf32>
    %445 = arith.addf %407, %444 : vector<4x16xf32>
    %446 = vector.extract_strided_slice %419 {offsets = [2, 0], sizes = [4, 16], strides = [1, 1]} : vector<10x16xf32> to vector<4x16xf32>
    %447 = vector.broadcast %441 : f32 to vector<4x16xf32>
    %448 = arith.mulf %447, %446 : vector<4x16xf32>
    %449 = arith.addf %445, %448 : vector<4x16xf32>
    %c26 = arith.constant 26 : index
    %450 = memref.load %arg1[%c26] : memref<294xf32, #tpu.memory_space<smem>>
    %c75 = arith.constant 75 : index
    %451 = memref.load %arg1[%c75] : memref<294xf32, #tpu.memory_space<smem>>
    %452 = vector.extract_strided_slice %418 {offsets = [3, 0], sizes = [4, 16], strides = [1, 1]} : vector<10x16xf32> to vector<4x16xf32>
    %453 = vector.broadcast %450 : f32 to vector<4x16xf32>
    %454 = arith.mulf %453, %452 : vector<4x16xf32>
    %455 = arith.addf %417, %454 : vector<4x16xf32>
    %456 = vector.extract_strided_slice %419 {offsets = [3, 0], sizes = [4, 16], strides = [1, 1]} : vector<10x16xf32> to vector<4x16xf32>
    %457 = vector.broadcast %451 : f32 to vector<4x16xf32>
    %458 = arith.mulf %457, %456 : vector<4x16xf32>
    %459 = arith.addf %455, %458 : vector<4x16xf32>
    %c33 = arith.constant 33 : index
    %460 = memref.load %arg1[%c33] : memref<294xf32, #tpu.memory_space<smem>>
    %c82 = arith.constant 82 : index
    %461 = memref.load %arg1[%c82] : memref<294xf32, #tpu.memory_space<smem>>
    %462 = vector.extract_strided_slice %418 {offsets = [4, 0], sizes = [4, 16], strides = [1, 1]} : vector<10x16xf32> to vector<4x16xf32>
    %463 = vector.broadcast %460 : f32 to vector<4x16xf32>
    %464 = arith.mulf %463, %462 : vector<4x16xf32>
    %465 = arith.addf %429, %464 : vector<4x16xf32>
    %466 = vector.extract_strided_slice %419 {offsets = [4, 0], sizes = [4, 16], strides = [1, 1]} : vector<10x16xf32> to vector<4x16xf32>
    %467 = vector.broadcast %461 : f32 to vector<4x16xf32>
    %468 = arith.mulf %467, %466 : vector<4x16xf32>
    %469 = arith.addf %465, %468 : vector<4x16xf32>
    %c40 = arith.constant 40 : index
    %470 = memref.load %arg1[%c40] : memref<294xf32, #tpu.memory_space<smem>>
    %c89 = arith.constant 89 : index
    %471 = memref.load %arg1[%c89] : memref<294xf32, #tpu.memory_space<smem>>
    %472 = vector.extract_strided_slice %418 {offsets = [5, 0], sizes = [4, 16], strides = [1, 1]} : vector<10x16xf32> to vector<4x16xf32>
    %473 = vector.broadcast %470 : f32 to vector<4x16xf32>
    %474 = arith.mulf %473, %472 : vector<4x16xf32>
    %475 = arith.addf %439, %474 : vector<4x16xf32>
    %476 = vector.extract_strided_slice %419 {offsets = [5, 0], sizes = [4, 16], strides = [1, 1]} : vector<10x16xf32> to vector<4x16xf32>
    %477 = vector.broadcast %471 : f32 to vector<4x16xf32>
    %478 = arith.mulf %477, %476 : vector<4x16xf32>
    %479 = arith.addf %475, %478 : vector<4x16xf32>
    %c47 = arith.constant 47 : index
    %480 = memref.load %arg1[%c47] : memref<294xf32, #tpu.memory_space<smem>>
    %c96 = arith.constant 96 : index
    %481 = memref.load %arg1[%c96] : memref<294xf32, #tpu.memory_space<smem>>
    %482 = vector.extract_strided_slice %418 {offsets = [6, 0], sizes = [4, 16], strides = [1, 1]} : vector<10x16xf32> to vector<4x16xf32>
    %483 = vector.broadcast %480 : f32 to vector<4x16xf32>
    %484 = arith.mulf %483, %482 : vector<4x16xf32>
    %485 = arith.addf %449, %484 : vector<4x16xf32>
    %486 = vector.extract_strided_slice %419 {offsets = [6, 0], sizes = [4, 16], strides = [1, 1]} : vector<10x16xf32> to vector<4x16xf32>
    %487 = vector.broadcast %481 : f32 to vector<4x16xf32>
    %488 = arith.mulf %487, %486 : vector<4x16xf32>
    %489 = arith.addf %485, %488 : vector<4x16xf32>
    %490 = vector.extract_strided_slice %51 {offsets = [0, 6], sizes = [10, 16], strides = [1, 1]} : vector<10x22xf32> to vector<10x16xf32>
    %491 = vector.extract_strided_slice %53 {offsets = [0, 6], sizes = [10, 16], strides = [1, 1]} : vector<10x22xf32> to vector<10x16xf32>
    %c6 = arith.constant 6 : index
    %492 = memref.load %arg1[%c6] : memref<294xf32, #tpu.memory_space<smem>>
    %c55 = arith.constant 55 : index
    %493 = memref.load %arg1[%c55] : memref<294xf32, #tpu.memory_space<smem>>
    %494 = vector.extract_strided_slice %490 {offsets = [0, 0], sizes = [4, 16], strides = [1, 1]} : vector<10x16xf32> to vector<4x16xf32>
    %495 = vector.broadcast %492 : f32 to vector<4x16xf32>
    %496 = arith.mulf %495, %494 : vector<4x16xf32>
    %497 = arith.addf %459, %496 : vector<4x16xf32>
    %498 = vector.extract_strided_slice %491 {offsets = [0, 0], sizes = [4, 16], strides = [1, 1]} : vector<10x16xf32> to vector<4x16xf32>
    %499 = vector.broadcast %493 : f32 to vector<4x16xf32>
    %500 = arith.mulf %499, %498 : vector<4x16xf32>
    %501 = arith.addf %497, %500 : vector<4x16xf32>
    %c13 = arith.constant 13 : index
    %502 = memref.load %arg1[%c13] : memref<294xf32, #tpu.memory_space<smem>>
    %c62 = arith.constant 62 : index
    %503 = memref.load %arg1[%c62] : memref<294xf32, #tpu.memory_space<smem>>
    %504 = vector.extract_strided_slice %490 {offsets = [1, 0], sizes = [4, 16], strides = [1, 1]} : vector<10x16xf32> to vector<4x16xf32>
    %505 = vector.broadcast %502 : f32 to vector<4x16xf32>
    %506 = arith.mulf %505, %504 : vector<4x16xf32>
    %507 = arith.addf %469, %506 : vector<4x16xf32>
    %508 = vector.extract_strided_slice %491 {offsets = [1, 0], sizes = [4, 16], strides = [1, 1]} : vector<10x16xf32> to vector<4x16xf32>
    %509 = vector.broadcast %503 : f32 to vector<4x16xf32>
    %510 = arith.mulf %509, %508 : vector<4x16xf32>
    %511 = arith.addf %507, %510 : vector<4x16xf32>
    %c20 = arith.constant 20 : index
    %512 = memref.load %arg1[%c20] : memref<294xf32, #tpu.memory_space<smem>>
    %c69 = arith.constant 69 : index
    %513 = memref.load %arg1[%c69] : memref<294xf32, #tpu.memory_space<smem>>
    %514 = vector.extract_strided_slice %490 {offsets = [2, 0], sizes = [4, 16], strides = [1, 1]} : vector<10x16xf32> to vector<4x16xf32>
    %515 = vector.broadcast %512 : f32 to vector<4x16xf32>
    %516 = arith.mulf %515, %514 : vector<4x16xf32>
    %517 = arith.addf %479, %516 : vector<4x16xf32>
    %518 = vector.extract_strided_slice %491 {offsets = [2, 0], sizes = [4, 16], strides = [1, 1]} : vector<10x16xf32> to vector<4x16xf32>
    %519 = vector.broadcast %513 : f32 to vector<4x16xf32>
    %520 = arith.mulf %519, %518 : vector<4x16xf32>
    %521 = arith.addf %517, %520 : vector<4x16xf32>
    %c27 = arith.constant 27 : index
    %522 = memref.load %arg1[%c27] : memref<294xf32, #tpu.memory_space<smem>>
    %c76 = arith.constant 76 : index
    %523 = memref.load %arg1[%c76] : memref<294xf32, #tpu.memory_space<smem>>
    %524 = vector.extract_strided_slice %490 {offsets = [3, 0], sizes = [4, 16], strides = [1, 1]} : vector<10x16xf32> to vector<4x16xf32>
    %525 = vector.broadcast %522 : f32 to vector<4x16xf32>
    %526 = arith.mulf %525, %524 : vector<4x16xf32>
    %527 = arith.addf %489, %526 : vector<4x16xf32>
    %528 = vector.extract_strided_slice %491 {offsets = [3, 0], sizes = [4, 16], strides = [1, 1]} : vector<10x16xf32> to vector<4x16xf32>
    %529 = vector.broadcast %523 : f32 to vector<4x16xf32>
    %530 = arith.mulf %529, %528 : vector<4x16xf32>
    %531 = arith.addf %527, %530 : vector<4x16xf32>
    %c34 = arith.constant 34 : index
    %532 = memref.load %arg1[%c34] : memref<294xf32, #tpu.memory_space<smem>>
    %c83 = arith.constant 83 : index
    %533 = memref.load %arg1[%c83] : memref<294xf32, #tpu.memory_space<smem>>
    %534 = vector.extract_strided_slice %490 {offsets = [4, 0], sizes = [4, 16], strides = [1, 1]} : vector<10x16xf32> to vector<4x16xf32>
    %535 = vector.broadcast %532 : f32 to vector<4x16xf32>
    %536 = arith.mulf %535, %534 : vector<4x16xf32>
    %537 = arith.addf %501, %536 : vector<4x16xf32>
    %538 = vector.extract_strided_slice %491 {offsets = [4, 0], sizes = [4, 16], strides = [1, 1]} : vector<10x16xf32> to vector<4x16xf32>
    %539 = vector.broadcast %533 : f32 to vector<4x16xf32>
    %540 = arith.mulf %539, %538 : vector<4x16xf32>
    %541 = arith.addf %537, %540 : vector<4x16xf32>
    %c41 = arith.constant 41 : index
    %542 = memref.load %arg1[%c41] : memref<294xf32, #tpu.memory_space<smem>>
    %c90 = arith.constant 90 : index
    %543 = memref.load %arg1[%c90] : memref<294xf32, #tpu.memory_space<smem>>
    %544 = vector.extract_strided_slice %490 {offsets = [5, 0], sizes = [4, 16], strides = [1, 1]} : vector<10x16xf32> to vector<4x16xf32>
    %545 = vector.broadcast %542 : f32 to vector<4x16xf32>
    %546 = arith.mulf %545, %544 : vector<4x16xf32>
    %547 = arith.addf %511, %546 : vector<4x16xf32>
    %548 = vector.extract_strided_slice %491 {offsets = [5, 0], sizes = [4, 16], strides = [1, 1]} : vector<10x16xf32> to vector<4x16xf32>
    %549 = vector.broadcast %543 : f32 to vector<4x16xf32>
    %550 = arith.mulf %549, %548 : vector<4x16xf32>
    %551 = arith.addf %547, %550 : vector<4x16xf32>
    %c48 = arith.constant 48 : index
    %552 = memref.load %arg1[%c48] : memref<294xf32, #tpu.memory_space<smem>>
    %c97 = arith.constant 97 : index
    %553 = memref.load %arg1[%c97] : memref<294xf32, #tpu.memory_space<smem>>
    %554 = vector.extract_strided_slice %490 {offsets = [6, 0], sizes = [4, 16], strides = [1, 1]} : vector<10x16xf32> to vector<4x16xf32>
    %555 = vector.broadcast %552 : f32 to vector<4x16xf32>
    %556 = arith.mulf %555, %554 : vector<4x16xf32>
    %557 = arith.addf %521, %556 : vector<4x16xf32>
    %558 = vector.extract_strided_slice %491 {offsets = [6, 0], sizes = [4, 16], strides = [1, 1]} : vector<10x16xf32> to vector<4x16xf32>
    %559 = vector.broadcast %553 : f32 to vector<4x16xf32>
    %560 = arith.mulf %559, %558 : vector<4x16xf32>
    %561 = arith.addf %557, %560 : vector<4x16xf32>
    %562 = arith.addf %561, %531 : vector<4x16xf32>
    %563 = arith.addf %562, %541 : vector<4x16xf32>
    %564 = arith.addf %563, %551 : vector<4x16xf32>
    %c0_82 = arith.constant 0 : index
    %565 = memref.load %arg2[%c0_82] : memref<12xf32, #tpu.memory_space<smem>>
    %c1_83 = arith.constant 1 : index
    %566 = memref.load %arg2[%c1_83] : memref<12xf32, #tpu.memory_space<smem>>
    %c2_84 = arith.constant 2 : index
    %567 = memref.load %arg2[%c2_84] : memref<12xf32, #tpu.memory_space<smem>>
    %c3_85 = arith.constant 3 : index
    %568 = memref.load %arg2[%c3_85] : memref<12xf32, #tpu.memory_space<smem>>
    %569 = vector.broadcast %567 : f32 to vector<4x16xf32>
    %570 = arith.subf %564, %569 : vector<4x16xf32>
    %cst_86 = arith.constant 9.99999974E-6 : f32
    %571 = arith.addf %568, %cst_86 : f32
    %572 = math.rsqrt %571 : f32
    %573 = vector.broadcast %572 : f32 to vector<4x16xf32>
    %574 = arith.mulf %570, %573 : vector<4x16xf32>
    %575 = vector.broadcast %565 : f32 to vector<4x16xf32>
    %576 = arith.mulf %574, %575 : vector<4x16xf32>
    %577 = vector.broadcast %566 : f32 to vector<4x16xf32>
    %578 = arith.addf %576, %577 : vector<4x16xf32>
    %579 = arith.negf %578 : vector<4x16xf32>
    %580 = math.exp %579 : vector<4x16xf32>
    %cst_87 = arith.constant 1.000000e+00 : f32
    %581 = vector.broadcast %cst_87 : f32 to vector<4x16xf32>
    %582 = arith.addf %581, %580 : vector<4x16xf32>
    %583 = arith.divf %581, %582 : vector<4x16xf32>
    %c0_88 = arith.constant 0 : index
    %c0_89 = arith.constant 0 : index
    %584 = vector.load %arg8[%c0_88, %c0_89] : memref<4x16xf32, #tpu.memory_space<vmem>>, vector<4x16xf32>
    tpu.vector_store %arg8[%c0_88, %c0_89], %583 {strides = array<i32>} : memref<4x16xf32, #tpu.memory_space<vmem>>, vector<4x16xf32>,
    %c0_90 = arith.constant 0 : index
    %c0_91 = arith.constant 0 : index
    %c0_92 = arith.constant 0 : index
    %585 = vector.load %arg6[%c0_90, %c0_91, %c0_92] : memref<2x10x22xf32, #tpu.memory_space<vmem>>, vector<1x10x22xf32>
    %586 = vector.shape_cast %585 : vector<1x10x22xf32> to vector<10x22xf32>
    %c1_93 = arith.constant 1 : index
    %c0_94 = arith.constant 0 : index
    %c0_95 = arith.constant 0 : index
    %587 = vector.load %arg6[%c1_93, %c0_94, %c0_95] : memref<2x10x22xf32, #tpu.memory_space<vmem>>, vector<1x10x22xf32>
    %588 = vector.shape_cast %587 : vector<1x10x22xf32> to vector<10x22xf32>
    %cst_96 = arith.constant 0.000000e+00 : f32
    %589 = vector.broadcast %cst_96 : f32 to vector<4x16xf32>
    %cst_97 = arith.constant 0.000000e+00 : f32
    %590 = vector.broadcast %cst_97 : f32 to vector<4x16xf32>
    %cst_98 = arith.constant 0.000000e+00 : f32
    %591 = vector.broadcast %cst_98 : f32 to vector<4x16xf32>
    %cst_99 = arith.constant 0.000000e+00 : f32
    %592 = vector.broadcast %cst_99 : f32 to vector<4x16xf32>
    %593 = vector.extract_strided_slice %586 {offsets = [0, 0], sizes = [10, 16], strides = [1, 1]} : vector<10x22xf32> to vector<10x16xf32>
    %594 = vector.extract_strided_slice %588 {offsets = [0, 0], sizes = [10, 16], strides = [1, 1]} : vector<10x22xf32> to vector<10x16xf32>
    %c98 = arith.constant 98 : index
    %595 = memref.load %arg1[%c98] : memref<294xf32, #tpu.memory_space<smem>>
    %c147 = arith.constant 147 : index
    %596 = memref.load %arg1[%c147] : memref<294xf32, #tpu.memory_space<smem>>
    %597 = vector.extract_strided_slice %593 {offsets = [0, 0], sizes = [4, 16], strides = [1, 1]} : vector<10x16xf32> to vector<4x16xf32>
    %598 = vector.broadcast %595 : f32 to vector<4x16xf32>
    %599 = arith.mulf %598, %597 : vector<4x16xf32>
    %600 = arith.addf %589, %599 : vector<4x16xf32>
    %601 = vector.extract_strided_slice %594 {offsets = [0, 0], sizes = [4, 16], strides = [1, 1]} : vector<10x16xf32> to vector<4x16xf32>
    %602 = vector.broadcast %596 : f32 to vector<4x16xf32>
    %603 = arith.mulf %602, %601 : vector<4x16xf32>
    %604 = arith.addf %600, %603 : vector<4x16xf32>
    %c99 = arith.constant 99 : index
    %605 = memref.load %arg1[%c99] : memref<294xf32, #tpu.memory_space<smem>>
    %c148 = arith.constant 148 : index
    %606 = memref.load %arg1[%c148] : memref<294xf32, #tpu.memory_space<smem>>
    %607 = vector.extract_strided_slice %593 {offsets = [1, 0], sizes = [4, 16], strides = [1, 1]} : vector<10x16xf32> to vector<4x16xf32>
    %608 = vector.broadcast %605 : f32 to vector<4x16xf32>
    %609 = arith.mulf %608, %607 : vector<4x16xf32>
    %610 = arith.addf %590, %609 : vector<4x16xf32>
    %611 = vector.extract_strided_slice %594 {offsets = [1, 0], sizes = [4, 16], strides = [1, 1]} : vector<10x16xf32> to vector<4x16xf32>
    %612 = vector.broadcast %606 : f32 to vector<4x16xf32>
    %613 = arith.mulf %612, %611 : vector<4x16xf32>
    %614 = arith.addf %610, %613 : vector<4x16xf32>
    %c100 = arith.constant 100 : index
    %615 = memref.load %arg1[%c100] : memref<294xf32, #tpu.memory_space<smem>>
    %c149 = arith.constant 149 : index
    %616 = memref.load %arg1[%c149] : memref<294xf32, #tpu.memory_space<smem>>
    %617 = vector.extract_strided_slice %593 {offsets = [2, 0], sizes = [4, 16], strides = [1, 1]} : vector<10x16xf32> to vector<4x16xf32>
    %618 = vector.broadcast %615 : f32 to vector<4x16xf32>
    %619 = arith.mulf %618, %617 : vector<4x16xf32>
    %620 = arith.addf %591, %619 : vector<4x16xf32>
    %621 = vector.extract_strided_slice %594 {offsets = [2, 0], sizes = [4, 16], strides = [1, 1]} : vector<10x16xf32> to vector<4x16xf32>
    %622 = vector.broadcast %616 : f32 to vector<4x16xf32>
    %623 = arith.mulf %622, %621 : vector<4x16xf32>
    %624 = arith.addf %620, %623 : vector<4x16xf32>
    %c101 = arith.constant 101 : index
    %625 = memref.load %arg1[%c101] : memref<294xf32, #tpu.memory_space<smem>>
    %c150 = arith.constant 150 : index
    %626 = memref.load %arg1[%c150] : memref<294xf32, #tpu.memory_space<smem>>
    %627 = vector.extract_strided_slice %593 {offsets = [3, 0], sizes = [4, 16], strides = [1, 1]} : vector<10x16xf32> to vector<4x16xf32>
    %628 = vector.broadcast %625 : f32 to vector<4x16xf32>
    %629 = arith.mulf %628, %627 : vector<4x16xf32>
    %630 = arith.addf %592, %629 : vector<4x16xf32>
    %631 = vector.extract_strided_slice %594 {offsets = [3, 0], sizes = [4, 16], strides = [1, 1]} : vector<10x16xf32> to vector<4x16xf32>
    %632 = vector.broadcast %626 : f32 to vector<4x16xf32>
    %633 = arith.mulf %632, %631 : vector<4x16xf32>
    %634 = arith.addf %630, %633 : vector<4x16xf32>
    %c102 = arith.constant 102 : index
    %635 = memref.load %arg1[%c102] : memref<294xf32, #tpu.memory_space<smem>>
    %c151 = arith.constant 151 : index
    %636 = memref.load %arg1[%c151] : memref<294xf32, #tpu.memory_space<smem>>
    %637 = vector.extract_strided_slice %593 {offsets = [4, 0], sizes = [4, 16], strides = [1, 1]} : vector<10x16xf32> to vector<4x16xf32>
    %638 = vector.broadcast %635 : f32 to vector<4x16xf32>
    %639 = arith.mulf %638, %637 : vector<4x16xf32>
    %640 = arith.addf %604, %639 : vector<4x16xf32>
    %641 = vector.extract_strided_slice %594 {offsets = [4, 0], sizes = [4, 16], strides = [1, 1]} : vector<10x16xf32> to vector<4x16xf32>
    %642 = vector.broadcast %636 : f32 to vector<4x16xf32>
    %643 = arith.mulf %642, %641 : vector<4x16xf32>
    %644 = arith.addf %640, %643 : vector<4x16xf32>
    %c103 = arith.constant 103 : index
    %645 = memref.load %arg1[%c103] : memref<294xf32, #tpu.memory_space<smem>>
    %c152 = arith.constant 152 : index
    %646 = memref.load %arg1[%c152] : memref<294xf32, #tpu.memory_space<smem>>
    %647 = vector.extract_strided_slice %593 {offsets = [5, 0], sizes = [4, 16], strides = [1, 1]} : vector<10x16xf32> to vector<4x16xf32>
    %648 = vector.broadcast %645 : f32 to vector<4x16xf32>
    %649 = arith.mulf %648, %647 : vector<4x16xf32>
    %650 = arith.addf %614, %649 : vector<4x16xf32>
    %651 = vector.extract_strided_slice %594 {offsets = [5, 0], sizes = [4, 16], strides = [1, 1]} : vector<10x16xf32> to vector<4x16xf32>
    %652 = vector.broadcast %646 : f32 to vector<4x16xf32>
    %653 = arith.mulf %652, %651 : vector<4x16xf32>
    %654 = arith.addf %650, %653 : vector<4x16xf32>
    %c104 = arith.constant 104 : index
    %655 = memref.load %arg1[%c104] : memref<294xf32, #tpu.memory_space<smem>>
    %c153 = arith.constant 153 : index
    %656 = memref.load %arg1[%c153] : memref<294xf32, #tpu.memory_space<smem>>
    %657 = vector.extract_strided_slice %593 {offsets = [6, 0], sizes = [4, 16], strides = [1, 1]} : vector<10x16xf32> to vector<4x16xf32>
    %658 = vector.broadcast %655 : f32 to vector<4x16xf32>
    %659 = arith.mulf %658, %657 : vector<4x16xf32>
    %660 = arith.addf %624, %659 : vector<4x16xf32>
    %661 = vector.extract_strided_slice %594 {offsets = [6, 0], sizes = [4, 16], strides = [1, 1]} : vector<10x16xf32> to vector<4x16xf32>
    %662 = vector.broadcast %656 : f32 to vector<4x16xf32>
    %663 = arith.mulf %662, %661 : vector<4x16xf32>
    %664 = arith.addf %660, %663 : vector<4x16xf32>
    %665 = vector.extract_strided_slice %586 {offsets = [0, 1], sizes = [10, 16], strides = [1, 1]} : vector<10x22xf32> to vector<10x16xf32>
    %666 = vector.extract_strided_slice %588 {offsets = [0, 1], sizes = [10, 16], strides = [1, 1]} : vector<10x22xf32> to vector<10x16xf32>
    %c105 = arith.constant 105 : index
    %667 = memref.load %arg1[%c105] : memref<294xf32, #tpu.memory_space<smem>>
    %c154 = arith.constant 154 : index
    %668 = memref.load %arg1[%c154] : memref<294xf32, #tpu.memory_space<smem>>
    %669 = vector.extract_strided_slice %665 {offsets = [0, 0], sizes = [4, 16], strides = [1, 1]} : vector<10x16xf32> to vector<4x16xf32>
    %670 = vector.broadcast %667 : f32 to vector<4x16xf32>
    %671 = arith.mulf %670, %669 : vector<4x16xf32>
    %672 = arith.addf %634, %671 : vector<4x16xf32>
    %673 = vector.extract_strided_slice %666 {offsets = [0, 0], sizes = [4, 16], strides = [1, 1]} : vector<10x16xf32> to vector<4x16xf32>
    %674 = vector.broadcast %668 : f32 to vector<4x16xf32>
    %675 = arith.mulf %674, %673 : vector<4x16xf32>
    %676 = arith.addf %672, %675 : vector<4x16xf32>
    %c106 = arith.constant 106 : index
    %677 = memref.load %arg1[%c106] : memref<294xf32, #tpu.memory_space<smem>>
    %c155 = arith.constant 155 : index
    %678 = memref.load %arg1[%c155] : memref<294xf32, #tpu.memory_space<smem>>
    %679 = vector.extract_strided_slice %665 {offsets = [1, 0], sizes = [4, 16], strides = [1, 1]} : vector<10x16xf32> to vector<4x16xf32>
    %680 = vector.broadcast %677 : f32 to vector<4x16xf32>
    %681 = arith.mulf %680, %679 : vector<4x16xf32>
    %682 = arith.addf %644, %681 : vector<4x16xf32>
    %683 = vector.extract_strided_slice %666 {offsets = [1, 0], sizes = [4, 16], strides = [1, 1]} : vector<10x16xf32> to vector<4x16xf32>
    %684 = vector.broadcast %678 : f32 to vector<4x16xf32>
    %685 = arith.mulf %684, %683 : vector<4x16xf32>
    %686 = arith.addf %682, %685 : vector<4x16xf32>
    %c107 = arith.constant 107 : index
    %687 = memref.load %arg1[%c107] : memref<294xf32, #tpu.memory_space<smem>>
    %c156 = arith.constant 156 : index
    %688 = memref.load %arg1[%c156] : memref<294xf32, #tpu.memory_space<smem>>
    %689 = vector.extract_strided_slice %665 {offsets = [2, 0], sizes = [4, 16], strides = [1, 1]} : vector<10x16xf32> to vector<4x16xf32>
    %690 = vector.broadcast %687 : f32 to vector<4x16xf32>
    %691 = arith.mulf %690, %689 : vector<4x16xf32>
    %692 = arith.addf %654, %691 : vector<4x16xf32>
    %693 = vector.extract_strided_slice %666 {offsets = [2, 0], sizes = [4, 16], strides = [1, 1]} : vector<10x16xf32> to vector<4x16xf32>
    %694 = vector.broadcast %688 : f32 to vector<4x16xf32>
    %695 = arith.mulf %694, %693 : vector<4x16xf32>
    %696 = arith.addf %692, %695 : vector<4x16xf32>
    %c108 = arith.constant 108 : index
    %697 = memref.load %arg1[%c108] : memref<294xf32, #tpu.memory_space<smem>>
    %c157 = arith.constant 157 : index
    %698 = memref.load %arg1[%c157] : memref<294xf32, #tpu.memory_space<smem>>
    %699 = vector.extract_strided_slice %665 {offsets = [3, 0], sizes = [4, 16], strides = [1, 1]} : vector<10x16xf32> to vector<4x16xf32>
    %700 = vector.broadcast %697 : f32 to vector<4x16xf32>
    %701 = arith.mulf %700, %699 : vector<4x16xf32>
    %702 = arith.addf %664, %701 : vector<4x16xf32>
    %703 = vector.extract_strided_slice %666 {offsets = [3, 0], sizes = [4, 16], strides = [1, 1]} : vector<10x16xf32> to vector<4x16xf32>
    %704 = vector.broadcast %698 : f32 to vector<4x16xf32>
    %705 = arith.mulf %704, %703 : vector<4x16xf32>
    %706 = arith.addf %702, %705 : vector<4x16xf32>
    %c109 = arith.constant 109 : index
    %707 = memref.load %arg1[%c109] : memref<294xf32, #tpu.memory_space<smem>>
    %c158 = arith.constant 158 : index
    %708 = memref.load %arg1[%c158] : memref<294xf32, #tpu.memory_space<smem>>
    %709 = vector.extract_strided_slice %665 {offsets = [4, 0], sizes = [4, 16], strides = [1, 1]} : vector<10x16xf32> to vector<4x16xf32>
    %710 = vector.broadcast %707 : f32 to vector<4x16xf32>
    %711 = arith.mulf %710, %709 : vector<4x16xf32>
    %712 = arith.addf %676, %711 : vector<4x16xf32>
    %713 = vector.extract_strided_slice %666 {offsets = [4, 0], sizes = [4, 16], strides = [1, 1]} : vector<10x16xf32> to vector<4x16xf32>
    %714 = vector.broadcast %708 : f32 to vector<4x16xf32>
    %715 = arith.mulf %714, %713 : vector<4x16xf32>
    %716 = arith.addf %712, %715 : vector<4x16xf32>
    %c110 = arith.constant 110 : index
    %717 = memref.load %arg1[%c110] : memref<294xf32, #tpu.memory_space<smem>>
    %c159 = arith.constant 159 : index
    %718 = memref.load %arg1[%c159] : memref<294xf32, #tpu.memory_space<smem>>
    %719 = vector.extract_strided_slice %665 {offsets = [5, 0], sizes = [4, 16], strides = [1, 1]} : vector<10x16xf32> to vector<4x16xf32>
    %720 = vector.broadcast %717 : f32 to vector<4x16xf32>
    %721 = arith.mulf %720, %719 : vector<4x16xf32>
    %722 = arith.addf %686, %721 : vector<4x16xf32>
    %723 = vector.extract_strided_slice %666 {offsets = [5, 0], sizes = [4, 16], strides = [1, 1]} : vector<10x16xf32> to vector<4x16xf32>
    %724 = vector.broadcast %718 : f32 to vector<4x16xf32>
    %725 = arith.mulf %724, %723 : vector<4x16xf32>
    %726 = arith.addf %722, %725 : vector<4x16xf32>
    %c111 = arith.constant 111 : index
    %727 = memref.load %arg1[%c111] : memref<294xf32, #tpu.memory_space<smem>>
    %c160 = arith.constant 160 : index
    %728 = memref.load %arg1[%c160] : memref<294xf32, #tpu.memory_space<smem>>
    %729 = vector.extract_strided_slice %665 {offsets = [6, 0], sizes = [4, 16], strides = [1, 1]} : vector<10x16xf32> to vector<4x16xf32>
    %730 = vector.broadcast %727 : f32 to vector<4x16xf32>
    %731 = arith.mulf %730, %729 : vector<4x16xf32>
    %732 = arith.addf %696, %731 : vector<4x16xf32>
    %733 = vector.extract_strided_slice %666 {offsets = [6, 0], sizes = [4, 16], strides = [1, 1]} : vector<10x16xf32> to vector<4x16xf32>
    %734 = vector.broadcast %728 : f32 to vector<4x16xf32>
    %735 = arith.mulf %734, %733 : vector<4x16xf32>
    %736 = arith.addf %732, %735 : vector<4x16xf32>
    %737 = vector.extract_strided_slice %586 {offsets = [0, 2], sizes = [10, 16], strides = [1, 1]} : vector<10x22xf32> to vector<10x16xf32>
    %738 = vector.extract_strided_slice %588 {offsets = [0, 2], sizes = [10, 16], strides = [1, 1]} : vector<10x22xf32> to vector<10x16xf32>
    %c112 = arith.constant 112 : index
    %739 = memref.load %arg1[%c112] : memref<294xf32, #tpu.memory_space<smem>>
    %c161 = arith.constant 161 : index
    %740 = memref.load %arg1[%c161] : memref<294xf32, #tpu.memory_space<smem>>
    %741 = vector.extract_strided_slice %737 {offsets = [0, 0], sizes = [4, 16], strides = [1, 1]} : vector<10x16xf32> to vector<4x16xf32>
    %742 = vector.broadcast %739 : f32 to vector<4x16xf32>
    %743 = arith.mulf %742, %741 : vector<4x16xf32>
    %744 = arith.addf %706, %743 : vector<4x16xf32>
    %745 = vector.extract_strided_slice %738 {offsets = [0, 0], sizes = [4, 16], strides = [1, 1]} : vector<10x16xf32> to vector<4x16xf32>
    %746 = vector.broadcast %740 : f32 to vector<4x16xf32>
    %747 = arith.mulf %746, %745 : vector<4x16xf32>
    %748 = arith.addf %744, %747 : vector<4x16xf32>
    %c113 = arith.constant 113 : index
    %749 = memref.load %arg1[%c113] : memref<294xf32, #tpu.memory_space<smem>>
    %c162 = arith.constant 162 : index
    %750 = memref.load %arg1[%c162] : memref<294xf32, #tpu.memory_space<smem>>
    %751 = vector.extract_strided_slice %737 {offsets = [1, 0], sizes = [4, 16], strides = [1, 1]} : vector<10x16xf32> to vector<4x16xf32>
    %752 = vector.broadcast %749 : f32 to vector<4x16xf32>
    %753 = arith.mulf %752, %751 : vector<4x16xf32>
    %754 = arith.addf %716, %753 : vector<4x16xf32>
    %755 = vector.extract_strided_slice %738 {offsets = [1, 0], sizes = [4, 16], strides = [1, 1]} : vector<10x16xf32> to vector<4x16xf32>
    %756 = vector.broadcast %750 : f32 to vector<4x16xf32>
    %757 = arith.mulf %756, %755 : vector<4x16xf32>
    %758 = arith.addf %754, %757 : vector<4x16xf32>
    %c114 = arith.constant 114 : index
    %759 = memref.load %arg1[%c114] : memref<294xf32, #tpu.memory_space<smem>>
    %c163 = arith.constant 163 : index
    %760 = memref.load %arg1[%c163] : memref<294xf32, #tpu.memory_space<smem>>
    %761 = vector.extract_strided_slice %737 {offsets = [2, 0], sizes = [4, 16], strides = [1, 1]} : vector<10x16xf32> to vector<4x16xf32>
    %762 = vector.broadcast %759 : f32 to vector<4x16xf32>
    %763 = arith.mulf %762, %761 : vector<4x16xf32>
    %764 = arith.addf %726, %763 : vector<4x16xf32>
    %765 = vector.extract_strided_slice %738 {offsets = [2, 0], sizes = [4, 16], strides = [1, 1]} : vector<10x16xf32> to vector<4x16xf32>
    %766 = vector.broadcast %760 : f32 to vector<4x16xf32>
    %767 = arith.mulf %766, %765 : vector<4x16xf32>
    %768 = arith.addf %764, %767 : vector<4x16xf32>
    %c115 = arith.constant 115 : index
    %769 = memref.load %arg1[%c115] : memref<294xf32, #tpu.memory_space<smem>>
    %c164 = arith.constant 164 : index
    %770 = memref.load %arg1[%c164] : memref<294xf32, #tpu.memory_space<smem>>
    %771 = vector.extract_strided_slice %737 {offsets = [3, 0], sizes = [4, 16], strides = [1, 1]} : vector<10x16xf32> to vector<4x16xf32>
    %772 = vector.broadcast %769 : f32 to vector<4x16xf32>
    %773 = arith.mulf %772, %771 : vector<4x16xf32>
    %774 = arith.addf %736, %773 : vector<4x16xf32>
    %775 = vector.extract_strided_slice %738 {offsets = [3, 0], sizes = [4, 16], strides = [1, 1]} : vector<10x16xf32> to vector<4x16xf32>
    %776 = vector.broadcast %770 : f32 to vector<4x16xf32>
    %777 = arith.mulf %776, %775 : vector<4x16xf32>
    %778 = arith.addf %774, %777 : vector<4x16xf32>
    %c116 = arith.constant 116 : index
    %779 = memref.load %arg1[%c116] : memref<294xf32, #tpu.memory_space<smem>>
    %c165 = arith.constant 165 : index
    %780 = memref.load %arg1[%c165] : memref<294xf32, #tpu.memory_space<smem>>
    %781 = vector.extract_strided_slice %737 {offsets = [4, 0], sizes = [4, 16], strides = [1, 1]} : vector<10x16xf32> to vector<4x16xf32>
    %782 = vector.broadcast %779 : f32 to vector<4x16xf32>
    %783 = arith.mulf %782, %781 : vector<4x16xf32>
    %784 = arith.addf %748, %783 : vector<4x16xf32>
    %785 = vector.extract_strided_slice %738 {offsets = [4, 0], sizes = [4, 16], strides = [1, 1]} : vector<10x16xf32> to vector<4x16xf32>
    %786 = vector.broadcast %780 : f32 to vector<4x16xf32>
    %787 = arith.mulf %786, %785 : vector<4x16xf32>
    %788 = arith.addf %784, %787 : vector<4x16xf32>
    %c117 = arith.constant 117 : index
    %789 = memref.load %arg1[%c117] : memref<294xf32, #tpu.memory_space<smem>>
    %c166 = arith.constant 166 : index
    %790 = memref.load %arg1[%c166] : memref<294xf32, #tpu.memory_space<smem>>
    %791 = vector.extract_strided_slice %737 {offsets = [5, 0], sizes = [4, 16], strides = [1, 1]} : vector<10x16xf32> to vector<4x16xf32>
    %792 = vector.broadcast %789 : f32 to vector<4x16xf32>
    %793 = arith.mulf %792, %791 : vector<4x16xf32>
    %794 = arith.addf %758, %793 : vector<4x16xf32>
    %795 = vector.extract_strided_slice %738 {offsets = [5, 0], sizes = [4, 16], strides = [1, 1]} : vector<10x16xf32> to vector<4x16xf32>
    %796 = vector.broadcast %790 : f32 to vector<4x16xf32>
    %797 = arith.mulf %796, %795 : vector<4x16xf32>
    %798 = arith.addf %794, %797 : vector<4x16xf32>
    %c118 = arith.constant 118 : index
    %799 = memref.load %arg1[%c118] : memref<294xf32, #tpu.memory_space<smem>>
    %c167 = arith.constant 167 : index
    %800 = memref.load %arg1[%c167] : memref<294xf32, #tpu.memory_space<smem>>
    %801 = vector.extract_strided_slice %737 {offsets = [6, 0], sizes = [4, 16], strides = [1, 1]} : vector<10x16xf32> to vector<4x16xf32>
    %802 = vector.broadcast %799 : f32 to vector<4x16xf32>
    %803 = arith.mulf %802, %801 : vector<4x16xf32>
    %804 = arith.addf %768, %803 : vector<4x16xf32>
    %805 = vector.extract_strided_slice %738 {offsets = [6, 0], sizes = [4, 16], strides = [1, 1]} : vector<10x16xf32> to vector<4x16xf32>
    %806 = vector.broadcast %800 : f32 to vector<4x16xf32>
    %807 = arith.mulf %806, %805 : vector<4x16xf32>
    %808 = arith.addf %804, %807 : vector<4x16xf32>
    %809 = vector.extract_strided_slice %586 {offsets = [0, 3], sizes = [10, 16], strides = [1, 1]} : vector<10x22xf32> to vector<10x16xf32>
    %810 = vector.extract_strided_slice %588 {offsets = [0, 3], sizes = [10, 16], strides = [1, 1]} : vector<10x22xf32> to vector<10x16xf32>
    %c119 = arith.constant 119 : index
    %811 = memref.load %arg1[%c119] : memref<294xf32, #tpu.memory_space<smem>>
    %c168 = arith.constant 168 : index
    %812 = memref.load %arg1[%c168] : memref<294xf32, #tpu.memory_space<smem>>
    %813 = vector.extract_strided_slice %809 {offsets = [0, 0], sizes = [4, 16], strides = [1, 1]} : vector<10x16xf32> to vector<4x16xf32>
    %814 = vector.broadcast %811 : f32 to vector<4x16xf32>
    %815 = arith.mulf %814, %813 : vector<4x16xf32>
    %816 = arith.addf %778, %815 : vector<4x16xf32>
    %817 = vector.extract_strided_slice %810 {offsets = [0, 0], sizes = [4, 16], strides = [1, 1]} : vector<10x16xf32> to vector<4x16xf32>
    %818 = vector.broadcast %812 : f32 to vector<4x16xf32>
    %819 = arith.mulf %818, %817 : vector<4x16xf32>
    %820 = arith.addf %816, %819 : vector<4x16xf32>
    %c120 = arith.constant 120 : index
    %821 = memref.load %arg1[%c120] : memref<294xf32, #tpu.memory_space<smem>>
    %c169 = arith.constant 169 : index
    %822 = memref.load %arg1[%c169] : memref<294xf32, #tpu.memory_space<smem>>
    %823 = vector.extract_strided_slice %809 {offsets = [1, 0], sizes = [4, 16], strides = [1, 1]} : vector<10x16xf32> to vector<4x16xf32>
    %824 = vector.broadcast %821 : f32 to vector<4x16xf32>
    %825 = arith.mulf %824, %823 : vector<4x16xf32>
    %826 = arith.addf %788, %825 : vector<4x16xf32>
    %827 = vector.extract_strided_slice %810 {offsets = [1, 0], sizes = [4, 16], strides = [1, 1]} : vector<10x16xf32> to vector<4x16xf32>
    %828 = vector.broadcast %822 : f32 to vector<4x16xf32>
    %829 = arith.mulf %828, %827 : vector<4x16xf32>
    %830 = arith.addf %826, %829 : vector<4x16xf32>
    %c121 = arith.constant 121 : index
    %831 = memref.load %arg1[%c121] : memref<294xf32, #tpu.memory_space<smem>>
    %c170 = arith.constant 170 : index
    %832 = memref.load %arg1[%c170] : memref<294xf32, #tpu.memory_space<smem>>
    %833 = vector.extract_strided_slice %809 {offsets = [2, 0], sizes = [4, 16], strides = [1, 1]} : vector<10x16xf32> to vector<4x16xf32>
    %834 = vector.broadcast %831 : f32 to vector<4x16xf32>
    %835 = arith.mulf %834, %833 : vector<4x16xf32>
    %836 = arith.addf %798, %835 : vector<4x16xf32>
    %837 = vector.extract_strided_slice %810 {offsets = [2, 0], sizes = [4, 16], strides = [1, 1]} : vector<10x16xf32> to vector<4x16xf32>
    %838 = vector.broadcast %832 : f32 to vector<4x16xf32>
    %839 = arith.mulf %838, %837 : vector<4x16xf32>
    %840 = arith.addf %836, %839 : vector<4x16xf32>
    %c122 = arith.constant 122 : index
    %841 = memref.load %arg1[%c122] : memref<294xf32, #tpu.memory_space<smem>>
    %c171 = arith.constant 171 : index
    %842 = memref.load %arg1[%c171] : memref<294xf32, #tpu.memory_space<smem>>
    %843 = vector.extract_strided_slice %809 {offsets = [3, 0], sizes = [4, 16], strides = [1, 1]} : vector<10x16xf32> to vector<4x16xf32>
    %844 = vector.broadcast %841 : f32 to vector<4x16xf32>
    %845 = arith.mulf %844, %843 : vector<4x16xf32>
    %846 = arith.addf %808, %845 : vector<4x16xf32>
    %847 = vector.extract_strided_slice %810 {offsets = [3, 0], sizes = [4, 16], strides = [1, 1]} : vector<10x16xf32> to vector<4x16xf32>
    %848 = vector.broadcast %842 : f32 to vector<4x16xf32>
    %849 = arith.mulf %848, %847 : vector<4x16xf32>
    %850 = arith.addf %846, %849 : vector<4x16xf32>
    %c123 = arith.constant 123 : index
    %851 = memref.load %arg1[%c123] : memref<294xf32, #tpu.memory_space<smem>>
    %c172 = arith.constant 172 : index
    %852 = memref.load %arg1[%c172] : memref<294xf32, #tpu.memory_space<smem>>
    %853 = vector.extract_strided_slice %809 {offsets = [4, 0], sizes = [4, 16], strides = [1, 1]} : vector<10x16xf32> to vector<4x16xf32>
    %854 = vector.broadcast %851 : f32 to vector<4x16xf32>
    %855 = arith.mulf %854, %853 : vector<4x16xf32>
    %856 = arith.addf %820, %855 : vector<4x16xf32>
    %857 = vector.extract_strided_slice %810 {offsets = [4, 0], sizes = [4, 16], strides = [1, 1]} : vector<10x16xf32> to vector<4x16xf32>
    %858 = vector.broadcast %852 : f32 to vector<4x16xf32>
    %859 = arith.mulf %858, %857 : vector<4x16xf32>
    %860 = arith.addf %856, %859 : vector<4x16xf32>
    %c124 = arith.constant 124 : index
    %861 = memref.load %arg1[%c124] : memref<294xf32, #tpu.memory_space<smem>>
    %c173 = arith.constant 173 : index
    %862 = memref.load %arg1[%c173] : memref<294xf32, #tpu.memory_space<smem>>
    %863 = vector.extract_strided_slice %809 {offsets = [5, 0], sizes = [4, 16], strides = [1, 1]} : vector<10x16xf32> to vector<4x16xf32>
    %864 = vector.broadcast %861 : f32 to vector<4x16xf32>
    %865 = arith.mulf %864, %863 : vector<4x16xf32>
    %866 = arith.addf %830, %865 : vector<4x16xf32>
    %867 = vector.extract_strided_slice %810 {offsets = [5, 0], sizes = [4, 16], strides = [1, 1]} : vector<10x16xf32> to vector<4x16xf32>
    %868 = vector.broadcast %862 : f32 to vector<4x16xf32>
    %869 = arith.mulf %868, %867 : vector<4x16xf32>
    %870 = arith.addf %866, %869 : vector<4x16xf32>
    %c125 = arith.constant 125 : index
    %871 = memref.load %arg1[%c125] : memref<294xf32, #tpu.memory_space<smem>>
    %c174 = arith.constant 174 : index
    %872 = memref.load %arg1[%c174] : memref<294xf32, #tpu.memory_space<smem>>
    %873 = vector.extract_strided_slice %809 {offsets = [6, 0], sizes = [4, 16], strides = [1, 1]} : vector<10x16xf32> to vector<4x16xf32>
    %874 = vector.broadcast %871 : f32 to vector<4x16xf32>
    %875 = arith.mulf %874, %873 : vector<4x16xf32>
    %876 = arith.addf %840, %875 : vector<4x16xf32>
    %877 = vector.extract_strided_slice %810 {offsets = [6, 0], sizes = [4, 16], strides = [1, 1]} : vector<10x16xf32> to vector<4x16xf32>
    %878 = vector.broadcast %872 : f32 to vector<4x16xf32>
    %879 = arith.mulf %878, %877 : vector<4x16xf32>
    %880 = arith.addf %876, %879 : vector<4x16xf32>
    %881 = vector.extract_strided_slice %586 {offsets = [0, 4], sizes = [10, 16], strides = [1, 1]} : vector<10x22xf32> to vector<10x16xf32>
    %882 = vector.extract_strided_slice %588 {offsets = [0, 4], sizes = [10, 16], strides = [1, 1]} : vector<10x22xf32> to vector<10x16xf32>
    %c126 = arith.constant 126 : index
    %883 = memref.load %arg1[%c126] : memref<294xf32, #tpu.memory_space<smem>>
    %c175 = arith.constant 175 : index
    %884 = memref.load %arg1[%c175] : memref<294xf32, #tpu.memory_space<smem>>
    %885 = vector.extract_strided_slice %881 {offsets = [0, 0], sizes = [4, 16], strides = [1, 1]} : vector<10x16xf32> to vector<4x16xf32>
    %886 = vector.broadcast %883 : f32 to vector<4x16xf32>
    %887 = arith.mulf %886, %885 : vector<4x16xf32>
    %888 = arith.addf %850, %887 : vector<4x16xf32>
    %889 = vector.extract_strided_slice %882 {offsets = [0, 0], sizes = [4, 16], strides = [1, 1]} : vector<10x16xf32> to vector<4x16xf32>
    %890 = vector.broadcast %884 : f32 to vector<4x16xf32>
    %891 = arith.mulf %890, %889 : vector<4x16xf32>
    %892 = arith.addf %888, %891 : vector<4x16xf32>
    %c127 = arith.constant 127 : index
    %893 = memref.load %arg1[%c127] : memref<294xf32, #tpu.memory_space<smem>>
    %c176 = arith.constant 176 : index
    %894 = memref.load %arg1[%c176] : memref<294xf32, #tpu.memory_space<smem>>
    %895 = vector.extract_strided_slice %881 {offsets = [1, 0], sizes = [4, 16], strides = [1, 1]} : vector<10x16xf32> to vector<4x16xf32>
    %896 = vector.broadcast %893 : f32 to vector<4x16xf32>
    %897 = arith.mulf %896, %895 : vector<4x16xf32>
    %898 = arith.addf %860, %897 : vector<4x16xf32>
    %899 = vector.extract_strided_slice %882 {offsets = [1, 0], sizes = [4, 16], strides = [1, 1]} : vector<10x16xf32> to vector<4x16xf32>
    %900 = vector.broadcast %894 : f32 to vector<4x16xf32>
    %901 = arith.mulf %900, %899 : vector<4x16xf32>
    %902 = arith.addf %898, %901 : vector<4x16xf32>
    %c128 = arith.constant 128 : index
    %903 = memref.load %arg1[%c128] : memref<294xf32, #tpu.memory_space<smem>>
    %c177 = arith.constant 177 : index
    %904 = memref.load %arg1[%c177] : memref<294xf32, #tpu.memory_space<smem>>
    %905 = vector.extract_strided_slice %881 {offsets = [2, 0], sizes = [4, 16], strides = [1, 1]} : vector<10x16xf32> to vector<4x16xf32>
    %906 = vector.broadcast %903 : f32 to vector<4x16xf32>
    %907 = arith.mulf %906, %905 : vector<4x16xf32>
    %908 = arith.addf %870, %907 : vector<4x16xf32>
    %909 = vector.extract_strided_slice %882 {offsets = [2, 0], sizes = [4, 16], strides = [1, 1]} : vector<10x16xf32> to vector<4x16xf32>
    %910 = vector.broadcast %904 : f32 to vector<4x16xf32>
    %911 = arith.mulf %910, %909 : vector<4x16xf32>
    %912 = arith.addf %908, %911 : vector<4x16xf32>
    %c129 = arith.constant 129 : index
    %913 = memref.load %arg1[%c129] : memref<294xf32, #tpu.memory_space<smem>>
    %c178 = arith.constant 178 : index
    %914 = memref.load %arg1[%c178] : memref<294xf32, #tpu.memory_space<smem>>
    %915 = vector.extract_strided_slice %881 {offsets = [3, 0], sizes = [4, 16], strides = [1, 1]} : vector<10x16xf32> to vector<4x16xf32>
    %916 = vector.broadcast %913 : f32 to vector<4x16xf32>
    %917 = arith.mulf %916, %915 : vector<4x16xf32>
    %918 = arith.addf %880, %917 : vector<4x16xf32>
    %919 = vector.extract_strided_slice %882 {offsets = [3, 0], sizes = [4, 16], strides = [1, 1]} : vector<10x16xf32> to vector<4x16xf32>
    %920 = vector.broadcast %914 : f32 to vector<4x16xf32>
    %921 = arith.mulf %920, %919 : vector<4x16xf32>
    %922 = arith.addf %918, %921 : vector<4x16xf32>
    %c130 = arith.constant 130 : index
    %923 = memref.load %arg1[%c130] : memref<294xf32, #tpu.memory_space<smem>>
    %c179 = arith.constant 179 : index
    %924 = memref.load %arg1[%c179] : memref<294xf32, #tpu.memory_space<smem>>
    %925 = vector.extract_strided_slice %881 {offsets = [4, 0], sizes = [4, 16], strides = [1, 1]} : vector<10x16xf32> to vector<4x16xf32>
    %926 = vector.broadcast %923 : f32 to vector<4x16xf32>
    %927 = arith.mulf %926, %925 : vector<4x16xf32>
    %928 = arith.addf %892, %927 : vector<4x16xf32>
    %929 = vector.extract_strided_slice %882 {offsets = [4, 0], sizes = [4, 16], strides = [1, 1]} : vector<10x16xf32> to vector<4x16xf32>
    %930 = vector.broadcast %924 : f32 to vector<4x16xf32>
    %931 = arith.mulf %930, %929 : vector<4x16xf32>
    %932 = arith.addf %928, %931 : vector<4x16xf32>
    %c131 = arith.constant 131 : index
    %933 = memref.load %arg1[%c131] : memref<294xf32, #tpu.memory_space<smem>>
    %c180 = arith.constant 180 : index
    %934 = memref.load %arg1[%c180] : memref<294xf32, #tpu.memory_space<smem>>
    %935 = vector.extract_strided_slice %881 {offsets = [5, 0], sizes = [4, 16], strides = [1, 1]} : vector<10x16xf32> to vector<4x16xf32>
    %936 = vector.broadcast %933 : f32 to vector<4x16xf32>
    %937 = arith.mulf %936, %935 : vector<4x16xf32>
    %938 = arith.addf %902, %937 : vector<4x16xf32>
    %939 = vector.extract_strided_slice %882 {offsets = [5, 0], sizes = [4, 16], strides = [1, 1]} : vector<10x16xf32> to vector<4x16xf32>
    %940 = vector.broadcast %934 : f32 to vector<4x16xf32>
    %941 = arith.mulf %940, %939 : vector<4x16xf32>
    %942 = arith.addf %938, %941 : vector<4x16xf32>
    %c132 = arith.constant 132 : index
    %943 = memref.load %arg1[%c132] : memref<294xf32, #tpu.memory_space<smem>>
    %c181 = arith.constant 181 : index
    %944 = memref.load %arg1[%c181] : memref<294xf32, #tpu.memory_space<smem>>
    %945 = vector.extract_strided_slice %881 {offsets = [6, 0], sizes = [4, 16], strides = [1, 1]} : vector<10x16xf32> to vector<4x16xf32>
    %946 = vector.broadcast %943 : f32 to vector<4x16xf32>
    %947 = arith.mulf %946, %945 : vector<4x16xf32>
    %948 = arith.addf %912, %947 : vector<4x16xf32>
    %949 = vector.extract_strided_slice %882 {offsets = [6, 0], sizes = [4, 16], strides = [1, 1]} : vector<10x16xf32> to vector<4x16xf32>
    %950 = vector.broadcast %944 : f32 to vector<4x16xf32>
    %951 = arith.mulf %950, %949 : vector<4x16xf32>
    %952 = arith.addf %948, %951 : vector<4x16xf32>
    %953 = vector.extract_strided_slice %586 {offsets = [0, 5], sizes = [10, 16], strides = [1, 1]} : vector<10x22xf32> to vector<10x16xf32>
    %954 = vector.extract_strided_slice %588 {offsets = [0, 5], sizes = [10, 16], strides = [1, 1]} : vector<10x22xf32> to vector<10x16xf32>
    %c133 = arith.constant 133 : index
    %955 = memref.load %arg1[%c133] : memref<294xf32, #tpu.memory_space<smem>>
    %c182 = arith.constant 182 : index
    %956 = memref.load %arg1[%c182] : memref<294xf32, #tpu.memory_space<smem>>
    %957 = vector.extract_strided_slice %953 {offsets = [0, 0], sizes = [4, 16], strides = [1, 1]} : vector<10x16xf32> to vector<4x16xf32>
    %958 = vector.broadcast %955 : f32 to vector<4x16xf32>
    %959 = arith.mulf %958, %957 : vector<4x16xf32>
    %960 = arith.addf %922, %959 : vector<4x16xf32>
    %961 = vector.extract_strided_slice %954 {offsets = [0, 0], sizes = [4, 16], strides = [1, 1]} : vector<10x16xf32> to vector<4x16xf32>
    %962 = vector.broadcast %956 : f32 to vector<4x16xf32>
    %963 = arith.mulf %962, %961 : vector<4x16xf32>
    %964 = arith.addf %960, %963 : vector<4x16xf32>
    %c134 = arith.constant 134 : index
    %965 = memref.load %arg1[%c134] : memref<294xf32, #tpu.memory_space<smem>>
    %c183 = arith.constant 183 : index
    %966 = memref.load %arg1[%c183] : memref<294xf32, #tpu.memory_space<smem>>
    %967 = vector.extract_strided_slice %953 {offsets = [1, 0], sizes = [4, 16], strides = [1, 1]} : vector<10x16xf32> to vector<4x16xf32>
    %968 = vector.broadcast %965 : f32 to vector<4x16xf32>
    %969 = arith.mulf %968, %967 : vector<4x16xf32>
    %970 = arith.addf %932, %969 : vector<4x16xf32>
    %971 = vector.extract_strided_slice %954 {offsets = [1, 0], sizes = [4, 16], strides = [1, 1]} : vector<10x16xf32> to vector<4x16xf32>
    %972 = vector.broadcast %966 : f32 to vector<4x16xf32>
    %973 = arith.mulf %972, %971 : vector<4x16xf32>
    %974 = arith.addf %970, %973 : vector<4x16xf32>
    %c135 = arith.constant 135 : index
    %975 = memref.load %arg1[%c135] : memref<294xf32, #tpu.memory_space<smem>>
    %c184 = arith.constant 184 : index
    %976 = memref.load %arg1[%c184] : memref<294xf32, #tpu.memory_space<smem>>
    %977 = vector.extract_strided_slice %953 {offsets = [2, 0], sizes = [4, 16], strides = [1, 1]} : vector<10x16xf32> to vector<4x16xf32>
    %978 = vector.broadcast %975 : f32 to vector<4x16xf32>
    %979 = arith.mulf %978, %977 : vector<4x16xf32>
    %980 = arith.addf %942, %979 : vector<4x16xf32>
    %981 = vector.extract_strided_slice %954 {offsets = [2, 0], sizes = [4, 16], strides = [1, 1]} : vector<10x16xf32> to vector<4x16xf32>
    %982 = vector.broadcast %976 : f32 to vector<4x16xf32>
    %983 = arith.mulf %982, %981 : vector<4x16xf32>
    %984 = arith.addf %980, %983 : vector<4x16xf32>
    %c136 = arith.constant 136 : index
    %985 = memref.load %arg1[%c136] : memref<294xf32, #tpu.memory_space<smem>>
    %c185 = arith.constant 185 : index
    %986 = memref.load %arg1[%c185] : memref<294xf32, #tpu.memory_space<smem>>
    %987 = vector.extract_strided_slice %953 {offsets = [3, 0], sizes = [4, 16], strides = [1, 1]} : vector<10x16xf32> to vector<4x16xf32>
    %988 = vector.broadcast %985 : f32 to vector<4x16xf32>
    %989 = arith.mulf %988, %987 : vector<4x16xf32>
    %990 = arith.addf %952, %989 : vector<4x16xf32>
    %991 = vector.extract_strided_slice %954 {offsets = [3, 0], sizes = [4, 16], strides = [1, 1]} : vector<10x16xf32> to vector<4x16xf32>
    %992 = vector.broadcast %986 : f32 to vector<4x16xf32>
    %993 = arith.mulf %992, %991 : vector<4x16xf32>
    %994 = arith.addf %990, %993 : vector<4x16xf32>
    %c137 = arith.constant 137 : index
    %995 = memref.load %arg1[%c137] : memref<294xf32, #tpu.memory_space<smem>>
    %c186 = arith.constant 186 : index
    %996 = memref.load %arg1[%c186] : memref<294xf32, #tpu.memory_space<smem>>
    %997 = vector.extract_strided_slice %953 {offsets = [4, 0], sizes = [4, 16], strides = [1, 1]} : vector<10x16xf32> to vector<4x16xf32>
    %998 = vector.broadcast %995 : f32 to vector<4x16xf32>
    %999 = arith.mulf %998, %997 : vector<4x16xf32>
    %1000 = arith.addf %964, %999 : vector<4x16xf32>
    %1001 = vector.extract_strided_slice %954 {offsets = [4, 0], sizes = [4, 16], strides = [1, 1]} : vector<10x16xf32> to vector<4x16xf32>
    %1002 = vector.broadcast %996 : f32 to vector<4x16xf32>
    %1003 = arith.mulf %1002, %1001 : vector<4x16xf32>
    %1004 = arith.addf %1000, %1003 : vector<4x16xf32>
    %c138 = arith.constant 138 : index
    %1005 = memref.load %arg1[%c138] : memref<294xf32, #tpu.memory_space<smem>>
    %c187 = arith.constant 187 : index
    %1006 = memref.load %arg1[%c187] : memref<294xf32, #tpu.memory_space<smem>>
    %1007 = vector.extract_strided_slice %953 {offsets = [5, 0], sizes = [4, 16], strides = [1, 1]} : vector<10x16xf32> to vector<4x16xf32>
    %1008 = vector.broadcast %1005 : f32 to vector<4x16xf32>
    %1009 = arith.mulf %1008, %1007 : vector<4x16xf32>
    %1010 = arith.addf %974, %1009 : vector<4x16xf32>
    %1011 = vector.extract_strided_slice %954 {offsets = [5, 0], sizes = [4, 16], strides = [1, 1]} : vector<10x16xf32> to vector<4x16xf32>
    %1012 = vector.broadcast %1006 : f32 to vector<4x16xf32>
    %1013 = arith.mulf %1012, %1011 : vector<4x16xf32>
    %1014 = arith.addf %1010, %1013 : vector<4x16xf32>
    %c139 = arith.constant 139 : index
    %1015 = memref.load %arg1[%c139] : memref<294xf32, #tpu.memory_space<smem>>
    %c188 = arith.constant 188 : index
    %1016 = memref.load %arg1[%c188] : memref<294xf32, #tpu.memory_space<smem>>
    %1017 = vector.extract_strided_slice %953 {offsets = [6, 0], sizes = [4, 16], strides = [1, 1]} : vector<10x16xf32> to vector<4x16xf32>
    %1018 = vector.broadcast %1015 : f32 to vector<4x16xf32>
    %1019 = arith.mulf %1018, %1017 : vector<4x16xf32>
    %1020 = arith.addf %984, %1019 : vector<4x16xf32>
    %1021 = vector.extract_strided_slice %954 {offsets = [6, 0], sizes = [4, 16], strides = [1, 1]} : vector<10x16xf32> to vector<4x16xf32>
    %1022 = vector.broadcast %1016 : f32 to vector<4x16xf32>
    %1023 = arith.mulf %1022, %1021 : vector<4x16xf32>
    %1024 = arith.addf %1020, %1023 : vector<4x16xf32>
    %1025 = vector.extract_strided_slice %586 {offsets = [0, 6], sizes = [10, 16], strides = [1, 1]} : vector<10x22xf32> to vector<10x16xf32>
    %1026 = vector.extract_strided_slice %588 {offsets = [0, 6], sizes = [10, 16], strides = [1, 1]} : vector<10x22xf32> to vector<10x16xf32>
    %c140 = arith.constant 140 : index
    %1027 = memref.load %arg1[%c140] : memref<294xf32, #tpu.memory_space<smem>>
    %c189 = arith.constant 189 : index
    %1028 = memref.load %arg1[%c189] : memref<294xf32, #tpu.memory_space<smem>>
    %1029 = vector.extract_strided_slice %1025 {offsets = [0, 0], sizes = [4, 16], strides = [1, 1]} : vector<10x16xf32> to vector<4x16xf32>
    %1030 = vector.broadcast %1027 : f32 to vector<4x16xf32>
    %1031 = arith.mulf %1030, %1029 : vector<4x16xf32>
    %1032 = arith.addf %994, %1031 : vector<4x16xf32>
    %1033 = vector.extract_strided_slice %1026 {offsets = [0, 0], sizes = [4, 16], strides = [1, 1]} : vector<10x16xf32> to vector<4x16xf32>
    %1034 = vector.broadcast %1028 : f32 to vector<4x16xf32>
    %1035 = arith.mulf %1034, %1033 : vector<4x16xf32>
    %1036 = arith.addf %1032, %1035 : vector<4x16xf32>
    %c141 = arith.constant 141 : index
    %1037 = memref.load %arg1[%c141] : memref<294xf32, #tpu.memory_space<smem>>
    %c190 = arith.constant 190 : index
    %1038 = memref.load %arg1[%c190] : memref<294xf32, #tpu.memory_space<smem>>
    %1039 = vector.extract_strided_slice %1025 {offsets = [1, 0], sizes = [4, 16], strides = [1, 1]} : vector<10x16xf32> to vector<4x16xf32>
    %1040 = vector.broadcast %1037 : f32 to vector<4x16xf32>
    %1041 = arith.mulf %1040, %1039 : vector<4x16xf32>
    %1042 = arith.addf %1004, %1041 : vector<4x16xf32>
    %1043 = vector.extract_strided_slice %1026 {offsets = [1, 0], sizes = [4, 16], strides = [1, 1]} : vector<10x16xf32> to vector<4x16xf32>
    %1044 = vector.broadcast %1038 : f32 to vector<4x16xf32>
    %1045 = arith.mulf %1044, %1043 : vector<4x16xf32>
    %1046 = arith.addf %1042, %1045 : vector<4x16xf32>
    %c142 = arith.constant 142 : index
    %1047 = memref.load %arg1[%c142] : memref<294xf32, #tpu.memory_space<smem>>
    %c191 = arith.constant 191 : index
    %1048 = memref.load %arg1[%c191] : memref<294xf32, #tpu.memory_space<smem>>
    %1049 = vector.extract_strided_slice %1025 {offsets = [2, 0], sizes = [4, 16], strides = [1, 1]} : vector<10x16xf32> to vector<4x16xf32>
    %1050 = vector.broadcast %1047 : f32 to vector<4x16xf32>
    %1051 = arith.mulf %1050, %1049 : vector<4x16xf32>
    %1052 = arith.addf %1014, %1051 : vector<4x16xf32>
    %1053 = vector.extract_strided_slice %1026 {offsets = [2, 0], sizes = [4, 16], strides = [1, 1]} : vector<10x16xf32> to vector<4x16xf32>
    %1054 = vector.broadcast %1048 : f32 to vector<4x16xf32>
    %1055 = arith.mulf %1054, %1053 : vector<4x16xf32>
    %1056 = arith.addf %1052, %1055 : vector<4x16xf32>
    %c143 = arith.constant 143 : index
    %1057 = memref.load %arg1[%c143] : memref<294xf32, #tpu.memory_space<smem>>
    %c192 = arith.constant 192 : index
    %1058 = memref.load %arg1[%c192] : memref<294xf32, #tpu.memory_space<smem>>
    %1059 = vector.extract_strided_slice %1025 {offsets = [3, 0], sizes = [4, 16], strides = [1, 1]} : vector<10x16xf32> to vector<4x16xf32>
    %1060 = vector.broadcast %1057 : f32 to vector<4x16xf32>
    %1061 = arith.mulf %1060, %1059 : vector<4x16xf32>
    %1062 = arith.addf %1024, %1061 : vector<4x16xf32>
    %1063 = vector.extract_strided_slice %1026 {offsets = [3, 0], sizes = [4, 16], strides = [1, 1]} : vector<10x16xf32> to vector<4x16xf32>
    %1064 = vector.broadcast %1058 : f32 to vector<4x16xf32>
    %1065 = arith.mulf %1064, %1063 : vector<4x16xf32>
    %1066 = arith.addf %1062, %1065 : vector<4x16xf32>
    %c144 = arith.constant 144 : index
    %1067 = memref.load %arg1[%c144] : memref<294xf32, #tpu.memory_space<smem>>
    %c193 = arith.constant 193 : index
    %1068 = memref.load %arg1[%c193] : memref<294xf32, #tpu.memory_space<smem>>
    %1069 = vector.extract_strided_slice %1025 {offsets = [4, 0], sizes = [4, 16], strides = [1, 1]} : vector<10x16xf32> to vector<4x16xf32>
    %1070 = vector.broadcast %1067 : f32 to vector<4x16xf32>
    %1071 = arith.mulf %1070, %1069 : vector<4x16xf32>
    %1072 = arith.addf %1036, %1071 : vector<4x16xf32>
    %1073 = vector.extract_strided_slice %1026 {offsets = [4, 0], sizes = [4, 16], strides = [1, 1]} : vector<10x16xf32> to vector<4x16xf32>
    %1074 = vector.broadcast %1068 : f32 to vector<4x16xf32>
    %1075 = arith.mulf %1074, %1073 : vector<4x16xf32>
    %1076 = arith.addf %1072, %1075 : vector<4x16xf32>
    %c145 = arith.constant 145 : index
    %1077 = memref.load %arg1[%c145] : memref<294xf32, #tpu.memory_space<smem>>
    %c194 = arith.constant 194 : index
    %1078 = memref.load %arg1[%c194] : memref<294xf32, #tpu.memory_space<smem>>
    %1079 = vector.extract_strided_slice %1025 {offsets = [5, 0], sizes = [4, 16], strides = [1, 1]} : vector<10x16xf32> to vector<4x16xf32>
    %1080 = vector.broadcast %1077 : f32 to vector<4x16xf32>
    %1081 = arith.mulf %1080, %1079 : vector<4x16xf32>
    %1082 = arith.addf %1046, %1081 : vector<4x16xf32>
    %1083 = vector.extract_strided_slice %1026 {offsets = [5, 0], sizes = [4, 16], strides = [1, 1]} : vector<10x16xf32> to vector<4x16xf32>
    %1084 = vector.broadcast %1078 : f32 to vector<4x16xf32>
    %1085 = arith.mulf %1084, %1083 : vector<4x16xf32>
    %1086 = arith.addf %1082, %1085 : vector<4x16xf32>
    %c146 = arith.constant 146 : index
    %1087 = memref.load %arg1[%c146] : memref<294xf32, #tpu.memory_space<smem>>
    %c195 = arith.constant 195 : index
    %1088 = memref.load %arg1[%c195] : memref<294xf32, #tpu.memory_space<smem>>
    %1089 = vector.extract_strided_slice %1025 {offsets = [6, 0], sizes = [4, 16], strides = [1, 1]} : vector<10x16xf32> to vector<4x16xf32>
    %1090 = vector.broadcast %1087 : f32 to vector<4x16xf32>
    %1091 = arith.mulf %1090, %1089 : vector<4x16xf32>
    %1092 = arith.addf %1056, %1091 : vector<4x16xf32>
    %1093 = vector.extract_strided_slice %1026 {offsets = [6, 0], sizes = [4, 16], strides = [1, 1]} : vector<10x16xf32> to vector<4x16xf32>
    %1094 = vector.broadcast %1088 : f32 to vector<4x16xf32>
    %1095 = arith.mulf %1094, %1093 : vector<4x16xf32>
    %1096 = arith.addf %1092, %1095 : vector<4x16xf32>
    %1097 = arith.addf %1096, %1066 : vector<4x16xf32>
    %1098 = arith.addf %1097, %1076 : vector<4x16xf32>
    %1099 = arith.addf %1098, %1086 : vector<4x16xf32>
    %c4_100 = arith.constant 4 : index
    %1100 = memref.load %arg2[%c4_100] : memref<12xf32, #tpu.memory_space<smem>>
    %c5_101 = arith.constant 5 : index
    %1101 = memref.load %arg2[%c5_101] : memref<12xf32, #tpu.memory_space<smem>>
    %c6_102 = arith.constant 6 : index
    %1102 = memref.load %arg2[%c6_102] : memref<12xf32, #tpu.memory_space<smem>>
    %c7_103 = arith.constant 7 : index
    %1103 = memref.load %arg2[%c7_103] : memref<12xf32, #tpu.memory_space<smem>>
    %1104 = vector.broadcast %1102 : f32 to vector<4x16xf32>
    %1105 = arith.subf %1099, %1104 : vector<4x16xf32>
    %cst_104 = arith.constant 9.99999974E-6 : f32
    %1106 = arith.addf %1103, %cst_104 : f32
    %1107 = math.rsqrt %1106 : f32
    %1108 = vector.broadcast %1107 : f32 to vector<4x16xf32>
    %1109 = arith.mulf %1105, %1108 : vector<4x16xf32>
    %1110 = vector.broadcast %1100 : f32 to vector<4x16xf32>
    %1111 = arith.mulf %1109, %1110 : vector<4x16xf32>
    %1112 = vector.broadcast %1101 : f32 to vector<4x16xf32>
    %1113 = arith.addf %1111, %1112 : vector<4x16xf32>
    %1114 = arith.negf %1113 : vector<4x16xf32>
    %1115 = math.exp %1114 : vector<4x16xf32>
    %cst_105 = arith.constant 1.000000e+00 : f32
    %1116 = vector.broadcast %cst_105 : f32 to vector<4x16xf32>
    %1117 = arith.addf %1116, %1115 : vector<4x16xf32>
    %1118 = arith.divf %1116, %1117 : vector<4x16xf32>
    %c0_106 = arith.constant 0 : index
    %c0_107 = arith.constant 0 : index
    %1119 = vector.load %arg9[%c0_106, %c0_107] : memref<4x16xf32, #tpu.memory_space<vmem>>, vector<4x16xf32>
    tpu.vector_store %arg9[%c0_106, %c0_107], %1118 {strides = array<i32>} : memref<4x16xf32, #tpu.memory_space<vmem>>, vector<4x16xf32>,
    %c0_108 = arith.constant 0 : index
    %c0_109 = arith.constant 0 : index
    %c0_110 = arith.constant 0 : index
    %1120 = vector.load %arg7[%c0_108, %c0_109, %c0_110] : memref<2x22x22xf32, #tpu.memory_space<vmem>>, vector<1x22x22xf32>
    %1121 = vector.shape_cast %1120 : vector<1x22x22xf32> to vector<22x22xf32>
    %c1_111 = arith.constant 1 : index
    %c0_112 = arith.constant 0 : index
    %c0_113 = arith.constant 0 : index
    %1122 = vector.load %arg7[%c1_111, %c0_112, %c0_113] : memref<2x22x22xf32, #tpu.memory_space<vmem>>, vector<1x22x22xf32>
    %1123 = vector.shape_cast %1122 : vector<1x22x22xf32> to vector<22x22xf32>
    %cst_114 = arith.constant 0.000000e+00 : f32
    %1124 = vector.broadcast %cst_114 : f32 to vector<16x16xf32>
    %cst_115 = arith.constant 0.000000e+00 : f32
    %1125 = vector.broadcast %cst_115 : f32 to vector<16x16xf32>
    %cst_116 = arith.constant 0.000000e+00 : f32
    %1126 = vector.broadcast %cst_116 : f32 to vector<16x16xf32>
    %cst_117 = arith.constant 0.000000e+00 : f32
    %1127 = vector.broadcast %cst_117 : f32 to vector<16x16xf32>
    %1128 = vector.extract_strided_slice %1121 {offsets = [0, 0], sizes = [22, 16], strides = [1, 1]} : vector<22x22xf32> to vector<22x16xf32>
    %1129 = vector.extract_strided_slice %1123 {offsets = [0, 0], sizes = [22, 16], strides = [1, 1]} : vector<22x22xf32> to vector<22x16xf32>
    %c196 = arith.constant 196 : index
    %1130 = memref.load %arg1[%c196] : memref<294xf32, #tpu.memory_space<smem>>
    %c245 = arith.constant 245 : index
    %1131 = memref.load %arg1[%c245] : memref<294xf32, #tpu.memory_space<smem>>
    %1132 = vector.extract_strided_slice %1128 {offsets = [0, 0], sizes = [16, 16], strides = [1, 1]} : vector<22x16xf32> to vector<16x16xf32>
    %1133 = vector.broadcast %1130 : f32 to vector<16x16xf32>
    %1134 = arith.mulf %1133, %1132 : vector<16x16xf32>
    %1135 = arith.addf %1124, %1134 : vector<16x16xf32>
    %1136 = vector.extract_strided_slice %1129 {offsets = [0, 0], sizes = [16, 16], strides = [1, 1]} : vector<22x16xf32> to vector<16x16xf32>
    %1137 = vector.broadcast %1131 : f32 to vector<16x16xf32>
    %1138 = arith.mulf %1137, %1136 : vector<16x16xf32>
    %1139 = arith.addf %1135, %1138 : vector<16x16xf32>
    %c203 = arith.constant 203 : index
    %1140 = memref.load %arg1[%c203] : memref<294xf32, #tpu.memory_space<smem>>
    %c252 = arith.constant 252 : index
    %1141 = memref.load %arg1[%c252] : memref<294xf32, #tpu.memory_space<smem>>
    %1142 = vector.extract_strided_slice %1128 {offsets = [1, 0], sizes = [16, 16], strides = [1, 1]} : vector<22x16xf32> to vector<16x16xf32>
    %1143 = vector.broadcast %1140 : f32 to vector<16x16xf32>
    %1144 = arith.mulf %1143, %1142 : vector<16x16xf32>
    %1145 = arith.addf %1125, %1144 : vector<16x16xf32>
    %1146 = vector.extract_strided_slice %1129 {offsets = [1, 0], sizes = [16, 16], strides = [1, 1]} : vector<22x16xf32> to vector<16x16xf32>
    %1147 = vector.broadcast %1141 : f32 to vector<16x16xf32>
    %1148 = arith.mulf %1147, %1146 : vector<16x16xf32>
    %1149 = arith.addf %1145, %1148 : vector<16x16xf32>
    %c210 = arith.constant 210 : index
    %1150 = memref.load %arg1[%c210] : memref<294xf32, #tpu.memory_space<smem>>
    %c259 = arith.constant 259 : index
    %1151 = memref.load %arg1[%c259] : memref<294xf32, #tpu.memory_space<smem>>
    %1152 = vector.extract_strided_slice %1128 {offsets = [2, 0], sizes = [16, 16], strides = [1, 1]} : vector<22x16xf32> to vector<16x16xf32>
    %1153 = vector.broadcast %1150 : f32 to vector<16x16xf32>
    %1154 = arith.mulf %1153, %1152 : vector<16x16xf32>
    %1155 = arith.addf %1126, %1154 : vector<16x16xf32>
    %1156 = vector.extract_strided_slice %1129 {offsets = [2, 0], sizes = [16, 16], strides = [1, 1]} : vector<22x16xf32> to vector<16x16xf32>
    %1157 = vector.broadcast %1151 : f32 to vector<16x16xf32>
    %1158 = arith.mulf %1157, %1156 : vector<16x16xf32>
    %1159 = arith.addf %1155, %1158 : vector<16x16xf32>
    %c217 = arith.constant 217 : index
    %1160 = memref.load %arg1[%c217] : memref<294xf32, #tpu.memory_space<smem>>
    %c266 = arith.constant 266 : index
    %1161 = memref.load %arg1[%c266] : memref<294xf32, #tpu.memory_space<smem>>
    %1162 = vector.extract_strided_slice %1128 {offsets = [3, 0], sizes = [16, 16], strides = [1, 1]} : vector<22x16xf32> to vector<16x16xf32>
    %1163 = vector.broadcast %1160 : f32 to vector<16x16xf32>
    %1164 = arith.mulf %1163, %1162 : vector<16x16xf32>
    %1165 = arith.addf %1127, %1164 : vector<16x16xf32>
    %1166 = vector.extract_strided_slice %1129 {offsets = [3, 0], sizes = [16, 16], strides = [1, 1]} : vector<22x16xf32> to vector<16x16xf32>
    %1167 = vector.broadcast %1161 : f32 to vector<16x16xf32>
    %1168 = arith.mulf %1167, %1166 : vector<16x16xf32>
    %1169 = arith.addf %1165, %1168 : vector<16x16xf32>
    %c224 = arith.constant 224 : index
    %1170 = memref.load %arg1[%c224] : memref<294xf32, #tpu.memory_space<smem>>
    %c273 = arith.constant 273 : index
    %1171 = memref.load %arg1[%c273] : memref<294xf32, #tpu.memory_space<smem>>
    %1172 = vector.extract_strided_slice %1128 {offsets = [4, 0], sizes = [16, 16], strides = [1, 1]} : vector<22x16xf32> to vector<16x16xf32>
    %1173 = vector.broadcast %1170 : f32 to vector<16x16xf32>
    %1174 = arith.mulf %1173, %1172 : vector<16x16xf32>
    %1175 = arith.addf %1139, %1174 : vector<16x16xf32>
    %1176 = vector.extract_strided_slice %1129 {offsets = [4, 0], sizes = [16, 16], strides = [1, 1]} : vector<22x16xf32> to vector<16x16xf32>
    %1177 = vector.broadcast %1171 : f32 to vector<16x16xf32>
    %1178 = arith.mulf %1177, %1176 : vector<16x16xf32>
    %1179 = arith.addf %1175, %1178 : vector<16x16xf32>
    %c231 = arith.constant 231 : index
    %1180 = memref.load %arg1[%c231] : memref<294xf32, #tpu.memory_space<smem>>
    %c280 = arith.constant 280 : index
    %1181 = memref.load %arg1[%c280] : memref<294xf32, #tpu.memory_space<smem>>
    %1182 = vector.extract_strided_slice %1128 {offsets = [5, 0], sizes = [16, 16], strides = [1, 1]} : vector<22x16xf32> to vector<16x16xf32>
    %1183 = vector.broadcast %1180 : f32 to vector<16x16xf32>
    %1184 = arith.mulf %1183, %1182 : vector<16x16xf32>
    %1185 = arith.addf %1149, %1184 : vector<16x16xf32>
    %1186 = vector.extract_strided_slice %1129 {offsets = [5, 0], sizes = [16, 16], strides = [1, 1]} : vector<22x16xf32> to vector<16x16xf32>
    %1187 = vector.broadcast %1181 : f32 to vector<16x16xf32>
    %1188 = arith.mulf %1187, %1186 : vector<16x16xf32>
    %1189 = arith.addf %1185, %1188 : vector<16x16xf32>
    %c238 = arith.constant 238 : index
    %1190 = memref.load %arg1[%c238] : memref<294xf32, #tpu.memory_space<smem>>
    %c287 = arith.constant 287 : index
    %1191 = memref.load %arg1[%c287] : memref<294xf32, #tpu.memory_space<smem>>
    %1192 = vector.extract_strided_slice %1128 {offsets = [6, 0], sizes = [16, 16], strides = [1, 1]} : vector<22x16xf32> to vector<16x16xf32>
    %1193 = vector.broadcast %1190 : f32 to vector<16x16xf32>
    %1194 = arith.mulf %1193, %1192 : vector<16x16xf32>
    %1195 = arith.addf %1159, %1194 : vector<16x16xf32>
    %1196 = vector.extract_strided_slice %1129 {offsets = [6, 0], sizes = [16, 16], strides = [1, 1]} : vector<22x16xf32> to vector<16x16xf32>
    %1197 = vector.broadcast %1191 : f32 to vector<16x16xf32>
    %1198 = arith.mulf %1197, %1196 : vector<16x16xf32>
    %1199 = arith.addf %1195, %1198 : vector<16x16xf32>
    %1200 = vector.extract_strided_slice %1121 {offsets = [0, 1], sizes = [22, 16], strides = [1, 1]} : vector<22x22xf32> to vector<22x16xf32>
    %1201 = vector.extract_strided_slice %1123 {offsets = [0, 1], sizes = [22, 16], strides = [1, 1]} : vector<22x22xf32> to vector<22x16xf32>
    %c197 = arith.constant 197 : index
    %1202 = memref.load %arg1[%c197] : memref<294xf32, #tpu.memory_space<smem>>
    %c246 = arith.constant 246 : index
    %1203 = memref.load %arg1[%c246] : memref<294xf32, #tpu.memory_space<smem>>
    %1204 = vector.extract_strided_slice %1200 {offsets = [0, 0], sizes = [16, 16], strides = [1, 1]} : vector<22x16xf32> to vector<16x16xf32>
    %1205 = vector.broadcast %1202 : f32 to vector<16x16xf32>
    %1206 = arith.mulf %1205, %1204 : vector<16x16xf32>
    %1207 = arith.addf %1169, %1206 : vector<16x16xf32>
    %1208 = vector.extract_strided_slice %1201 {offsets = [0, 0], sizes = [16, 16], strides = [1, 1]} : vector<22x16xf32> to vector<16x16xf32>
    %1209 = vector.broadcast %1203 : f32 to vector<16x16xf32>
    %1210 = arith.mulf %1209, %1208 : vector<16x16xf32>
    %1211 = arith.addf %1207, %1210 : vector<16x16xf32>
    %c204 = arith.constant 204 : index
    %1212 = memref.load %arg1[%c204] : memref<294xf32, #tpu.memory_space<smem>>
    %c253 = arith.constant 253 : index
    %1213 = memref.load %arg1[%c253] : memref<294xf32, #tpu.memory_space<smem>>
    %1214 = vector.extract_strided_slice %1200 {offsets = [1, 0], sizes = [16, 16], strides = [1, 1]} : vector<22x16xf32> to vector<16x16xf32>
    %1215 = vector.broadcast %1212 : f32 to vector<16x16xf32>
    %1216 = arith.mulf %1215, %1214 : vector<16x16xf32>
    %1217 = arith.addf %1179, %1216 : vector<16x16xf32>
    %1218 = vector.extract_strided_slice %1201 {offsets = [1, 0], sizes = [16, 16], strides = [1, 1]} : vector<22x16xf32> to vector<16x16xf32>
    %1219 = vector.broadcast %1213 : f32 to vector<16x16xf32>
    %1220 = arith.mulf %1219, %1218 : vector<16x16xf32>
    %1221 = arith.addf %1217, %1220 : vector<16x16xf32>
    %c211 = arith.constant 211 : index
    %1222 = memref.load %arg1[%c211] : memref<294xf32, #tpu.memory_space<smem>>
    %c260 = arith.constant 260 : index
    %1223 = memref.load %arg1[%c260] : memref<294xf32, #tpu.memory_space<smem>>
    %1224 = vector.extract_strided_slice %1200 {offsets = [2, 0], sizes = [16, 16], strides = [1, 1]} : vector<22x16xf32> to vector<16x16xf32>
    %1225 = vector.broadcast %1222 : f32 to vector<16x16xf32>
    %1226 = arith.mulf %1225, %1224 : vector<16x16xf32>
    %1227 = arith.addf %1189, %1226 : vector<16x16xf32>
    %1228 = vector.extract_strided_slice %1201 {offsets = [2, 0], sizes = [16, 16], strides = [1, 1]} : vector<22x16xf32> to vector<16x16xf32>
    %1229 = vector.broadcast %1223 : f32 to vector<16x16xf32>
    %1230 = arith.mulf %1229, %1228 : vector<16x16xf32>
    %1231 = arith.addf %1227, %1230 : vector<16x16xf32>
    %c218 = arith.constant 218 : index
    %1232 = memref.load %arg1[%c218] : memref<294xf32, #tpu.memory_space<smem>>
    %c267 = arith.constant 267 : index
    %1233 = memref.load %arg1[%c267] : memref<294xf32, #tpu.memory_space<smem>>
    %1234 = vector.extract_strided_slice %1200 {offsets = [3, 0], sizes = [16, 16], strides = [1, 1]} : vector<22x16xf32> to vector<16x16xf32>
    %1235 = vector.broadcast %1232 : f32 to vector<16x16xf32>
    %1236 = arith.mulf %1235, %1234 : vector<16x16xf32>
    %1237 = arith.addf %1199, %1236 : vector<16x16xf32>
    %1238 = vector.extract_strided_slice %1201 {offsets = [3, 0], sizes = [16, 16], strides = [1, 1]} : vector<22x16xf32> to vector<16x16xf32>
    %1239 = vector.broadcast %1233 : f32 to vector<16x16xf32>
    %1240 = arith.mulf %1239, %1238 : vector<16x16xf32>
    %1241 = arith.addf %1237, %1240 : vector<16x16xf32>
    %c225 = arith.constant 225 : index
    %1242 = memref.load %arg1[%c225] : memref<294xf32, #tpu.memory_space<smem>>
    %c274 = arith.constant 274 : index
    %1243 = memref.load %arg1[%c274] : memref<294xf32, #tpu.memory_space<smem>>
    %1244 = vector.extract_strided_slice %1200 {offsets = [4, 0], sizes = [16, 16], strides = [1, 1]} : vector<22x16xf32> to vector<16x16xf32>
    %1245 = vector.broadcast %1242 : f32 to vector<16x16xf32>
    %1246 = arith.mulf %1245, %1244 : vector<16x16xf32>
    %1247 = arith.addf %1211, %1246 : vector<16x16xf32>
    %1248 = vector.extract_strided_slice %1201 {offsets = [4, 0], sizes = [16, 16], strides = [1, 1]} : vector<22x16xf32> to vector<16x16xf32>
    %1249 = vector.broadcast %1243 : f32 to vector<16x16xf32>
    %1250 = arith.mulf %1249, %1248 : vector<16x16xf32>
    %1251 = arith.addf %1247, %1250 : vector<16x16xf32>
    %c232 = arith.constant 232 : index
    %1252 = memref.load %arg1[%c232] : memref<294xf32, #tpu.memory_space<smem>>
    %c281 = arith.constant 281 : index
    %1253 = memref.load %arg1[%c281] : memref<294xf32, #tpu.memory_space<smem>>
    %1254 = vector.extract_strided_slice %1200 {offsets = [5, 0], sizes = [16, 16], strides = [1, 1]} : vector<22x16xf32> to vector<16x16xf32>
    %1255 = vector.broadcast %1252 : f32 to vector<16x16xf32>
    %1256 = arith.mulf %1255, %1254 : vector<16x16xf32>
    %1257 = arith.addf %1221, %1256 : vector<16x16xf32>
    %1258 = vector.extract_strided_slice %1201 {offsets = [5, 0], sizes = [16, 16], strides = [1, 1]} : vector<22x16xf32> to vector<16x16xf32>
    %1259 = vector.broadcast %1253 : f32 to vector<16x16xf32>
    %1260 = arith.mulf %1259, %1258 : vector<16x16xf32>
    %1261 = arith.addf %1257, %1260 : vector<16x16xf32>
    %c239 = arith.constant 239 : index
    %1262 = memref.load %arg1[%c239] : memref<294xf32, #tpu.memory_space<smem>>
    %c288 = arith.constant 288 : index
    %1263 = memref.load %arg1[%c288] : memref<294xf32, #tpu.memory_space<smem>>
    %1264 = vector.extract_strided_slice %1200 {offsets = [6, 0], sizes = [16, 16], strides = [1, 1]} : vector<22x16xf32> to vector<16x16xf32>
    %1265 = vector.broadcast %1262 : f32 to vector<16x16xf32>
    %1266 = arith.mulf %1265, %1264 : vector<16x16xf32>
    %1267 = arith.addf %1231, %1266 : vector<16x16xf32>
    %1268 = vector.extract_strided_slice %1201 {offsets = [6, 0], sizes = [16, 16], strides = [1, 1]} : vector<22x16xf32> to vector<16x16xf32>
    %1269 = vector.broadcast %1263 : f32 to vector<16x16xf32>
    %1270 = arith.mulf %1269, %1268 : vector<16x16xf32>
    %1271 = arith.addf %1267, %1270 : vector<16x16xf32>
    %1272 = vector.extract_strided_slice %1121 {offsets = [0, 2], sizes = [22, 16], strides = [1, 1]} : vector<22x22xf32> to vector<22x16xf32>
    %1273 = vector.extract_strided_slice %1123 {offsets = [0, 2], sizes = [22, 16], strides = [1, 1]} : vector<22x22xf32> to vector<22x16xf32>
    %c198 = arith.constant 198 : index
    %1274 = memref.load %arg1[%c198] : memref<294xf32, #tpu.memory_space<smem>>
    %c247 = arith.constant 247 : index
    %1275 = memref.load %arg1[%c247] : memref<294xf32, #tpu.memory_space<smem>>
    %1276 = vector.extract_strided_slice %1272 {offsets = [0, 0], sizes = [16, 16], strides = [1, 1]} : vector<22x16xf32> to vector<16x16xf32>
    %1277 = vector.broadcast %1274 : f32 to vector<16x16xf32>
    %1278 = arith.mulf %1277, %1276 : vector<16x16xf32>
    %1279 = arith.addf %1241, %1278 : vector<16x16xf32>
    %1280 = vector.extract_strided_slice %1273 {offsets = [0, 0], sizes = [16, 16], strides = [1, 1]} : vector<22x16xf32> to vector<16x16xf32>
    %1281 = vector.broadcast %1275 : f32 to vector<16x16xf32>
    %1282 = arith.mulf %1281, %1280 : vector<16x16xf32>
    %1283 = arith.addf %1279, %1282 : vector<16x16xf32>
    %c205 = arith.constant 205 : index
    %1284 = memref.load %arg1[%c205] : memref<294xf32, #tpu.memory_space<smem>>
    %c254 = arith.constant 254 : index
    %1285 = memref.load %arg1[%c254] : memref<294xf32, #tpu.memory_space<smem>>
    %1286 = vector.extract_strided_slice %1272 {offsets = [1, 0], sizes = [16, 16], strides = [1, 1]} : vector<22x16xf32> to vector<16x16xf32>
    %1287 = vector.broadcast %1284 : f32 to vector<16x16xf32>
    %1288 = arith.mulf %1287, %1286 : vector<16x16xf32>
    %1289 = arith.addf %1251, %1288 : vector<16x16xf32>
    %1290 = vector.extract_strided_slice %1273 {offsets = [1, 0], sizes = [16, 16], strides = [1, 1]} : vector<22x16xf32> to vector<16x16xf32>
    %1291 = vector.broadcast %1285 : f32 to vector<16x16xf32>
    %1292 = arith.mulf %1291, %1290 : vector<16x16xf32>
    %1293 = arith.addf %1289, %1292 : vector<16x16xf32>
    %c212 = arith.constant 212 : index
    %1294 = memref.load %arg1[%c212] : memref<294xf32, #tpu.memory_space<smem>>
    %c261 = arith.constant 261 : index
    %1295 = memref.load %arg1[%c261] : memref<294xf32, #tpu.memory_space<smem>>
    %1296 = vector.extract_strided_slice %1272 {offsets = [2, 0], sizes = [16, 16], strides = [1, 1]} : vector<22x16xf32> to vector<16x16xf32>
    %1297 = vector.broadcast %1294 : f32 to vector<16x16xf32>
    %1298 = arith.mulf %1297, %1296 : vector<16x16xf32>
    %1299 = arith.addf %1261, %1298 : vector<16x16xf32>
    %1300 = vector.extract_strided_slice %1273 {offsets = [2, 0], sizes = [16, 16], strides = [1, 1]} : vector<22x16xf32> to vector<16x16xf32>
    %1301 = vector.broadcast %1295 : f32 to vector<16x16xf32>
    %1302 = arith.mulf %1301, %1300 : vector<16x16xf32>
    %1303 = arith.addf %1299, %1302 : vector<16x16xf32>
    %c219 = arith.constant 219 : index
    %1304 = memref.load %arg1[%c219] : memref<294xf32, #tpu.memory_space<smem>>
    %c268 = arith.constant 268 : index
    %1305 = memref.load %arg1[%c268] : memref<294xf32, #tpu.memory_space<smem>>
    %1306 = vector.extract_strided_slice %1272 {offsets = [3, 0], sizes = [16, 16], strides = [1, 1]} : vector<22x16xf32> to vector<16x16xf32>
    %1307 = vector.broadcast %1304 : f32 to vector<16x16xf32>
    %1308 = arith.mulf %1307, %1306 : vector<16x16xf32>
    %1309 = arith.addf %1271, %1308 : vector<16x16xf32>
    %1310 = vector.extract_strided_slice %1273 {offsets = [3, 0], sizes = [16, 16], strides = [1, 1]} : vector<22x16xf32> to vector<16x16xf32>
    %1311 = vector.broadcast %1305 : f32 to vector<16x16xf32>
    %1312 = arith.mulf %1311, %1310 : vector<16x16xf32>
    %1313 = arith.addf %1309, %1312 : vector<16x16xf32>
    %c226 = arith.constant 226 : index
    %1314 = memref.load %arg1[%c226] : memref<294xf32, #tpu.memory_space<smem>>
    %c275 = arith.constant 275 : index
    %1315 = memref.load %arg1[%c275] : memref<294xf32, #tpu.memory_space<smem>>
    %1316 = vector.extract_strided_slice %1272 {offsets = [4, 0], sizes = [16, 16], strides = [1, 1]} : vector<22x16xf32> to vector<16x16xf32>
    %1317 = vector.broadcast %1314 : f32 to vector<16x16xf32>
    %1318 = arith.mulf %1317, %1316 : vector<16x16xf32>
    %1319 = arith.addf %1283, %1318 : vector<16x16xf32>
    %1320 = vector.extract_strided_slice %1273 {offsets = [4, 0], sizes = [16, 16], strides = [1, 1]} : vector<22x16xf32> to vector<16x16xf32>
    %1321 = vector.broadcast %1315 : f32 to vector<16x16xf32>
    %1322 = arith.mulf %1321, %1320 : vector<16x16xf32>
    %1323 = arith.addf %1319, %1322 : vector<16x16xf32>
    %c233 = arith.constant 233 : index
    %1324 = memref.load %arg1[%c233] : memref<294xf32, #tpu.memory_space<smem>>
    %c282 = arith.constant 282 : index
    %1325 = memref.load %arg1[%c282] : memref<294xf32, #tpu.memory_space<smem>>
    %1326 = vector.extract_strided_slice %1272 {offsets = [5, 0], sizes = [16, 16], strides = [1, 1]} : vector<22x16xf32> to vector<16x16xf32>
    %1327 = vector.broadcast %1324 : f32 to vector<16x16xf32>
    %1328 = arith.mulf %1327, %1326 : vector<16x16xf32>
    %1329 = arith.addf %1293, %1328 : vector<16x16xf32>
    %1330 = vector.extract_strided_slice %1273 {offsets = [5, 0], sizes = [16, 16], strides = [1, 1]} : vector<22x16xf32> to vector<16x16xf32>
    %1331 = vector.broadcast %1325 : f32 to vector<16x16xf32>
    %1332 = arith.mulf %1331, %1330 : vector<16x16xf32>
    %1333 = arith.addf %1329, %1332 : vector<16x16xf32>
    %c240 = arith.constant 240 : index
    %1334 = memref.load %arg1[%c240] : memref<294xf32, #tpu.memory_space<smem>>
    %c289 = arith.constant 289 : index
    %1335 = memref.load %arg1[%c289] : memref<294xf32, #tpu.memory_space<smem>>
    %1336 = vector.extract_strided_slice %1272 {offsets = [6, 0], sizes = [16, 16], strides = [1, 1]} : vector<22x16xf32> to vector<16x16xf32>
    %1337 = vector.broadcast %1334 : f32 to vector<16x16xf32>
    %1338 = arith.mulf %1337, %1336 : vector<16x16xf32>
    %1339 = arith.addf %1303, %1338 : vector<16x16xf32>
    %1340 = vector.extract_strided_slice %1273 {offsets = [6, 0], sizes = [16, 16], strides = [1, 1]} : vector<22x16xf32> to vector<16x16xf32>
    %1341 = vector.broadcast %1335 : f32 to vector<16x16xf32>
    %1342 = arith.mulf %1341, %1340 : vector<16x16xf32>
    %1343 = arith.addf %1339, %1342 : vector<16x16xf32>
    %1344 = vector.extract_strided_slice %1121 {offsets = [0, 3], sizes = [22, 16], strides = [1, 1]} : vector<22x22xf32> to vector<22x16xf32>
    %1345 = vector.extract_strided_slice %1123 {offsets = [0, 3], sizes = [22, 16], strides = [1, 1]} : vector<22x22xf32> to vector<22x16xf32>
    %c199 = arith.constant 199 : index
    %1346 = memref.load %arg1[%c199] : memref<294xf32, #tpu.memory_space<smem>>
    %c248 = arith.constant 248 : index
    %1347 = memref.load %arg1[%c248] : memref<294xf32, #tpu.memory_space<smem>>
    %1348 = vector.extract_strided_slice %1344 {offsets = [0, 0], sizes = [16, 16], strides = [1, 1]} : vector<22x16xf32> to vector<16x16xf32>
    %1349 = vector.broadcast %1346 : f32 to vector<16x16xf32>
    %1350 = arith.mulf %1349, %1348 : vector<16x16xf32>
    %1351 = arith.addf %1313, %1350 : vector<16x16xf32>
    %1352 = vector.extract_strided_slice %1345 {offsets = [0, 0], sizes = [16, 16], strides = [1, 1]} : vector<22x16xf32> to vector<16x16xf32>
    %1353 = vector.broadcast %1347 : f32 to vector<16x16xf32>
    %1354 = arith.mulf %1353, %1352 : vector<16x16xf32>
    %1355 = arith.addf %1351, %1354 : vector<16x16xf32>
    %c206 = arith.constant 206 : index
    %1356 = memref.load %arg1[%c206] : memref<294xf32, #tpu.memory_space<smem>>
    %c255 = arith.constant 255 : index
    %1357 = memref.load %arg1[%c255] : memref<294xf32, #tpu.memory_space<smem>>
    %1358 = vector.extract_strided_slice %1344 {offsets = [1, 0], sizes = [16, 16], strides = [1, 1]} : vector<22x16xf32> to vector<16x16xf32>
    %1359 = vector.broadcast %1356 : f32 to vector<16x16xf32>
    %1360 = arith.mulf %1359, %1358 : vector<16x16xf32>
    %1361 = arith.addf %1323, %1360 : vector<16x16xf32>
    %1362 = vector.extract_strided_slice %1345 {offsets = [1, 0], sizes = [16, 16], strides = [1, 1]} : vector<22x16xf32> to vector<16x16xf32>
    %1363 = vector.broadcast %1357 : f32 to vector<16x16xf32>
    %1364 = arith.mulf %1363, %1362 : vector<16x16xf32>
    %1365 = arith.addf %1361, %1364 : vector<16x16xf32>
    %c213 = arith.constant 213 : index
    %1366 = memref.load %arg1[%c213] : memref<294xf32, #tpu.memory_space<smem>>
    %c262 = arith.constant 262 : index
    %1367 = memref.load %arg1[%c262] : memref<294xf32, #tpu.memory_space<smem>>
    %1368 = vector.extract_strided_slice %1344 {offsets = [2, 0], sizes = [16, 16], strides = [1, 1]} : vector<22x16xf32> to vector<16x16xf32>
    %1369 = vector.broadcast %1366 : f32 to vector<16x16xf32>
    %1370 = arith.mulf %1369, %1368 : vector<16x16xf32>
    %1371 = arith.addf %1333, %1370 : vector<16x16xf32>
    %1372 = vector.extract_strided_slice %1345 {offsets = [2, 0], sizes = [16, 16], strides = [1, 1]} : vector<22x16xf32> to vector<16x16xf32>
    %1373 = vector.broadcast %1367 : f32 to vector<16x16xf32>
    %1374 = arith.mulf %1373, %1372 : vector<16x16xf32>
    %1375 = arith.addf %1371, %1374 : vector<16x16xf32>
    %c220 = arith.constant 220 : index
    %1376 = memref.load %arg1[%c220] : memref<294xf32, #tpu.memory_space<smem>>
    %c269 = arith.constant 269 : index
    %1377 = memref.load %arg1[%c269] : memref<294xf32, #tpu.memory_space<smem>>
    %1378 = vector.extract_strided_slice %1344 {offsets = [3, 0], sizes = [16, 16], strides = [1, 1]} : vector<22x16xf32> to vector<16x16xf32>
    %1379 = vector.broadcast %1376 : f32 to vector<16x16xf32>
    %1380 = arith.mulf %1379, %1378 : vector<16x16xf32>
    %1381 = arith.addf %1343, %1380 : vector<16x16xf32>
    %1382 = vector.extract_strided_slice %1345 {offsets = [3, 0], sizes = [16, 16], strides = [1, 1]} : vector<22x16xf32> to vector<16x16xf32>
    %1383 = vector.broadcast %1377 : f32 to vector<16x16xf32>
    %1384 = arith.mulf %1383, %1382 : vector<16x16xf32>
    %1385 = arith.addf %1381, %1384 : vector<16x16xf32>
    %c227 = arith.constant 227 : index
    %1386 = memref.load %arg1[%c227] : memref<294xf32, #tpu.memory_space<smem>>
    %c276 = arith.constant 276 : index
    %1387 = memref.load %arg1[%c276] : memref<294xf32, #tpu.memory_space<smem>>
    %1388 = vector.extract_strided_slice %1344 {offsets = [4, 0], sizes = [16, 16], strides = [1, 1]} : vector<22x16xf32> to vector<16x16xf32>
    %1389 = vector.broadcast %1386 : f32 to vector<16x16xf32>
    %1390 = arith.mulf %1389, %1388 : vector<16x16xf32>
    %1391 = arith.addf %1355, %1390 : vector<16x16xf32>
    %1392 = vector.extract_strided_slice %1345 {offsets = [4, 0], sizes = [16, 16], strides = [1, 1]} : vector<22x16xf32> to vector<16x16xf32>
    %1393 = vector.broadcast %1387 : f32 to vector<16x16xf32>
    %1394 = arith.mulf %1393, %1392 : vector<16x16xf32>
    %1395 = arith.addf %1391, %1394 : vector<16x16xf32>
    %c234 = arith.constant 234 : index
    %1396 = memref.load %arg1[%c234] : memref<294xf32, #tpu.memory_space<smem>>
    %c283 = arith.constant 283 : index
    %1397 = memref.load %arg1[%c283] : memref<294xf32, #tpu.memory_space<smem>>
    %1398 = vector.extract_strided_slice %1344 {offsets = [5, 0], sizes = [16, 16], strides = [1, 1]} : vector<22x16xf32> to vector<16x16xf32>
    %1399 = vector.broadcast %1396 : f32 to vector<16x16xf32>
    %1400 = arith.mulf %1399, %1398 : vector<16x16xf32>
    %1401 = arith.addf %1365, %1400 : vector<16x16xf32>
    %1402 = vector.extract_strided_slice %1345 {offsets = [5, 0], sizes = [16, 16], strides = [1, 1]} : vector<22x16xf32> to vector<16x16xf32>
    %1403 = vector.broadcast %1397 : f32 to vector<16x16xf32>
    %1404 = arith.mulf %1403, %1402 : vector<16x16xf32>
    %1405 = arith.addf %1401, %1404 : vector<16x16xf32>
    %c241 = arith.constant 241 : index
    %1406 = memref.load %arg1[%c241] : memref<294xf32, #tpu.memory_space<smem>>
    %c290 = arith.constant 290 : index
    %1407 = memref.load %arg1[%c290] : memref<294xf32, #tpu.memory_space<smem>>
    %1408 = vector.extract_strided_slice %1344 {offsets = [6, 0], sizes = [16, 16], strides = [1, 1]} : vector<22x16xf32> to vector<16x16xf32>
    %1409 = vector.broadcast %1406 : f32 to vector<16x16xf32>
    %1410 = arith.mulf %1409, %1408 : vector<16x16xf32>
    %1411 = arith.addf %1375, %1410 : vector<16x16xf32>
    %1412 = vector.extract_strided_slice %1345 {offsets = [6, 0], sizes = [16, 16], strides = [1, 1]} : vector<22x16xf32> to vector<16x16xf32>
    %1413 = vector.broadcast %1407 : f32 to vector<16x16xf32>
    %1414 = arith.mulf %1413, %1412 : vector<16x16xf32>
    %1415 = arith.addf %1411, %1414 : vector<16x16xf32>
    %1416 = vector.extract_strided_slice %1121 {offsets = [0, 4], sizes = [22, 16], strides = [1, 1]} : vector<22x22xf32> to vector<22x16xf32>
    %1417 = vector.extract_strided_slice %1123 {offsets = [0, 4], sizes = [22, 16], strides = [1, 1]} : vector<22x22xf32> to vector<22x16xf32>
    %c200 = arith.constant 200 : index
    %1418 = memref.load %arg1[%c200] : memref<294xf32, #tpu.memory_space<smem>>
    %c249 = arith.constant 249 : index
    %1419 = memref.load %arg1[%c249] : memref<294xf32, #tpu.memory_space<smem>>
    %1420 = vector.extract_strided_slice %1416 {offsets = [0, 0], sizes = [16, 16], strides = [1, 1]} : vector<22x16xf32> to vector<16x16xf32>
    %1421 = vector.broadcast %1418 : f32 to vector<16x16xf32>
    %1422 = arith.mulf %1421, %1420 : vector<16x16xf32>
    %1423 = arith.addf %1385, %1422 : vector<16x16xf32>
    %1424 = vector.extract_strided_slice %1417 {offsets = [0, 0], sizes = [16, 16], strides = [1, 1]} : vector<22x16xf32> to vector<16x16xf32>
    %1425 = vector.broadcast %1419 : f32 to vector<16x16xf32>
    %1426 = arith.mulf %1425, %1424 : vector<16x16xf32>
    %1427 = arith.addf %1423, %1426 : vector<16x16xf32>
    %c207 = arith.constant 207 : index
    %1428 = memref.load %arg1[%c207] : memref<294xf32, #tpu.memory_space<smem>>
    %c256 = arith.constant 256 : index
    %1429 = memref.load %arg1[%c256] : memref<294xf32, #tpu.memory_space<smem>>
    %1430 = vector.extract_strided_slice %1416 {offsets = [1, 0], sizes = [16, 16], strides = [1, 1]} : vector<22x16xf32> to vector<16x16xf32>
    %1431 = vector.broadcast %1428 : f32 to vector<16x16xf32>
    %1432 = arith.mulf %1431, %1430 : vector<16x16xf32>
    %1433 = arith.addf %1395, %1432 : vector<16x16xf32>
    %1434 = vector.extract_strided_slice %1417 {offsets = [1, 0], sizes = [16, 16], strides = [1, 1]} : vector<22x16xf32> to vector<16x16xf32>
    %1435 = vector.broadcast %1429 : f32 to vector<16x16xf32>
    %1436 = arith.mulf %1435, %1434 : vector<16x16xf32>
    %1437 = arith.addf %1433, %1436 : vector<16x16xf32>
    %c214 = arith.constant 214 : index
    %1438 = memref.load %arg1[%c214] : memref<294xf32, #tpu.memory_space<smem>>
    %c263 = arith.constant 263 : index
    %1439 = memref.load %arg1[%c263] : memref<294xf32, #tpu.memory_space<smem>>
    %1440 = vector.extract_strided_slice %1416 {offsets = [2, 0], sizes = [16, 16], strides = [1, 1]} : vector<22x16xf32> to vector<16x16xf32>
    %1441 = vector.broadcast %1438 : f32 to vector<16x16xf32>
    %1442 = arith.mulf %1441, %1440 : vector<16x16xf32>
    %1443 = arith.addf %1405, %1442 : vector<16x16xf32>
    %1444 = vector.extract_strided_slice %1417 {offsets = [2, 0], sizes = [16, 16], strides = [1, 1]} : vector<22x16xf32> to vector<16x16xf32>
    %1445 = vector.broadcast %1439 : f32 to vector<16x16xf32>
    %1446 = arith.mulf %1445, %1444 : vector<16x16xf32>
    %1447 = arith.addf %1443, %1446 : vector<16x16xf32>
    %c221 = arith.constant 221 : index
    %1448 = memref.load %arg1[%c221] : memref<294xf32, #tpu.memory_space<smem>>
    %c270 = arith.constant 270 : index
    %1449 = memref.load %arg1[%c270] : memref<294xf32, #tpu.memory_space<smem>>
    %1450 = vector.extract_strided_slice %1416 {offsets = [3, 0], sizes = [16, 16], strides = [1, 1]} : vector<22x16xf32> to vector<16x16xf32>
    %1451 = vector.broadcast %1448 : f32 to vector<16x16xf32>
    %1452 = arith.mulf %1451, %1450 : vector<16x16xf32>
    %1453 = arith.addf %1415, %1452 : vector<16x16xf32>
    %1454 = vector.extract_strided_slice %1417 {offsets = [3, 0], sizes = [16, 16], strides = [1, 1]} : vector<22x16xf32> to vector<16x16xf32>
    %1455 = vector.broadcast %1449 : f32 to vector<16x16xf32>
    %1456 = arith.mulf %1455, %1454 : vector<16x16xf32>
    %1457 = arith.addf %1453, %1456 : vector<16x16xf32>
    %c228 = arith.constant 228 : index
    %1458 = memref.load %arg1[%c228] : memref<294xf32, #tpu.memory_space<smem>>
    %c277 = arith.constant 277 : index
    %1459 = memref.load %arg1[%c277] : memref<294xf32, #tpu.memory_space<smem>>
    %1460 = vector.extract_strided_slice %1416 {offsets = [4, 0], sizes = [16, 16], strides = [1, 1]} : vector<22x16xf32> to vector<16x16xf32>
    %1461 = vector.broadcast %1458 : f32 to vector<16x16xf32>
    %1462 = arith.mulf %1461, %1460 : vector<16x16xf32>
    %1463 = arith.addf %1427, %1462 : vector<16x16xf32>
    %1464 = vector.extract_strided_slice %1417 {offsets = [4, 0], sizes = [16, 16], strides = [1, 1]} : vector<22x16xf32> to vector<16x16xf32>
    %1465 = vector.broadcast %1459 : f32 to vector<16x16xf32>
    %1466 = arith.mulf %1465, %1464 : vector<16x16xf32>
    %1467 = arith.addf %1463, %1466 : vector<16x16xf32>
    %c235 = arith.constant 235 : index
    %1468 = memref.load %arg1[%c235] : memref<294xf32, #tpu.memory_space<smem>>
    %c284 = arith.constant 284 : index
    %1469 = memref.load %arg1[%c284] : memref<294xf32, #tpu.memory_space<smem>>
    %1470 = vector.extract_strided_slice %1416 {offsets = [5, 0], sizes = [16, 16], strides = [1, 1]} : vector<22x16xf32> to vector<16x16xf32>
    %1471 = vector.broadcast %1468 : f32 to vector<16x16xf32>
    %1472 = arith.mulf %1471, %1470 : vector<16x16xf32>
    %1473 = arith.addf %1437, %1472 : vector<16x16xf32>
    %1474 = vector.extract_strided_slice %1417 {offsets = [5, 0], sizes = [16, 16], strides = [1, 1]} : vector<22x16xf32> to vector<16x16xf32>
    %1475 = vector.broadcast %1469 : f32 to vector<16x16xf32>
    %1476 = arith.mulf %1475, %1474 : vector<16x16xf32>
    %1477 = arith.addf %1473, %1476 : vector<16x16xf32>
    %c242 = arith.constant 242 : index
    %1478 = memref.load %arg1[%c242] : memref<294xf32, #tpu.memory_space<smem>>
    %c291 = arith.constant 291 : index
    %1479 = memref.load %arg1[%c291] : memref<294xf32, #tpu.memory_space<smem>>
    %1480 = vector.extract_strided_slice %1416 {offsets = [6, 0], sizes = [16, 16], strides = [1, 1]} : vector<22x16xf32> to vector<16x16xf32>
    %1481 = vector.broadcast %1478 : f32 to vector<16x16xf32>
    %1482 = arith.mulf %1481, %1480 : vector<16x16xf32>
    %1483 = arith.addf %1447, %1482 : vector<16x16xf32>
    %1484 = vector.extract_strided_slice %1417 {offsets = [6, 0], sizes = [16, 16], strides = [1, 1]} : vector<22x16xf32> to vector<16x16xf32>
    %1485 = vector.broadcast %1479 : f32 to vector<16x16xf32>
    %1486 = arith.mulf %1485, %1484 : vector<16x16xf32>
    %1487 = arith.addf %1483, %1486 : vector<16x16xf32>
    %1488 = vector.extract_strided_slice %1121 {offsets = [0, 5], sizes = [22, 16], strides = [1, 1]} : vector<22x22xf32> to vector<22x16xf32>
    %1489 = vector.extract_strided_slice %1123 {offsets = [0, 5], sizes = [22, 16], strides = [1, 1]} : vector<22x22xf32> to vector<22x16xf32>
    %c201 = arith.constant 201 : index
    %1490 = memref.load %arg1[%c201] : memref<294xf32, #tpu.memory_space<smem>>
    %c250 = arith.constant 250 : index
    %1491 = memref.load %arg1[%c250] : memref<294xf32, #tpu.memory_space<smem>>
    %1492 = vector.extract_strided_slice %1488 {offsets = [0, 0], sizes = [16, 16], strides = [1, 1]} : vector<22x16xf32> to vector<16x16xf32>
    %1493 = vector.broadcast %1490 : f32 to vector<16x16xf32>
    %1494 = arith.mulf %1493, %1492 : vector<16x16xf32>
    %1495 = arith.addf %1457, %1494 : vector<16x16xf32>
    %1496 = vector.extract_strided_slice %1489 {offsets = [0, 0], sizes = [16, 16], strides = [1, 1]} : vector<22x16xf32> to vector<16x16xf32>
    %1497 = vector.broadcast %1491 : f32 to vector<16x16xf32>
    %1498 = arith.mulf %1497, %1496 : vector<16x16xf32>
    %1499 = arith.addf %1495, %1498 : vector<16x16xf32>
    %c208 = arith.constant 208 : index
    %1500 = memref.load %arg1[%c208] : memref<294xf32, #tpu.memory_space<smem>>
    %c257 = arith.constant 257 : index
    %1501 = memref.load %arg1[%c257] : memref<294xf32, #tpu.memory_space<smem>>
    %1502 = vector.extract_strided_slice %1488 {offsets = [1, 0], sizes = [16, 16], strides = [1, 1]} : vector<22x16xf32> to vector<16x16xf32>
    %1503 = vector.broadcast %1500 : f32 to vector<16x16xf32>
    %1504 = arith.mulf %1503, %1502 : vector<16x16xf32>
    %1505 = arith.addf %1467, %1504 : vector<16x16xf32>
    %1506 = vector.extract_strided_slice %1489 {offsets = [1, 0], sizes = [16, 16], strides = [1, 1]} : vector<22x16xf32> to vector<16x16xf32>
    %1507 = vector.broadcast %1501 : f32 to vector<16x16xf32>
    %1508 = arith.mulf %1507, %1506 : vector<16x16xf32>
    %1509 = arith.addf %1505, %1508 : vector<16x16xf32>
    %c215 = arith.constant 215 : index
    %1510 = memref.load %arg1[%c215] : memref<294xf32, #tpu.memory_space<smem>>
    %c264 = arith.constant 264 : index
    %1511 = memref.load %arg1[%c264] : memref<294xf32, #tpu.memory_space<smem>>
    %1512 = vector.extract_strided_slice %1488 {offsets = [2, 0], sizes = [16, 16], strides = [1, 1]} : vector<22x16xf32> to vector<16x16xf32>
    %1513 = vector.broadcast %1510 : f32 to vector<16x16xf32>
    %1514 = arith.mulf %1513, %1512 : vector<16x16xf32>
    %1515 = arith.addf %1477, %1514 : vector<16x16xf32>
    %1516 = vector.extract_strided_slice %1489 {offsets = [2, 0], sizes = [16, 16], strides = [1, 1]} : vector<22x16xf32> to vector<16x16xf32>
    %1517 = vector.broadcast %1511 : f32 to vector<16x16xf32>
    %1518 = arith.mulf %1517, %1516 : vector<16x16xf32>
    %1519 = arith.addf %1515, %1518 : vector<16x16xf32>
    %c222 = arith.constant 222 : index
    %1520 = memref.load %arg1[%c222] : memref<294xf32, #tpu.memory_space<smem>>
    %c271 = arith.constant 271 : index
    %1521 = memref.load %arg1[%c271] : memref<294xf32, #tpu.memory_space<smem>>
    %1522 = vector.extract_strided_slice %1488 {offsets = [3, 0], sizes = [16, 16], strides = [1, 1]} : vector<22x16xf32> to vector<16x16xf32>
    %1523 = vector.broadcast %1520 : f32 to vector<16x16xf32>
    %1524 = arith.mulf %1523, %1522 : vector<16x16xf32>
    %1525 = arith.addf %1487, %1524 : vector<16x16xf32>
    %1526 = vector.extract_strided_slice %1489 {offsets = [3, 0], sizes = [16, 16], strides = [1, 1]} : vector<22x16xf32> to vector<16x16xf32>
    %1527 = vector.broadcast %1521 : f32 to vector<16x16xf32>
    %1528 = arith.mulf %1527, %1526 : vector<16x16xf32>
    %1529 = arith.addf %1525, %1528 : vector<16x16xf32>
    %c229 = arith.constant 229 : index
    %1530 = memref.load %arg1[%c229] : memref<294xf32, #tpu.memory_space<smem>>
    %c278 = arith.constant 278 : index
    %1531 = memref.load %arg1[%c278] : memref<294xf32, #tpu.memory_space<smem>>
    %1532 = vector.extract_strided_slice %1488 {offsets = [4, 0], sizes = [16, 16], strides = [1, 1]} : vector<22x16xf32> to vector<16x16xf32>
    %1533 = vector.broadcast %1530 : f32 to vector<16x16xf32>
    %1534 = arith.mulf %1533, %1532 : vector<16x16xf32>
    %1535 = arith.addf %1499, %1534 : vector<16x16xf32>
    %1536 = vector.extract_strided_slice %1489 {offsets = [4, 0], sizes = [16, 16], strides = [1, 1]} : vector<22x16xf32> to vector<16x16xf32>
    %1537 = vector.broadcast %1531 : f32 to vector<16x16xf32>
    %1538 = arith.mulf %1537, %1536 : vector<16x16xf32>
    %1539 = arith.addf %1535, %1538 : vector<16x16xf32>
    %c236 = arith.constant 236 : index
    %1540 = memref.load %arg1[%c236] : memref<294xf32, #tpu.memory_space<smem>>
    %c285 = arith.constant 285 : index
    %1541 = memref.load %arg1[%c285] : memref<294xf32, #tpu.memory_space<smem>>
    %1542 = vector.extract_strided_slice %1488 {offsets = [5, 0], sizes = [16, 16], strides = [1, 1]} : vector<22x16xf32> to vector<16x16xf32>
    %1543 = vector.broadcast %1540 : f32 to vector<16x16xf32>
    %1544 = arith.mulf %1543, %1542 : vector<16x16xf32>
    %1545 = arith.addf %1509, %1544 : vector<16x16xf32>
    %1546 = vector.extract_strided_slice %1489 {offsets = [5, 0], sizes = [16, 16], strides = [1, 1]} : vector<22x16xf32> to vector<16x16xf32>
    %1547 = vector.broadcast %1541 : f32 to vector<16x16xf32>
    %1548 = arith.mulf %1547, %1546 : vector<16x16xf32>
    %1549 = arith.addf %1545, %1548 : vector<16x16xf32>
    %c243 = arith.constant 243 : index
    %1550 = memref.load %arg1[%c243] : memref<294xf32, #tpu.memory_space<smem>>
    %c292 = arith.constant 292 : index
    %1551 = memref.load %arg1[%c292] : memref<294xf32, #tpu.memory_space<smem>>
    %1552 = vector.extract_strided_slice %1488 {offsets = [6, 0], sizes = [16, 16], strides = [1, 1]} : vector<22x16xf32> to vector<16x16xf32>
    %1553 = vector.broadcast %1550 : f32 to vector<16x16xf32>
    %1554 = arith.mulf %1553, %1552 : vector<16x16xf32>
    %1555 = arith.addf %1519, %1554 : vector<16x16xf32>
    %1556 = vector.extract_strided_slice %1489 {offsets = [6, 0], sizes = [16, 16], strides = [1, 1]} : vector<22x16xf32> to vector<16x16xf32>
    %1557 = vector.broadcast %1551 : f32 to vector<16x16xf32>
    %1558 = arith.mulf %1557, %1556 : vector<16x16xf32>
    %1559 = arith.addf %1555, %1558 : vector<16x16xf32>
    %1560 = vector.extract_strided_slice %1121 {offsets = [0, 6], sizes = [22, 16], strides = [1, 1]} : vector<22x22xf32> to vector<22x16xf32>
    %1561 = vector.extract_strided_slice %1123 {offsets = [0, 6], sizes = [22, 16], strides = [1, 1]} : vector<22x22xf32> to vector<22x16xf32>
    %c202 = arith.constant 202 : index
    %1562 = memref.load %arg1[%c202] : memref<294xf32, #tpu.memory_space<smem>>
    %c251 = arith.constant 251 : index
    %1563 = memref.load %arg1[%c251] : memref<294xf32, #tpu.memory_space<smem>>
    %1564 = vector.extract_strided_slice %1560 {offsets = [0, 0], sizes = [16, 16], strides = [1, 1]} : vector<22x16xf32> to vector<16x16xf32>
    %1565 = vector.broadcast %1562 : f32 to vector<16x16xf32>
    %1566 = arith.mulf %1565, %1564 : vector<16x16xf32>
    %1567 = arith.addf %1529, %1566 : vector<16x16xf32>
    %1568 = vector.extract_strided_slice %1561 {offsets = [0, 0], sizes = [16, 16], strides = [1, 1]} : vector<22x16xf32> to vector<16x16xf32>
    %1569 = vector.broadcast %1563 : f32 to vector<16x16xf32>
    %1570 = arith.mulf %1569, %1568 : vector<16x16xf32>
    %1571 = arith.addf %1567, %1570 : vector<16x16xf32>
    %c209 = arith.constant 209 : index
    %1572 = memref.load %arg1[%c209] : memref<294xf32, #tpu.memory_space<smem>>
    %c258 = arith.constant 258 : index
    %1573 = memref.load %arg1[%c258] : memref<294xf32, #tpu.memory_space<smem>>
    %1574 = vector.extract_strided_slice %1560 {offsets = [1, 0], sizes = [16, 16], strides = [1, 1]} : vector<22x16xf32> to vector<16x16xf32>
    %1575 = vector.broadcast %1572 : f32 to vector<16x16xf32>
    %1576 = arith.mulf %1575, %1574 : vector<16x16xf32>
    %1577 = arith.addf %1539, %1576 : vector<16x16xf32>
    %1578 = vector.extract_strided_slice %1561 {offsets = [1, 0], sizes = [16, 16], strides = [1, 1]} : vector<22x16xf32> to vector<16x16xf32>
    %1579 = vector.broadcast %1573 : f32 to vector<16x16xf32>
    %1580 = arith.mulf %1579, %1578 : vector<16x16xf32>
    %1581 = arith.addf %1577, %1580 : vector<16x16xf32>
    %c216 = arith.constant 216 : index
    %1582 = memref.load %arg1[%c216] : memref<294xf32, #tpu.memory_space<smem>>
    %c265 = arith.constant 265 : index
    %1583 = memref.load %arg1[%c265] : memref<294xf32, #tpu.memory_space<smem>>
    %1584 = vector.extract_strided_slice %1560 {offsets = [2, 0], sizes = [16, 16], strides = [1, 1]} : vector<22x16xf32> to vector<16x16xf32>
    %1585 = vector.broadcast %1582 : f32 to vector<16x16xf32>
    %1586 = arith.mulf %1585, %1584 : vector<16x16xf32>
    %1587 = arith.addf %1549, %1586 : vector<16x16xf32>
    %1588 = vector.extract_strided_slice %1561 {offsets = [2, 0], sizes = [16, 16], strides = [1, 1]} : vector<22x16xf32> to vector<16x16xf32>
    %1589 = vector.broadcast %1583 : f32 to vector<16x16xf32>
    %1590 = arith.mulf %1589, %1588 : vector<16x16xf32>
    %1591 = arith.addf %1587, %1590 : vector<16x16xf32>
    %c223 = arith.constant 223 : index
    %1592 = memref.load %arg1[%c223] : memref<294xf32, #tpu.memory_space<smem>>
    %c272 = arith.constant 272 : index
    %1593 = memref.load %arg1[%c272] : memref<294xf32, #tpu.memory_space<smem>>
    %1594 = vector.extract_strided_slice %1560 {offsets = [3, 0], sizes = [16, 16], strides = [1, 1]} : vector<22x16xf32> to vector<16x16xf32>
    %1595 = vector.broadcast %1592 : f32 to vector<16x16xf32>
    %1596 = arith.mulf %1595, %1594 : vector<16x16xf32>
    %1597 = arith.addf %1559, %1596 : vector<16x16xf32>
    %1598 = vector.extract_strided_slice %1561 {offsets = [3, 0], sizes = [16, 16], strides = [1, 1]} : vector<22x16xf32> to vector<16x16xf32>
    %1599 = vector.broadcast %1593 : f32 to vector<16x16xf32>
    %1600 = arith.mulf %1599, %1598 : vector<16x16xf32>
    %1601 = arith.addf %1597, %1600 : vector<16x16xf32>
    %c230 = arith.constant 230 : index
    %1602 = memref.load %arg1[%c230] : memref<294xf32, #tpu.memory_space<smem>>
    %c279 = arith.constant 279 : index
    %1603 = memref.load %arg1[%c279] : memref<294xf32, #tpu.memory_space<smem>>
    %1604 = vector.extract_strided_slice %1560 {offsets = [4, 0], sizes = [16, 16], strides = [1, 1]} : vector<22x16xf32> to vector<16x16xf32>
    %1605 = vector.broadcast %1602 : f32 to vector<16x16xf32>
    %1606 = arith.mulf %1605, %1604 : vector<16x16xf32>
    %1607 = arith.addf %1571, %1606 : vector<16x16xf32>
    %1608 = vector.extract_strided_slice %1561 {offsets = [4, 0], sizes = [16, 16], strides = [1, 1]} : vector<22x16xf32> to vector<16x16xf32>
    %1609 = vector.broadcast %1603 : f32 to vector<16x16xf32>
    %1610 = arith.mulf %1609, %1608 : vector<16x16xf32>
    %1611 = arith.addf %1607, %1610 : vector<16x16xf32>
    %c237 = arith.constant 237 : index
    %1612 = memref.load %arg1[%c237] : memref<294xf32, #tpu.memory_space<smem>>
    %c286 = arith.constant 286 : index
    %1613 = memref.load %arg1[%c286] : memref<294xf32, #tpu.memory_space<smem>>
    %1614 = vector.extract_strided_slice %1560 {offsets = [5, 0], sizes = [16, 16], strides = [1, 1]} : vector<22x16xf32> to vector<16x16xf32>
    %1615 = vector.broadcast %1612 : f32 to vector<16x16xf32>
    %1616 = arith.mulf %1615, %1614 : vector<16x16xf32>
    %1617 = arith.addf %1581, %1616 : vector<16x16xf32>
    %1618 = vector.extract_strided_slice %1561 {offsets = [5, 0], sizes = [16, 16], strides = [1, 1]} : vector<22x16xf32> to vector<16x16xf32>
    %1619 = vector.broadcast %1613 : f32 to vector<16x16xf32>
    %1620 = arith.mulf %1619, %1618 : vector<16x16xf32>
    %1621 = arith.addf %1617, %1620 : vector<16x16xf32>
    %c244 = arith.constant 244 : index
    %1622 = memref.load %arg1[%c244] : memref<294xf32, #tpu.memory_space<smem>>
    %c293 = arith.constant 293 : index
    %1623 = memref.load %arg1[%c293] : memref<294xf32, #tpu.memory_space<smem>>
    %1624 = vector.extract_strided_slice %1560 {offsets = [6, 0], sizes = [16, 16], strides = [1, 1]} : vector<22x16xf32> to vector<16x16xf32>
    %1625 = vector.broadcast %1622 : f32 to vector<16x16xf32>
    %1626 = arith.mulf %1625, %1624 : vector<16x16xf32>
    %1627 = arith.addf %1591, %1626 : vector<16x16xf32>
    %1628 = vector.extract_strided_slice %1561 {offsets = [6, 0], sizes = [16, 16], strides = [1, 1]} : vector<22x16xf32> to vector<16x16xf32>
    %1629 = vector.broadcast %1623 : f32 to vector<16x16xf32>
    %1630 = arith.mulf %1629, %1628 : vector<16x16xf32>
    %1631 = arith.addf %1627, %1630 : vector<16x16xf32>
    %1632 = arith.addf %1631, %1601 : vector<16x16xf32>
    %1633 = arith.addf %1632, %1611 : vector<16x16xf32>
    %1634 = arith.addf %1633, %1621 : vector<16x16xf32>
    %c8_118 = arith.constant 8 : index
    %1635 = memref.load %arg2[%c8_118] : memref<12xf32, #tpu.memory_space<smem>>
    %c9_119 = arith.constant 9 : index
    %1636 = memref.load %arg2[%c9_119] : memref<12xf32, #tpu.memory_space<smem>>
    %c10_120 = arith.constant 10 : index
    %1637 = memref.load %arg2[%c10_120] : memref<12xf32, #tpu.memory_space<smem>>
    %c11_121 = arith.constant 11 : index
    %1638 = memref.load %arg2[%c11_121] : memref<12xf32, #tpu.memory_space<smem>>
    %1639 = vector.broadcast %1637 : f32 to vector<16x16xf32>
    %1640 = arith.subf %1634, %1639 : vector<16x16xf32>
    %cst_122 = arith.constant 9.99999974E-6 : f32
    %1641 = arith.addf %1638, %cst_122 : f32
    %1642 = math.rsqrt %1641 : f32
    %1643 = vector.broadcast %1642 : f32 to vector<16x16xf32>
    %1644 = arith.mulf %1640, %1643 : vector<16x16xf32>
    %1645 = vector.broadcast %1635 : f32 to vector<16x16xf32>
    %1646 = arith.mulf %1644, %1645 : vector<16x16xf32>
    %1647 = vector.broadcast %1636 : f32 to vector<16x16xf32>
    %1648 = arith.addf %1646, %1647 : vector<16x16xf32>
    %1649 = arith.negf %1648 : vector<16x16xf32>
    %1650 = math.exp %1649 : vector<16x16xf32>
    %cst_123 = arith.constant 1.000000e+00 : f32
    %1651 = vector.broadcast %cst_123 : f32 to vector<16x16xf32>
    %1652 = arith.addf %1651, %1650 : vector<16x16xf32>
    %1653 = arith.divf %1651, %1652 : vector<16x16xf32>
    %cst_124 = arith.constant 0.333333343 : f32
    %1654 = vector.broadcast %cst_124 : f32 to vector<16x16xf32>
    %1655 = arith.mulf %1653, %1654 : vector<16x16xf32>
    %c0_125 = arith.constant 0 : index
    %c0_126 = arith.constant 0 : index
    %1656 = vector.load %arg10[%c0_125, %c0_126] : memref<16x16xf32, #tpu.memory_space<vmem>>, vector<16x16xf32>
    tpu.vector_store %arg10[%c0_125, %c0_126], %1655 {strides = array<i32>} : memref<16x16xf32, #tpu.memory_space<vmem>>, vector<16x16xf32>,
    %1657 = tpu.iota {dimensions = array<i32: 0>} : vector<16x16xi32>
    %1658 = tpu.iota {dimensions = array<i32: 1>} : vector<16x16xi32>
    %1659 = arith.cmpi eq, %1657, %1658 : vector<16x16xi32>
    %1660 = arith.extui %1659 : vector<16x16xi1> to vector<16x16xi32>
    %1661 = arith.sitofp %1660 : vector<16x16xi32> to vector<16x16xf32>
    %cst_127 = arith.constant 0.333333343 : f32
    %c0_i32 = arith.constant 0 : i32
    %c4_i32 = arith.constant 4 : i32
    %1662 = arith.muli %c0_i32, %c4_i32 : i32
    %1663 = tpu.assume_multiple %1662, 4 : i32
    %c0_128 = arith.constant 0 : index
    %1664 = arith.index_cast %1663 : i32 to index
    %c0_129 = arith.constant 0 : index
    %c0_130 = arith.constant 0 : index
    %1665 = vector.load %arg3[%c0_128, %1664, %c0_129, %c0_130] : memref<1x4x16x16xf32, #tpu.memory_space<vmem>>, vector<1x4x16x16xf32>
    %1666 = vector.shape_cast %1665 : vector<1x4x16x16xf32> to vector<4x16x16xf32>
    %1667 = arith.index_cast %1663 : i32 to index
    %c0_131 = arith.constant 0 : index
    %1668 = vector.load %arg8[%1667, %c0_131] : memref<4x16xf32, #tpu.memory_space<vmem>>, vector<4x16xf32>
    %1669 = arith.index_cast %1663 : i32 to index
    %c0_132 = arith.constant 0 : index
    %1670 = vector.load %arg9[%1669, %c0_132] : memref<4x16xf32, #tpu.memory_space<vmem>>, vector<4x16xf32>
    %c0_133 = arith.constant 0 : index
    %c0_134 = arith.constant 0 : index
    %1671 = vector.load %arg10[%c0_133, %c0_134] : memref<16x16xf32, #tpu.memory_space<vmem>>, vector<16x16xf32>
    %1672 = vector.broadcast %cst_127 : f32 to vector<4x16xf32>
    %1673 = arith.mulf %1668, %1672 : vector<4x16xf32>
    %cst_135 = arith.constant dense<0.000000e+00> : vector<16x4xf32>
    %1674 = tpu.matmul %1661, %1670, %cst_135 {dimension_numbers = #tpu.dot_dimension_numbers<[1], [1], [0], [0], [0, 0, 1, 0], [], []>} : vector<16x16xf32>, vector<4x16xf32>, vector<16x4xf32> -> vector<16x4xf32>
    %1675 = vector.extract_strided_slice %1666 {offsets = [0, 0, 0], sizes = [1, 16, 16], strides = [1, 1, 1]} : vector<4x16x16xf32> to vector<1x16x16xf32>
    %1676 = vector.shape_cast %1675 : vector<1x16x16xf32> to vector<16x16xf32>
    %1677 = vector.extract_strided_slice %1668 {offsets = [0, 0], sizes = [1, 16], strides = [1, 1]} : vector<4x16xf32> to vector<1x16xf32>
    %1678 = vector.extract_strided_slice %1673 {offsets = [0, 0], sizes = [1, 16], strides = [1, 1]} : vector<4x16xf32> to vector<1x16xf32>
    %1679 = vector.extract_strided_slice %1674 {offsets = [0, 0], sizes = [16, 1], strides = [1, 1]} : vector<16x4xf32> to vector<16x1xf32>
    %1680 = vector.broadcast %1678 : vector<1x16xf32> to vector<16x16xf32>
    %1681 = arith.addf %1680, %1671 : vector<16x16xf32>
    %1682 = vector.broadcast %1679 : vector<16x1xf32> to vector<16x16xf32>
    %1683 = arith.mulf %1682, %1681 : vector<16x16xf32>
    %1684 = vector.broadcast %1677 : vector<1x16xf32> to vector<16x16xf32>
    %1685 = arith.mulf %1684, %1671 : vector<16x16xf32>
    %1686 = arith.addf %1683, %1685 : vector<16x16xf32>
    %1687 = arith.mulf %1676, %1676 : vector<16x16xf32>
    %1688 = arith.mulf %1687, %1686 : vector<16x16xf32>
    %1689 = vector.shape_cast %1688 : vector<16x16xf32> to vector<1x16x16xf32>
    %c0_i32_136 = arith.constant 0 : i32
    %1690 = arith.addi %1663, %c0_i32_136 : i32
    %c0_137 = arith.constant 0 : index
    %1691 = arith.index_cast %1690 : i32 to index
    %c0_138 = arith.constant 0 : index
    %c0_139 = arith.constant 0 : index
    %1692 = vector.load %arg4[%c0_137, %1691, %c0_138, %c0_139] : memref<1x4x16x16xf32, #tpu.memory_space<vmem>>, vector<1x1x16x16xf32>
    %1693 = vector.shape_cast %1692 : vector<1x1x16x16xf32> to vector<1x16x16xf32>
    %1694 = vector.shape_cast %1689 : vector<1x16x16xf32> to vector<1x1x16x16xf32>
    tpu.vector_store %arg4[%c0_137, %1691, %c0_138, %c0_139], %1694 {strides = array<i32>} : memref<1x4x16x16xf32, #tpu.memory_space<vmem>>, vector<1x1x16x16xf32>,
    %1695 = vector.extract_strided_slice %1666 {offsets = [1, 0, 0], sizes = [1, 16, 16], strides = [1, 1, 1]} : vector<4x16x16xf32> to vector<1x16x16xf32>
    %1696 = vector.shape_cast %1695 : vector<1x16x16xf32> to vector<16x16xf32>
    %1697 = vector.extract_strided_slice %1668 {offsets = [1, 0], sizes = [1, 16], strides = [1, 1]} : vector<4x16xf32> to vector<1x16xf32>
    %1698 = vector.extract_strided_slice %1673 {offsets = [1, 0], sizes = [1, 16], strides = [1, 1]} : vector<4x16xf32> to vector<1x16xf32>
    %1699 = vector.extract_strided_slice %1674 {offsets = [0, 1], sizes = [16, 1], strides = [1, 1]} : vector<16x4xf32> to vector<16x1xf32>
    %1700 = vector.broadcast %1698 : vector<1x16xf32> to vector<16x16xf32>
    %1701 = arith.addf %1700, %1671 : vector<16x16xf32>
    %1702 = vector.broadcast %1699 : vector<16x1xf32> to vector<16x16xf32>
    %1703 = arith.mulf %1702, %1701 : vector<16x16xf32>
    %1704 = vector.broadcast %1697 : vector<1x16xf32> to vector<16x16xf32>
    %1705 = arith.mulf %1704, %1671 : vector<16x16xf32>
    %1706 = arith.addf %1703, %1705 : vector<16x16xf32>
    %1707 = arith.mulf %1696, %1696 : vector<16x16xf32>
    %1708 = arith.mulf %1707, %1706 : vector<16x16xf32>
    %1709 = vector.shape_cast %1708 : vector<16x16xf32> to vector<1x16x16xf32>
    %c1_i32 = arith.constant 1 : i32
    %1710 = arith.addi %1663, %c1_i32 : i32
    %c0_140 = arith.constant 0 : index
    %1711 = arith.index_cast %1710 : i32 to index
    %c0_141 = arith.constant 0 : index
    %c0_142 = arith.constant 0 : index
    %1712 = vector.load %arg4[%c0_140, %1711, %c0_141, %c0_142] : memref<1x4x16x16xf32, #tpu.memory_space<vmem>>, vector<1x1x16x16xf32>
    %1713 = vector.shape_cast %1712 : vector<1x1x16x16xf32> to vector<1x16x16xf32>
    %1714 = vector.shape_cast %1709 : vector<1x16x16xf32> to vector<1x1x16x16xf32>
    tpu.vector_store %arg4[%c0_140, %1711, %c0_141, %c0_142], %1714 {strides = array<i32>} : memref<1x4x16x16xf32, #tpu.memory_space<vmem>>, vector<1x1x16x16xf32>,
    %1715 = vector.extract_strided_slice %1666 {offsets = [2, 0, 0], sizes = [1, 16, 16], strides = [1, 1, 1]} : vector<4x16x16xf32> to vector<1x16x16xf32>
    %1716 = vector.shape_cast %1715 : vector<1x16x16xf32> to vector<16x16xf32>
    %1717 = vector.extract_strided_slice %1668 {offsets = [2, 0], sizes = [1, 16], strides = [1, 1]} : vector<4x16xf32> to vector<1x16xf32>
    %1718 = vector.extract_strided_slice %1673 {offsets = [2, 0], sizes = [1, 16], strides = [1, 1]} : vector<4x16xf32> to vector<1x16xf32>
    %1719 = vector.extract_strided_slice %1674 {offsets = [0, 2], sizes = [16, 1], strides = [1, 1]} : vector<16x4xf32> to vector<16x1xf32>
    %1720 = vector.broadcast %1718 : vector<1x16xf32> to vector<16x16xf32>
    %1721 = arith.addf %1720, %1671 : vector<16x16xf32>
    %1722 = vector.broadcast %1719 : vector<16x1xf32> to vector<16x16xf32>
    %1723 = arith.mulf %1722, %1721 : vector<16x16xf32>
    %1724 = vector.broadcast %1717 : vector<1x16xf32> to vector<16x16xf32>
    %1725 = arith.mulf %1724, %1671 : vector<16x16xf32>
    %1726 = arith.addf %1723, %1725 : vector<16x16xf32>
    %1727 = arith.mulf %1716, %1716 : vector<16x16xf32>
    %1728 = arith.mulf %1727, %1726 : vector<16x16xf32>
    %1729 = vector.shape_cast %1728 : vector<16x16xf32> to vector<1x16x16xf32>
    %c2_i32 = arith.constant 2 : i32
    %1730 = arith.addi %1663, %c2_i32 : i32
    %c0_143 = arith.constant 0 : index
    %1731 = arith.index_cast %1730 : i32 to index
    %c0_144 = arith.constant 0 : index
    %c0_145 = arith.constant 0 : index
    %1732 = vector.load %arg4[%c0_143, %1731, %c0_144, %c0_145] : memref<1x4x16x16xf32, #tpu.memory_space<vmem>>, vector<1x1x16x16xf32>
    %1733 = vector.shape_cast %1732 : vector<1x1x16x16xf32> to vector<1x16x16xf32>
    %1734 = vector.shape_cast %1729 : vector<1x16x16xf32> to vector<1x1x16x16xf32>
    tpu.vector_store %arg4[%c0_143, %1731, %c0_144, %c0_145], %1734 {strides = array<i32>} : memref<1x4x16x16xf32, #tpu.memory_space<vmem>>, vector<1x1x16x16xf32>,
    %1735 = vector.extract_strided_slice %1666 {offsets = [3, 0, 0], sizes = [1, 16, 16], strides = [1, 1, 1]} : vector<4x16x16xf32> to vector<1x16x16xf32>
    %1736 = vector.shape_cast %1735 : vector<1x16x16xf32> to vector<16x16xf32>
    %1737 = vector.extract_strided_slice %1668 {offsets = [3, 0], sizes = [1, 16], strides = [1, 1]} : vector<4x16xf32> to vector<1x16xf32>
    %1738 = vector.extract_strided_slice %1673 {offsets = [3, 0], sizes = [1, 16], strides = [1, 1]} : vector<4x16xf32> to vector<1x16xf32>
    %1739 = vector.extract_strided_slice %1674 {offsets = [0, 3], sizes = [16, 1], strides = [1, 1]} : vector<16x4xf32> to vector<16x1xf32>
    %1740 = vector.broadcast %1738 : vector<1x16xf32> to vector<16x16xf32>
    %1741 = arith.addf %1740, %1671 : vector<16x16xf32>
    %1742 = vector.broadcast %1739 : vector<16x1xf32> to vector<16x16xf32>
    %1743 = arith.mulf %1742, %1741 : vector<16x16xf32>
    %1744 = vector.broadcast %1737 : vector<1x16xf32> to vector<16x16xf32>
    %1745 = arith.mulf %1744, %1671 : vector<16x16xf32>
    %1746 = arith.addf %1743, %1745 : vector<16x16xf32>
    %1747 = arith.mulf %1736, %1736 : vector<16x16xf32>
    %1748 = arith.mulf %1747, %1746 : vector<16x16xf32>
    %1749 = vector.shape_cast %1748 : vector<16x16xf32> to vector<1x16x16xf32>
    %c3_i32 = arith.constant 3 : i32
    %1750 = arith.addi %1663, %c3_i32 : i32
    %c0_146 = arith.constant 0 : index
    %1751 = arith.index_cast %1750 : i32 to index
    %c0_147 = arith.constant 0 : index
    %c0_148 = arith.constant 0 : index
    %1752 = vector.load %arg4[%c0_146, %1751, %c0_147, %c0_148] : memref<1x4x16x16xf32, #tpu.memory_space<vmem>>, vector<1x1x16x16xf32>
    %1753 = vector.shape_cast %1752 : vector<1x1x16x16xf32> to vector<1x16x16xf32>
    %1754 = vector.shape_cast %1749 : vector<1x16x16xf32> to vector<1x1x16x16xf32>
    tpu.vector_store %arg4[%c0_146, %1751, %c0_147, %c0_148], %1754 {strides = array<i32>} : memref<1x4x16x16xf32, #tpu.memory_space<vmem>>, vector<1x1x16x16xf32>,
    %c1_i32_149 = arith.constant 1 : i32
    return
  }
  func.func @transform_0(%arg0: i32) -> i32 {
    %c0_i32 = arith.constant 0 : i32
    %c0_i32_0 = arith.constant 0 : i32
    return %c0_i32 : i32
  }
  func.func @transform_1(%arg0: i32) -> i32 {
    %c0_i32 = arith.constant 0 : i32
    %c0_i32_0 = arith.constant 0 : i32
    return %c0_i32 : i32
  }
  func.func @transform_2(%arg0: i32) -> (i32, i32, i32, i32) {
    %c0_i32 = arith.constant 0 : i32
    %c0_i32_0 = arith.constant 0 : i32
    %c0_i32_1 = arith.constant 0 : i32
    %c0_i32_2 = arith.constant 0 : i32
    return %arg0, %c0_i32, %c0_i32_0, %c0_i32_1 : i32, i32, i32, i32
  }
  func.func @transform_3(%arg0: i32) -> (i32, i32, i32, i32) {
    %c0_i32 = arith.constant 0 : i32
    %c0_i32_0 = arith.constant 0 : i32
    %c0_i32_1 = arith.constant 0 : i32
    %c0_i32_2 = arith.constant 0 : i32
    return %arg0, %c0_i32, %c0_i32_0, %c0_i32_1 : i32, i32, i32, i32
  }
}

</mosaic_0001>

<bundles_post_ra>
// kernel: cda_forward.1
= control target key start
LH: loop header
LB: loop body
LE: loop exit
PB: predicated region body
PF: predicated region fallthrough
CT: control target
= control target key end

     0   :  { %s9527_s0 = inlined_call_operand.vmem [shape: f32[294], index: 0, kind: input, shape index: {}]   ;;  %s9528_s1 = inlined_call_operand.vmem [shape: f32[12], index: 1, kind: input, shape index: {}]   ;;  %s9529_s2 = inlined_call_operand.hbm [shape: f32[2,4,16,16], index: 2, kind: input, shape index: {}]   ;;  %s9530_s3 = inlined_call_operand.hbm [shape: f32[2,4,16,16], index: 3, kind: output, shape index: {}]  }
   0x1   :  { %9578 = sst [smem:[#allocation149_spill]] %s9527_s0 }
   0x2   :  { %9579 = sst [smem:[#allocation150_spill]] %s9528_s1 }
   0x3   :  { %9580 = sst [smem:[#allocation151_spill]] %s9529_s2 }
   0x4   :  { %9581 = sst [smem:[#allocation152_spill]] %s9530_s3 }
   0x5   :  { %8 = vsyncpa [#allocation11], 0 }
   0x6   :  { %9 = vsyncpa [#allocation13], 0 }
   0x7   :  { %10 = vsyncpa [#allocation9], 0 }
   0x8   :  { %12 = vsyncpa [#allocation9 + $0x1], 0 }
   0x9   :  { %13 = vsyncpa [#allocation10], 0 }
   0xa   :  { %15 = vsyncpa [#allocation10 + $0x1], 0  ;;  %s5703_s12 = smov 0   ;;  %s5705_s13 = smov 0  }
   0xb   :  { %s5707_s14 = smov 0   ;;  %s5709_s15 = smov 0  }
   0xc LB: > { %9582 = sst [smem:[#allocation20_spill]] %s5649_s12  ;;  %s5724_s16 = sadd.s32 4294967295, %s5661_s15   ;;  %s5661_s15 = sphi %s5709_s15, %s9946_s15   ;;  %s5657_s14 = sphi %s5707_s14, %s9949_s14   ;;  %s5653_s13 = sphi %s5705_s13, %s9948_s13   ;;  %s5649_s12 = sphi %s5703_s12, %s9947_s12  }
   0xd   : > { %9583 = sst [smem:[#allocation21_spill]] %s5653_s13  ;;  %s5037_s17 = sadd.s32 4294967294, %s5661_s15  }
   0xe   : > { %9584 = sst [smem:[#allocation22_spill]] %s5657_s14  ;;  %s5728_s18 = sadd.s32 1, %s5661_s15  }
   0xf   : > { %9585 = sst [smem:[#allocation23_spill]] %s5661_s15  ;;  %s70_s19 = sadd.s32 1, %s5657_s14 }
  0x10   : > { %9586 = sst [smem:[#allocation24_spill]] %s5724_s16  ;;  %s67_s20 = ssub.s32 %s5661_s15, %s5728_s18 }
  0x11   : > { %9587 = sst [smem:[#allocation25_spill]] %s5728_s18  ;;  %p77_p0 = scmp.ne.s32.totalorder %s5657_s14, %s5653_s13 }
  0x12   : > { %p68_p1 = scmp.eq.s32.totalorder %s67_s20, 0  ;;  %p78_p2 = scmp.eq.s32.totalorder %s5661_s15, 0 }
  0x13   : > { %p83_p3 = scmp.ne.s32.totalorder %s5653_s13, %s5649_s12  ;;  %p9531_p4 = scmp.eq.s32.totalorder %s5724_s16, 0 }
  0x14   : > { %s5740_s21 = scalar_select %p68_p1, %s5657_s14, %s70_s19  }
  0x15   : > { %p5742_p5 = por %p78_p2, %p77_p0  ;;  %p5748_p6 = por %p9531_p4, %p83_p3 }
  0x16   : > { %9588 = sst [smem:[#allocation26_spill]] %s5740_s21  ;;  %p107_p7 = scmp.eq.s32.totalorder %s5724_s16, 1 }
  0x17   : > { %s9590_s23 = scalar_select %p5748_p6, 1, 0 }
  0x18   : > { %p113_p8 = scmp.eq.s32.totalorder %s5037_s17, 1  ;;  %p5038_p9 = scmp.ge.s32.totalorder %s5661_s15, 1 }
  0x19   : > { %p120_p10 = scmp.lt.s32.totalorder %s5661_s15, 3  ;;  %p5755_p11 = por %p107_p7, %p77_p0 }
  0x1a   : > { %p5759_p12 = por %p113_p8, %p83_p3  ;;  %s9596_s0 = sld [smem:[#allocation149_spill]] }
  0x1b   : > { %s9591_s24 = scalar_select %p5755_p11, 1, 0 }
  0x1c   : > { %s9593_s25 = scalar_select %p5759_p12, 1, 0 }
  0x1d   : > { %9592 = sst [smem:[#allocation27_spill]] %s9591_s24  ;;  %p5763_p13 = pnand %p5038_p9, %p120_p10 }
  0x1e   : > { %9594 = sst [smem:[#allocation28_spill]] %s9593_s25  ;;  %p5419_p2 = scmp.lt.s32.totalorder %s5661_s15, 2 }
  0x1f   : > { %s9595_s26 = scalar_select %p5763_p13, 1, 0 }
  0x20   : > { %s133_s29 = sshll.u32 %s9596_s0, 4  ;;  %p5402_p1 = pneg %p5763_p13  ;;  %s134_s29 = int_to_ptr.vmem [resolvable:$true] %s133_s29 }
  0x21   : > { %s9598_s1 = sld [smem:[#allocation150_spill]]  ;;  %p5785_p3 = pnand %p5419_p2, %p5742_p5 }
  0x22   : > { %p5776_p7 = pnand %p5402_p1, %p9531_p4  ;;  %s5527_s8 = scalar_lea.vmem %s134_s29, 48 }
  0x23   : > { %s9599_s7 = scalar_select %p5785_p3, 1, 0 }
  0x24   : > { %p5528_p8 = scmp.ne.s32.totalorder %s134_s29, %s5527_s8  ;;  %p5529_p9 = pneg %p5776_p7 }
  0x25   : > { %s5534_s9 = scalar_lea.vmem %s134_s29, 64  ;;  %p5535_p0 = scmp.lt.s32.totalorder %s134_s29, %s134_s29 }
  0x26   : > { %p5530_p10 = pnand %p5529_p9, %p5528_p8  ;;  %p5536_p4 = scmp.lt.s32.totalorder %s5534_s9, %s5527_s8 }
  0x27   : > { %s144_s6 = sshll.u32 %s9598_s1, 4  ;;  %s145_s6 = int_to_ptr.vmem [resolvable:$true] %s144_s6 }
  0x28   : > { %p5531_p1 = pneg %p5530_p10  ;;  %p5537_p12 = por %p5536_p4, %p5535_p0 }
  0x2a   : > { %p5538_p11 = pnand %p5537_p12, %p5531_p1 }
  0x2c   : > { %5541 = shalt.err (!%p5538_p11)
}
  0x2d   : > { %s5663_s10 = smov [#allocation8]   ;;  %s155_s11 = sand.u32 1, %s5657_s14  }
  0x2e   : > { %5405 = dma.vmem_to_smem (!%p5776_p7), %s134_s29, 48, %s5663_s10, [#allocation11]  }
  0x2f   : > { %s5542_s17 = scalar_lea.vmem %s145_s6, 16  ;;  %p5550_p10 = scmp.lt.s32.totalorder %s145_s6, %s145_s6 }
  0x30   : > { %p5543_p5 = scmp.ne.s32.totalorder %s145_s6, %s5542_s17  ;;  %p5551_p6 = scmp.lt.s32.totalorder %s5542_s17, %s5542_s17 }
  0x32   : > { %p5545_p2 = pnand %p5543_p5, %p5529_p9  ;;  %p5552_p13 = por %p5551_p6, %p5550_p10 }
  0x34   : > { %p5546_p8 = pneg %p5545_p2 }
  0x36   : > { %p5553_p3 = pnand %p5552_p13, %p5546_p8 }
  0x38   : > { %5556 = shalt.err (!%p5553_p3)
}
  0x39   : > { %s5664_s19 = smov [#allocation12]   ;;  %s5042_s20 = sshll.u32 %s155_s11, 6 }
  0x3a   : > { %5408 = dma.vmem_to_smem (!%p5776_p7), %s145_s6, 16, %s5664_s19, [#allocation13]  }
  0x3b   : > { %s5374_s22 = sshll.u32 %s5661_s15, 10  ;;  %s9600_s2 = sld [smem:[#allocation151_spill]] }
  0x3c   : > { %s159_s4 = scalar_lea.vmem [#allocation14], %s5042_s20  ;;  %s5810_s30 = scalar_lea.sflag [#allocation9], %s155_s11 }
  0x3d   : > { %s166_s5 = sshll.u32 %s159_s4, 4  ;;  %p9601_p6 = scmp.ne.s32.totalorder %s9599_s7, 0  ;;  %s5808_s5 = int_to_ptr.vmem [resolvable:$true] %s166_s5 }
  0x3f   : > { %p5559_p11 = pneg %p9601_p6 }
  0x41   : > { %s5806_s29 = scalar_lea.hbm %s9600_s2, %s5374_s22  ;;  %s5562_s10 = scalar_lea.hbm %s9600_s2, 2048 }
  0x42   : > { %s5557_s8 = scalar_lea.hbm %s5806_s29, 1024  ;;  %p5563_p0 = scmp.lt.u32.totalorder %s5806_s29, %s9600_s2 }
  0x43   : > { %p5558_p4 = scmp.ne.s32.totalorder %s5806_s29, %s5557_s8  ;;  %p5564_p7 = scmp.lt.u32.totalorder %s5562_s10, %s5557_s8 }
  0x44   : > { %p5566_p9 = scmp.lt.u32.totalorder %s5557_s8, %s5806_s29 }
  0x45   : > { %p5560_p12 = pnand %p5559_p11, %p5558_p4  ;;  %p5565_p3 = por %p5564_p7, %p5563_p0 }
  0x47   : > { %p5561_p13 = pneg %p5560_p12  ;;  %p5567_p1 = por %p5566_p9, %p5565_p3 }
  0x49   : > { %p5568_p5 = pnand %p5567_p1, %p5561_p13 }
  0x4b   : > { %5571 = shalt.err (!%p5568_p5)
}
  0x4c   : > { %s5572_s11 = scalar_lea.vmem %s5808_s5, 1024  ;;  %s5665_s20 = smov [#allocation14]  }
  0x4d   : > { %p5573_p2 = scmp.ne.s32.totalorder %s5808_s5, %s5572_s11  ;;  %s5577_s22 = sshll.u32 %s5665_s20, 4  ;;  %s5578_s22 = int_to_ptr.vmem [resolvable:$false] %s5577_s22 }
  0x4e   : > { %s5579_s27 = scalar_lea.vmem %s5578_s22, 2048  ;;  %p5580_p4 = scmp.lt.s32.totalorder %s5808_s5, %s5578_s22 }
  0x4f   : > { %p5575_p8 = pnand %p5573_p2, %p5559_p11  ;;  %p5581_p12 = scmp.lt.s32.totalorder %s5579_s27, %s5572_s11 }
  0x51   : > { %p5576_p10 = pneg %p5575_p8  ;;  %p5582_p0 = por %p5581_p12, %p5580_p4 }
  0x53   : > { %p5583_p7 = pnand %p5582_p0, %p5576_p10 }
  0x55   : > { %5586 = shalt.err (!%p5583_p7)
}
  0x56   : > { %s5666_s28 = smov 128   ;;  %s5667_s4 = smov 8  }
  0x57   : > { %5412 = dma.hbm_to_vmem [thread:$0]  (!%p9601_p6), %s5806_s29, 1024, %s5808_s5, %s5810_s30, %s5666_s28, %s5666_s28, %s5667_s4  }
  0x58   : > { %p9602_p11 = scmp.ne.s32.totalorder %s9595_s26, 0 }
  0x5a   : > { %178 = sbr.rel (%p9602_p11) target bundleno = 1289 (0x509), region = 32 }
  0x61   : > { %p9603_p13 = scmp.eq.s32.totalorder %s5724_s16, 0 }
  0x63   : > { %5632 = dma.done.wait (%p9603_p13), [#allocation11], 48   ;;  %p9604_p3 = pmov %p9603_p13 }
  0x65   : > { %5634 = vsyncadd (%p9604_p3), [#allocation11], 4294967248  ;;  %p9605_p9 = pmov %p9604_p3 }
  0x66   : > { %p9606_p1 = pmov %p9604_p3 }
  0x67   : > { %5636 = dma.done.wait (%p9605_p9), [#allocation13], 16  }
  0x68   : > { %5638 = vsyncadd (%p9606_p1), [#allocation13], 4294967280  ;;  %s5849_s8 = sand.u32 1, %s5653_s13   ;;  %p9609_p6 = scmp.ne.s32.totalorder %s9590_s23, 0 }
  0x69   : > { %9607 = sst [smem:[#allocation29_spill]] %s5849_s8  ;;  %s9536_s26 = sshll.u32 %s5849_s8, 6 }
  0x6a   : > { %s189_s7 = scalar_lea.sflag [#allocation9], %s5849_s8  ;;  %s5855_s29 = scalar_lea.vmem [#allocation14], %s9536_s26 }
  0x6b   : > { %9608 = sst [smem:[#allocation30_spill]] %s5855_s29 }
  0x6c   : > { %5640 = dma.done.wait (%p9609_p6), %s189_s7, 1024  }
  0x6d   : > { %5642 = vsyncadd (%p9609_p6), %s189_s7, 4294966272 }
  0x6e   : > { %197 = sfence }
  0x6f   : > { %v218_v0 = vld [vmem:[%s5855_s29 + $0x10] sm:$0xff]  ;;  %vm224_vm0 = vcmask 130048   ;;  %v216_v1 = vld [vmem:[%s5855_s29] sm:$0xff]  ;;  %v219_v2 = vld [vmem:[%s5855_s29 + $0x18] sm:$0xff]  ;;  %vm355_vm1 = vcmask 174080   ;;  %v9560_v62 = vmov 0.0  }
  0x70   : > { %v5865_v3 = vsel %vm224_vm0, %v218_v0, -inf  ;;  %v5868_v4 = vsel %vm224_vm0, %v216_v1, -inf  ;;  %v217_v5 = vld [vmem:[%s5855_s29 + $0x8] sm:$0xff]  ;;  %v5874_v6 = vsel %vm224_vm0, %v219_v2, -inf  ;;  %v220_v9 = vld [vmem:[%s5855_s29 + $0x20] sm:$0xff]  ;;  %v5887_v11 = vsel %vm224_vm0, %v216_v1, 0.0 }
  0x71   : > { %305 = vmax.xlane.f32.xlu1 %v5865_v3  ;;  %301 = vmax.xlane.f32.xlu0 %v5868_v4  ;;  %v5877_v7 = vsel %vm224_vm0, %v217_v5, -inf  ;;  %v221_v8 = vld [vmem:[%s5855_s29 + $0x28] sm:$0xff]  ;;  %v5884_v10 = vsel %vm224_vm0, %v217_v5, 0.0  ;;  %v5893_v13 = vsel %vm224_vm0, %v220_v9, -inf  ;;  %v223_v15 = vld [vmem:[%s5855_s29 + $0x38] sm:$0xff]  ;;  %v222_v16 = vld [vmem:[%s5855_s29 + $0x30] sm:$0xff]  ;;  %v236_v30 = vmax.f32 %v5865_v3, %v5874_v6 }
  0x72   : > { %v5890_v12 = vsel %vm224_vm0, %v221_v8, -inf  ;;  %v263_v14 = vadd.f32 %v5884_v10, %v5887_v11  ;;  %v5900_v17 = vsel %vm224_vm0, %v219_v2, 0.0  ;;  %v5903_v18 = vsel %vm224_vm0, %v218_v0, 0.0  ;;  %357 = vst.msk [vmem:[#allocation2 + $0x10] sm:$0x7] %vm355_vm1, %v9560_v62  ;;  %s5669_s23 = smov 3  }
  0x73   : > { %v272_v20 = vadd.f32 %v5900_v17, %v5903_v18  ;;  %v5910_v21 = vsel %vm224_vm0, %v223_v15, -inf  ;;  %v5913_v22 = vsel %vm224_vm0, %v222_v16, -inf  ;;  %v5916_v23 = vsel %vm224_vm0, %v221_v8, 0.0  ;;  %359 = vst.msk [vmem:[#allocation2 + $0x17] sm:$0x7] %vm355_vm1, %v9560_v62  ;;  %s6087_s5 = sld [smem:[#allocation8 + $0x35]] }
  0x74   : > { %v264_v19 = vrot.slane %v263_v14, 4  ;;  %v5919_v24 = vsel %vm224_vm0, %v220_v9, 0.0  ;;  %v227_v31 = vmax.f32 %v5868_v4, %v5877_v7  ;;  %v5930_v32 = vsel %vm224_vm0, %v223_v15, 0.0  ;;  %372 = vst.msk [vmem:[#allocation3] sm:$0x7] %vm355_vm1, %v9560_v62  ;;  %s6089_s30 = sld [smem:[#allocation8 + $0x4]] }
  0x75   : > { %307 = vmax.xlane.f32.xlu1 %v5874_v6  ;;  %303 = vmax.xlane.f32.xlu0 %v5877_v7  ;;  %v273_v25 = vrot.slane %v272_v20, 4  ;;  %v281_v26 = vadd.f32 %v5916_v23, %v5919_v24  ;;  %v5933_v33 = vsel %vm224_vm0, %v222_v16, 0.0  ;;  %v245_v35 = vmax.f32 %v5893_v13, %v5890_v12  ;;  %373 = vst.msk [vmem:[#allocation3 + $0x10] sm:$0x7] %vm355_vm1, %v9560_v62  ;;  %s6099_s6 = sld [smem:[#allocation8 + $0x3c]]  ;;  %s6101_s9 = sld [smem:[#allocation8 + $0xb]] }
  0x76   : > { %v265_v27 = vadd.f32 %v264_v19, %v263_v14  ;;  %v290_v34 = vadd.f32 %v5930_v32, %v5933_v33  ;;  %v237_v40 = vrot.slane %v236_v30, 4  ;;  %v228_v41 = vrot.slane %v227_v31, 4  ;;  %374 = vst.msk [vmem:[#allocation3 + $0x7] sm:$0x7] %vm355_vm1, %v9560_v62  ;;  %375 = vst.msk [vmem:[#allocation3 + $0x17] sm:$0x7] %vm355_vm1, %v9560_v62 }
  0x77   : > { %v274_v28 = vadd.f32 %v273_v25, %v272_v20  ;;  %v282_v29 = vrot.slane %v281_v26, 4  ;;  %v246_v43 = vrot.slane %v245_v35, 4  ;;  %v254_v44 = vmax.f32 %v5913_v22, %v5910_v21  ;;  %356 = vst.msk [vmem:[#allocation2] sm:$0x7] %vm355_vm1, %v9560_v62  ;;  %358 = vst.msk [vmem:[#allocation2 + $0x7] sm:$0x7] %vm355_vm1, %v9560_v62 }
  0x78   : > { %v266_v37 = vrot.slane %v265_v27, 2  ;;  %v291_v39 = vrot.slane %v290_v34, 4  ;;  %v238_v48 = vmax.f32 %v236_v30, %v237_v40  ;;  %v229_v49 = vmax.f32 %v227_v31, %v228_v41  ;;  %384 = vst.msk [vmem:[#allocation4] sm:$0x7] %vm355_vm1, %v9560_v62  ;;  %385 = vst.msk [vmem:[#allocation4 + $0x18] sm:$0x7] %vm355_vm1, %v9560_v62 }
  0x79   : > { %311 = vmax.xlane.f32.xlu1 %v5890_v12  ;;  %309 = vmax.xlane.f32.xlu0 %v5893_v13  ;;  %v283_v36 = vadd.f32 %v282_v29, %v281_v26  ;;  %v275_v38 = vrot.slane %v274_v28, 2  ;;  %v5945_v51 = vmax.f32 %v245_v35, %v246_v43  ;;  %v255_v52 = vrot.slane %v254_v44, 4  ;;  %386 = vst.msk [vmem:[#allocation4 + $0x13] sm:$0x7] %vm355_vm1, %v9560_v62  ;;  %s6104_s10 = sld [smem:[#allocation8 + $0x32]]  ;;  %s6106_s17 = sld [smem:[#allocation8 + $0x1]] }
  0x7a   : > { %v292_v42 = vadd.f32 %v291_v39, %v290_v34  ;;  %v267_v46 = vadd.f32 %v266_v37, %v265_v27  ;;  %v239_v56 = vrot.slane %v238_v48, 2  ;;  %v230_v57 = vrot.slane %v229_v49, 2  ;;  %387 = vst.msk [vmem:[#allocation4 + $0x2b] sm:$0x7] %vm355_vm1, %v9560_v62  ;;  %s6109_s19 = sld [smem:[#allocation8 + $0x39]]  ;;  %s6111_s11 = sld [smem:[#allocation8 + $0x8]] }
  0x7b   : > { %v284_v45 = vrot.slane %v283_v36, 2  ;;  %v276_v47 = vadd.f32 %v275_v38, %v274_v28  ;;  %v248_v59 = vrot.slane %v5945_v51, 2  ;;  %v256_v60 = vmax.f32 %v254_v44, %v255_v52  ;;  %s6117_s20 = sld [smem:[#allocation8 + $0x40]]  ;;  %s6119_s22 = sld [smem:[#allocation8 + $0xf]] }
  0x7c   : > { %v293_v50 = vrot.slane %v292_v42, 2  ;;  %v268_v54 = vrot.slane %v267_v46, 1  ;;  %vm360_vm2 = vcmask 23552   ;;  %vm362_vm3 = vcmask 17408   ;;  %s6121_s27 = sld [smem:[#allocation8 + $0x47]]  ;;  %s6123_s28 = sld [smem:[#allocation8 + $0x16]] }
  0x7d   : > { %315 = vmax.xlane.f32.xlu1 %v5910_v21  ;;  %313 = vmax.xlane.f32.xlu0 %v5913_v22  ;;  %v285_v53 = vadd.f32 %v284_v45, %v283_v36  ;;  %v277_v55 = vrot.slane %v276_v47, 1  ;;  %364 = vst.msk [vmem:[#allocation2 + $0x10] sm:$0xff] %vm360_vm2, %v9560_v62  ;;  %vm366_vm4 = vcmask 179352   ;;  %376 = vst.msk [vmem:[#allocation3] sm:$0xff] %vm360_vm2, %v9560_v62  ;;  %v240_v1 = vmax.f32 %v238_v48, %v239_v56  ;;  %s6129_s4 = sld [smem:[#allocation8 + $0x4e]]  ;;  %s6133_s7 = sld [smem:[#allocation8 + $0x1d]] }
  0x7e   : > { %v294_v58 = vadd.f32 %v293_v50, %v292_v42  ;;  %v269_v63 = vadd.f32 %v268_v54, %v267_v46  ;;  %378 = vst.msk [vmem:[#allocation3 + $0x10] sm:$0xff] %vm360_vm2, %v9560_v62  ;;  %389 = vst.msk [vmem:[#allocation4 + $0x8] sm:$0xff] %vm360_vm2, %v9560_v62  ;;  %v231_v2 = vmax.f32 %v229_v49, %v230_v57  ;;  %vm368_vm5 = vcmask 173208   ;;  %s9541_s26 = smov 124   ;;  %s6148_s0 = sld [smem:[#allocation8 + $0x9]] }
  0x7f   : > { %v286_v61 = vrot.slane %v285_v53, 1  ;;  %v278_v0 = vadd.f32 %v277_v55, %v276_v47  ;;  %393 = vst.msk [vmem:[#allocation4 + $0x20] sm:$0xff] %vm360_vm2, %v9560_v62  ;;  %361 = vst.msk [vmem:[#allocation2] sm:$0xff] %vm360_vm2, %v9560_v62  ;;  %v257_v8 = vrot.slane %v256_v60, 2  ;;  %v249_v14 = vmax.f32 %v5945_v51, %v248_v59  ;;  %s6150_s1 = sld [smem:[#allocation8 + $0x41]]  ;;  %s6152_s2 = sld [smem:[#allocation8 + $0x10]] }
  0x80   : > { %388 = vst.msk [vmem:[#allocation4] sm:$0xff] %vm360_vm2, %v9560_v62  ;;  %392 = vst.msk [vmem:[#allocation4 + $0x18] sm:$0xff] %vm360_vm2, %v9560_v62  ;;  %v295_v5 = vrot.slane %v294_v58, 1  ;;  %v297_v15 = vmul.f32 0.0625, %v269_v63  ;;  %v241_v19 = vrot.slane %v240_v1, 1  ;;  %v232_v20 = vrot.slane %v231_v2, 1 }
  0x81   : > { %319 = vadd.xlane.f32.xlu1 %v5884_v10  ;;  %317 = vadd.xlane.f32.xlu0 %v5887_v11  ;;  %365 = vst.msk [vmem:[#allocation2 + $0x18] sm:$0x3] %vm362_vm3, %v9560_v62  ;;  %377 = vst.msk [vmem:[#allocation3 + $0x8] sm:$0x3] %vm362_vm3, %v9560_v62  ;;  %v287_v9 = vadd.f32 %v286_v61, %v285_v53  ;;  %v298_v16 = vmul.f32 0.0625, %v278_v0  ;;  %vm406_vm6 = vcmask 1041409   ;;  %v258_v26 = vmax.f32 %v256_v60, %v257_v8 }
  0x82   : > { %370 = vst.msk [vmem:[#allocation2 + $0x10] sm:$0xff] %vm366_vm4, %v9560_v62  ;;  %380 = vst.msk [vmem:[#allocation3] sm:$0xff] %vm366_vm4, %v9560_v62  ;;  %v296_v25 = vadd.f32 %v295_v5, %v294_v58  ;;  %v250_v28 = vrot.slane %v249_v14, 1  ;;  %vm408_vm7 = vcmask 1042434   ;;  %v242_v30 = vmax.f32 %v240_v1, %v241_v19  ;;  %s6171_s21 = sld [smem:[#allocation8 + $0x34]]  ;;  %s6173_s14 = sld [smem:[#allocation8 + $0x3]] }
  0x83   : > { %379 = vst.msk [vmem:[#allocation3 + $0x18] sm:$0x3] %vm362_vm3, %v9560_v62  ;;  %363 = vst.msk [vmem:[#allocation2 + $0x8] sm:$0x3] %vm362_vm3, %v9560_v62  ;;  %v299_v27 = vmul.f32 0.0625, %v287_v9  ;;  %v421_v29 = vsel %vm406_vm6, %v298_v16, %v297_v15  ;;  %v233_v31 = vmax.f32 %v231_v2, %v232_v20  ;;  %v347_v34 = vadd.f32 %v5903_v18, %v5887_v11  ;;  %s6175_s13 = sld [smem:[#allocation8 + $0x3b]] }
  0x84   : > { %382 = vst.msk [vmem:[#allocation3 + $0x10] sm:$0xff] %vm366_vm4, %v9560_v62  ;;  %367 = vst.msk [vmem:[#allocation2] sm:$0xff] %vm366_vm4, %v9560_v62  ;;  %v300_v35 = vmul.f32 0.0625, %v296_v25  ;;  %vm410_vm8 = vcmask 1043459   ;;  %v259_v37 = vrot.slane %v258_v26, 1  ;;  %v251_v38 = vmax.f32 %v249_v14, %v250_v28  ;;  %s6177_s18 = sld [smem:[#allocation8 + $0xa]] }
  0x85   : > { %323 = vadd.xlane.f32.xlu1 %v5900_v17  ;;  %321 = vadd.xlane.f32.xlu0 %v5903_v18  ;;  %396 = vst.msk [vmem:[#allocation4 + $0x8] sm:$0xff] %vm366_vm4, %v9560_v62  ;;  %400 = vst.msk [vmem:[#allocation4 + $0x20] sm:$0xff] %vm366_vm4, %v9560_v62  ;;  %v422_v36 = vsel %vm408_vm7, %v299_v27, %v421_v29  ;;  %v341_v39 = vmax.f32 %v5868_v4, %v5893_v13  ;;  %vm449_vm9 = vcmask 154712   ;;  %vm390_vm10 = vcmask 21504   ;;  %s6189_s15 = sld [smem:[#allocation8]]  ;;  %s9547_s25 = smov 127  }
  0x86   : > { %395 = vst.msk [vmem:[#allocation4] sm:$0xff] %vm366_vm4, %v9560_v62  ;;  %399 = vst.msk [vmem:[#allocation4 + $0x18] sm:$0xff] %vm366_vm4, %v9560_v62  ;;  %v342_v40 = vmax.f32 %v5865_v3, %v5913_v22  ;;  %v350_v41 = vadd.f32 %v5900_v17, %v5884_v10  ;;  %v407_v42 = vsel %vm406_vm6, %v242_v30, %v233_v31  ;;  %vm397_vm11 = vcmask 177304   ;;  %s6193_s12 = sld [smem:[#allocation8 + $0x31]]  ;;  %s6195_s3 = sld [smem:[#allocation8 + $0x1c]] }
  0x87   : > { %371 = vst.msk [vmem:[#allocation2 + $0x18] sm:$0x3] %vm368_vm5, %v9560_v62  ;;  %381 = vst.msk [vmem:[#allocation3 + $0x8] sm:$0x3] %vm368_vm5, %v9560_v62  ;;  %v348_v43 = vadd.f32 %v347_v34, %v5919_v24  ;;  %v423_v11 = vsel %vm410_vm8, %v300_v35, %v422_v36  ;;  %v260_v18 = vmax.f32 %v258_v26, %v259_v37  ;;  %vm415_vm12 = vcmask 150552   ;;  %s6223_s24 = sld [smem:[#allocation8 + $0x2a]] }
  0x88   : > { %383 = vst.msk [vmem:[#allocation3 + $0x18] sm:$0x3] %vm368_vm5, %v9560_v62  ;;  %369 = vst.msk [vmem:[#allocation2 + $0x8] sm:$0x3] %vm368_vm5, %v9560_v62  ;;  %v409_v44 = vsel %vm408_vm7, %v251_v38, %v407_v42  ;;  %v344_v45 = vmax.f32 %v5877_v7, %v5890_v12  ;;  %v345_v4 = vmax.f32 %v5874_v6, %v5910_v21  ;;  %v437_v6 = vlaneseq  ;;  %s6233_s16 = sld [smem:[#allocation8 + $0x2f]]  ;;  %s6245_s8 = sld [smem:[#allocation8 + $0x38]] }
  0x89   : > { %327 = vadd.xlane.f32.xlu1 %v5916_v23  ;;  %325 = vadd.xlane.f32.xlu0 %v5919_v24  ;;  %v351_v3 = vadd.f32 %v350_v41, %v5916_v23  ;;  %v343_v10 = vmax.f32 %v341_v39, %v342_v40  ;;  %v349_v13 = vadd.f32 %v348_v43, %v5933_v33  ;;  %vm541_vm13 = vcmask 154648   ;;  %9612 = sst [smem:[#allocation33_spill]] %s6175_s13  ;;  %s6247_s29 = sld [smem:[#allocation8 + $0xe]] }
  0x8a   : > { %v411_v17 = vsel %vm410_vm8, %v260_v18, %v409_v44  ;;  %v346_v24 = vmax.f32 %v344_v45, %v345_v4  ;;  %v6047_v12 = vand.u32 127, %v437_v6  ;;  %v6051_v48 = vshrl.u32 %v437_v6, 7  ;;  %391 = vst.msk [vmem:[#allocation4 + $0x10] sm:$0x3f] %vm390_vm10, %v9560_v62  ;;  %394 = vst.msk [vmem:[#allocation4 + $0x28] sm:$0x3f] %vm390_vm10, %v9560_v62 }
  0x8b   : > { %v352_v22 = vadd.f32 %v351_v3, %v5930_v32  ;;  %v353_v46 = vmul.f32 0.25, %v349_v13  ;;  %398 = vst.msk [vmem:[#allocation4 + $0x10] sm:$0x3f] %vm397_vm11, %v9560_v62  ;;  %401 = vst.msk [vmem:[#allocation4 + $0x28] sm:$0x3f] %vm397_vm11, %v9560_v62  ;;  %9613 = sst [smem:[#allocation34_spill]] %s6177_s18 }
  0x8c   : > { %9610 = vst [vmem:[#allocation31_spill] sm:$0xff] %v6047_v12  ;;  %v444_v21 = vadd.s32 4294967285, %v6047_v12  ;;  %9611 = vst [vmem:[#allocation32_spill] sm:$0xff] %v6051_v48  ;;  %vm612_vm14 = vcmask 1043456   ;;  %vm747_vm15 = vcmask 1042432   ;;  %vm890_vm1 = vcmask 1045504  }
  0x8d   : > { %331 = vadd.xlane.f32.xlu1 %v5930_v32  ;;  %329 = vadd.xlane.f32.xlu0 %v5933_v33  ;;  %v354_v7 = vmul.f32 0.25, %v352_v22  ;;  %v439_v33 = vadd.s32 4294967293, %v6047_v12  ;;  %vm917_vm2 = vcmask 1041408   ;;  %vm1034_vm3 = vcmask 1044480  }
  0x8e   : > { %v6054_v32 = vsub.s32 %v444_v21, %v6051_v48  ;;  %vm1532_vm4 = vcmask 125952   ;;  %vm2734_vm5 = vcmask 1046528  }
  0x8f   : > { %v6057_v51 = vsub.s32 %v439_v33, %v6051_v48 }
  0x9e   : > { %424 = vrot.lane.b32.xlu1 %v423_v11, %s5669_s23 }
  0xa2   : > { %535 = vrot.lane.b32.xlu1 %v343_v10, %s5669_s23 }
  0xa3   : > { %412 = vrot.lane.b32.xlu0 %v411_v17, %s5669_s23 }
  0xa6   : > { %537 = vrot.lane.b32.xlu1 %v346_v24, %s5669_s23 }
  0xa7   : > { %546 = vrot.lane.b32.xlu0 %v353_v46, %s5669_s23 }
  0xaa   : > { %548 = vrot.lane.b32.xlu1 %v354_v7, %s5669_s23  ;;  %s6135_s23 = sld [smem:[#allocation8 + $0x33]] }
  0xfe   : > { %v306_v23 = vpop.xlane.xlu1 %305  ;;  %v302_v47 = vpop.xlane.xlu0 %301 }
  0xff   : > { %v454_v56 = vrot.slane %v306_v23, %v6057_v51  ;;  %v443_v57 = vrot.slane %v302_v47, %v6057_v51  ;;  %v1089_v23 = vstv %s6087_s5  ;;  %v1082_v47 = vstv %s6089_s30  ;;  %s6142_s5 = sld [smem:[#allocation8 + $0x2]] }
 0x100   : > { %s6144_s30 = sld [smem:[#allocation8 + $0x3a]] }
 0x102   : > { %v308_v49 = vpop.xlane.xlu1 %307  ;;  %v304_v50 = vpop.xlane.xlu0 %303 }
 0x103   : > { %v458_v52 = vrot.slane %v308_v49, %v6054_v32  ;;  %v448_v53 = vrot.slane %v304_v50, %v6054_v32 }
 0x105   : > { %v459_v60 = vsel %vm449_vm9, %v458_v52, %v454_v56  ;;  %v450_v61 = vsel %vm449_vm9, %v448_v53, %v443_v57  ;;  %v1105_v52 = vstv %s6099_s6  ;;  %v1098_v53 = vstv %s6101_s9  ;;  %s6154_s6 = sld [smem:[#allocation8 + $0x48]]  ;;  %s6160_s9 = sld [smem:[#allocation8 + $0x17]] }
 0x106   : > { %v312_v54 = vpop.xlane.xlu1 %311  ;;  %v310_v55 = vpop.xlane.xlu0 %309  ;;  %v478_v8 = vsel %vm406_vm6, %v459_v60, %v450_v61  ;;  %v678_v61 = vstv %s6109_s19  ;;  %s6181_s19 = sld [smem:[#allocation8 + $0x42]] }
 0x107   : > { %v467_v58 = vrot.slane %v312_v54, %v6054_v32  ;;  %v463_v59 = vrot.slane %v310_v55, %v6057_v51  ;;  %v660_v54 = vstv %s6104_s10  ;;  %v652_v55 = vstv %s6106_s17  ;;  %s6162_s10 = sld [smem:[#allocation8 + $0x4f]]  ;;  %s6167_s17 = sld [smem:[#allocation8 + $0x1e]] }
 0x109   : > { %v468_v63 = vsel %vm449_vm9, %v467_v58, %v463_v59 }
 0x10a   : > { %v316_v0 = vpop.xlane.xlu1 %315  ;;  %v314_v1 = vpop.xlane.xlu0 %313  ;;  %v479_v9 = vsel %vm408_vm7, %v468_v63, %v478_v8  ;;  %v670_v63 = vstv %s6111_s11  ;;  %s6183_s11 = sld [smem:[#allocation8 + $0x15]]  ;;  %v696_v8 = vstv %s6117_s20 }
 0x10b   : > { %v476_v2 = vrot.slane %v316_v0, %v6054_v32  ;;  %v472_v5 = vrot.slane %v314_v1, %v6057_v51  ;;  %s6201_s20 = sld [smem:[#allocation8 + $0x4d]] }
 0x10c   : > { %9614 = sst [smem:[#allocation35_spill]] %s6181_s19 }
 0x10d   : > { %v477_v14 = vsel %vm449_vm9, %v476_v2, %v472_v5 }
 0x10e   : > { %v480_v15 = vsel %vm410_vm8, %v477_v14, %v479_v9  ;;  %v320_v16 = vpop.xlane.xlu1 %319  ;;  %v318_v19 = vpop.xlane.xlu0 %317  ;;  %v688_v9 = vstv %s6119_s22  ;;  %v714_v14 = vstv %s6121_s27  ;;  %s6203_s22 = sld [smem:[#allocation8 + $0x7]]  ;;  %s6209_s27 = sld [smem:[#allocation8 + $0x54]] }
 0x10f   : > { %482 = vst.msk [vmem:[#allocation3 + $0x3] sm:$0xf] %vm415_vm12, %v480_v15  ;;  %v334_v28 = vmul.f32 0.0625, %v320_v16  ;;  %v333_v29 = vmul.f32 0.0625, %v318_v19  ;;  %v706_v15 = vstv %s6123_s28  ;;  %v732_v16 = vstv %s6129_s4  ;;  %s6215_s28 = sld [smem:[#allocation8 + $0x59]]  ;;  %s6217_s4 = sld [smem:[#allocation8 + $0x28]] }
 0x110   : > { %v724_v19 = vstv %s6133_s7  ;;  %s9616_s7 = smov 127  }
 0x111   : > { %v498_v38 = vrot.slane %v334_v28, %v6054_v32  ;;  %v494_v39 = vrot.slane %v333_v29, %v6057_v51  ;;  %v803_v28 = vstv %s6135_s23  ;;  %v795_v29 = vstv %s6142_s5  ;;  %s6225_s23 = sld [smem:[#allocation8 + $0x5b]]  ;;  %s6231_s5 = sld [smem:[#allocation8 + $0x60]] }
 0x112   : > { %v324_v20 = vpop.xlane.xlu1 %323  ;;  %v322_v25 = vpop.xlane.xlu0 %321 }
 0x113   : > { %v336_v26 = vmul.f32 0.0625, %v324_v20  ;;  %v335_v27 = vmul.f32 0.0625, %v322_v25  ;;  %v499_v4 = vsel %vm449_vm9, %v498_v38, %v494_v39  ;;  %v875_v38 = vstv %s6162_s10  ;;  %s6547_s10 = sld [smem:[#allocation8 + $0x2c]] }
 0x114   : > { %9615 = sst [smem:[#allocation36_spill]] %s6203_s22  ;;  %v867_v39 = vstv %s6167_s17  ;;  %s6553_s17 = sld [smem:[#allocation8 + $0x57]] }
 0x115   : > { %v507_v34 = vrot.slane %v336_v26, %v6054_v32  ;;  %v503_v35 = vrot.slane %v335_v27, %v6057_v51 }
 0x116   : > { %v328_v30 = vpop.xlane.xlu1 %327  ;;  %v326_v31 = vpop.xlane.xlu0 %325 }
 0x117   : > { %v338_v36 = vmul.f32 0.0625, %v328_v30  ;;  %v337_v37 = vmul.f32 0.0625, %v326_v31  ;;  %v508_v11 = vsel %vm449_vm9, %v507_v34, %v503_v35  ;;  %v821_v30 = vstv %s6144_s30  ;;  %s6514_s30 = sld [smem:[#allocation8 + $0x2b]] }
 0x118   : > { %v527_v13 = vsel %vm406_vm6, %v508_v11, %v499_v4  ;;  %v813_v31 = vstv %s6148_s0  ;;  %v839_v34 = vstv %s6150_s1  ;;  %v831_v35 = vstv %s6152_s2  ;;  %s6412_s1 = sld [smem:[#allocation8 + $0x30]]  ;;  %s6426_s2 = sld [smem:[#allocation8 + $0x11]] }
 0x119   : > { %v516_v40 = vrot.slane %v338_v36, %v6054_v32  ;;  %v512_v41 = vrot.slane %v337_v37, %v6057_v51  ;;  %v857_v36 = vstv %s6154_s6  ;;  %v849_v37 = vstv %s6160_s9  ;;  %s6523_s6 = sld [smem:[#allocation8 + $0x56]]  ;;  %s6525_s9 = sld [smem:[#allocation8 + $0x25]] }
 0x11a   : > { %v332_v42 = vpop.xlane.xlu1 %331  ;;  %v330_v43 = vpop.xlane.xlu0 %329  ;;  %v947_v11 = vstv %s6171_s21  ;;  %v983_v4 = vstv %s6181_s19  ;;  %s6275_s19 = sld [smem:[#allocation8 + $0x29]]  ;;  %s6484_s21 = sld [smem:[#allocation8 + $0x5c]] }
 0x11b   : > { %v340_v18 = vmul.f32 0.0625, %v332_v42  ;;  %v339_v44 = vmul.f32 0.0625, %v330_v43  ;;  %v517_v45 = vsel %vm449_vm9, %v516_v40, %v512_v41  ;;  %s6632_s0 = sld [smem:[#allocation8 + $0x99]] }
 0x11c   : > { %v528_v24 = vsel %vm408_vm7, %v517_v45, %v527_v13  ;;  %v957_v45 = vstv %s6177_s18  ;;  %v561_v13 = vstv %s6189_s15  ;;  %s6253_s18 = sld [smem:[#allocation8 + $0x3f]]  ;;  %s6716_s15 = sld [smem:[#allocation8 + $0x58]]  ;;  %vm3343_vm7 = vcmask 1040384  }
 0x11d   : > { %v525_v3 = vrot.slane %v340_v18, %v6054_v32  ;;  %v521_v10 = vrot.slane %v339_v44, %v6057_v51  ;;  %v939_v18 = vstv %s6173_s14  ;;  %v965_v44 = vstv %s6175_s13  ;;  %s6255_s13 = sld [smem:[#allocation8 + $0x5a]]  ;;  %s6462_s14 = sld [smem:[#allocation8 + $0x18]] }
 0x11e   : > { %v425_v17 = vpop.permute.xlu1 %424  ;;  %v413_v22 = vpop.permute.xlu0 %412 }
 0x11f   : > { %v526_v46 = vsel %vm449_vm9, %v525_v3, %v521_v10  ;;  %428 = vst.msk [vmem:[#allocation2 + $0x13] sm:$0xf] %vm415_vm12, %v425_v17  ;;  %416 = vst.msk [vmem:[#allocation2 + $0x3] sm:$0xf] %vm415_vm12, %v413_v22  ;;  %v585_v3 = vstv %s6183_s11  ;;  %v564_v17 = vstv %s6193_s12  ;;  %v593_v22 = vstv %s6195_s3  ;;  %s6436_s3 = sld [smem:[#allocation8 + $0x49]]  ;;  %s6575_s11 = sld [smem:[#allocation8 + $0x67]] }
 0x120   : > { %v529_v7 = vsel %vm410_vm8, %v526_v46, %v528_v24  ;;  %s6710_s12 = sld [smem:[#allocation8 + $0x4a]] }
 0x121   : > { %532 = vst.msk [vmem:[#allocation3 + $0x13] sm:$0xf] %vm415_vm12, %v529_v7 }
 0x122   : > { %v536_v6 = vpop.permute.xlu1 %535  ;;  %v547_v21 = vpop.permute.xlu0 %546 }
 0x123   : > { %542 = vst.msk [vmem:[#allocation4 + $0x3] sm:$0xff] %vm541_vm13, %v536_v6  ;;  %553 = vst.msk [vmem:[#allocation4 + $0x1b] sm:$0xff] %vm541_vm13, %v547_v21  ;;  %v599_v21 = vstv %s6201_s20  ;;  %s6579_s20 = sld [smem:[#allocation8 + $0x5e]] }
 0x126   : > { %v6125_v33 = vld [vmem:[#allocation2 + $0x10] sm:$0xff]  ;;  %v6127_v32 = vld [vmem:[#allocation2] sm:$0xff]  ;;  %v538_v49 = vpop.permute.xlu1 %537 }
 0x127   : > { %v1090_v50 = vmul.f32 %v1089_v23, %v6125_v33  ;;  %v1083_v51 = vmul.f32 %v1082_v47, %v6127_v32  ;;  %543 = vst.msk [vmem:[#allocation4 + $0xb] sm:$0xff] %vm541_vm13, %v538_v49  ;;  %v1106_v57 = vmul.f32 %v1105_v52, %v6125_v33  ;;  %v1099_v58 = vmul.f32 %v1098_v53, %v6127_v32 }
 0x128   : > { %v661_v59 = vmul.f32 %v660_v54, %v6125_v33  ;;  %v653_v60 = vmul.f32 %v652_v55, %v6127_v32  ;;  %v679_v2 = vmul.f32 %v678_v61, %v6125_v33  ;;  %v671_v5 = vmul.f32 %v670_v63, %v6127_v32 }
 0x129   : > { %1092 = vrot.lane.b32.xlu1 %v1090_v50, %s9541_s26  ;;  %1085 = vrot.lane.b32.xlu0 %v1083_v51, %s9541_s26  ;;  %v697_v26 = vmul.f32 %v696_v8, %v6125_v33  ;;  %v689_v27 = vmul.f32 %v688_v9, %v6127_v32  ;;  %v715_v42 = vmul.f32 %v714_v14, %v6125_v33  ;;  %v569_v23 = vstv %s6203_s22  ;;  %v6263_v50 = vld [vmem:[#allocation2 + $0x18] sm:$0x3]  ;;  %v6265_v51 = vld [vmem:[#allocation2 + $0x8] sm:$0x3]  ;;  %s6279_s22 = sld [smem:[#allocation8 + $0x61]] }
 0x12a   : > { %v549_v56 = vpop.permute.xlu1 %548  ;;  %v663_v0 = vrot.slane %v661_v59, 5  ;;  %v655_v1 = vrot.slane %v653_v60, 5  ;;  %v681_v20 = vrot.slane %v679_v2, 1  ;;  %v673_v25 = vrot.slane %v671_v5, 1 }
 0x12b   : > { %554 = vst.msk [vmem:[#allocation4 + $0x23] sm:$0xff] %vm541_vm13, %v549_v56  ;;  %v699_v40 = vrot.slane %v697_v26, 1  ;;  %v691_v41 = vrot.slane %v689_v27, 1  ;;  %v707_v43 = vmul.f32 %v706_v15, %v6127_v32  ;;  %v717_v24 = vrot.slane %v715_v42, 1 }
 0x12c   : > { %v733_v7 = vmul.f32 %v732_v16, %v6125_v33  ;;  %v725_v6 = vmul.f32 %v724_v19, %v6127_v32  ;;  %v618_v49 = vstv %s6209_s27  ;;  %v1318_v52 = vstv %s6215_s28  ;;  %s6591_s27 = sld [smem:[#allocation8 + $0x2d]]  ;;  %s6599_s28 = sld [smem:[#allocation8 + $0x98]] }
 0x12d   : > { %1108 = vrot.lane.b32.xlu1 %v1106_v57, %s9541_s26  ;;  %1101 = vrot.lane.b32.xlu0 %v1099_v58, %s9541_s26  ;;  %s6187_s26 = sld [smem:[#allocation8 + $0x46]]  ;;  %v709_v46 = vrot.slane %v707_v43, 1  ;;  %v1306_v53 = vstv %s6217_s4  ;;  %v630_v54 = vstv %s6223_s24  ;;  %v804_v60 = vmul.f32 %v803_v28, %v6125_v33  ;;  %s6616_s4 = sld [smem:[#allocation8 + $0x63]] }
 0x12e   : > { %v640_v55 = vstv %s6225_s23  ;;  %v1344_v56 = vstv %s6231_s5  ;;  %v1332_v57 = vstv %s6233_s16  ;;  %v735_v58 = vrot.slane %v733_v7, 1  ;;  %s6472_s16 = sld [smem:[#allocation8 + $0x55]]  ;;  %s6618_s23 = sld [smem:[#allocation8 + $0x94]] }
 0x12f   : > { %v727_v59 = vrot.slane %v725_v6, 1  ;;  %v796_v61 = vmul.f32 %v795_v29, %v6127_v32  ;;  %v6299_v2 = vmul.f32 %v1306_v53, %v6265_v51  ;;  %v572_v5 = vstv %s6245_s8  ;;  %s5672_s8 = smov 126   ;;  %s6630_s5 = sld [smem:[#allocation8 + $0x64]] }
 0x130   : > { %v6307_v8 = vmul.f32 %v630_v54, %v6265_v51  ;;  %v6312_v9 = vmul.f32 %v640_v55, %v6263_v50  ;;  %v6317_v14 = vmul.f32 %v1344_v56, %v6263_v50  ;;  %v577_v15 = vstv %s6247_s29  ;;  %s5673_s29 = smov 125   ;;  %s6737_s24 = sld [smem:[#allocation8 + $0x5f]] }
 0x131   : > { %664 = vrot.lane.b32.xlu1 %v663_v0, %s9547_s25  ;;  %656 = vrot.lane.b32.xlu0 %v655_v1, %s9547_s25  ;;  %s6207_s25 = sld [smem:[#allocation8 + $0x23]]  ;;  %v6289_v0 = vmul.f32 %v618_v49, %v6263_v50  ;;  %v6294_v1 = vmul.f32 %v1318_v52, %v6263_v50  ;;  %v580_v16 = vstv %s6253_s18  ;;  %v6324_v19 = vmul.f32 %v1332_v57, %v6265_v51  ;;  %s6474_s18 = sld [smem:[#allocation8 + $0x24]] }
 0x132   : > { %v798_v26 = vrot.slane %v796_v61, 6  ;;  %v822_v27 = vmul.f32 %v821_v30, %v6125_v33  ;;  %v814_v28 = vmul.f32 %v813_v31, %v6127_v32  ;;  %v1312_v42 = vrot.slane %v6299_v2, 5 }
 0x133   : > { %v588_v10 = vstv %s6187_s26  ;;  %v840_v30 = vmul.f32 %v839_v34, %v6125_v33  ;;  %v636_v31 = vrot.slane %v6307_v8, 4  ;;  %v646_v43 = vrot.slane %v6312_v9, 4  ;;  %s6508_s26 = sld [smem:[#allocation8 + $0x1f]] }
 0x134   : > { %v1338_v7 = vrot.slane %v6324_v19, 5  ;;  %v824_v34 = vrot.slane %v822_v27, 6  ;;  %v1486_v61 = vstv %s6279_s22  ;;  %v975_v9 = vstv %s6426_s2  ;;  %s6581_s22 = sld [smem:[#allocation8 + $0x68]]  ;;  %s6700_s2 = sld [smem:[#allocation8 + $0x43]] }
 0x135   : > { %682 = vrot.lane.b32.xlu1 %v681_v20, %s9616_s7  ;;  %674 = vrot.lane.b32.xlu0 %v673_v25, %s9616_s7  ;;  %v1460_v20 = vstv %s6255_s13  ;;  %v806_v25 = vrot.slane %v804_v60, 6  ;;  %v858_v60 = vmul.f32 %v857_v36, %v6125_v33  ;;  %v842_v36 = vrot.slane %v840_v30, 2  ;;  %s6545_s13 = sld [smem:[#allocation8 + $0x5d]] }
 0x136   : > { %v6352_v6 = vmul.f32 %v1460_v20, %v6263_v50  ;;  %v594_v30 = vmul.f32 %v593_v22, %v6127_v32  ;;  %v1488_v8 = vmul.f32 %v1486_v61, %v6263_v50  ;;  %v1461_v19 = vmul.f32 %v1460_v20, %v6125_v33 }
 0x137   : > { %v607_v47 = vstv %s6207_s25  ;;  %s6506_s25 = sld [smem:[#allocation8 + $0x50]]  ;;  %v976_v20 = vmul.f32 %v975_v9, %v6127_v32 }
 0x138   : > { %v6284_v63 = vmul.f32 %v607_v47, %v6265_v51  ;;  %v608_v22 = vmul.f32 %v607_v47, %v6127_v32 }
 0x139   : > { %700 = vrot.lane.b32.xlu1 %v699_v40, %s9616_s7  ;;  %692 = vrot.lane.b32.xlu0 %v691_v41, %s9616_s7  ;;  %v624_v40 = vrot.slane %v6289_v0, 4  ;;  %v1324_v41 = vrot.slane %v6294_v1, 5  ;;  %v1333_v1 = vmul.f32 %v1332_v57, %v6127_v32 }
 0x13a   : > { %v614_v29 = vrot.slane %v6284_v63, 4  ;;  %v876_v63 = vmul.f32 %v875_v38, %v6125_v33  ;;  %v562_v38 = vmul.f32 %v561_v13, %v6127_v32 }
 0x13b   : > { %v1337_v2 = vrot.slane %v1333_v1, 5 }
 0x13d   : > { %718 = vrot.lane.b32.xlu1 %v717_v24, %s9616_s7  ;;  %710 = vrot.lane.b32.xlu0 %v709_v46, %s9616_s7  ;;  %v1350_v24 = vrot.slane %v6317_v14, 5  ;;  %v832_v46 = vmul.f32 %v831_v35, %v6127_v32  ;;  %v850_v35 = vmul.f32 %v849_v37, %v6127_v32  ;;  %v868_v37 = vmul.f32 %v867_v39, %v6127_v32 }
 0x13e   : > { %v6395_v39 = vmul.f32 %v939_v18, %v6127_v32 }
 0x13f   : > { %v834_v27 = vrot.slane %v832_v46, 2  ;;  %v596_v46 = vrot.slane %v594_v30, 4  ;;  %v852_v18 = vrot.slane %v850_v35, 2  ;;  %v578_v35 = vmul.f32 %v577_v15, %v6127_v32 }
 0x141   : > { %736 = vrot.lane.b32.xlu1 %v735_v58, %s9616_s7  ;;  %728 = vrot.lane.b32.xlu0 %v727_v59, %s9616_s7  ;;  %v1448_v58 = vstv %s6275_s19  ;;  %v816_v59 = vrot.slane %v814_v28, 6  ;;  %s6555_s19 = sld [smem:[#allocation8 + $0x26]] }
 0x145   : > { %807 = vrot.lane.b32.xlu1 %v806_v25, %s5672_s8  ;;  %799 = vrot.lane.b32.xlu0 %v798_v26, %s5672_s8  ;;  %v586_v25 = vmul.f32 %v585_v3, %v6127_v32  ;;  %v589_v26 = vmul.f32 %v588_v10, %v6125_v33  ;;  %v565_v3 = vmul.f32 %v564_v17, %v6125_v33 }
 0x146   : > { %v6385_v10 = vmul.f32 %v947_v11, %v6125_v33  ;;  %v600_v17 = vmul.f32 %v599_v21, %v6125_v33  ;;  %v570_v11 = vmul.f32 %v569_v23, %v6127_v32 }
 0x147   : > { %v6387_v28 = vadd.f32 %v589_v26, %v586_v25  ;;  %v566_v13 = vadd.f32 %v565_v3, %v562_v38  ;;  %v619_v25 = vmul.f32 %v618_v49, %v6125_v33  ;;  %v1319_v38 = vmul.f32 %v1318_v52, %v6125_v33 }
 0x148   : > { %v602_v21 = vrot.slane %v600_v17, 4  ;;  %v631_v52 = vmul.f32 %v630_v54, %v6127_v32  ;;  %v870_v17 = vrot.slane %v868_v37, 2  ;;  %v1450_v37 = vmul.f32 %v1448_v58, %v6265_v51 }
 0x149   : > { %825 = vrot.lane.b32.xlu1 %v824_v34, %s5672_s8  ;;  %817 = vrot.lane.b32.xlu0 %v816_v59, %s5672_s8  ;;  %v860_v34 = vrot.slane %v858_v60, 2  ;;  %v573_v59 = vmul.f32 %v572_v5, %v6125_v33  ;;  %v878_v60 = vrot.slane %v876_v63, 2  ;;  %v598_v23 = vadd.f32 %v596_v46, %v566_v13 }
 0x14a   : > { %v613_v5 = vrot.slane %v608_v22, 4  ;;  %v623_v47 = vrot.slane %v619_v25, 4  ;;  %v581_v63 = vmul.f32 %v580_v16, %v6125_v33  ;;  %v635_v54 = vrot.slane %v631_v52, 4 }
 0x14b   : > { %v574_v26 = vadd.f32 %v573_v59, %v570_v11  ;;  %v6428_v49 = vadd.f32 %v602_v21, %v598_v23  ;;  %v1345_v13 = vmul.f32 %v1344_v56, %v6125_v33  ;;  %v966_v46 = vmul.f32 %v965_v44, %v6125_v33 }
 0x14c   : > { %v615_v3 = vsel %vm612_vm14, %v613_v5, %v614_v29  ;;  %v625_v15 = vsel %vm612_vm14, %v623_v47, %v624_v40  ;;  %v582_v30 = vadd.f32 %v581_v63, %v578_v35  ;;  %v942_v22 = vrot.slane %v6395_v39, 7 }
 0x14d   : > { %843 = vrot.lane.b32.xlu1 %v842_v36, %s5672_s8  ;;  %835 = vrot.lane.b32.xlu0 %v834_v27, %s5672_s8  ;;  %v1307_v36 = vmul.f32 %v1306_v53, %v6127_v32  ;;  %v1323_v27 = vrot.slane %v1319_v38, 5  ;;  %v617_v53 = vadd.f32 %v615_v3, %v574_v26  ;;  %v6503_v44 = vsel %vm747_vm15, %v1337_v2, %v1338_v7 }
 0x14e   : > { %v968_v7 = vrot.slane %v966_v46, 7  ;;  %v984_v39 = vmul.f32 %v983_v4, %v6125_v33  ;;  %v1492_v21 = vrot.slane %v1488_v8, 6  ;;  %v1487_v23 = vmul.f32 %v1486_v61, %v6125_v33 }
 0x14f   : > { %v1311_v16 = vrot.slane %v1307_v36, 5  ;;  %v6444_v29 = vsel %vm747_vm15, %v1323_v27, %v1324_v41  ;;  %v6452_v0 = vadd.f32 %v625_v15, %v617_v53  ;;  %v1349_v41 = vrot.slane %v1345_v13, 5 }
 0x150   : > { %v993_v26 = vstv %s6462_s14  ;;  %v755_v47 = vstv %s6472_s16  ;;  %v1491_v35 = vrot.slane %v1487_v23, 6  ;;  %v781_v61 = vstv %s6484_s21  ;;  %s6714_s14 = sld [smem:[#allocation8 + $0x19]]  ;;  %s6723_s16 = sld [smem:[#allocation8 + $0x27]] }
 0x151   : > { %861 = vrot.lane.b32.xlu1 %v860_v34, %s5672_s8  ;;  %853 = vrot.lane.b32.xlu0 %v852_v18, %s5672_s8  ;;  %v641_v34 = vmul.f32 %v640_v55, %v6125_v33  ;;  %v6457_v40 = vsel %vm747_vm15, %v1311_v16, %v1312_v42  ;;  %v637_v55 = vsel %vm612_vm14, %v635_v54, %v636_v31  ;;  %v1474_v42 = vstv %s6412_s1  ;;  %s6637_s1 = sld [smem:[#allocation8 + $0x95]]  ;;  %s6730_s21 = sld [smem:[#allocation8 + $0x20]] }
 0x152   : > { %v639_v57 = vadd.f32 %v637_v55, %v582_v30  ;;  %v950_v31 = vrot.slane %v6385_v10, 7  ;;  %v6492_v59 = vsel %vm747_vm15, %v1349_v41, %v1350_v24  ;;  %v958_v10 = vmul.f32 %v957_v45, %v6127_v32 }
 0x153   : > { %v645_v56 = vrot.slane %v641_v34, 4  ;;  %v1476_v14 = vmul.f32 %v1474_v42, %v6265_v51  ;;  %v1001_v45 = vstv %s6436_s3  ;;  %v1454_v24 = vrot.slane %v1450_v37, 2  ;;  %s6702_s3 = sld [smem:[#allocation8 + $0x12]] }
 0x154   : > { %v960_v25 = vrot.slane %v958_v10, 7  ;;  %v1475_v4 = vmul.f32 %v1474_v42, %v6127_v32  ;;  %v1002_v63 = vmul.f32 %v1001_v45, %v6125_v33  ;;  %v986_v52 = vrot.slane %v984_v39, 7 }
 0x155   : > { %879 = vrot.lane.b32.xlu1 %v878_v60, %s5672_s8  ;;  %871 = vrot.lane.b32.xlu0 %v870_v17, %s5672_s8  ;;  %v647_v11 = vsel %vm612_vm14, %v645_v56, %v646_v43  ;;  %v1466_v43 = vrot.slane %v6352_v6, 2  ;;  %v1449_v60 = vmul.f32 %v1448_v58, %v6127_v32  ;;  %v1465_v6 = vrot.slane %v1461_v19, 2 }
 0x156   : > { %v6498_v18 = vadd.f32 %v647_v11, %v639_v57  ;;  %v1480_v38 = vrot.slane %v1476_v14, 6  ;;  %v742_v58 = vstv %s6474_s18  ;;  %v1479_v27 = vrot.slane %v1475_v4, 6  ;;  %s6728_s18 = sld [smem:[#allocation8 + $0x51]] }
 0x157   : > { %v1453_v5 = vrot.slane %v1449_v60, 2  ;;  %v6541_v36 = vsel %vm890_vm1, %v1465_v6, %v1466_v43  ;;  %v978_v53 = vrot.slane %v976_v20, 7  ;;  %v994_v15 = vmul.f32 %v993_v26, %v6127_v32  ;;  %v6603_v60 = vld [vmem:[#allocation3 + $0x8] sm:$0x3] }
 0x158   : > { %v6558_v16 = vsel %vm917_vm2, %v1491_v35, %v1492_v21  ;;  %v1019_v30 = vstv %s6506_s25  ;;  %v1011_v54 = vstv %s6508_s26  ;;  %v6563_v34 = vsel %vm917_vm2, %v1479_v27, %v1480_v38  ;;  %s6739_s25 = sld [smem:[#allocation8 + $0x2e]]  ;;  %s9623_s26 = smov 124  }
 0x159   : > { %951 = vrot.lane.b32.xlu1 %v950_v31, %s5673_s29  ;;  %943 = vrot.lane.b32.xlu0 %v942_v22, %s5673_s29  ;;  %v6550_v3 = vsel %vm890_vm1, %v1453_v5, %v1454_v24  ;;  %v757_v13 = vmul.f32 %v755_v47, %v6263_v50  ;;  %v744_v17 = vmul.f32 %v742_v58, %v6265_v51  ;;  %v769_v55 = vstv %s6514_s30  ;;  %s6768_s30 = sld [smem:[#allocation8 + $0x36]] }
 0x15a   : > { %v6570_v1 = vmul.f32 %v781_v61, %v6263_v50  ;;  %v898_v56 = vstv %s6523_s6  ;;  %v885_v41 = vstv %s6525_s9  ;;  %v1004_v37 = vrot.slane %v1002_v63, 3  ;;  %s6770_s6 = sld [smem:[#allocation8 + $0x5]] }
 0x15b   : > { %v996_v57 = vrot.slane %v994_v15, 3  ;;  %v1020_v2 = vmul.f32 %v1019_v30, %v6125_v33  ;;  %v1012_v8 = vmul.f32 %v1011_v54, %v6127_v32  ;;  %v756_v42 = vmul.f32 %v755_v47, %v6125_v33  ;;  %s5122_s9 = sld [smem:[#allocation8 + $0x3d]] }
 0x15c   : > { %v743_v31 = vmul.f32 %v742_v58, %v6127_v32  ;;  %v761_v46 = vrot.slane %v757_v13, 5  ;;  %v749_v11 = vrot.slane %v744_v17, 5  ;;  %v771_v22 = vmul.f32 %v769_v55, %v6265_v51 }
 0x15d   : > { %969 = vrot.lane.b32.xlu1 %v968_v7, %s5673_s29  ;;  %961 = vrot.lane.b32.xlu0 %v960_v25, %s5673_s29  ;;  %v6589_v10 = vmul.f32 %v898_v56, %v6263_v50  ;;  %v787_v9 = vrot.slane %v6570_v1, 5  ;;  %v6595_v14 = vmul.f32 %v885_v41, %v6265_v51  ;;  %v925_v45 = vstv %s6545_s13  ;;  %s5121_s13 = sld [smem:[#allocation8 + $0xc]] }
 0x15e   : > { %v912_v19 = vstv %s6547_s10  ;;  %v1022_v43 = vrot.slane %v1020_v2, 3  ;;  %v1014_v24 = vrot.slane %v1012_v8, 3  ;;  %v1042_v7 = vstv %s6553_s17  ;;  %s6786_s10 = sld [smem:[#allocation8 + $0x44]]  ;;  %s6788_s17 = sld [smem:[#allocation8 + $0x13]] }
 0x15f   : > { %v1029_v39 = vstv %s6555_s19  ;;  %v760_v21 = vrot.slane %v756_v42, 5  ;;  %v748_v25 = vrot.slane %v743_v31, 5  ;;  %v782_v20 = vmul.f32 %v781_v61, %v6125_v33  ;;  %s6796_s19 = sld [smem:[#allocation8 + $0x4b]] }
 0x160   : > { %v770_v6 = vmul.f32 %v769_v55, %v6127_v32  ;;  %v775_v23 = vrot.slane %v771_v22, 5  ;;  %v904_v26 = vrot.slane %v6589_v10, 2  ;;  %v6611_v5 = vmul.f32 %v925_v45, %v6263_v50 }
 0x161   : > { %987 = vrot.lane.b32.xlu1 %v986_v52, %s5673_s29  ;;  %979 = vrot.lane.b32.xlu0 %v978_v53, %s5673_s29  ;;  %v6614_v4 = vmul.f32 %v912_v19, %v6265_v51  ;;  %v892_v38 = vrot.slane %v6595_v14, 2  ;;  %v6622_v47 = vmul.f32 %v1042_v7, %v6263_v50  ;;  %v6627_v58 = vmul.f32 %v1029_v39, %v6265_v51 }
 0x162   : > { %v1586_v35 = vstv %s6575_s11  ;;  %v899_v63 = vmul.f32 %v898_v56, %v6125_v33  ;;  %v886_v61 = vmul.f32 %v885_v41, %v6127_v32  ;;  %v1068_v27 = vstv %s6579_s20  ;;  %v6648_v56 = vld [vmem:[#allocation3 + $0x18] sm:$0x3]  ;;  %s6798_s11 = sld [smem:[#allocation8 + $0x1a]] }
 0x163   : > { %v1608_v52 = vstv %s6581_s22  ;;  %v762_v53 = vsel %vm747_vm15, %v760_v21, %v761_v46  ;;  %v750_v15 = vsel %vm747_vm15, %v748_v25, %v749_v11  ;;  %v786_v30 = vrot.slane %v782_v20, 5  ;;  %s6808_s20 = sld [smem:[#allocation8 + $0x52]]  ;;  %s6812_s22 = sld [smem:[#allocation8 + $0x21]] }
 0x164   : > { %v774_v54 = vrot.slane %v770_v6, 5  ;;  %v931_v13 = vrot.slane %v6611_v5, 6  ;;  %v919_v17 = vrot.slane %v6614_v4, 6  ;;  %v1056_v1 = vstv %s6591_s27  ;;  %s5149_s27 = sld [smem:[#allocation12 + $0x3]] }
 0x165   : > { %1005 = vrot.lane.b32.xlu1 %v1004_v37, %s5673_s29  ;;  %997 = vrot.lane.b32.xlu0 %v996_v57, %s5673_s29  ;;  %v1588_v55 = vmul.f32 %v1586_v35, %v6603_v60  ;;  %v1048_v41 = vrot.slane %v6622_v47, 3  ;;  %v6652_v37 = vmul.f32 %v1068_v27, %v6263_v50  ;;  %v1596_v57 = vstv %s6599_s28  ;;  %s5674_s28 = smov 123  }
 0x166   : > { %v6658_v2 = vmul.f32 %v1608_v52, %v6603_v60  ;;  %v903_v8 = vrot.slane %v899_v63, 2  ;;  %v926_v42 = vmul.f32 %v925_v45, %v6125_v33  ;;  %v913_v31 = vmul.f32 %v912_v19, %v6127_v32 }
 0x167   : > { %v1036_v46 = vrot.slane %v6627_v58, 3  ;;  %v788_v11 = vsel %vm747_vm15, %v786_v30, %v787_v9  ;;  %v776_v22 = vsel %vm747_vm15, %v774_v54, %v775_v23  ;;  %v891_v10 = vrot.slane %v886_v61, 2 }
 0x168   : > { %v6666_v14 = vmul.f32 %v1056_v1, %v6265_v51  ;;  %v1548_v45 = vstv %s6616_s4  ;;  %v1551_v19 = vstv %s6618_s23  ;;  %v1592_v9 = vrot.slane %v1588_v55, 4  ;;  %s5134_s23 = sld [smem:[#allocation8 + $0x37]] }
 0x169   : > { %1023 = vrot.lane.b32.xlu1 %v1022_v43, %s5673_s29  ;;  %1015 = vrot.lane.b32.xlu0 %v1014_v24, %s5673_s29  ;;  %v6668_v43 = vld [vmem:[#allocation3] sm:$0xff]  ;;  %v6670_v24 = vld [vmem:[#allocation3 + $0x10] sm:$0xff]  ;;  %v1598_v21 = vmul.f32 %v1596_v57, %v6648_v56  ;;  %v1043_v25 = vmul.f32 %v1042_v7, %v6125_v33  ;;  %v1556_v20 = vstv %s6630_s5  ;;  %v1614_v6 = vrot.slane %v6658_v2, 4  ;;  %s5133_s5 = sld [smem:[#allocation8 + $0x6]] }
 0x16a   : > { %v1618_v23 = vstv %s6632_s0  ;;  %v905_v5 = vsel %vm890_vm1, %v903_v8, %v904_v26  ;;  %v930_v4 = vrot.slane %v926_v42, 6  ;;  %v918_v63 = vrot.slane %v913_v31, 6  ;;  %s1516_s4 = sadd.f32 1e-05, %s5149_s27  ;;  %s5136_s0 = sld [smem:[#allocation8 + $0x3e]] }
 0x16b   : > { %v1559_v61 = vstv %s6637_s1  ;;  %v1549_v30 = vmul.f32 %v1548_v45, %v6668_v43  ;;  %v1552_v54 = vmul.f32 %v1551_v19, %v6670_v24  ;;  %v1587_v7 = vmul.f32 %v1586_v35, %v6668_v43  ;;  %s5135_s1 = sld [smem:[#allocation8 + $0xd]]  ;;  %s6972_s27 = sld [smem:[#allocation8 + $0xa0]] }
 0x16c   : > { %v1597_v26 = vmul.f32 %v1596_v57, %v6670_v24  ;;  %v1602_v55 = vrot.slane %v1598_v21, 4  ;;  %v1620_v2 = vmul.f32 %v1618_v23, %v6648_v56  ;;  %v1069_v8 = vmul.f32 %v1068_v27, %v6125_v33 }
 0x16d   : > { %763 = vrot.lane.b32.xlu1 %v762_v53, %s9616_s7  ;;  %751 = vrot.lane.b32.xlu0 %v750_v15, %s9616_s7  ;;  %v893_v53 = vsel %vm890_vm1, %v891_v10, %v892_v38  ;;  %v1030_v15 = vmul.f32 %v1029_v39, %v6127_v32  ;;  %v1047_v38 = vrot.slane %v1043_v25, 3  ;;  %v1057_v39 = vmul.f32 %v1056_v1, %v6127_v32 }
 0x16e   : > { %v1553_v42 = vadd.f32 %v1552_v54, %v1549_v30  ;;  %v1591_v31 = vrot.slane %v1587_v7, 4  ;;  %v1560_v10 = vmul.f32 %v1559_v61, %v6670_v24  ;;  %v932_v35 = vsel %vm917_vm2, %v930_v4, %v931_v13 }
 0x16f   : > { %v920_v57 = vsel %vm917_vm2, %v918_v63, %v919_v17  ;;  %v1035_v45 = vrot.slane %v1030_v15, 3  ;;  %v1609_v27 = vmul.f32 %v1608_v52, %v6668_v43  ;;  %v1074_v1 = vrot.slane %v6652_v37, 3 }
 0x170   : > { %v1593_v13 = vsel %vm612_vm14, %v1591_v31, %v1592_v9  ;;  %v1619_v52 = vmul.f32 %v1618_v23, %v6670_v24  ;;  %v1049_v37 = vsel %vm1034_vm3, %v1047_v38, %v1048_v41  ;;  %v1061_v4 = vrot.slane %v1057_v39, 3 }
 0x171   : > { %789 = vrot.lane.b32.xlu1 %v788_v11, %s9616_s7  ;;  %777 = vrot.lane.b32.xlu0 %v776_v22, %s9616_s7  ;;  %v1601_v11 = vrot.slane %v1597_v26, 4  ;;  %v1557_v22 = vmul.f32 %v1556_v20, %v6668_v43  ;;  %v1595_v21 = vadd.f32 %v1593_v13, %v1553_v42  ;;  %v1613_v25 = vrot.slane %v1609_v27, 4 }
 0x172   : > { %v1624_v20 = vrot.slane %v1620_v2, 4  ;;  %v1062_v9 = vrot.slane %v6666_v14, 3  ;;  %v1037_v63 = vsel %vm1034_vm3, %v1035_v45, %v1036_v46  ;;  %v1623_v41 = vrot.slane %v1619_v52, 4 }
 0x173   : > { %v1603_v17 = vsel %vm612_vm14, %v1601_v11, %v1602_v55  ;;  %v1561_v19 = vadd.f32 %v1560_v10, %v1557_v22  ;;  %v1615_v47 = vsel %vm612_vm14, %v1613_v25, %v1614_v6  ;;  %v1114_v15 = vstv %s6702_s3  ;;  %s6856_s3 = sld [smem:[#allocation8 + $0x14]] }
 0x174   : > { %v6732_v23 = vadd.f32 %v1603_v17, %v1595_v21  ;;  %v1625_v46 = vsel %vm612_vm14, %v1623_v41, %v1624_v20  ;;  %v1063_v61 = vsel %vm1034_vm3, %v1061_v4, %v1062_v9  ;;  %v1115_v54 = vmul.f32 %v1114_v15, %v6127_v32 }
 0x175   : > { %906 = vrot.lane.b32.xlu1 %v905_v5, %s5672_s8  ;;  %894 = vrot.lane.b32.xlu0 %v893_v53, %s5672_s8  ;;  %v1073_v5 = vrot.slane %v1069_v8, 3  ;;  %v1617_v58 = vadd.f32 %v1615_v47, %v1561_v19  ;;  %v1121_v53 = vstv %s6700_s2  ;;  %v1176_v7 = vstv %s6716_s15  ;;  %s6854_s2 = sld [smem:[#allocation8 + $0x45]]  ;;  %s5142_s15 = sld [smem:[#allocation8 + $0x53]] }
 0x176   : > { %9621 = vst [vmem:[#allocation37_spill] sm:$0xff] %v6732_v23  ;;  %v1122_v30 = vmul.f32 %v1121_v53, %v6125_v33  ;;  %v1164_v26 = vstv %s6723_s16  ;;  %v1137_v55 = vstv %s6710_s12  ;;  %v1130_v2 = vstv %s6714_s14  ;;  %s6868_s12 = sld [smem:[#allocation8 + $0x4c]]  ;;  %s6870_s14 = sld [smem:[#allocation8 + $0x1b]] }
 0x177   : > { %v6742_v14 = vadd.f32 %v1625_v46, %v1617_v58  ;;  %v1075_v6 = vsel %vm1034_vm3, %v1073_v5, %v1074_v1  ;;  %v1154_v38 = vstv %s6728_s18  ;;  %v1146_v8 = vstv %s6730_s21  ;;  %s5141_s16 = sld [smem:[#allocation8 + $0x22]]  ;;  %s5675_s18 = smov 122  }
 0x178   : > { %v1178_v39 = vmul.f32 %v1176_v7, %v6263_v50  ;;  %v1166_v42 = vmul.f32 %v1164_v26, %v6265_v51  ;;  %v1202_v31 = vstv %s6737_s24  ;;  %v1190_v11 = vstv %s6739_s25  ;;  %s5166_s21 = sld [smem:[#allocation8 + $0x9a]]  ;;  %s5165_s24 = sld [smem:[#allocation8 + $0x69]] }
 0x179   : > { %933 = vrot.lane.b32.xlu1 %v932_v35, %s5672_s8  ;;  %921 = vrot.lane.b32.xlu0 %v920_v57, %s5672_s8  ;;  %9622 = vst [vmem:[#allocation38_spill] sm:$0xff] %v6742_v14  ;;  %v1138_v22 = vmul.f32 %v1137_v55, %v6125_v33  ;;  %v1131_v10 = vmul.f32 %v1130_v2, %v6127_v32  ;;  %v1216_v9 = vstv %s6770_s6  ;;  %v1242_v15 = vstv %s5122_s9  ;;  %s5168_s25 = sld [smem:[#allocation8 + $0x9b]]  ;;  %s6922_s6 = sld [smem:[#allocation8 + $0x9c]] }
 0x17a   : > { %v1155_v35 = vmul.f32 %v1154_v38, %v6125_v33  ;;  %v1147_v57 = vmul.f32 %v1146_v8, %v6127_v32  ;;  %v1177_v45 = vmul.f32 %v1176_v7, %v6125_v33  ;;  %v1165_v27 = vmul.f32 %v1164_v26, %v6127_v32  ;;  %v6802_v7 = vld [vmem:[#allocation2 + $0x10] sm:$0xff]  ;;  %v6805_v26 = vld [vmem:[#allocation2] sm:$0xff]  ;;  %s6924_s9 = sld [smem:[#allocation8 + $0x6b]] }
 0x17b   : > { %v1204_v1 = vmul.f32 %v1202_v31, %v6263_v50  ;;  %v1192_v13 = vmul.f32 %v1190_v11, %v6265_v51  ;;  %v1182_v21 = vrot.slane %v1178_v39, 4  ;;  %v1170_v25 = vrot.slane %v1166_v42, 4 }
 0x17c   : > { %v1157_v17 = vrot.slane %v1155_v35, 4  ;;  %v1149_v19 = vrot.slane %v1147_v57, 4  ;;  %v1181_v52 = vrot.slane %v1177_v45, 4  ;;  %v1169_v20 = vrot.slane %v1165_v27, 4 }
 0x17d   : > { %1050 = vrot.lane.b32.xlu1 %v1049_v37, %s5673_s29  ;;  %1038 = vrot.lane.b32.xlu0 %v1037_v63, %s5673_s29  ;;  %v1203_v37 = vmul.f32 %v1202_v31, %v6125_v33  ;;  %v1191_v5 = vmul.f32 %v1190_v11, %v6127_v32  ;;  %v1208_v50 = vrot.slane %v1204_v1, 4  ;;  %v1196_v4 = vrot.slane %v1192_v13, 4 }
 0x17e   : > { %v1224_v51 = vstv %s6768_s30  ;;  %v1183_v63 = vsel %vm612_vm14, %v1181_v52, %v1182_v21  ;;  %v1171_v47 = vsel %vm612_vm14, %v1169_v20, %v1170_v25  ;;  %v1260_v2 = vstv %s6786_s10  ;;  %s5167_s30 = sld [smem:[#allocation8 + $0x6a]]  ;;  %s6938_s10 = sld [smem:[#allocation8 + $0x6c]] }
 0x17f   : > { %v1207_v41 = vrot.slane %v1203_v37, 4  ;;  %v1195_v58 = vrot.slane %v1191_v5, 4  ;;  %v1225_v46 = vmul.f32 %v1224_v51, %v6125_v33  ;;  %v1252_v38 = vstv %s6788_s17  ;;  %s6944_s17 = sld [smem:[#allocation8 + $0x9f]] }
 0x180   : > { %v1261_v11 = vmul.f32 %v6802_v7, %v1260_v2  ;;  %v1270_v35 = vstv %s6798_s11  ;;  %v1288_v21 = vstv %s6812_s22  ;;  %v1517_v25 = vstv %s1516_s4  ;;  %s6956_s11 = sld [smem:[#allocation8 + $0x9e]]  ;;  %s6962_s22 = sld [smem:[#allocation8 + $0x6f]] }
 0x181   : > { %1076 = vrot.lane.b32.xlu1 %v1075_v6, %s5673_s29  ;;  %1064 = vrot.lane.b32.xlu0 %v1063_v61, %s5673_s29  ;;  %v1217_v6 = vmul.f32 %v1216_v9, %v6127_v32  ;;  %v1209_v61 = vsel %vm612_vm14, %v1207_v41, %v1208_v50  ;;  %v1197_v53 = vsel %vm612_vm14, %v1195_v58, %v1196_v4  ;;  %5480 = vrsqrt.f32 %v1517_v25  ;;  %s6997_s4 = sld [smem:[#allocation8 + $0xa1]] }
 0x182   : > { %v1243_v32 = vmul.f32 %v6802_v7, %v1242_v15  ;;  %v1263_v27 = vrot.slane %v1261_v11, 1  ;;  %v1289_v4 = vmul.f32 %v6805_v26, %v1288_v21  ;;  %v1394_v11 = vstv %s6856_s3  ;;  %s7044_s3 = sld [smem:[#allocation8 + $0xa4]] }
 0x183   : > { %v1219_v33 = vrot.slane %v1217_v6, 5  ;;  %v1366_v6 = vstv %s5134_s23  ;;  %s6999_s23 = sld [smem:[#allocation8 + $0x70]] }
 0x184   : > { %v1245_v42 = vrot.slane %v1243_v32, 1  ;;  %v1376_v32 = vstv %s5135_s1  ;;  %s7028_s1 = sld [smem:[#allocation8 + $0xa3]] }
 0x185   : > { %1124 = vrot.lane.b32.xlu1 %v1122_v30, %s9623_s26  ;;  %1117 = vrot.lane.b32.xlu0 %v1115_v54, %s9623_s26  ;;  %v1234_v30 = vstv %s5121_s13  ;;  %v1227_v54 = vrot.slane %v1225_v46, 5  ;;  %s6936_s13 = sld [smem:[#allocation8 + $0x9d]] }
 0x186   : > { %v1235_v55 = vmul.f32 %v6805_v26, %v1234_v30  ;;  %v1367_v30 = vmul.f32 %v6802_v7, %v1366_v6 }
 0x188   : > { %v1237_v31 = vrot.slane %v1235_v55, 1  ;;  %v1369_v55 = vrot.slane %v1367_v30, 6 }
 0x189   : > { %1140 = vrot.lane.b32.xlu1 %v1138_v22, %s9623_s26  ;;  %1133 = vrot.lane.b32.xlu0 %v1131_v10, %s9623_s26  ;;  %v1253_v22 = vmul.f32 %v6805_v26, %v1252_v38  ;;  %v1278_v10 = vstv %s6796_s19  ;;  %s6946_s19 = sld [smem:[#allocation8 + $0x6e]] }
 0x18a   : > { %v1279_v13 = vmul.f32 %v6802_v7, %v1278_v10 }
 0x18b   : > { %v1255_v1 = vrot.slane %v1253_v22, 1  ;;  %v5481_v41 = vpop.eup %5480 }
 0x18c   : > { %v1281_v37 = vrot.slane %v1279_v13, 1  ;;  %5384 = vpush %v5481_v41  ;;  %v1412_v13 = vstv %s6870_s14  ;;  %s7050_s14 = sld [smem:[#allocation8 + $0x74]] }
 0x18d   : > { %1158 = vrot.lane.b32.xlu1 %v1157_v17, %s9623_s26  ;;  %1150 = vrot.lane.b32.xlu0 %v1149_v19, %s9623_s26  ;;  %v1271_v17 = vmul.f32 %v6805_v26, %v1270_v35  ;;  %v1296_v19 = vstv %s6808_s20  ;;  %s6958_s20 = sld [smem:[#allocation8 + $0x6d]] }
 0x18e   : > { %v1297_v50 = vmul.f32 %v6802_v7, %v1296_v19 }
 0x18f   : > { %v1273_v5 = vrot.slane %v1271_v17, 1 }
 0x191   : > { %1184 = vrot.lane.b32.xlu1 %v1183_v63, %s9623_s26  ;;  %1172 = vrot.lane.b32.xlu0 %v1171_v47, %s9623_s26  ;;  %v1299_v63 = vrot.slane %v1297_v50, 1  ;;  %v1291_v47 = vrot.slane %v1289_v4, 1  ;;  %v1438_v50 = vstv %s5142_s15  ;;  %v1430_v4 = vstv %s5141_s16  ;;  %s7052_s15 = sld [smem:[#allocation8 + $0x75]] }
 0x192   : > { %v1431_v30 = vmul.f32 %v6805_v26, %v1430_v4  ;;  %s7062_s16 = sld [smem:[#allocation8 + $0xa5]] }
 0x195   : > { %1210 = vrot.lane.b32.xlu1 %v1209_v61, %s9623_s26  ;;  %1198 = vrot.lane.b32.xlu0 %v1197_v53, %s9623_s26  ;;  %v1358_v61 = vstv %s5133_s5  ;;  %s7014_s5 = sld [smem:[#allocation8 + $0xa2]] }
 0x199   : > { %1228 = vrot.lane.b32.xlu1 %v1227_v54, %s5674_s28  ;;  %1220 = vrot.lane.b32.xlu0 %v1219_v33, %s5674_s28  ;;  %v1359_v54 = vmul.f32 %v6805_v26, %v1358_v61  ;;  %v1384_v33 = vstv %s5136_s0  ;;  %v1439_v61 = vmul.f32 %v6802_v7, %v1438_v50  ;;  %s7016_s0 = sld [smem:[#allocation8 + $0x71]] }
 0x19a   : > { %v1385_v38 = vmul.f32 %v6802_v7, %v1384_v33 }
 0x19b   : > { %v6816_v8 = vpop.permute.xlu1 %1092  ;;  %v6818_v39 = vpop.permute.xlu0 %1085  ;;  %v1361_v2 = vrot.slane %v1359_v54, 6 }
 0x19c   : > { %9624 = vst [vmem:[#allocation39_spill] sm:$0xff] %v6816_v8  ;;  %9625 = vst [vmem:[#allocation40_spill] sm:$0xff] %v6818_v39  ;;  %v1387_v22 = vrot.slane %v1385_v38, 6  ;;  %v1630_v38 = vstv %s5165_s24  ;;  %s7068_s24 = sld [smem:[#allocation8 + $0xa7]] }
 0x19d   : > { %1246 = vrot.lane.b32.xlu1 %v1245_v42, %s5674_s28  ;;  %1238 = vrot.lane.b32.xlu0 %v1237_v31, %s5674_s28  ;;  %v1377_v42 = vmul.f32 %v6805_v26, %v1376_v32  ;;  %v1402_v31 = vstv %s6854_s2  ;;  %v1441_v32 = vrot.slane %v1439_v61, 2  ;;  %v1684_v61 = vstv %s6938_s10  ;;  %s7030_s2 = sld [smem:[#allocation8 + $0x72]] }
 0x19e   : > { %v1403_v35 = vmul.f32 %v6802_v7, %v1402_v31  ;;  %s7141_s10 = sld [smem:[#allocation8 + $0xaa]] }
 0x19f   : > { %v6826_v57 = vpop.permute.xlu1 %1108  ;;  %v6828_v45 = vpop.permute.xlu0 %1101  ;;  %v1379_v10 = vrot.slane %v1377_v42, 6 }
 0x1a0   : > { %9626 = vst [vmem:[#allocation41_spill] sm:$0xff] %v6826_v57  ;;  %9627 = vst [vmem:[#allocation42_spill] sm:$0xff] %v6828_v45  ;;  %v1405_v21 = vrot.slane %v1403_v35, 2  ;;  %v1648_v35 = vstv %s5167_s30  ;;  %v1852_v45 = vstv %s7062_s16  ;;  %s7098_s30 = sld [smem:[#allocation8 + $0xa8]]  ;;  %s7311_s16 = sld [smem:[#allocation8 + $0xb4]] }
 0x1a1   : > { %1264 = vrot.lane.b32.xlu1 %v1263_v27, %s5674_s28  ;;  %1256 = vrot.lane.b32.xlu0 %v1255_v1, %s5674_s28  ;;  %v1395_v27 = vmul.f32 %v6805_v26, %v1394_v11  ;;  %v1420_v1 = vstv %s6868_s12  ;;  %s7046_s12 = sld [smem:[#allocation8 + $0x73]] }
 0x1a3   : > { %v6836_v52 = vpop.permute.xlu1 %664  ;;  %v6838_v20 = vpop.permute.xlu0 %656  ;;  %v1397_v25 = vrot.slane %v1395_v27, 2 }
 0x1a5   : > { %1282 = vrot.lane.b32.xlu1 %v1281_v37, %s5674_s28  ;;  %1274 = vrot.lane.b32.xlu0 %v1273_v5, %s5674_s28  ;;  %v1421_v37 = vmul.f32 %v6802_v7, %v1420_v1  ;;  %v1413_v5 = vmul.f32 %v6805_v26, %v1412_v13 }
 0x1a7   : > { %v6844_v51 = vpop.permute.xlu1 %682  ;;  %v6846_v9 = vpop.permute.xlu0 %674  ;;  %v1423_v41 = vrot.slane %v1421_v37, 2  ;;  %v1415_v6 = vrot.slane %v1413_v5, 2 }
 0x1a9   : > { %1300 = vrot.lane.b32.xlu1 %v1299_v63, %s5674_s28  ;;  %1292 = vrot.lane.b32.xlu0 %v1291_v47, %s5674_s28 }
 0x1ab   : > { %v6850_v58 = vpop.permute.xlu1 %700  ;;  %v6852_v46 = vpop.permute.xlu0 %692 }
 0x1ad   : > { %1326 = vrot.lane.b32.xlu1 %v6444_v29, %s5674_s28  ;;  %1314 = vrot.lane.b32.xlu0 %v6457_v40, %s5674_s28 }
 0x1af   : > { %v6862_v53 = vpop.permute.xlu1 %718  ;;  %v6864_v15 = vpop.permute.xlu0 %710 }
 0x1b1   : > { %1352 = vrot.lane.b32.xlu1 %v6492_v59, %s5674_s28  ;;  %1340 = vrot.lane.b32.xlu0 %v6503_v44, %s5674_s28 }
 0x1b3   : > { %v6876_v29 = vpop.permute.xlu1 %736  ;;  %v6878_v40 = vpop.permute.xlu0 %728 }
 0x1b5   : > { %1370 = vrot.lane.b32.xlu1 %v1369_v55, %s5675_s18  ;;  %1362 = vrot.lane.b32.xlu0 %v1361_v2, %s5675_s18  ;;  %v1433_v55 = vrot.slane %v1431_v30, 2  ;;  %v1638_v2 = vstv %s5166_s21  ;;  %v1732_v30 = vstv %s6944_s17  ;;  %s7066_s21 = sld [smem:[#allocation8 + $0xa6]]  ;;  %s7143_s17 = sld [smem:[#allocation8 + $0x79]] }
 0x1b6   : > { %v1639_v11 = vmul.f32 %v1638_v2, %v6670_v24 }
 0x1b7   : > { %v6886_v59 = vpop.permute.xlu1 %807  ;;  %v6888_v44 = vpop.permute.xlu0 %799 }
 0x1b8   : > { %v1641_v27 = vrot.slane %v1639_v11, 5 }
 0x1b9   : > { %1388 = vrot.lane.b32.xlu1 %v1387_v22, %s5675_s18  ;;  %1380 = vrot.lane.b32.xlu0 %v1379_v10, %s5675_s18  ;;  %v1631_v22 = vmul.f32 %v1630_v38, %v6668_v43  ;;  %v1656_v10 = vstv %s5168_s25  ;;  %s7070_s25 = sld [smem:[#allocation8 + $0x76]] }
 0x1ba   : > { %v1657_v13 = vmul.f32 %v1656_v10, %v6670_v24  ;;  %v1685_v10 = vmul.f32 %v1684_v61, %v6668_v43 }
 0x1bb   : > { %v6896_v17 = vpop.permute.xlu1 %825  ;;  %v6898_v19 = vpop.permute.xlu0 %817  ;;  %v1633_v1 = vrot.slane %v1631_v22, 5 }
 0x1bc   : > { %v1659_v5 = vrot.slane %v1657_v13, 1 }
 0x1bd   : > { %1406 = vrot.lane.b32.xlu1 %v1405_v21, %s5675_s18  ;;  %1398 = vrot.lane.b32.xlu0 %v1397_v25, %s5675_s18  ;;  %v1649_v21 = vmul.f32 %v1648_v35, %v6668_v43  ;;  %v1666_v25 = vstv %s6924_s9  ;;  %v1710_v35 = vstv %s6956_s11  ;;  %s7114_s9 = sld [smem:[#allocation8 + $0xa9]]  ;;  %s7163_s11 = sld [smem:[#allocation8 + $0x7a]] }
 0x1bf   : > { %v6904_v63 = vpop.permute.xlu1 %843  ;;  %v6906_v47 = vpop.permute.xlu0 %835  ;;  %v1651_v50 = vrot.slane %v1649_v21, 1  ;;  %v1746_v21 = vstv %s6962_s22  ;;  %s7173_s22 = sld [smem:[#allocation8 + $0xad]] }
 0x1c1   : > { %1424 = vrot.lane.b32.xlu1 %v1423_v41, %s5675_s18  ;;  %1416 = vrot.lane.b32.xlu0 %v1415_v6, %s5675_s18  ;;  %v1667_v41 = vmul.f32 %v1666_v25, %v6668_v43  ;;  %v1692_v6 = vstv %s6936_s13  ;;  %s7121_s13 = sld [smem:[#allocation8 + $0x78]] }
 0x1c2   : > { %v1693_v22 = vmul.f32 %v1692_v6, %v6670_v24  ;;  %v1733_v6 = vmul.f32 %v1732_v30, %v6670_v24 }
 0x1c3   : > { %v6912_v54 = vpop.permute.xlu1 %861  ;;  %v6914_v33 = vpop.permute.xlu0 %853  ;;  %v1669_v11 = vrot.slane %v1667_v41, 1 }
 0x1c5   : > { %1442 = vrot.lane.b32.xlu1 %v1441_v32, %s5675_s18  ;;  %1434 = vrot.lane.b32.xlu0 %v1433_v55, %s5675_s18  ;;  %v1720_v32 = vstv %s6946_s19  ;;  %s7149_s19 = sld [smem:[#allocation8 + $0xab]] }
 0x1c6   : > { %v1722_v13 = vmul.f32 %v1720_v32, %v6603_v60  ;;  %v1721_v61 = vmul.f32 %v1720_v32, %v6668_v43  ;;  %v1737_v32 = vrot.slane %v1733_v6, 5  ;;  %v1780_v6 = vstv %s6997_s4  ;;  %s7186_s4 = sld [smem:[#allocation8 + $0x7b]] }
 0x1c7   : > { %v6918_v7 = vpop.permute.xlu1 %879  ;;  %v6920_v26 = vpop.permute.xlu0 %871 }
 0x1c8   : > { %v1725_v12 = vrot.slane %v1721_v61, 5  ;;  %v1772_v61 = vstv %s6999_s23  ;;  %s7190_s23 = sld [smem:[#allocation8 + $0x7d]] }
 0x1c9   : > { %1468 = vrot.lane.b32.xlu1 %v6541_v36, %s5675_s18  ;;  %1456 = vrot.lane.b32.xlu0 %v6550_v3, %s5675_s18 }
 0x1cb   : > { %v6930_v42 = vpop.permute.xlu1 %951  ;;  %v6932_v31 = vpop.permute.xlu0 %943 }
 0x1cd   : > { %1494 = vrot.lane.b32.xlu1 %v6558_v16, %s5675_s18  ;;  %1482 = vrot.lane.b32.xlu0 %v6563_v34, %s5675_s18  ;;  %v1674_v16 = vstv %s6922_s6  ;;  %s7100_s6 = sld [smem:[#allocation8 + $0x77]] }
 0x1ce   : > { %v1675_v4 = vmul.f32 %v1674_v16, %v6670_v24 }
 0x1cf   : > { %v6948_v36 = vpop.permute.xlu1 %969  ;;  %v6950_v3 = vpop.permute.xlu0 %961 }
 0x1d0   : > { %v1677_v38 = vrot.slane %v1675_v4, 1  ;;  %v1711_v4 = vmul.f32 %v1710_v35, %v6670_v24 }
 0x1d1   : > { %1642 = vrot.lane.b32.xlu1 %v1641_v27, %s9616_s7  ;;  %1634 = vrot.lane.b32.xlu0 %v1633_v1, %s9616_s7  ;;  %v1702_v27 = vstv %s6958_s20  ;;  %v1734_v1 = vmul.f32 %v1732_v30, %v6648_v56  ;;  %s7167_s20 = sld [smem:[#allocation8 + $0xac]] }
 0x1d2   : > { %v1703_v41 = vmul.f32 %v1702_v27, %v6668_v43  ;;  %v1713_v27 = vrot.slane %v1711_v4, 1 }
 0x1d3   : > { %v6964_v34 = vpop.permute.xlu1 %987  ;;  %v6966_v37 = vpop.permute.xlu0 %979  ;;  %v1738_v48 = vrot.slane %v1734_v1, 5 }
 0x1d4   : > { %v1705_v62 = vrot.slane %v1703_v41, 1 }
 0x1d5   : > { %1660 = vrot.lane.b32.xlu1 %v1659_v5, %s9616_s7  ;;  %1652 = vrot.lane.b32.xlu0 %v1651_v50, %s9616_s7  ;;  %v1695_v5 = vrot.slane %v1693_v22, 1  ;;  %v1687_v50 = vrot.slane %v1685_v10, 1  ;;  %v1748_v22 = vmul.f32 %v1746_v21, %v6603_v60 }
 0x1d7   : > { %v6978_v55 = vpop.permute.xlu1 %1005  ;;  %v6980_v2 = vpop.permute.xlu0 %997  ;;  %v1752_v41 = vrot.slane %v1748_v22, 5 }
 0x1d8   : > { %9628 = vst [vmem:[#allocation43_spill] sm:$0xff] %v6978_v55 }
 0x1d9   : > { %1678 = vrot.lane.b32.xlu1 %v1677_v38, %s9616_s7  ;;  %1670 = vrot.lane.b32.xlu0 %v1669_v11, %s9616_s7  ;;  %v1758_v38 = vstv %s6972_s27  ;;  %v1726_v11 = vrot.slane %v1722_v13, 5  ;;  %s7175_s27 = sld [smem:[#allocation8 + $0x7c]] }
 0x1da   : > { %v1760_v30 = vmul.f32 %v1758_v38, %v6648_v56 }
 0x1db   : > { %v6991_v16 = vpop.permute.xlu1 %1023  ;;  %v6993_v25 = vpop.permute.xlu0 %1015 }
 0x1dc   : > { %9629 = vst [vmem:[#allocation44_spill] sm:$0xff] %v6991_v16  ;;  %v1764_v1 = vrot.slane %v1760_v30, 5  ;;  %v1798_v30 = vstv %s7014_s5  ;;  %s7206_s5 = sld [smem:[#allocation8 + $0xae]] }
 0x1dd   : > { %1696 = vrot.lane.b32.xlu1 %v1695_v5, %s9616_s7  ;;  %1688 = vrot.lane.b32.xlu0 %v1687_v50, %s9616_s7  ;;  %v1759_v5 = vmul.f32 %v1758_v38, %v6670_v24  ;;  %v1747_v50 = vmul.f32 %v1746_v21, %v6668_v43  ;;  %v1739_v21 = vsel %vm747_vm15, %v1737_v32, %v1738_v48  ;;  %v1790_v32 = vstv %s7016_s0  ;;  %s7263_s0 = sld [smem:[#allocation8 + $0x7e]] }
 0x1de   : > { %v1727_v38 = vsel %vm747_vm15, %v1725_v12, %v1726_v11  ;;  %v1773_v48 = vmul.f32 %v1772_v61, %v6668_v43  ;;  %v1808_v61 = vstv %s7030_s2  ;;  %s7281_s2 = sld [smem:[#allocation8 + $0xb0]] }
 0x1df   : > { %v7007_v10 = vpop.permute.xlu1 %763  ;;  %v7009_v35 = vpop.permute.xlu0 %751  ;;  %v1763_v14 = vrot.slane %v1759_v5, 5  ;;  %v1751_v23 = vrot.slane %v1747_v50, 5 }
 0x1e0   : > { %v1775_v50 = vrot.slane %v1773_v48, 6 }
 0x1e1   : > { %1714 = vrot.lane.b32.xlu1 %v1713_v27, %s9616_s7  ;;  %1706 = vrot.lane.b32.xlu0 %v1705_v62, %s9616_s7  ;;  %v1781_v27 = vmul.f32 %v1780_v6, %v6670_v24  ;;  %v1765_v12 = vsel %vm747_vm15, %v1763_v14, %v1764_v1  ;;  %v1753_v11 = vsel %vm747_vm15, %v1751_v23, %v1752_v41  ;;  %v1816_v6 = vstv %s7028_s1  ;;  %s7267_s1 = sld [smem:[#allocation8 + $0xaf]] }
 0x1e2   : > { %v1799_v1 = vmul.f32 %v1798_v30, %v6670_v24  ;;  %v1791_v41 = vmul.f32 %v1790_v32, %v6668_v43  ;;  %v1834_v30 = vstv %s7044_s3  ;;  %v1826_v32 = vstv %s7046_s12  ;;  %s7283_s3 = sld [smem:[#allocation8 + $0x7f]]  ;;  %s7296_s12 = sld [smem:[#allocation8 + $0x80]] }
 0x1e3   : > { %v7020_v13 = vpop.permute.xlu1 %789  ;;  %v7022_v4 = vpop.permute.xlu0 %777  ;;  %v1783_v23 = vrot.slane %v1781_v27, 6 }
 0x1e4   : > { %v1801_v27 = vrot.slane %v1799_v1, 6  ;;  %v1793_v48 = vrot.slane %v1791_v41, 6 }
 0x1e5   : > { %1740 = vrot.lane.b32.xlu1 %v1739_v21, %s9616_s7  ;;  %1728 = vrot.lane.b32.xlu0 %v1727_v38, %s9616_s7 }
 0x1e7   : > { %v7034_v62 = vpop.permute.xlu1 %906  ;;  %v7036_v22 = vpop.permute.xlu0 %894 }
 0x1e9   : > { %1766 = vrot.lane.b32.xlu1 %v1765_v12, %s9616_s7  ;;  %1754 = vrot.lane.b32.xlu0 %v1753_v11, %s9616_s7  ;;  %v1817_v12 = vmul.f32 %v1816_v6, %v6670_v24  ;;  %v1809_v11 = vmul.f32 %v1808_v61, %v6668_v43  ;;  %v1835_v6 = vmul.f32 %v1834_v30, %v6670_v24 }
 0x1ea   : > { %v1827_v61 = vmul.f32 %v1826_v32, %v6668_v43 }
 0x1eb   : > { %v7054_v5 = vpop.permute.xlu1 %933  ;;  %v7056_v14 = vpop.permute.xlu0 %921  ;;  %v1819_v41 = vrot.slane %v1817_v12, 2  ;;  %v1811_v8 = vrot.slane %v1809_v11, 2  ;;  %v1837_v30 = vrot.slane %v1835_v6, 2 }
 0x1ec   : > { %v1829_v32 = vrot.slane %v1827_v61, 2 }
 0x1ed   : > { %1784 = vrot.lane.b32.xlu1 %v1783_v23, %s5672_s8  ;;  %1776 = vrot.lane.b32.xlu0 %v1775_v50, %s5672_s8  ;;  %v1844_v23 = vstv %s7050_s14  ;;  %v1862_v50 = vstv %s7052_s15  ;;  %s7302_s14 = sld [smem:[#allocation8 + $0xb1]] }
 0x1ee   : > { %v1864_v39 = vmul.f32 %v1862_v50, %v6603_v60  ;;  %s7306_s15 = sld [smem:[#allocation8 + $0x81]] }
 0x1ef   : > { %v7072_v21 = vpop.permute.xlu1 %1050  ;;  %v7074_v38 = vpop.permute.xlu0 %1038 }
 0x1f0   : > { %9630 = vst [vmem:[#allocation45_spill] sm:$0xff] %v7072_v21  ;;  %v1900_v21 = vstv %s7068_s24  ;;  %v1868_v16 = vrot.slane %v1864_v39, 2  ;;  %s7321_s24 = sld [smem:[#allocation8 + $0xb2]] }
 0x1f1   : > { %1802 = vrot.lane.b32.xlu1 %v1801_v27, %s5672_s8  ;;  %1794 = vrot.lane.b32.xlu0 %v1793_v48, %s5672_s8  ;;  %v1874_v27 = vstv %s7066_s21  ;;  %v1845_v48 = vmul.f32 %v1844_v23, %v6668_v43  ;;  %v1902_v55 = vmul.f32 %v1900_v21, %v6648_v56  ;;  %s7313_s21 = sld [smem:[#allocation8 + $0x83]] }
 0x1f2   : > { %v1875_v23 = vmul.f32 %v1874_v27, %v6670_v24 }
 0x1f3   : > { %v7084_v57 = vpop.permute.xlu1 %1076  ;;  %v7086_v1 = vpop.permute.xlu0 %1064  ;;  %v1847_v61 = vrot.slane %v1845_v48, 2  ;;  %v1922_v48 = vstv %s7098_s30  ;;  %s7329_s30 = sld [smem:[#allocation8 + $0xb3]] }
 0x1f4   : > { %9631 = vst [vmem:[#allocation46_spill] sm:$0xff] %v7084_v57  ;;  %9632 = vst [vmem:[#allocation47_spill] sm:$0xff] %v7086_v1  ;;  %v1888_v57 = vstv %s7070_s25  ;;  %v1876_v1 = vmul.f32 %v1874_v27, %v6648_v56  ;;  %v695_v56 = vadd.f32 %v6852_v46, %v6452_v0  ;;  %v1879_v39 = vrot.slane %v1875_v23, 2  ;;  %s7323_s25 = sld [smem:[#allocation8 + $0x82]] }
 0x1f5   : > { %1820 = vrot.lane.b32.xlu1 %v1819_v41, %s5672_s8  ;;  %1812 = vrot.lane.b32.xlu0 %v1811_v8, %s5672_s8  ;;  %v1853_v41 = vmul.f32 %v1852_v45, %v6670_v24  ;;  %v1863_v8 = vmul.f32 %v1862_v50, %v6668_v43  ;;  %v1906_v0 = vrot.slane %v1902_v55, 6 }
 0x1f6   : > { %v703_v23 = vadd.f32 %v6850_v58, %v695_v56  ;;  %v1923_v58 = vmul.f32 %v1922_v48, %v6670_v24 }
 0x1f7   : > { %v7102_v12 = vpop.permute.xlu1 %1124  ;;  %v7104_v11 = vpop.permute.xlu0 %1117  ;;  %v1855_v6 = vrot.slane %v1853_v41, 2  ;;  %v1867_v27 = vrot.slane %v1863_v8, 2  ;;  %v677_v41 = vadd.f32 %v6846_v9, %v6428_v49  ;;  %v1914_v8 = vstv %s7100_s6  ;;  %s7333_s6 = sld [smem:[#allocation8 + $0xb5]] }
 0x1f8   : > { %9633 = vst [vmem:[#allocation48_spill] sm:$0xff] %v7102_v12  ;;  %v1890_v12 = vmul.f32 %v1888_v57, %v6603_v60  ;;  %v1880_v60 = vrot.slane %v1876_v1, 2 }
 0x1f9   : > { %1838 = vrot.lane.b32.xlu1 %v1837_v30, %s5672_s8  ;;  %1830 = vrot.lane.b32.xlu0 %v1829_v32, %s5672_s8  ;;  %v1889_v30 = vmul.f32 %v1888_v57, %v6668_v43  ;;  %v1901_v32 = vmul.f32 %v1900_v21, %v6670_v24  ;;  %v659_v21 = vadd.f32 %v6838_v20, %v6387_v28 }
 0x1fa   : > { %v1894_v1 = vrot.slane %v1890_v12, 6  ;;  %v1881_v49 = vsel %vm890_vm1, %v1879_v39, %v1880_v60  ;;  %v685_v55 = vadd.f32 %v6844_v51, %v677_v41  ;;  %v1915_v12 = vmul.f32 %v1914_v8, %v6668_v43 }
 0x1fb   : > { %v7116_v45 = vpop.permute.xlu1 %1140  ;;  %v7118_v50 = vpop.permute.xlu0 %1133  ;;  %v1893_v46 = vrot.slane %v1889_v30, 6  ;;  %v1905_v9 = vrot.slane %v1901_v32, 6  ;;  %v713_v30 = vadd.f32 %v6864_v15, %v6498_v18  ;;  %v1925_v60 = vrot.slane %v1923_v58, 7 }
 0x1fc   : > { %9634 = vst [vmem:[#allocation49_spill] sm:$0xff] %v7116_v45  ;;  %9635 = vst [vmem:[#allocation50_spill] sm:$0xff] %v7118_v50  ;;  %v1869_v50 = vsel %vm890_vm1, %v1867_v27, %v1868_v16  ;;  %v780_v16 = vadd.f32 %v7022_v4, %v703_v23  ;;  %v667_v27 = vadd.f32 %v6836_v52, %v659_v21  ;;  %v1917_v32 = vrot.slane %v1915_v12, 7 }
 0x1fd   : > { %1856 = vrot.lane.b32.xlu1 %v1855_v6, %s5672_s8  ;;  %1848 = vrot.lane.b32.xlu0 %v1847_v61, %s5672_s8  ;;  %v1940_v6 = vstv %s7114_s9  ;;  %v1932_v61 = vstv %s7121_s13  ;;  %v1907_v51 = vsel %vm917_vm2, %v1905_v9, %v1906_v0  ;;  %v1895_v4 = vsel %vm917_vm2, %v1893_v46, %v1894_v1  ;;  %s7335_s9 = sld [smem:[#allocation8 + $0x84]]  ;;  %s7376_s13 = sld [smem:[#allocation8 + $0x85]] }
 0x1fe   : > { %v731_v52 = vadd.f32 %v6878_v40, %v667_v27  ;;  %v1941_v41 = vmul.f32 %v1940_v6, %v6670_v24  ;;  %v1933_v48 = vmul.f32 %v1932_v61, %v6668_v43  ;;  %v1958_v15 = vstv %s7141_s10  ;;  %v7218_v6 = vld [vmem:[#allocation3 + $0x10] sm:$0xff]  ;;  %v7221_v27 = vld [vmem:[#allocation3] sm:$0xff]  ;;  %s7382_s10 = sld [smem:[#allocation8 + $0xb6]] }
 0x1ff   : > { %v7132_v45 = vpop.permute.xlu1 %1158  ;;  %v7134_v57 = vpop.permute.xlu0 %1150  ;;  %v1950_v40 = vstv %s7143_s17  ;;  %v1976_v46 = vstv %s7149_s19  ;;  %v1994_v58 = vstv %s7167_s20  ;;  %v2004_v12 = vstv %s7175_s27  ;;  %s7402_s17 = sld [smem:[#allocation8 + $0xb7]]  ;;  %s7404_s19 = sld [smem:[#allocation8 + $0x86]] }
 0x200   : > { %v739_v8 = vadd.f32 %v6876_v29, %v731_v52  ;;  %v1943_v21 = vrot.slane %v1941_v41, 7  ;;  %v1935_v23 = vrot.slane %v1933_v48, 7  ;;  %v1951_v9 = vmul.f32 %v1950_v40, %v6668_v43  ;;  %v7230_v52 = vld [vmem:[#allocation3 + $0x18] sm:$0x3]  ;;  %s7422_s20 = sld [smem:[#allocation8 + $0x87]]  ;;  %s7436_s27 = sld [smem:[#allocation8 + $0x88]] }
 0x201   : > { %1882 = vrot.lane.b32.xlu1 %v1881_v49, %s5672_s8  ;;  %1870 = vrot.lane.b32.xlu0 %v1869_v50, %s5672_s8  ;;  %v754_v50 = vadd.f32 %v7009_v35, %v685_v55  ;;  %v792_v35 = vadd.f32 %v7020_v13, %v780_v16  ;;  %v721_v13 = vadd.f32 %v6862_v53, %v713_v30  ;;  %v1968_v55 = vstv %s7163_s11  ;;  %s7420_s11 = sld [smem:[#allocation8 + $0xb8]] }
 0x202   : > { %v1959_v49 = vmul.f32 %v1958_v15, %v6670_v24  ;;  %v820_v29 = vadd.f32 %v6898_v19, %v739_v8  ;;  %v2016_v24 = vstv %s7173_s22  ;;  %v1977_v61 = vmul.f32 %v7218_v6, %v1976_v46  ;;  %s7427_s22 = sld [smem:[#allocation8 + $0xb9]] }
 0x203   : > { %v7151_v28 = vpop.permute.xlu1 %1184  ;;  %v7153_v20 = vpop.permute.xlu0 %1172  ;;  %v766_v18 = vadd.f32 %v7007_v10, %v754_v50  ;;  %v856_v0 = vadd.f32 %v6914_v33, %v792_v35  ;;  %v802_v53 = vadd.f32 %v6888_v44, %v721_v13  ;;  %v1969_v50 = vmul.f32 %v7221_v27, %v1968_v55 }
 0x204   : > { %v1961_v19 = vrot.slane %v1959_v49, 7  ;;  %v1986_v30 = vstv %s7186_s4  ;;  %v2018_v35 = vmul.f32 %v7230_v52, %v2016_v24  ;;  %v2030_v41 = vstv %s7190_s23  ;;  %s7440_s4 = sld [smem:[#allocation8 + $0x8a]]  ;;  %s7443_s23 = sld [smem:[#allocation8 + $0xbb]] }
 0x205   : > { %1908 = vrot.lane.b32.xlu1 %v1907_v51, %s5672_s8  ;;  %1896 = vrot.lane.b32.xlu0 %v1895_v4, %s5672_s8  ;;  %v838_v33 = vadd.f32 %v6906_v47, %v766_v18  ;;  %v864_v16 = vadd.f32 %v6912_v54, %v856_v0  ;;  %v1953_v47 = vrot.slane %v1951_v9, 7  ;;  %v810_v54 = vadd.f32 %v6886_v59, %v802_v53 }
 0x206   : > { %v828_v51 = vadd.f32 %v6896_v17, %v820_v29  ;;  %v1979_v40 = vrot.slane %v1977_v61, 3  ;;  %v1971_v13 = vrot.slane %v1969_v50, 3  ;;  %v1995_v8 = vmul.f32 %v7218_v6, %v1994_v58 }
 0x207   : > { %v7177_v56 = vpop.permute.xlu1 %1210  ;;  %v7179_v39 = vpop.permute.xlu0 %1198  ;;  %v846_v4 = vadd.f32 %v6904_v63, %v838_v33  ;;  %v874_v59 = vadd.f32 %v6920_v26, %v810_v54  ;;  %v946_v17 = vadd.f32 %v6932_v31, %v864_v16  ;;  %v1987_v0 = vmul.f32 %v7221_v27, %v1986_v30 }
 0x208   : > { %v897_v63 = vadd.f32 %v7036_v22, %v828_v51  ;;  %v2017_v46 = vmul.f32 %v7218_v6, %v2016_v24  ;;  %v2005_v26 = vmul.f32 %v7221_v27, %v2004_v12  ;;  %v2022_v31 = vrot.slane %v2018_v35, 3 }
 0x209   : > { %1926 = vrot.lane.b32.xlu1 %v1925_v60, %s5673_s29  ;;  %1918 = vrot.lane.b32.xlu0 %v1917_v32, %s5673_s29  ;;  %v7233_v60 = vld [vmem:[#allocation3 + $0x8] sm:$0x3]  ;;  %v924_v48 = vadd.f32 %v7056_v14, %v846_v4  ;;  %v954_v53 = vadd.f32 %v6930_v42, %v946_v17  ;;  %v1997_v55 = vrot.slane %v1995_v8, 3  ;;  %v1989_v16 = vrot.slane %v1987_v0, 3 }
 0x20a   : > { %v2006_v32 = vmul.f32 %v7233_v60, %v2004_v12  ;;  %v2032_v14 = vmul.f32 %v7233_v60, %v2030_v41  ;;  %v909_v49 = vadd.f32 %v7034_v62, %v897_v63  ;;  %v2031_v24 = vmul.f32 %v7221_v27, %v2030_v41  ;;  %v9637_v41 = vld [vmem:[#allocation44_spill] sm:$0xff] }
 0x20b   : > { %v7196_v10 = vpop.permute.xlu1 %1228  ;;  %v7198_v1 = vpop.permute.xlu0 %1220  ;;  %v936_v9 = vadd.f32 %v7054_v5, %v924_v48  ;;  %v2021_v12 = vrot.slane %v2017_v46, 3  ;;  %v2009_v62 = vrot.slane %v2005_v26, 3  ;;  %v2056_v48 = vstv %s7263_s0  ;;  %v9640_v26 = vld [vmem:[#allocation40_spill] sm:$0xff]  ;;  %s7449_s0 = sld [smem:[#allocation8 + $0x89]] }
 0x20c   : > { %v2010_v22 = vrot.slane %v2006_v32, 3  ;;  %v2035_v54 = vrot.slane %v2031_v24, 3  ;;  %v2036_v51 = vrot.slane %v2032_v14, 3  ;;  %v2072_v24 = vstv %s7283_s3  ;;  %s7459_s3 = sld [smem:[#allocation8 + $0x8b]] }
 0x20d   : > { %1944 = vrot.lane.b32.xlu1 %v1943_v21, %s5673_s29  ;;  %1936 = vrot.lane.b32.xlu0 %v1935_v23, %s5673_s29  ;;  %v2042_v21 = vstv %s7206_s5  ;;  %v882_v23 = vadd.f32 %v6918_v7, %v874_v59  ;;  %v1000_v42 = vadd.f32 %v6980_v2, %v936_v9  ;;  %v2023_v30 = vsel %vm1034_vm3, %v2021_v12, %v2022_v31  ;;  %v9641_v31 = vld [vmem:[#allocation42_spill] sm:$0xff]  ;;  %s7447_s5 = sld [smem:[#allocation12 + $0x2]] }
 0x20e   : > { %v2044_v58 = vmul.f32 %v7230_v52, %v2042_v21  ;;  %v2043_v5 = vmul.f32 %v7218_v6, %v2042_v21  ;;  %v2011_v35 = vsel %vm1034_vm3, %v2009_v62, %v2010_v22  ;;  %v2037_v0 = vsel %vm1034_vm3, %v2035_v54, %v2036_v51 }
 0x20f   : > { %v7214_v43 = vpop.permute.xlu1 %1246  ;;  %v7216_v44 = vpop.permute.xlu0 %1238  ;;  %v964_v7 = vadd.f32 %v6950_v3, %v882_v23  ;;  %v2057_v9 = vmul.f32 %v7221_v27, %v2056_v48  ;;  %v2073_v54 = vmul.f32 %v7221_v27, %v2072_v24  ;;  %v2088_v51 = vstv %s7296_s12  ;;  %s7462_s12 = sld [smem:[#allocation8 + $0xbc]] }
 0x210   : > { %v2048_v3 = vrot.slane %v2044_v58, 3  ;;  %v2047_v32 = vrot.slane %v2043_v5, 3  ;;  %v2079_v58 = vstv %s7281_s2  ;;  %v9645_v5 = vld [vmem:[#allocation41_spill] sm:$0xff]  ;;  %v2138_v48 = vstv %s7313_s21  ;;  %s7455_s2 = sld [smem:[#allocation12 + $0x7]] }
 0x211   : > { %1962 = vrot.lane.b32.xlu1 %v1961_v19, %s5673_s29  ;;  %1954 = vrot.lane.b32.xlu0 %v1953_v47, %s5673_s29  ;;  %v982_v19 = vadd.f32 %v6966_v37, %v909_v49  ;;  %v1018_v47 = vadd.f32 %v6993_v25, %v954_v53  ;;  %v972_v4 = vadd.f32 %v6948_v36, %v964_v7  ;;  %v9636_v25 = vld [vmem:[#allocation43_spill] sm:$0xff]  ;;  %v9643_v7 = vld [vmem:[#allocation50_spill] sm:$0xff] }
 0x212   : > { %v1008_v36 = vadd.f32 %v9636_v25, %v1000_v42  ;;  %v2049_v8 = vsel %vm1034_vm3, %v2047_v32, %v2048_v3  ;;  %v2080_v3 = vmul.f32 %v7218_v6, %v2079_v58 }
 0x213   : > { %v7241_v18 = vpop.permute.xlu1 %1264  ;;  %v7243_v15 = vpop.permute.xlu0 %1256  ;;  %v1041_v37 = vadd.f32 %v7074_v38, %v972_v4  ;;  %v990_v2 = vadd.f32 %v6964_v34, %v982_v19  ;;  %v1026_v59 = vadd.f32 %v9637_v41, %v1018_v47  ;;  %v2063_v38 = vstv %s7267_s1  ;;  %v9639_v34 = vld [vmem:[#allocation45_spill] sm:$0xff]  ;;  %s7453_s1 = sld [smem:[#allocation8 + $0xba]] }
 0x214   : > { %v1088_v21 = vadd.f32 %v9640_v26, %v1008_v36  ;;  %v2064_v49 = vmul.f32 %v7218_v6, %v2063_v38  ;;  %v9647_v36 = vld [vmem:[#allocation49_spill] sm:$0xff] }
 0x215   : > { %1980 = vrot.lane.b32.xlu1 %v1979_v40, %s5673_s29  ;;  %1972 = vrot.lane.b32.xlu0 %v1971_v13, %s5673_s29  ;;  %v9638_v40 = vld [vmem:[#allocation47_spill] sm:$0xff]  ;;  %v1053_v46 = vadd.f32 %v9639_v34, %v1041_v37  ;;  %v1104_v22 = vadd.f32 %v9641_v31, %v1026_v59  ;;  %v2095_v37 = vstv %s7302_s14  ;;  %v2150_v59 = vstv %s7311_s16  ;;  %s7470_s14 = sld [smem:[#allocation12]]  ;;  %s7478_s16 = spop %5384 }
 0x216   : > { %v1067_v13 = vadd.f32 %v9638_v40, %v990_v2  ;;  %v2104_v2 = vstv %s7306_s15  ;;  %v2096_v40 = vmul.f32 %v7218_v6, %v2095_v37  ;;  %v2152_v26 = vmul.f32 %v7230_v52, %v2150_v59  ;;  %s7475_s15 = sld [smem:[#allocation12 + $0x1]]  ;;  %s2490_s21 = sadd.f32 1e-05, %s7455_s2 }
 0x217   : > { %v7257_v29 = vpop.permute.xlu1 %1282  ;;  %v7259_v33 = vpop.permute.xlu0 %1274  ;;  %v1120_v53 = vadd.f32 %v7104_v11, %v1053_v46  ;;  %v9644_v11 = vld [vmem:[#allocation39_spill] sm:$0xff]  ;;  %v1111_v42 = vadd.f32 %v9645_v5, %v1104_v22  ;;  %v2128_v46 = vstv %s7329_s30  ;;  %v2176_v31 = vstv %s7333_s6  ;;  %s7522_s30 = sld [smem:[#allocation8 + $0xbe]]  ;;  %s7524_s6 = sld [smem:[#allocation8 + $0x8d]] }
 0x218   : > { %v1095_v62 = vadd.f32 %v9644_v11, %v1088_v21  ;;  %v2140_v21 = vmul.f32 %v7233_v60, %v2138_v48  ;;  %v2164_v22 = vstv %s7335_s9  ;;  %v2129_v58 = vmul.f32 %v7218_v6, %v2128_v46  ;;  %s7529_s9 = sld [smem:[#allocation8 + $0xbf]]  ;;  %s5272_s2 = sld [smem:[#allocation8 + $0xd3]] }
 0x219   : > { %1998 = vrot.lane.b32.xlu1 %v1997_v55, %s5673_s29  ;;  %1990 = vrot.lane.b32.xlu0 %v1989_v16, %s5673_s29  ;;  %v9642_v55 = vld [vmem:[#allocation46_spill] sm:$0xff]  ;;  %v2151_v24 = vmul.f32 %v7218_v6, %v2150_v59  ;;  %v2178_v11 = vmul.f32 %v7230_v52, %v2176_v31  ;;  %v2190_v37 = vstv %s7376_s13  ;;  %v2216_v46 = vstv %s7402_s17  ;;  %s7538_s13 = sld [smem:[#allocation8 + $0x8e]]  ;;  %s7554_s17 = sld [smem:[#allocation8 + $0x8f]] }
 0x21a   : > { %v1079_v16 = vadd.f32 %v9642_v55, %v1067_v13  ;;  %v1153_v4 = vadd.f32 %v7134_v57, %v1095_v62  ;;  %v2089_v13 = vmul.f32 %v7221_v27, %v2088_v51  ;;  %v2166_v62 = vmul.f32 %v7233_v60, %v2164_v22 }
 0x21b   : > { %v7274_v61 = vpop.permute.xlu1 %1300  ;;  %v7276_v50 = vpop.permute.xlu0 %1292  ;;  %v2131_v51 = vrot.slane %v2129_v58, 4 }
 0x21c   : > { %v1136_v12 = vadd.f32 %v9643_v7, %v1079_v16  ;;  %v2105_v16 = vmul.f32 %v7221_v27, %v2104_v2  ;;  %v2156_v7 = vrot.slane %v2152_v26, 4  ;;  %v2208_v26 = vstv %s7404_s19  ;;  %s7559_s19 = sld [smem:[#allocation8 + $0xc2]] }
 0x21d   : > { %2024 = vrot.lane.b32.xlu1 %v2023_v30, %s5673_s29  ;;  %2012 = vrot.lane.b32.xlu0 %v2011_v35, %s5673_s29  ;;  %v1175_v30 = vadd.f32 %v7153_v20, %v1111_v42  ;;  %v9646_v35 = vld [vmem:[#allocation48_spill] sm:$0xff]  ;;  %v2209_v58 = vmul.f32 %v7221_v27, %v2208_v26 }
 0x21e   : > { %v1127_v32 = vadd.f32 %v9646_v35, %v1120_v53  ;;  %v1143_v41 = vadd.f32 %v9647_v36, %v1136_v12  ;;  %v2144_v12 = vrot.slane %v2140_v21, 4  ;;  %v2165_v35 = vmul.f32 %v7221_v27, %v2164_v22 }
 0x21f   : > { %v7291_v17 = vpop.permute.xlu1 %1326  ;;  %v7293_v63 = vpop.permute.xlu0 %1314  ;;  %v1187_v34 = vadd.f32 %v7151_v28, %v1175_v30  ;;  %v2177_v30 = vmul.f32 %v7218_v6, %v2176_v31  ;;  %v2170_v36 = vrot.slane %v2166_v62, 4 }
 0x220   : > { %v1201_v25 = vadd.f32 %v7179_v39, %v1127_v32  ;;  %v1223_v38 = vadd.f32 %v7198_v1, %v1143_v41  ;;  %v1161_v39 = vadd.f32 %v7132_v45, %v1153_v4  ;;  %v2155_v4 = vrot.slane %v2151_v24, 4 }
 0x221   : > { %2050 = vrot.lane.b32.xlu1 %v2049_v8, %s5673_s29  ;;  %2038 = vrot.lane.b32.xlu0 %v2037_v0, %s5673_s29  ;;  %v2111_v8 = vstv %s7321_s24  ;;  %v2120_v0 = vstv %s7323_s25  ;;  %v1259_v1 = vadd.f32 %v7243_v15, %v1187_v34  ;;  %v2191_v34 = vmul.f32 %v7221_v27, %v2190_v37  ;;  %s7498_s24 = sld [smem:[#allocation8 + $0x8c]]  ;;  %s7507_s25 = sld [smem:[#allocation8 + $0xbd]] }
 0x222   : > { %v1213_v45 = vadd.f32 %v7177_v56, %v1201_v25  ;;  %v2121_v28 = vmul.f32 %v7221_v27, %v2120_v0  ;;  %v2112_v55 = vmul.f32 %v7218_v6, %v2111_v8  ;;  %v1231_v15 = vadd.f32 %v7196_v10, %v1223_v38 }
 0x223   : > { %v7315_v14 = vpop.permute.xlu1 %1352  ;;  %v7317_v23 = vpop.permute.xlu0 %1340  ;;  %v2139_v56 = vmul.f32 %v7221_v27, %v2138_v48  ;;  %v2198_v41 = vstv %s7382_s10  ;;  %s7552_s10 = sld [smem:[#allocation8 + $0xc0]] }
 0x224   : > { %v1295_v5 = vadd.f32 %v7276_v50, %v1231_v15  ;;  %v2123_v10 = vrot.slane %v2121_v28, 4  ;;  %v2234_v15 = vstv %s7420_s11  ;;  %s7561_s11 = sld [smem:[#allocation8 + $0x91]] }
 0x225   : > { %2066 = vrot.lane.b32.xlu1 %v2064_v49, %s9623_s26  ;;  %2059 = vrot.lane.b32.xlu0 %v2057_v9, %s9623_s26  ;;  %v1241_v49 = vadd.f32 %v7216_v44, %v1161_v39  ;;  %v1277_v44 = vadd.f32 %v7259_v33, %v1213_v45  ;;  %v1267_v33 = vadd.f32 %v7241_v18, %v1259_v1  ;;  %v2143_v32 = vrot.slane %v2139_v56, 4 }
 0x226   : > { %v1303_v25 = vadd.f32 %v7274_v61, %v1295_v5  ;;  %v2226_v56 = vstv %s7422_s20  ;;  %s7570_s20 = sld [smem:[#allocation8 + $0xc1]] }
 0x227   : > { %v7340_v19 = vpop.permute.xlu1 %1370  ;;  %v7342_v47 = vpop.permute.xlu0 %1362  ;;  %v1249_v42 = vadd.f32 %v7214_v43, %v1241_v49  ;;  %v1343_v43 = vadd.f32 %v7317_v23, %v1267_v33  ;;  %v1285_v18 = vadd.f32 %v7257_v29, %v1277_v44  ;;  %v2182_v23 = vrot.slane %v2178_v11, 4 }
 0x228   : > { %v2252_v11 = vstv %s7427_s22  ;;  %v2211_v33 = vrot.slane %v2209_v58, 1  ;;  %s7572_s22 = sld [smem:[#allocation8 + $0x90]] }
 0x229   : > { %2082 = vrot.lane.b32.xlu1 %v2080_v3, %s9623_s26  ;;  %2075 = vrot.lane.b32.xlu0 %v2073_v54, %s9623_s26  ;;  %v1317_v50 = vadd.f32 %v7293_v63, %v1249_v42  ;;  %v1365_v2 = vadd.f32 %v7342_v47, %v1285_v18  ;;  %v2157_v63 = vsel %vm612_vm14, %v2155_v4, %v2156_v7  ;;  %v2244_v4 = vstv %s7436_s27  ;;  %s7577_s27 = sld [smem:[#allocation8 + $0x92]] }
 0x22a   : > { %v1355_v0 = vadd.f32 %v7315_v14, %v1343_v43  ;;  %v2145_v47 = vsel %vm612_vm14, %v2143_v32, %v2144_v12  ;;  %v2199_v14 = vmul.f32 %v7218_v6, %v2198_v41  ;;  %v2253_v43 = vmul.f32 %v7218_v6, %v2252_v11 }
 0x22b   : > { %v7358_v57 = vpop.permute.xlu1 %1388  ;;  %v7360_v20 = vpop.permute.xlu0 %1380  ;;  %v1329_v8 = vadd.f32 %v7291_v17, %v1317_v50  ;;  %v2292_v18 = vstv %s7443_s23  ;;  %v2245_v41 = vmul.f32 %v7221_v27, %v2244_v4  ;;  %s7600_s23 = sld [smem:[#allocation8 + $0xc5]] }
 0x22c   : > { %v1383_v29 = vadd.f32 %v7360_v20, %v1303_v25  ;;  %v1373_v20 = vadd.f32 %v7340_v19, %v1365_v2  ;;  %v2293_v26 = vmul.f32 %v7218_v6, %v2292_v18 }
 0x22d   : > { %2098 = vrot.lane.b32.xlu1 %v2096_v40, %s9623_s26  ;;  %2091 = vrot.lane.b32.xlu0 %v2089_v13, %s9623_s26  ;;  %v2181_v40 = vrot.slane %v2177_v30, 4  ;;  %v2169_v13 = vrot.slane %v2165_v35, 4  ;;  %v2280_v30 = vstv %s7440_s4  ;;  %s7586_s4 = sld [smem:[#allocation8 + $0xc3]] }
 0x22e   : > { %v1391_v31 = vadd.f32 %v7358_v57, %v1383_v29  ;;  %v2306_v29 = vstv %s7459_s3  ;;  %s5273_s3 = sld [smem:[#allocation8 + $0x104]] }
 0x22f   : > { %v7384_v9 = vpop.permute.xlu1 %1406  ;;  %v1399_v53 = vpop.permute.xlu0 %1398  ;;  %v2183_v22 = vsel %vm612_vm14, %v2181_v40, %v2182_v23  ;;  %v2171_v49 = vsel %vm612_vm14, %v2169_v13, %v2170_v36  ;;  %v1514_v36 = vstv %s7447_s5  ;;  %v2491_v40 = vstv %s2490_s21  ;;  %s7630_s5 = sld [smem:[#allocation8 + $0xf6]]  ;;  %s7733_s21 = sld [smem:[#allocation8 + $0x93]] }
 0x230   : > { %v1401_v61 = vadd.f32 %v1399_v53, %v1329_v8  ;;  %v2201_v53 = vrot.slane %v2199_v14, 5  ;;  %v1520_v23 = vstv %s7478_s16  ;;  %v2282_v13 = vmul.f32 %v7233_v60, %v2280_v30  ;;  %s7731_s16 = sld [smem:[#allocation8 + $0x62]] }
 0x231   : > { %2114 = vrot.lane.b32.xlu1 %v2112_v55, %s9623_s26  ;;  %2107 = vrot.lane.b32.xlu0 %v2105_v16, %s9623_s26  ;;  %v2193_v55 = vrot.slane %v2191_v34, 5  ;;  %v2217_v16 = vmul.f32 %v7218_v6, %v2216_v46  ;;  %5482 = vrsqrt.f32 %v2491_v40 }
 0x232   : > { %v1409_v45 = vadd.f32 %v7384_v9, %v1401_v61  ;;  %v2318_v61 = vstv %s7462_s12  ;;  %s5274_s12 = sld [smem:[#allocation8 + $0xda]] }
 0x233   : > { %v1425_v3 = vpop.permute.xlu1 %1424  ;;  %v1417_v54 = vpop.permute.xlu0 %1416  ;;  %v2219_v42 = vrot.slane %v2217_v16, 1  ;;  %v2319_v16 = vmul.f32 %v7218_v6, %v2318_v61 }
 0x234   : > { %v1419_v38 = vadd.f32 %v1417_v54, %v1355_v0  ;;  %v2255_v0 = vrot.slane %v2253_v43, 1 }
 0x235   : > { %2132 = vrot.lane.b32.xlu1 %v2131_v51, %s9623_s26  ;;  %2124 = vrot.lane.b32.xlu0 %v2123_v10, %s9623_s26  ;;  %v2235_v10 = vmul.f32 %v7218_v6, %v2234_v15  ;;  %v2307_v15 = vmul.f32 %v7221_v27, %v2306_v29 }
 0x236   : > { %v1427_v19 = vadd.f32 %v1425_v3, %v1419_v38  ;;  %v2227_v3 = vmul.f32 %v7221_v27, %v2226_v56  ;;  %v1522_v38 = vstv %s7470_s14  ;;  %s5275_s14 = sld [smem:[#allocation8 + $0x10b]] }
 0x237   : > { %v1443_v59 = vpop.permute.xlu1 %1442  ;;  %v1435_v48 = vpop.permute.xlu0 %1434  ;;  %v2237_v2 = vrot.slane %v2235_v10, 1  ;;  %v2311_v4 = vrot.slane %v2307_v15, 5 }
 0x238   : > { %v1437_v21 = vadd.f32 %v1435_v48, %v1373_v20  ;;  %v1499_v9 = vrot.slane %v1427_v19, 1  ;;  %v2229_v25 = vrot.slane %v2227_v3, 1  ;;  %v2270_v48 = vstv %s7453_s1  ;;  %s5271_s1 = sld [smem:[#allocation8 + $0xfd]] }
 0x239   : > { %2158 = vrot.lane.b32.xlu1 %v2157_v63, %s9623_s26  ;;  %2146 = vrot.lane.b32.xlu0 %v2145_v47, %s9623_s26  ;;  %v2262_v63 = vstv %s7449_s0  ;;  %v2294_v47 = vmul.f32 %v7230_v52, %v2292_v18  ;;  %v2271_v14 = vmul.f32 %v7218_v6, %v2270_v48  ;;  %v2320_v19 = vmul.f32 %v7230_v52, %v2318_v61  ;;  %s5270_s0 = sld [smem:[#allocation8 + $0xcc]] }
 0x23a   : > { %v1445_v24 = vadd.f32 %v1443_v59, %v1437_v21  ;;  %v2263_v34 = vmul.f32 %v7221_v27, %v2262_v63  ;;  %v2281_v21 = vmul.f32 %v7221_v27, %v2280_v30  ;;  %v2340_v3 = vstv %s7507_s25  ;;  %s5277_s25 = sld [smem:[#allocation8 + $0x112]] }
 0x23b   : > { %v1469_v17 = vpop.permute.xlu1 %1468  ;;  %v1457_v39 = vpop.permute.xlu0 %1456 }
 0x23c   : > { %v1459_v1 = vadd.f32 %v1457_v39, %v1391_v31  ;;  %v1503_v54 = vrot.slane %v1445_v24, 2  ;;  %v2247_v39 = vrot.slane %v2245_v41, 1  ;;  %v1524_v31 = vstv %s7475_s15  ;;  %s5276_s15 = sld [smem:[#allocation8 + $0xe1]] }
 0x23d   : > { %2184 = vrot.lane.b32.xlu1 %v2183_v22, %s9623_s26  ;;  %2172 = vrot.lane.b32.xlu0 %v2171_v49, %s9623_s26  ;;  %v2286_v49 = vrot.slane %v2282_v13, 5  ;;  %v2297_v24 = vrot.slane %v2293_v26, 5  ;;  %v2376_v41 = vstv %s7529_s9  ;;  %v2386_v26 = vstv %s7554_s17  ;;  %s7759_s9 = sld [smem:[#allocation8 + $0x65]]  ;;  %s7789_s17 = sld [smem:[#allocation8 + $0xef]] }
 0x23e   : > { %v1471_v7 = vadd.f32 %v1469_v17, %v1459_v1  ;;  %v2308_v1 = vmul.f32 %v7233_v60, %v2306_v29  ;;  %v2368_v29 = vstv %s7538_s13  ;;  %s7769_s13 = sld [smem:[#allocation8 + $0xe8]] }
 0x23f   : > { %v1495_v57 = vpop.permute.xlu1 %1494  ;;  %v1483_v28 = vpop.permute.xlu0 %1482 }
 0x240   : > { %v1485_v44 = vadd.f32 %v1483_v28, %v1409_v45  ;;  %v1507_v35 = vrot.slane %v1471_v7, 3  ;;  %v2273_v28 = vrot.slane %v2271_v14, 1  ;;  %v5483_v7 = vpop.eup %5482  ;;  %v2312_v10 = vrot.slane %v2308_v1, 5 }
 0x241   : > { %2202 = vrot.lane.b32.xlu1 %v2201_v53, %s5674_s28  ;;  %2194 = vrot.lane.b32.xlu0 %v2193_v55, %s5674_s28  ;;  %v2265_v53 = vrot.slane %v2263_v34, 1  ;;  %v2298_v55 = vrot.slane %v2294_v47, 5  ;;  %5386 = vpush %v5483_v7  ;;  %v2369_v34 = vmul.f32 %v7221_v27, %v2368_v29 }
 0x242   : > { %v1497_v12 = vadd.f32 %v1495_v57, %v1485_v44  ;;  %v2285_v44 = vrot.slane %v2281_v21, 5  ;;  %v2434_v21 = vstv %s7559_s19  ;;  %s7811_s19 = sld [smem:[#allocation8 + $0x120]] }
 0x243   : > { %v7464_v62 = vpop.permute.xlu1 %1642  ;;  %v7466_v5 = vpop.permute.xlu0 %1634  ;;  %v2371_v1 = vrot.slane %v2369_v34, 2 }
 0x244   : > { %v1501_v51 = vadd.f32 %v1499_v9, %v1497_v12  ;;  %v2332_v9 = vstv %s7498_s24  ;;  %s7735_s24 = sld [smem:[#allocation8 + $0x66]] }
 0x245   : > { %2220 = vrot.lane.b32.xlu1 %v2219_v42, %s5674_s28  ;;  %2212 = vrot.lane.b32.xlu0 %v2211_v33, %s5674_s28  ;;  %v2323_v42 = vrot.slane %v2319_v16, 5  ;;  %v2324_v33 = vrot.slane %v2320_v19, 5  ;;  %v2333_v43 = vmul.f32 %v7221_v27, %v2332_v9  ;;  %v2404_v16 = vstv %s7572_s22  ;;  %s5284_s22 = sld [smem:[#allocation8 + $0xcd]] }
 0x246   : > { %v1505_v50 = vadd.f32 %v1503_v54, %v1501_v51  ;;  %v2299_v54 = vsel %vm747_vm15, %v2297_v24, %v2298_v55  ;;  %v2287_v51 = vsel %vm747_vm15, %v2285_v44, %v2286_v49  ;;  %v2412_v55 = vstv %s7570_s20  ;;  %s7876_s20 = sld [smem:[#allocation8 + $0xf7]] }
 0x247   : > { %v7483_v32 = vpop.permute.xlu1 %1660  ;;  %v7485_v37 = vpop.permute.xlu0 %1652  ;;  %v2325_v18 = vsel %vm747_vm15, %v2323_v42, %v2324_v33  ;;  %v2335_v40 = vrot.slane %v2333_v43, 6  ;;  %v2448_v44 = vstv %s7577_s27  ;;  %v2413_v42 = vmul.f32 %v7218_v6, %v2412_v55  ;;  %s5285_s27 = sld [smem:[#allocation8 + $0xfe]] }
 0x248   : > { %v1509_v59 = vadd.f32 %v1507_v35, %v1505_v50  ;;  %v2341_v50 = vmul.f32 %v7218_v6, %v2340_v3  ;;  %v2405_v33 = vmul.f32 %v7221_v27, %v2404_v16  ;;  %v2449_v29 = vmul.f32 %v7221_v27, %v2448_v44  ;;  %v7655_v16 = vld [vmem:[#allocation4 + $0x18] sm:$0xff] }
 0x249   : > { %2238 = vrot.lane.b32.xlu1 %v2237_v2, %s5674_s28  ;;  %2230 = vrot.lane.b32.xlu0 %v2229_v25, %s5674_s28  ;;  %v2313_v2 = vsel %vm747_vm15, %v2311_v4, %v2312_v10  ;;  %v2358_v25 = vstv %s7522_s30  ;;  %v2435_v10 = vmul.f32 %v7218_v6, %v2434_v21  ;;  %v2705_v55 = vstv %s7630_s5  ;;  %s7746_s30 = sld [smem:[#allocation8 + $0x96]]  ;;  %s7986_s5 = sld [smem:[#allocation8 + $0x10c]] }
 0x24a   : > { %v1515_v8 = vsub.f32 %v1509_v59, %v1514_v36  ;;  %v2350_v36 = vstv %s7524_s6  ;;  %v2343_v63 = vrot.slane %v2341_v50, 6  ;;  %v2450_v50 = vmul.f32 %v7233_v60, %v2448_v44  ;;  %s7748_s6 = sld [smem:[#allocation8 + $0x97]] }
 0x24b   : > { %v7501_v20 = vpop.permute.xlu1 %1678  ;;  %v7503_v17 = vpop.permute.xlu0 %1670  ;;  %v2351_v13 = vmul.f32 %v7221_v27, %v2350_v36  ;;  %v2407_v36 = vrot.slane %v2405_v33, 2 }
 0x24c   : > { %v1521_v46 = vmul.f32 %v1520_v23, %v1515_v8  ;;  %v2359_v23 = vmul.f32 %v7218_v6, %v2358_v25  ;;  %v2415_v25 = vrot.slane %v2413_v42, 2 }
 0x24d   : > { %2256 = vrot.lane.b32.xlu1 %v2255_v0, %s5674_s28  ;;  %2248 = vrot.lane.b32.xlu0 %v2247_v39, %s5674_s28  ;;  %v2377_v0 = vmul.f32 %v7218_v6, %v2376_v41  ;;  %v2353_v14 = vrot.slane %v2351_v13, 6 }
 0x24e   : > { %v1523_v22 = vmul.f32 %v1522_v38, %v1521_v46  ;;  %v2361_v39 = vrot.slane %v2359_v23, 6  ;;  %v2394_v46 = vstv %s7552_s10  ;;  %v2439_v23 = vrot.slane %v2435_v10, 2  ;;  %s7778_s10 = sld [smem:[#allocation8 + $0x119]] }
 0x24f   : > { %v7516_v45 = vpop.permute.xlu1 %1696  ;;  %v7518_v57 = vpop.permute.xlu0 %1688  ;;  %v2379_v19 = vrot.slane %v2377_v0, 2  ;;  %v2727_v10 = vstv %s5270_s0  ;;  %s8014_s0 = sld [smem:[#allocation8 + $0xe2]] }
 0x250   : > { %v1525_v58 = vadd.f32 %v1524_v31, %v1523_v22  ;;  %v2422_v31 = vstv %s7561_s11  ;;  %s7842_s11 = sld [smem:[#allocation8 + $0xc6]] }
 0x251   : > { %2274 = vrot.lane.b32.xlu1 %v2273_v28, %s5674_s28  ;;  %2266 = vrot.lane.b32.xlu0 %v2265_v53, %s5674_s28  ;;  %v2395_v28 = vmul.f32 %v7218_v6, %v2394_v46  ;;  %v2387_v53 = vmul.f32 %v7221_v27, %v2386_v26  ;;  %v2424_v24 = vmul.f32 %v7233_v60, %v2422_v31  ;;  %v2685_v60 = vstv %s7600_s23  ;;  %s7955_s23 = sld [smem:[#allocation8 + $0xdb]] }
 0x252   : > { %v5150_v56 = vmul.f32 -1.442695, %v1525_v58  ;;  %v2436_v58 = vmul.f32 %v7230_v52, %v2434_v21  ;;  %v2423_v3 = vmul.f32 %v7221_v27, %v2422_v31  ;;  %v2453_v46 = vrot.slane %v2449_v29, 6 }
 0x253   : > { %v7531_v12 = vpop.permute.xlu1 %1714  ;;  %v7533_v11 = vpop.permute.xlu0 %1706  ;;  %v2397_v9 = vrot.slane %v2395_v28, 2  ;;  %v2389_v7 = vrot.slane %v2387_v53, 2  ;;  %v2428_v4 = vrot.slane %v2424_v24, 2 }
 0x254   : > { %5484 = vpow2.f32 %v5150_v56  ;;  %v2427_v13 = vrot.slane %v2423_v3, 2 }
 0x255   : > { %2300 = vrot.lane.b32.xlu1 %v2299_v54, %s5674_s28  ;;  %2288 = vrot.lane.b32.xlu0 %v2287_v51, %s5674_s28  ;;  %v2460_v54 = vstv %s7586_s4  ;;  %v2440_v51 = vrot.slane %v2436_v58, 2  ;;  %v7657_v58 = vld [vmem:[#allocation4 + $0x20] sm:$0xff]  ;;  %s7951_s4 = sld [smem:[#allocation8 + $0x105]] }
 0x256   : > { %v2461_v41 = vmul.f32 %v7218_v6, %v2460_v54  ;;  %v2429_v34 = vsel %vm890_vm1, %v2427_v13, %v2428_v4  ;;  %v2707_v33 = vmul.f32 %v2705_v55, %v7657_v58 }
 0x257   : > { %v7542_v30 = vpop.permute.xlu1 %1740  ;;  %v7544_v35 = vpop.permute.xlu0 %1728  ;;  %v2441_v27 = vsel %vm890_vm1, %v2439_v23, %v2440_v51 }
 0x258   : > { %v2465_v0 = vrot.slane %v2461_v41, 6  ;;  %v7679_v41 = vld [vmem:[#allocation4 + $0x28] sm:$0x3f] }
 0x259   : > { %2326 = vrot.lane.b32.xlu1 %v2325_v18, %s5674_s28  ;;  %2314 = vrot.lane.b32.xlu0 %v2313_v2, %s5674_s28 }
 0x25b   : > { %v7563_v59 = vpop.permute.xlu1 %1766  ;;  %v7565_v48 = vpop.permute.xlu0 %1754 }
 0x25d   : > { %2344 = vrot.lane.b32.xlu1 %v2343_v63, %s5675_s18  ;;  %2336 = vrot.lane.b32.xlu0 %v2335_v40, %s5675_s18  ;;  %v2462_v63 = vmul.f32 %v7230_v52, %v2460_v54  ;;  %v7625_v40 = vld [vmem:[#allocation4] sm:$0xff] }
 0x25e   : > { %v5485_v8 = vpop.eup %5484 }
 0x25f   : > { %v1529_v47 = vadd.f32 1.0, %v5485_v8  ;;  %v7579_v61 = vpop.permute.xlu1 %1784  ;;  %v7581_v38 = vpop.permute.xlu0 %1776  ;;  %v7632_v8 = vld [vmem:[#allocation4 + $0x8] sm:$0xff] }
 0x260   : > { %v2687_v26 = vmul.f32 %v2685_v60, %v7632_v8  ;;  %v2729_v4 = vmul.f32 %v2727_v10, %v7632_v8 }
 0x261   : > { %5486 = vrcp.f32 %v1529_v47  ;;  %2362 = vrot.lane.b32.xlu1 %v2361_v39, %s5675_s18  ;;  %2354 = vrot.lane.b32.xlu0 %v2353_v14, %s5675_s18  ;;  %v2466_v47 = vrot.slane %v2462_v63, 6  ;;  %v2454_v39 = vrot.slane %v2450_v50, 6  ;;  %v2686_v14 = vmul.f32 %v2685_v60, %v7625_v40 }
 0x262   : > { %v2691_v53 = vrot.slane %v2687_v26, 5  ;;  %v2736_v13 = vrot.slane %v2729_v4, 1 }
 0x263   : > { %v7592_v22 = vpop.permute.xlu1 %1802  ;;  %v7594_v49 = vpop.permute.xlu0 %1794  ;;  %v2690_v28 = vrot.slane %v2686_v14, 5 }
 0x265   : > { %2380 = vrot.lane.b32.xlu1 %v2379_v19, %s5675_s18  ;;  %2372 = vrot.lane.b32.xlu0 %v2371_v1, %s5675_s18  ;;  %v2467_v19 = vsel %vm917_vm2, %v2465_v0, %v2466_v47  ;;  %v2455_v1 = vsel %vm917_vm2, %v2453_v46, %v2454_v39  ;;  %v2692_v42 = vsel %vm747_vm15, %v2690_v28, %v2691_v53  ;;  %v2770_v0 = vstv %s5272_s2  ;;  %s8051_s2 = sld [smem:[#allocation12 + $0x6]] }
 0x267   : > { %v7607_v15 = vpop.permute.xlu1 %1820  ;;  %v7609_v56 = vpop.permute.xlu0 %1812 }
 0x269   : > { %2398 = vrot.lane.b32.xlu1 %v2397_v9, %s5675_s18  ;;  %2390 = vrot.lane.b32.xlu0 %v2389_v7, %s5675_s18  ;;  %v2706_v9 = vmul.f32 %v2705_v55, %v7655_v16  ;;  %v7664_v7 = vld [vmem:[#allocation4 + $0x10] sm:$0x3f] }
 0x26a   : > { %v2730_v50 = vmul.f32 %v2727_v10, %v7664_v7 }
 0x26b   : > { %v5487_v43 = vpop.eup %5486  ;;  %v7619_v18 = vpop.permute.xlu1 %1838  ;;  %v2710_v51 = vrot.slane %v2706_v9, 5 }
 0x26c   : > { %v7621_v2 = vpop.permute.xlu0 %1830  ;;  %1533 = vst.msk [vmem:[#allocation5] sm:$0xf] %vm1532_vm4, %v5487_v43  ;;  %v2728_v43 = vmul.f32 %v2727_v10, %v7625_v40  ;;  %v2738_v29 = vrot.slane %v2730_v50, 1 }
 0x26d   : > { %2416 = vrot.lane.b32.xlu1 %v2415_v25, %s5675_s18  ;;  %2408 = vrot.lane.b32.xlu0 %v2407_v36, %s5675_s18  ;;  %v2711_v25 = vrot.slane %v2707_v33, 5  ;;  %v2748_v36 = vstv %s5271_s1  ;;  %v2794_v33 = vstv %s5273_s3  ;;  %s8032_s1 = sld [smem:[#allocation8 + $0x113]]  ;;  %s8054_s3 = sld [smem:[#allocation8 + $0xe9]] }
 0x26e   : > { %v2735_v60 = vrot.slane %v2728_v43, 1  ;;  %v2750_v39 = vmul.f32 %v2748_v36, %v7657_v58  ;;  %v2751_v14 = vmul.f32 %v2748_v36, %v7679_v41  ;;  %v2739_v26 = vsel %vm2734_vm5, %v2736_v13, %v2738_v29 }
 0x26f   : > { %v7636_v6 = vpop.permute.xlu1 %1856  ;;  %v2712_v47 = vsel %vm747_vm15, %v2710_v51, %v2711_v25  ;;  %v2796_v29 = vmul.f32 %v2794_v33, %v7657_v58 }
 0x270   : > { %v7638_v52 = vpop.permute.xlu0 %1848  ;;  %v2756_v55 = vrot.slane %v2750_v39, 1  ;;  %v2758_v9 = vrot.slane %v2751_v14, 1  ;;  %v2820_v39 = vstv %s5274_s12  ;;  %s8063_s12 = sld [smem:[#allocation12 + $0x4]] }
 0x271   : > { %2442 = vrot.lane.b32.xlu1 %v2441_v27, %s5675_s18  ;;  %2430 = vrot.lane.b32.xlu0 %v2429_v34, %s5675_s18  ;;  %v2749_v27 = vmul.f32 %v2748_v36, %v7655_v16 }
 0x273   : > { %v7646_v21 = vpop.permute.xlu1 %1882 }
 0x274   : > { %v7648_v31 = vpop.permute.xlu0 %1870 }
 0x275   : > { %2468 = vrot.lane.b32.xlu1 %v2467_v19, %s5675_s18  ;;  %2456 = vrot.lane.b32.xlu0 %v2455_v1, %s5675_s18  ;;  %v2772_v19 = vmul.f32 %v2770_v0, %v7632_v8  ;;  %v2773_v1 = vmul.f32 %v2770_v0, %v7664_v7 }
 0x277   : > { %v7659_v24 = vpop.permute.xlu1 %1908  ;;  %v2778_v4 = vrot.slane %v2772_v19, 1  ;;  %v2780_v50 = vrot.slane %v2773_v1, 1  ;;  %v2797_v19 = vmul.f32 %v2794_v33, %v7679_v41 }
 0x278   : > { %v7661_v44 = vpop.permute.xlu0 %1896 }
 0x279   : > { %2695 = vrot.lane.b32.xlu1 %v2692_v42, %s9616_s7  ;;  %2693 = vrot.lane.b32.xlu0 %v2690_v28, %s9616_s7  ;;  %v2771_v28 = vmul.f32 %v2770_v0, %v7625_v40  ;;  %v2755_v42 = vrot.slane %v2749_v27, 1 }
 0x27b   : > { %v7670_v3 = vpop.permute.xlu1 %1926  ;;  %v2777_v43 = vrot.slane %v2771_v28, 1  ;;  %v2757_v36 = vsel %vm2734_vm5, %v2755_v42, %v2756_v55  ;;  %v2804_v42 = vrot.slane %v2797_v19, 1  ;;  %v2870_v19 = vstv %s5276_s15  ;;  %s8072_s15 = sld [smem:[#allocation8 + $0x11a]] }
 0x27c   : > { %v7672_v54 = vpop.permute.xlu0 %1918 }
 0x27d   : > { %2713 = vrot.lane.b32.xlu1 %v2710_v51, %s9616_s7  ;;  %2697 = vrot.lane.b32.xlu0 %v2691_v53, %s9616_s7  ;;  %v2737_v53 = vsel %vm2734_vm5, %v2735_v60, %v2736_v13  ;;  %v2795_v13 = vmul.f32 %v2794_v33, %v7655_v16  ;;  %v2779_v14 = vsel %vm2734_vm5, %v2777_v43, %v2778_v4  ;;  %v2844_v33 = vstv %s5275_s14  ;;  %s8070_s14 = sld [smem:[#allocation12 + $0x5]] }
 0x27f   : > { %v7681_v63 = vpop.permute.xlu1 %1944  ;;  %v2801_v27 = vrot.slane %v2795_v13, 1 }
 0x280   : > { %9648 = vst [vmem:[#allocation43_spill] sm:$0xff] %v7681_v63  ;;  %v7683_v23 = vpop.permute.xlu0 %1936 }
 0x281   : > { %2717 = vrot.lane.b32.xlu1 %v2711_v25, %s9616_s7  ;;  %2715 = vrot.lane.b32.xlu0 %v2712_v47, %s9616_s7  ;;  %v2759_v25 = vsel %vm2734_vm5, %v2756_v55, %v2758_v9  ;;  %v2781_v47 = vsel %vm2734_vm5, %v2778_v4, %v2780_v50  ;;  %v2823_v55 = vmul.f32 %v2820_v39, %v7664_v7 }
 0x282   : > { %v2821_v4 = vmul.f32 %v2820_v39, %v7625_v40 }
 0x283   : > { %v7691_v34 = vpop.permute.xlu1 %1962  ;;  %v2830_v13 = vrot.slane %v2823_v55, 1 }
 0x284   : > { %9649 = vst [vmem:[#allocation44_spill] sm:$0xff] %v7691_v34  ;;  %v7693_v46 = vpop.permute.xlu0 %1954 }
 0x285   : > { %2742 = vrot.lane.b32.xlu1 %v2739_v26, %s9616_s7  ;;  %2740 = vrot.lane.b32.xlu0 %v2737_v53, %s9616_s7  ;;  %v2802_v26 = vrot.slane %v2796_v29, 1  ;;  %v2822_v53 = vmul.f32 %v2820_v39, %v7632_v8  ;;  %v2845_v39 = vmul.f32 %v2844_v33, %v7655_v16 }
 0x287   : > { %v7702_v10 = vpop.permute.xlu1 %1980  ;;  %v2803_v9 = vsel %vm2734_vm5, %v2801_v27, %v2802_v26  ;;  %v2805_v29 = vsel %vm2734_vm5, %v2802_v26, %v2804_v42  ;;  %v2851_v55 = vrot.slane %v2845_v39, 1 }
 0x288   : > { %9650 = vst [vmem:[#allocation47_spill] sm:$0xff] %v7702_v10  ;;  %v7704_v51 = vpop.permute.xlu0 %1972 }
 0x289   : > { %9651 = vst [vmem:[#allocation45_spill] sm:$0xff] %v7704_v51  ;;  %2762 = vrot.lane.b32.xlu1 %v2759_v25, %s9616_s7  ;;  %2760 = vrot.lane.b32.xlu0 %v2757_v36, %s9616_s7  ;;  %v2828_v36 = vrot.slane %v2822_v53, 1 }
 0x28b   : > { %v7712_v60 = vpop.permute.xlu1 %1998  ;;  %v2831_v26 = vsel %vm2734_vm5, %v2828_v36, %v2830_v13 }
 0x28c   : > { %9652 = vst [vmem:[#allocation40_spill] sm:$0xff] %v7712_v60  ;;  %v7714_v0 = vpop.permute.xlu0 %1990  ;;  %v5509_v60 = vld [vmem:[#allocation3] sm:$0xff] }
 0x28d   : > { %9653 = vst [vmem:[#allocation42_spill] sm:$0xff] %v7714_v0  ;;  %2784 = vrot.lane.b32.xlu1 %v2781_v47, %s9616_s7  ;;  %2782 = vrot.lane.b32.xlu0 %v2779_v14, %s9616_s7  ;;  %v2827_v47 = vrot.slane %v2821_v4, 1  ;;  %v1543_v4 = vstv %s7733_s21  ;;  %s5294_s21 = sld [smem:[#allocation8 + $0xf0]] }
 0x28f   : > { %v7721_v1 = vpop.permute.xlu1 %2024  ;;  %v2829_v53 = vsel %vm2734_vm5, %v2827_v47, %v2828_v36  ;;  %v2872_v36 = vmul.f32 %v2870_v19, %v7632_v8  ;;  %v2894_v47 = vstv %s5277_s25  ;;  %s8120_s25 = sld [smem:[#allocation8 + $0xc7]] }
 0x290   : > { %9654 = vst [vmem:[#allocation46_spill] sm:$0xff] %v7721_v1  ;;  %v7723_v28 = vpop.permute.xlu0 %2012 }
 0x291   : > { %9655 = vst [vmem:[#allocation50_spill] sm:$0xff] %v7723_v28  ;;  %2806 = vrot.lane.b32.xlu1 %v2803_v9, %s9616_s7  ;;  %2786 = vrot.lane.b32.xlu0 %v2780_v50, %s9616_s7  ;;  %v2846_v50 = vmul.f32 %v2844_v33, %v7657_v58  ;;  %v2878_v34 = vrot.slane %v2872_v36, 1  ;;  %v2896_v28 = vmul.f32 %v2894_v47, %v7657_v58 }
 0x293   : > { %v7737_v43 = vpop.permute.xlu1 %2050  ;;  %v2852_v9 = vrot.slane %v2846_v50, 1  ;;  %v2873_v50 = vmul.f32 %v2870_v19, %v7664_v7 }
 0x294   : > { %9656 = vst [vmem:[#allocation39_spill] sm:$0xff] %v7737_v43  ;;  %v7739_v25 = vpop.permute.xlu0 %2038 }
 0x295   : > { %9657 = vst [vmem:[#allocation41_spill] sm:$0xff] %v7739_v25  ;;  %2810 = vrot.lane.b32.xlu1 %v2804_v42, %s9616_s7  ;;  %2808 = vrot.lane.b32.xlu0 %v2805_v29, %s9616_s7  ;;  %v2847_v42 = vmul.f32 %v2844_v33, %v7679_v41  ;;  %v1540_v29 = vstv %s7731_s16  ;;  %v2853_v33 = vsel %vm2734_vm5, %v2851_v55, %v2852_v9  ;;  %s5387_s16 = spop %5386 }
 0x296   : > { %v1541_v10 = vmul.f32 %v5509_v60, %v1540_v29 }
 0x297   : > { %v7750_v14 = vpop.permute.xlu1 %2066  ;;  %v2854_v39 = vrot.slane %v2847_v42, 1 }
 0x298   : > { %9658 = vst [vmem:[#allocation48_spill] sm:$0xff] %v7750_v14  ;;  %v7752_v27 = vpop.permute.xlu0 %2059  ;;  %v1572_v14 = vstv %s7735_s24  ;;  %s5295_s24 = sld [smem:[#allocation8 + $0x121]] }
 0x299   : > { %9659 = vst [vmem:[#allocation49_spill] sm:$0xff] %v7752_v27  ;;  %2834 = vrot.lane.b32.xlu1 %v2831_v26, %s9616_s7  ;;  %2832 = vrot.lane.b32.xlu0 %v2829_v53, %s9616_s7  ;;  %v2871_v26 = vmul.f32 %v2870_v19, %v7625_v40  ;;  %v5508_v53 = vld [vmem:[#allocation3 + $0x10] sm:$0xff]  ;;  %v1573_v25 = vmul.f32 %v5509_v60, %v1572_v14  ;;  %v1564_v14 = vstv %s7759_s9  ;;  %s5299_s9 = sld [smem:[#allocation8 + $0xff]] }
 0x29a   : > { %v1544_v27 = vmul.f32 %v5508_v53, %v1543_v4  ;;  %v2895_v19 = vmul.f32 %v2894_v47, %v7655_v16  ;;  %v2855_v4 = vsel %vm2734_vm5, %v2852_v9, %v2854_v39 }
 0x29b   : > { %v7764_v43 = vpop.permute.xlu1 %2082 }
 0x29c   : > { %9660 = vst [vmem:[#allocation51_spill] sm:$0xff] %v7764_v43  ;;  %v7766_v1 = vpop.permute.xlu0 %2075  ;;  %v1567_v43 = vstv %s7746_s30  ;;  %v1545_v63 = vadd.f32 %v1544_v27, %v1541_v10  ;;  %v2901_v9 = vrot.slane %v2895_v19, 1  ;;  %v2902_v27 = vrot.slane %v2896_v28, 1  ;;  %s8148_s30 = sld [smem:[#allocation8 + $0xf8]] }
 0x29d   : > { %9661 = vst [vmem:[#allocation52_spill] sm:$0xff] %v7766_v1  ;;  %2856 = vrot.lane.b32.xlu1 %v2853_v33, %s9616_s7  ;;  %2836 = vrot.lane.b32.xlu0 %v2830_v13, %s9616_s7  ;;  %v1578_v1 = vstv %s7748_s6  ;;  %v2880_v33 = vrot.slane %v2873_v50, 1  ;;  %v2877_v13 = vrot.slane %v2871_v26, 1  ;;  %v1568_v29 = vmul.f32 %v5508_v53, %v1567_v43  ;;  %s5298_s6 = sld [smem:[#allocation8 + $0xce]] }
 0x29e   : > { %v1579_v36 = vmul.f32 %v5508_v53, %v1578_v1  ;;  %v2920_v50 = vstv %s7769_s13  ;;  %v2940_v53 = vstv %s7778_s10  ;;  %s5301_s13 = sld [smem:[#allocation8 + $0x106]]  ;;  %s5302_s10 = sld [smem:[#allocation8 + $0xdc]] }
 0x29f   : > { %v7780_v55 = vpop.permute.xlu1 %2098  ;;  %v2881_v26 = vsel %vm2734_vm5, %v2878_v34, %v2880_v33  ;;  %v2879_v10 = vsel %vm2734_vm5, %v2877_v13, %v2878_v34  ;;  %v2922_v1 = vmul.f32 %v2920_v50, %v7632_v8  ;;  %v2923_v43 = vmul.f32 %v2920_v50, %v7664_v7 }
 0x2a0   : > { %9662 = vst [vmem:[#allocation53_spill] sm:$0xff] %v7780_v55  ;;  %v7782_v42 = vpop.permute.xlu0 %2091  ;;  %v1575_v55 = vrot.slane %v1573_v25, 4  ;;  %v2921_v25 = vmul.f32 %v2920_v50, %v7625_v40  ;;  %v1581_v19 = vrot.slane %v1579_v36, 4  ;;  %v2962_v13 = vstv %s7789_s17  ;;  %s5303_s17 = sld [smem:[#allocation8 + $0x10d]] }
 0x2a1   : > { %9663 = vst [vmem:[#allocation54_spill] sm:$0xff] %v7782_v42  ;;  %2860 = vrot.lane.b32.xlu1 %v2854_v39, %s9616_s7  ;;  %2858 = vrot.lane.b32.xlu0 %v2855_v4, %s9616_s7  ;;  %v2897_v39 = vmul.f32 %v2894_v47, %v7679_v41  ;;  %v1565_v4 = vmul.f32 %v5509_v60, %v1564_v14  ;;  %v2928_v36 = vrot.slane %v2922_v1, 5  ;;  %v2930_v50 = vrot.slane %v2923_v43, 5  ;;  %v9666_v43 = vld [vmem:[#allocation38_spill] sm:$0xff] }
 0x2a2   : > { %v1577_v51 = vadd.f32 %v1575_v55, %v1545_v63  ;;  %v2903_v63 = vsel %vm2734_vm5, %v2901_v9, %v2902_v27  ;;  %v2942_v55 = vmul.f32 %v2940_v53, %v7657_v58  ;;  %v2943_v9 = vmul.f32 %v2940_v53, %v7679_v41 }
 0x2a3   : > { %v7792_v42 = vpop.permute.xlu1 %2114  ;;  %v1569_v28 = vadd.f32 %v1568_v29, %v1565_v4  ;;  %v2904_v60 = vrot.slane %v2897_v39, 1  ;;  %v9665_v4 = vld [vmem:[#allocation37_spill] sm:$0xff]  ;;  %v2964_v1 = vmul.f32 %v2962_v13, %v7632_v8 }
 0x2a4   : > { %9664 = vst [vmem:[#allocation55_spill] sm:$0xff] %v7792_v42  ;;  %v7794_v0 = vpop.permute.xlu0 %2107  ;;  %v1583_v47 = vadd.f32 %v1581_v19, %v1577_v51  ;;  %v2941_v51 = vmul.f32 %v2940_v53, %v7655_v16 }
 0x2a5   : > { %2884 = vrot.lane.b32.xlu1 %v2881_v26, %s9616_s7  ;;  %2882 = vrot.lane.b32.xlu0 %v2879_v10, %s9616_s7  ;;  %v1637_v14 = vadd.f32 %v7466_v5, %v1569_v28  ;;  %v2927_v26 = vrot.slane %v2921_v25, 5  ;;  %v2905_v19 = vsel %vm2734_vm5, %v2902_v27, %v2904_v60  ;;  %v2948_v5 = vrot.slane %v2942_v55, 5 }
 0x2a6   : > { %v1655_v39 = vadd.f32 %v7485_v37, %v1583_v47  ;;  %v1691_v25 = vadd.f32 %v7518_v57, %v9666_v43  ;;  %v2931_v37 = vsel %vm747_vm15, %v2928_v36, %v2930_v50  ;;  %v2965_v47 = vmul.f32 %v2962_v13, %v7664_v7 }
 0x2a7   : > { %v7806_v42 = vpop.permute.xlu1 %2132  ;;  %v1645_v53 = vadd.f32 %v7464_v62, %v1637_v14  ;;  %v2929_v28 = vsel %vm747_vm15, %v2927_v26, %v2928_v36  ;;  %v2963_v55 = vmul.f32 %v2962_v13, %v7625_v40  ;;  %v2986_v50 = vstv %s7811_s19  ;;  %s5304_s19 = sld [smem:[#allocation8 + $0xe3]] }
 0x2a8   : > { %v7808_v34 = vpop.permute.xlu0 %2124  ;;  %v1663_v62 = vadd.f32 %v7483_v32, %v1655_v39  ;;  %v2970_v13 = vrot.slane %v2964_v1, 5  ;;  %v2987_v39 = vmul.f32 %v2986_v50, %v7655_v16 }
 0x2a9   : > { %2906 = vrot.lane.b32.xlu1 %v2903_v63, %s9616_s7  ;;  %2886 = vrot.lane.b32.xlu0 %v2880_v33, %s9616_s7  ;;  %v1673_v33 = vadd.f32 %v7503_v17, %v9665_v4  ;;  %v2950_v63 = vrot.slane %v2943_v9, 5  ;;  %v1709_v57 = vadd.f32 %v7533_v11, %v1645_v53  ;;  %v1699_v9 = vadd.f32 %v7516_v45, %v1691_v25 }
 0x2aa   : > { %v1731_v36 = vadd.f32 %v7544_v35, %v1663_v62  ;;  %v2972_v11 = vrot.slane %v2965_v47, 5  ;;  %v2988_v45 = vmul.f32 %v2986_v50, %v7657_v58  ;;  %v2989_v25 = vmul.f32 %v2986_v50, %v7679_v41 }
 0x2ab   : > { %v7818_v10 = vpop.permute.xlu1 %2158  ;;  %v1681_v14 = vadd.f32 %v7501_v20, %v1673_v33  ;;  %v2951_v32 = vsel %vm747_vm15, %v2948_v5, %v2950_v63  ;;  %v2969_v20 = vrot.slane %v2963_v55, 5  ;;  %v1779_v33 = vadd.f32 %v7581_v38, %v1699_v9 }
 0x2ac   : > { %v7820_v29 = vpop.permute.xlu0 %2146  ;;  %v1717_v35 = vadd.f32 %v7531_v12, %v1709_v57  ;;  %v1743_v1 = vadd.f32 %v7542_v30, %v1731_v36  ;;  %v2973_v12 = vsel %vm747_vm15, %v2970_v13, %v2972_v11  ;;  %v2994_v63 = vrot.slane %v2988_v45, 5 }
 0x2ad   : > { %2910 = vrot.lane.b32.xlu1 %v2904_v60, %s9616_s7  ;;  %2908 = vrot.lane.b32.xlu0 %v2905_v19, %s9616_s7  ;;  %v2947_v60 = vrot.slane %v2941_v51, 5  ;;  %v1757_v26 = vadd.f32 %v7565_v48, %v1681_v14  ;;  %v2996_v62 = vrot.slane %v2989_v25, 5 }
 0x2ae   : > { %v1797_v19 = vadd.f32 %v7594_v49, %v1717_v35  ;;  %v1815_v49 = vadd.f32 %v7609_v56, %v1743_v1  ;;  %v3054_v35 = vstv %s5284_s22  ;;  %s5307_s22 = sld [smem:[#allocation8 + $0x11b]] }
 0x2af   : > { %v7836_v17 = vpop.permute.xlu1 %2184  ;;  %v2949_v48 = vsel %vm747_vm15, %v2947_v60, %v2948_v5  ;;  %v1769_v43 = vadd.f32 %v7563_v59, %v1757_v26  ;;  %v2971_v5 = vsel %vm747_vm15, %v2969_v20, %v2970_v13  ;;  %v1787_v59 = vadd.f32 %v7579_v61, %v1779_v33 }
 0x2b0   : > { %v7838_v27 = vpop.permute.xlu0 %2172  ;;  %v1805_v47 = vadd.f32 %v7592_v22, %v1797_v19  ;;  %v1823_v14 = vadd.f32 %v7607_v15, %v1815_v49  ;;  %v2997_v15 = vsel %vm747_vm15, %v2994_v63, %v2996_v62  ;;  %v9668_v19 = vld [vmem:[#allocation42_spill] sm:$0xff] }
 0x2b1   : > { %2934 = vrot.lane.b32.xlu1 %v2931_v37, %s9616_s7  ;;  %2932 = vrot.lane.b32.xlu0 %v2929_v28, %s9616_s7  ;;  %v2993_v37 = vrot.slane %v2987_v39, 5  ;;  %v3012_v28 = vstv %s7842_s11  ;;  %v1833_v30 = vadd.f32 %v7621_v2, %v1769_v43  ;;  %v1851_v60 = vadd.f32 %v7638_v52, %v1787_v59  ;;  %v9669_v43 = vld [vmem:[#allocation43_spill] sm:$0xff]  ;;  %s5305_s11 = sld [smem:[#allocation8 + $0x114]] }
 0x2b2   : > { %v3013_v56 = vmul.f32 %v3012_v28, %v7625_v40  ;;  %v3014_v2 = vmul.f32 %v3012_v28, %v7632_v8  ;;  %v1873_v61 = vadd.f32 %v7648_v31, %v1805_v47  ;;  %v1899_v22 = vadd.f32 %v7661_v44, %v1823_v14  ;;  %v9673_v47 = vld [vmem:[#allocation47_spill] sm:$0xff]  ;;  %v9675_v14 = vld [vmem:[#allocation49_spill] sm:$0xff] }
 0x2b3   : > { %v7853_v51 = vpop.permute.xlu1 %2202  ;;  %v1841_v50 = vadd.f32 %v7619_v18, %v1833_v30  ;;  %v2995_v52 = vsel %vm747_vm15, %v2993_v37, %v2994_v63  ;;  %v1859_v26 = vadd.f32 %v7636_v6, %v1851_v60  ;;  %v3032_v31 = vstv %s7876_s20  ;;  %v9672_v63 = vld [vmem:[#allocation41_spill] sm:$0xff]  ;;  %s5306_s20 = sld [smem:[#allocation8 + $0xea]] }
 0x2b4   : > { %v7855_v4 = vpop.permute.xlu0 %2194  ;;  %v3017_v20 = vrot.slane %v3013_v56, 6  ;;  %v3018_v39 = vrot.slane %v3014_v2, 6  ;;  %v1911_v6 = vadd.f32 %v7659_v24, %v1899_v22  ;;  %v3055_v30 = vmul.f32 %v3054_v35, %v7625_v40  ;;  %v9674_v56 = vld [vmem:[#allocation40_spill] sm:$0xff] }
 0x2b5   : > { %2954 = vrot.lane.b32.xlu1 %v2951_v32, %s9616_s7  ;;  %2952 = vrot.lane.b32.xlu0 %v2949_v48, %s9616_s7  ;;  %v1921_v36 = vadd.f32 %v7672_v54, %v1841_v50  ;;  %v1939_v18 = vadd.f32 %v7683_v23, %v1859_v26  ;;  %v1885_v32 = vadd.f32 %v7646_v21, %v1873_v61  ;;  %v9667_v48 = vld [vmem:[#allocation45_spill] sm:$0xff] }
 0x2b6   : > { %v3033_v23 = vmul.f32 %v3032_v31, %v7655_v16  ;;  %v3034_v21 = vmul.f32 %v3032_v31, %v7657_v58  ;;  %v1975_v45 = vadd.f32 %v9667_v48, %v1911_v6  ;;  %v3019_v24 = vsel %vm917_vm2, %v3017_v20, %v3018_v39 }
 0x2b7   : > { %v7869_v53 = vpop.permute.xlu1 %2220  ;;  %v1957_v44 = vadd.f32 %v7693_v46, %v1885_v32  ;;  %v1929_v54 = vadd.f32 %v7670_v3, %v1921_v36  ;;  %v1947_v46 = vadd.f32 %v9669_v43, %v1939_v18  ;;  %v9670_v3 = vld [vmem:[#allocation50_spill] sm:$0xff]  ;;  %v3056_v59 = vmul.f32 %v3054_v35, %v7632_v8 }
 0x2b8   : > { %v7871_v38 = vpop.permute.xlu0 %2212  ;;  %v3037_v49 = vrot.slane %v3033_v23, 6  ;;  %v3038_v61 = vrot.slane %v3034_v21, 6  ;;  %v9677_v36 = vld [vmem:[#allocation46_spill] sm:$0xff]  ;;  %v3061_v18 = vrot.slane %v3055_v30, 6  ;;  %v3078_v32 = vstv %s5285_s27  ;;  %v9682_v30 = vld [vmem:[#allocation53_spill] sm:$0xff]  ;;  %s5308_s27 = sld [smem:[#allocation8 + $0xf1]] }
 0x2b9   : > { %2976 = vrot.lane.b32.xlu1 %v2973_v12, %s9616_s7  ;;  %2974 = vrot.lane.b32.xlu0 %v2971_v5, %s9616_s7  ;;  %v1993_v1 = vadd.f32 %v9668_v19, %v1929_v54  ;;  %v2015_v25 = vadd.f32 %v9670_v3, %v1947_v46  ;;  %v9671_v12 = vld [vmem:[#allocation44_spill] sm:$0xff]  ;;  %v9679_v54 = vld [vmem:[#allocation39_spill] sm:$0xff]  ;;  %v3062_v21 = vrot.slane %v3056_v59, 6  ;;  %v3079_v3 = vmul.f32 %v3078_v32, %v7655_v16 }
 0x2ba   : > { %v1965_v5 = vadd.f32 %v9671_v12, %v1957_v44  ;;  %v9678_v44 = vld [vmem:[#allocation54_spill] sm:$0xff]  ;;  %v3080_v12 = vmul.f32 %v3078_v32, %v7657_v58 }
 0x2bb   : > { %v7885_v55 = vpop.permute.xlu1 %2238  ;;  %v2001_v2 = vadd.f32 %v9674_v56, %v1993_v1  ;;  %v2027_v26 = vadd.f32 %v9677_v36, %v2015_v25  ;;  %v9683_v56 = vld [vmem:[#allocation55_spill] sm:$0xff] }
 0x2bc   : > { %v7887_v57 = vpop.permute.xlu0 %2230  ;;  %v2041_v60 = vadd.f32 %v9672_v63, %v1965_v5  ;;  %v3081_v5 = vmul.f32 %v3078_v32, %v7679_v41  ;;  %v3063_v63 = vsel %vm917_vm2, %v3061_v18, %v3062_v21 }
 0x2bd   : > { %2998 = vrot.lane.b32.xlu1 %v2995_v52, %s9616_s7  ;;  %2978 = vrot.lane.b32.xlu0 %v2972_v11, %s9616_s7  ;;  %v9676_v52 = vld [vmem:[#allocation52_spill] sm:$0xff]  ;;  %v2094_v6 = vadd.f32 %v9678_v44, %v2027_v26  ;;  %v3146_v44 = vstv %s7955_s23  ;;  %s5311_s23 = sld [smem:[#allocation8 + $0xf9]] }
 0x2be   : > { %v2078_v22 = vadd.f32 %v9676_v52, %v2001_v2  ;;  %v2053_v23 = vadd.f32 %v9679_v54, %v2041_v60  ;;  %v3086_v52 = vrot.slane %v3080_v12, 6 }
 0x2bf   : > { %v7900_v9 = vpop.permute.xlu1 %2256  ;;  %v2101_v59 = vadd.f32 %v9682_v30, %v2094_v6  ;;  %v3147_v30 = vmul.f32 %v3146_v44, %v7625_v40 }
 0x2c0   : > { %v7902_v13 = vpop.permute.xlu0 %2248  ;;  %v2110_v48 = vadd.f32 %v7794_v0, %v2053_v23 }
 0x2c1   : > { %3002 = vrot.lane.b32.xlu1 %v2996_v62, %s9616_s7  ;;  %3000 = vrot.lane.b32.xlu0 %v2997_v15, %s9616_s7  ;;  %s7927_s7 = sld [smem:[#allocation8 + $0xd4]]  ;;  %v1983_v62 = vadd.f32 %v9673_v47, %v1975_v45  ;;  %v9680_v45 = vld [vmem:[#allocation48_spill] sm:$0xff] }
 0x2c2   : > { %v2117_v2 = vadd.f32 %v9683_v56, %v2110_v48 }
 0x2c3   : > { %v7913_v11 = vpop.permute.xlu1 %2274  ;;  %v2062_v50 = vadd.f32 %v9675_v14, %v1983_v62  ;;  %v2175_v62 = vadd.f32 %v7838_v27, %v2101_v59  ;;  %v3085_v14 = vrot.slane %v3079_v3, 6  ;;  %v3124_v27 = vstv %s7951_s4  ;;  %s5310_s4 = sld [smem:[#allocation8 + $0xc8]] }
 0x2c4   : > { %v7915_v33 = vpop.permute.xlu0 %2266  ;;  %v2197_v36 = vadd.f32 %v7855_v4, %v2117_v2  ;;  %v3125_v48 = vmul.f32 %v3124_v27, %v7655_v16 }
 0x2c5   : > { %3022 = vrot.lane.b32.xlu1 %v3019_v24, %s5672_s8  ;;  %3020 = vrot.lane.b32.xlu0 %v3017_v20, %s5672_s8  ;;  %v3057_v20 = vmul.f32 %v3054_v35, %v7664_v7  ;;  %v2069_v19 = vadd.f32 %v9680_v45, %v2062_v50  ;;  %v9681_v35 = vld [vmem:[#allocation51_spill] sm:$0xff]  ;;  %v2187_v4 = vadd.f32 %v7836_v17, %v2175_v62 }
 0x2c6   : > { %v2085_v1 = vadd.f32 %v9681_v35, %v2078_v22  ;;  %v3088_v22 = vrot.slane %v3081_v5, 6  ;;  %v3148_v35 = vmul.f32 %v3146_v44, %v7632_v8 }
 0x2c7   : > { %v7929_v37 = vpop.permute.xlu1 %2300  ;;  %v3104_v43 = vstv %s7927_s7  ;;  %v3064_v25 = vrot.slane %v3057_v20, 6  ;;  %v2251_v45 = vadd.f32 %v7902_v13, %v2187_v4  ;;  %s5309_s7 = sld [smem:[#allocation8 + $0x122]] }
 0x2c8   : > { %v7931_v28 = vpop.permute.xlu0 %2288  ;;  %v2149_v0 = vadd.f32 %v7820_v29, %v2085_v1  ;;  %v3106_v60 = vmul.f32 %v3104_v43, %v7632_v8  ;;  %v3107_v47 = vmul.f32 %v3104_v43, %v7664_v7  ;;  %v8008_v1 = vmul.f32 %v3146_v44, %v7664_v7 }
 0x2c9   : > { %3040 = vrot.lane.b32.xlu1 %v3037_v49, %s5672_s8  ;;  %3024 = vrot.lane.b32.xlu0 %v3018_v39, %s5672_s8  ;;  %v3039_v39 = vsel %vm917_vm2, %v3037_v49, %v3038_v61  ;;  %v2127_v49 = vadd.f32 %v7808_v34, %v2069_v19  ;;  %v3105_v34 = vmul.f32 %v3104_v43, %v7625_v40 }
 0x2ca   : > { %v3065_v50 = vsel %vm917_vm2, %v3062_v21, %v3064_v25  ;;  %v3112_v32 = vrot.slane %v3106_v60, 2  ;;  %v3114_v20 = vrot.slane %v3107_v47, 2  ;;  %v3127_v21 = vmul.f32 %v3124_v27, %v7679_v41 }
 0x2cb   : > { %v7943_v15 = vpop.permute.xlu1 %2326  ;;  %v2135_v26 = vadd.f32 %v7806_v42, %v2127_v49  ;;  %v3111_v23 = vrot.slane %v3105_v34, 2  ;;  %v2205_v19 = vadd.f32 %v7853_v51, %v2197_v36  ;;  %v3154_v47 = vrot.slane %v3148_v35, 2 }
 0x2cc   : > { %v7945_v31 = vpop.permute.xlu0 %2314  ;;  %v3115_v17 = vsel %vm890_vm1, %v3112_v32, %v3114_v20  ;;  %v3134_v49 = vrot.slane %v3127_v21, 2  ;;  %v3156_v62 = vrot.slane %v8008_v1, 2 }
 0x2cd   : > { %3044 = vrot.lane.b32.xlu1 %v3038_v61, %s5672_s8  ;;  %3042 = vrot.lane.b32.xlu0 %v3039_v39, %s5672_s8  ;;  %v2215_v6 = vadd.f32 %v7871_v38, %v2135_v26  ;;  %v3126_v39 = vmul.f32 %v3124_v27, %v7657_v58  ;;  %v3089_v38 = vsel %vm917_vm2, %v3086_v52, %v3088_v22  ;;  %v3196_v26 = vstv %s8014_s0  ;;  %s5313_s0 = sld [smem:[#allocation8 + $0x100]] }
 0x2ce   : > { %v2269_v13 = vadd.f32 %v7915_v33, %v2205_v19  ;;  %v3113_v3 = vsel %vm890_vm1, %v3111_v23, %v3112_v32  ;;  %v2259_v33 = vadd.f32 %v7900_v9, %v2251_v45 }
 0x2cf   : > { %v7961_v46 = vpop.permute.xlu1 %2344  ;;  %v2223_v51 = vadd.f32 %v7869_v53, %v2215_v6  ;;  %v3132_v5 = vrot.slane %v3126_v39, 2  ;;  %v3170_v53 = vstv %s7986_s5  ;;  %s5312_s5 = sld [smem:[#allocation8 + $0xcf]] }
 0x2d0   : > { %v7963_v24 = vpop.permute.xlu0 %2336  ;;  %v2277_v60 = vadd.f32 %v7913_v11, %v2269_v13  ;;  %v3171_v9 = vmul.f32 %v3170_v53, %v7655_v16  ;;  %v3172_v34 = vmul.f32 %v3170_v53, %v7657_v58  ;;  %v3153_v11 = vrot.slane %v3147_v30, 2 }
 0x2d1   : > { %3068 = vrot.lane.b32.xlu1 %v3063_v63, %s5672_s8  ;;  %3066 = vrot.lane.b32.xlu0 %v3061_v18, %s5672_s8  ;;  %v2161_v18 = vadd.f32 %v7818_v10, %v2149_v0  ;;  %v3131_v0 = vrot.slane %v3125_v48, 2  ;;  %v2291_v59 = vadd.f32 %v7931_v28, %v2223_v51  ;;  %v3135_v28 = vsel %vm890_vm1, %v3132_v5, %v3134_v49 }
 0x2d2   : > { %v3177_v32 = vrot.slane %v3171_v9, 2  ;;  %v3155_v44 = vsel %vm890_vm1, %v3153_v11, %v3154_v47  ;;  %v3173_v6 = vmul.f32 %v3170_v53, %v7679_v41  ;;  %v3197_v48 = vmul.f32 %v3196_v26, %v7625_v40  ;;  %v9689_v9 = vld [vmem:[#allocation32_spill] sm:$0xff] }
 0x2d3   : > { %v7979_v29 = vpop.permute.xlu1 %2362  ;;  %v2233_v54 = vadd.f32 %v7887_v57, %v2161_v18  ;;  %v3087_v57 = vsel %vm917_vm2, %v3085_v14, %v3086_v52  ;;  %v2496_v11 = vstv %s8063_s12  ;;  %s5318_s12 = sld [smem:[#allocation8 + $0xe4]] }
 0x2d4   : > { %v2355_v61 = vpop.permute.xlu0 %2354 }
 0x2d5   : > { %3090 = vrot.lane.b32.xlu1 %v3085_v14, %s5672_s8  ;;  %3070 = vrot.lane.b32.xlu0 %v3065_v50, %s5672_s8  ;;  %v2241_v43 = vadd.f32 %v7885_v55, %v2233_v54  ;;  %v2339_v55 = vadd.f32 %v7963_v24, %v2259_v33  ;;  %v2357_v14 = vadd.f32 %v2355_v61, %v2277_v60  ;;  %v2488_v60 = vstv %s8051_s2  ;;  %s5316_s2 = sld [smem:[#allocation8 + $0xdd]] }
 0x2d6   : > { %v2303_v50 = vadd.f32 %v7929_v37, %v2291_v59  ;;  %v3157_v61 = vsel %vm890_vm1, %v3154_v47, %v3156_v62  ;;  %v3178_v37 = vrot.slane %v3172_v34, 2  ;;  %v2494_v34 = vstv %s5387_s16  ;;  %s5321_s16 = sld [smem:[#allocation8 + $0x11c]] }
 0x2d7   : > { %v7994_v42 = vpop.permute.xlu1 %2380  ;;  %v2317_v63 = vadd.f32 %v7945_v31, %v2241_v43  ;;  %v3133_v31 = vsel %vm890_vm1, %v3131_v0, %v3132_v5  ;;  %v2347_v36 = vadd.f32 %v7961_v46, %v2339_v55  ;;  %v3198_v46 = vmul.f32 %v3196_v26, %v7632_v8 }
 0x2d8   : > { %v2373_v10 = vpop.permute.xlu0 %2372  ;;  %v3179_v21 = vsel %vm890_vm1, %v3177_v32, %v3178_v37 }
 0x2d9   : > { %3094 = vrot.lane.b32.xlu1 %v3089_v38, %s5672_s8  ;;  %3092 = vrot.lane.b32.xlu0 %v3087_v57, %s5672_s8  ;;  %v2329_v24 = vadd.f32 %v7943_v15, %v2317_v63  ;;  %v2375_v52 = vadd.f32 %v2373_v10, %v2303_v50  ;;  %v2365_v15 = vadd.f32 %v7979_v29, %v2357_v14  ;;  %v3180_v38 = vrot.slane %v3173_v6, 2 }
 0x2da   : > { %v8047_v10 = vmul.f32 %v3196_v26, %v7664_v7  ;;  %v3220_v57 = vstv %s8032_s1  ;;  %v9690_v14 = vmov 0.0   ;;  %s5315_s1 = sld [smem:[#allocation8 + $0x107]] }
 0x2db   : > { %v2399_v25 = vpop.permute.xlu1 %2398  ;;  %v2383_v23 = vadd.f32 %v7994_v42, %v2375_v52  ;;  %v3204_v42 = vrot.slane %v3198_v46, 2  ;;  %v3181_v0 = vsel %vm890_vm1, %v3178_v37, %v3180_v38  ;;  %v2498_v37 = vstv %s8070_s14  ;;  %s5319_s14 = sld [smem:[#allocation8 + $0x115]] }
 0x2dc   : > { %v2391_v12 = vpop.permute.xlu0 %2390  ;;  %v3206_v13 = vrot.slane %v8047_v10, 2 }
 0x2dd   : > { %3118 = vrot.lane.b32.xlu1 %v3115_v17, %s5672_s8  ;;  %3116 = vrot.lane.b32.xlu0 %v3113_v3, %s5672_s8  ;;  %v2393_v22 = vadd.f32 %v2391_v12, %v2329_v24  ;;  %v3203_v3 = vrot.slane %v3197_v48, 2  ;;  %v3222_v12 = vmul.f32 %v3220_v57, %v7657_v58 }
 0x2de   : > { %v3207_v59 = vsel %vm890_vm1, %v3204_v42, %v3206_v13 }
 0x2df   : > { %v2417_v56 = vpop.permute.xlu1 %2416  ;;  %v2401_v54 = vadd.f32 %v2399_v25, %v2393_v22  ;;  %v3221_v25 = vmul.f32 %v3220_v57, %v7655_v16  ;;  %v3205_v55 = vsel %vm890_vm1, %v3203_v3, %v3204_v42 }
 0x2e0   : > { %v2409_v2 = vpop.permute.xlu0 %2408 }
 0x2e1   : > { %3138 = vrot.lane.b32.xlu1 %v3135_v28, %s5672_s8  ;;  %3136 = vrot.lane.b32.xlu0 %v3133_v31, %s5672_s8  ;;  %v2411_v20 = vadd.f32 %v2409_v2, %v2347_v36  ;;  %v2473_v17 = vrot.slane %v2401_v54, 1  ;;  %v3227_v47 = vrot.slane %v3221_v25, 2  ;;  %v3223_v2 = vmul.f32 %v3220_v57, %v7679_v41  ;;  %v9688_v31 = vld [vmem:[#allocation31_spill] sm:$0xff]  ;;  %v8131_v25 = vld [vmem:[#allocation4] sm:$0xff] }
 0x2e2   : > { %v3246_v28 = vstv %s8054_s3  ;;  %vm4688_vm6 = vcmp.eq.s32.totalorder %v9689_v9, %v9688_v31  ;;  %s5317_s3 = sld [smem:[#allocation8 + $0x10e]] }
 0x2e3   : > { %v2443_v18 = vpop.permute.xlu1 %2442  ;;  %v2419_v45 = vadd.f32 %v2417_v56, %v2411_v20  ;;  %v5358_v50 = vsel %vm4688_vm6, 1.0, %v9690_v14  ;;  %v3248_v36 = vmul.f32 %v3246_v28, %v7632_v8  ;;  %v3249_v26 = vmul.f32 %v3246_v28, %v7664_v7 }
 0x2e4   : > { %v2431_v27 = vpop.permute.xlu0 %2430  ;;  %5381 = vmatprep.mubr.msk.f32.mxu0 %vm224_vm0, %v5358_v50  ;;  %v3230_v32 = vrot.slane %v3223_v2, 2  ;;  %v3270_v20 = vstv %s8072_s15  ;;  %v3338_v2 = vstv %s8120_s25  ;;  %s5320_s15 = sld [smem:[#allocation8 + $0xeb]]  ;;  %s5324_s25 = sld [smem:[#allocation8 + $0xc9]] }
 0x2e5   : > { %3160 = vrot.lane.b32.xlu1 %v3157_v61, %s5672_s8  ;;  %3158 = vrot.lane.b32.xlu0 %v3155_v44, %s5672_s8  ;;  %v2433_v4 = vadd.f32 %v2431_v27, %v2365_v15  ;;  %v2477_v5 = vrot.slane %v2419_v45, 2  ;;  %v3254_v8 = vrot.slane %v3248_v36, 2  ;;  %v3256_v46 = vrot.slane %v3249_v26, 2 }
 0x2e6   : > { %v3272_v10 = vmul.f32 %v3270_v20, %v7657_v58  ;;  %v3273_v58 = vmul.f32 %v3270_v20, %v7679_v41 }
 0x2e7   : > { %v2469_v39 = vpop.permute.xlu1 %2468  ;;  %v2445_v35 = vadd.f32 %v2443_v18, %v2433_v4  ;;  %v3247_v18 = vmul.f32 %v3246_v28, %v7625_v40  ;;  %v3257_v48 = vsel %vm890_vm1, %v3254_v8, %v3256_v46 }
 0x2e8   : > { %v2457_v29 = vpop.permute.xlu0 %2456  ;;  %v3280_v3 = vrot.slane %v3273_v58, 2 }
 0x2e9   : > { %v2459_v19 = vadd.f32 %v2457_v29, %v2383_v23  ;;  %3182 = vrot.lane.b32.xlu1 %v3179_v21, %s5672_s8  ;;  %3162 = vrot.lane.b32.xlu0 %v3156_v62, %s5672_s8  ;;  %v2481_v30 = vrot.slane %v2445_v35, 3  ;;  %v3228_v62 = vrot.slane %v3222_v12, 2  ;;  %v3253_v54 = vrot.slane %v3247_v18, 2 }
 0x2ea   : > { %v3271_v23 = vmul.f32 %v3270_v20, %v7655_v16  ;;  %v3278_v16 = vrot.slane %v3272_v10, 2 }
 0x2eb   : > { %v2471_v1 = vadd.f32 %v2469_v39, %v2459_v19  ;;  %v8059_v51 = vpop.permute.xlu1 %2695  ;;  %v3229_v61 = vsel %vm890_vm1, %v3227_v47, %v3228_v62  ;;  %v3231_v4 = vsel %vm890_vm1, %v3228_v62, %v3230_v32  ;;  %v3255_v45 = vsel %vm890_vm1, %v3253_v54, %v3254_v8  ;;  %v8145_v62 = vld [vmem:[#allocation4 + $0x18] sm:$0xff] }
 0x2ec   : > { %9684 = vst [vmem:[#allocation37_spill] sm:$0xff] %v8059_v51  ;;  %v8061_v43 = vpop.permute.xlu0 %2693  ;;  %v3296_v19 = vstv %s5294_s21  ;;  %v3359_v54 = vstv %s8148_s30  ;;  %s5322_s21 = sld [smem:[#allocation8 + $0xf2]] }
 0x2ed   : > { %9685 = vst [vmem:[#allocation38_spill] sm:$0xff] %v8061_v43  ;;  %v2475_v49 = vadd.f32 %v2473_v17, %v2471_v1  ;;  %3186 = vrot.lane.b32.xlu1 %v3180_v38, %s5672_s8  ;;  %3184 = vrot.lane.b32.xlu0 %v3181_v0, %s5672_s8  ;;  %v3277_v38 = vrot.slane %v3271_v23, 2  ;;  %v8126_v17 = vld [vmem:[#allocation4 + $0x8] sm:$0xff]  ;;  %v3299_v1 = vmul.f32 %v3296_v19, %v7664_v7  ;;  %v8140_v7 = vld [vmem:[#allocation4 + $0x20] sm:$0xff]  ;;  %s5325_s30 = sld [smem:[#allocation8 + $0xfa]] }
 0x2ee   : > { %v3298_v35 = vmul.f32 %v8126_v17, %v3296_v19  ;;  %v3297_v12 = vmul.f32 %v8131_v25, %v3296_v19  ;;  %v3360_v23 = vmul.f32 %v8145_v62, %v3359_v54  ;;  %v3361_v10 = vmul.f32 %v8140_v7, %v3359_v54 }
 0x2ef   : > { %v2479_v63 = vadd.f32 %v2477_v5, %v2475_v49  ;;  %v8075_v33 = vpop.permute.xlu1 %2713  ;;  %v3316_v5 = vstv %s5295_s24  ;;  %s5323_s24 = sld [smem:[#allocation8 + $0x123]] }
 0x2f0   : > { %9686 = vst [vmem:[#allocation45_spill] sm:$0xff] %v8075_v33  ;;  %v8077_v53 = vpop.permute.xlu0 %2697  ;;  %v3303_v47 = vrot.slane %v3297_v12, 6  ;;  %v3365_v58 = vrot.slane %v3361_v10, 7  ;;  %v8642_v33 = vld [vmem:[#allocation4 + $0x18] sm:$0xff] }
 0x2f1   : > { %9687 = vst [vmem:[#allocation42_spill] sm:$0xff] %v8077_v53  ;;  %v2483_v56 = vadd.f32 %v2481_v30, %v2479_v63  ;;  %3210 = vrot.lane.b32.xlu1 %v3207_v59, %s5672_s8  ;;  %3208 = vrot.lane.b32.xlu0 %v3205_v55, %s5672_s8  ;;  %v3304_v30 = vrot.slane %v3298_v35, 6  ;;  %v3306_v59 = vrot.slane %v3299_v1, 6  ;;  %v3318_v63 = vmul.f32 %v8140_v7, %v3316_v5 }
 0x2f2   : > { %v3319_v55 = vmul.f32 %v3316_v5, %v7679_v41 }
 0x2f3   : > { %v2489_v24 = vsub.f32 %v2483_v56, %v2488_v60  ;;  %v8090_v52 = vpop.permute.xlu1 %2717  ;;  %v3281_v60 = vsel %vm890_vm1, %v3278_v16, %v3280_v3  ;;  %v3317_v56 = vmul.f32 %v8145_v62, %v3316_v5  ;;  %v3307_v41 = vsel %vm917_vm2, %v3304_v30, %v3306_v59 }
 0x2f4   : > { %9691 = vst [vmem:[#allocation43_spill] sm:$0xff] %v8090_v52  ;;  %v8092_v22 = vpop.permute.xlu0 %2715  ;;  %v3326_v36 = vrot.slane %v3319_v55, 6  ;;  %v3305_v26 = vsel %vm917_vm2, %v3303_v47, %v3304_v30  ;;  %v3405_v59 = vstv %s5299_s9  ;;  %s5260_s9 = sld [smem:[#allocation8 + $0xd9]] }
 0x2f5   : > { %9692 = vst [vmem:[#allocation50_spill] sm:$0xff] %v8092_v22  ;;  %v2495_v27 = vmul.f32 %v2494_v34, %v2489_v24  ;;  %3232 = vrot.lane.b32.xlu1 %v3229_v61, %s5672_s8  ;;  %3212 = vrot.lane.b32.xlu0 %v3206_v13, %s5672_s8  ;;  %v3279_v13 = vsel %vm890_vm1, %v3277_v38, %v3278_v16  ;;  %v3323_v18 = vrot.slane %v3317_v56, 6  ;;  %v3364_v16 = vrot.slane %v3360_v23, 7 }
 0x2f6   : > { %v3340_v61 = vmul.f32 %v8126_v17, %v3338_v2 }
 0x2f7   : > { %v2497_v15 = vmul.f32 %v2496_v11, %v2495_v27  ;;  %v8102_v44 = vpop.permute.xlu1 %2742  ;;  %v3324_v11 = vrot.slane %v3318_v63, 6  ;;  %v3339_v27 = vmul.f32 %v8131_v25, %v3338_v2  ;;  %v3366_v12 = vsel %vm3343_vm7, %v3364_v16, %v3365_v58  ;;  %v8195_v63 = vld [vmem:[#allocation4 + $0x10] sm:$0x3f] }
 0x2f8   : > { %9693 = vst [vmem:[#allocation44_spill] sm:$0xff] %v8102_v44  ;;  %v8104_v6 = vpop.permute.xlu0 %2740 }
 0x2f9   : > { %v2499_v40 = vadd.f32 %v2498_v37, %v2497_v15  ;;  %3236 = vrot.lane.b32.xlu1 %v3230_v32, %s5672_s8  ;;  %3234 = vrot.lane.b32.xlu0 %v3231_v4, %s5672_s8  ;;  %v3327_v20 = vsel %vm917_vm2, %v3324_v11, %v3326_v36  ;;  %v3325_v15 = vsel %vm917_vm2, %v3323_v18, %v3324_v11  ;;  %v3344_v8 = vrot.slane %v3339_v27, 7 }
 0x2fb   : > { %v5253_v39 = vmul.f32 -1.442695, %v2499_v40  ;;  %v8111_v29 = vpop.permute.xlu1 %2762 }
 0x2fc   : > { %9694 = vst [vmem:[#allocation41_spill] sm:$0xff] %v8111_v29  ;;  %v8113_v21 = vpop.permute.xlu0 %2760 }
 0x2fd   : > { %5488 = vpow2.f32 %v5253_v39  ;;  %3260 = vrot.lane.b32.xlu1 %v3257_v48, %s5672_s8  ;;  %3258 = vrot.lane.b32.xlu0 %v3255_v45, %s5672_s8  ;;  %v3381_v48 = vstv %s5298_s6  ;;  %s5326_s6 = sld [smem:[#allocation8 + $0xd0]] }
 0x2fe   : > { %v3382_v35 = vmul.f32 %v8131_v25, %v3381_v48  ;;  %v3383_v1 = vmul.f32 %v8126_v17, %v3381_v48  ;;  %v3384_v55 = vmul.f32 %v8195_v63, %v3381_v48 }
 0x2ff   : > { %v8122_v57 = vpop.permute.xlu1 %2784 }
 0x300   : > { %v8124_v42 = vpop.permute.xlu0 %2782  ;;  %v3388_v5 = vrot.slane %v3382_v35, 7  ;;  %v3389_v30 = vrot.slane %v3383_v1, 7 }
 0x301   : > { %3282 = vrot.lane.b32.xlu1 %v3279_v13, %s5672_s8  ;;  %3262 = vrot.lane.b32.xlu0 %v3256_v46, %s5672_s8  ;;  %v3345_v46 = vrot.slane %v3340_v61, 7 }
 0x302   : > { %v3390_v36 = vsel %vm3343_vm7, %v3388_v5, %v3389_v30 }
 0x303   : > { %v8136_v49 = vpop.permute.xlu1 %2806  ;;  %v3346_v39 = vsel %vm3343_vm7, %v3344_v8, %v3345_v46 }
 0x304   : > { %v8138_v0 = vpop.permute.xlu0 %2786 }
 0x305   : > { %3286 = vrot.lane.b32.xlu1 %v3280_v3, %s5672_s8  ;;  %3284 = vrot.lane.b32.xlu0 %v3281_v60, %s5672_s8  ;;  %v4687_v60 = vadd.s32 8, %v9689_v9 }
 0x307   : > { %v5489_v28 = vpop.eup %5488  ;;  %v8153_v50 = vpop.permute.xlu1 %2810  ;;  %vm4689_vm8 = vcmp.eq.s32.totalorder %v4687_v60, %v9688_v31 }
 0x308   : > { %v2503_v34 = vadd.f32 1.0, %v5489_v28  ;;  %v8155_v24 = vpop.permute.xlu0 %2808  ;;  %v3406_v28 = vmul.f32 %v8145_v62, %v3405_v59 }
 0x309   : > { %3310 = vrot.lane.b32.xlu1 %v3307_v41, %s5672_s8  ;;  %3308 = vrot.lane.b32.xlu0 %v3305_v26, %s5672_s8  ;;  %v8207_v41 = vld [vmem:[#allocation4 + $0x28] sm:$0x3f]  ;;  %v3391_v26 = vrot.slane %v3384_v55, 7 }
 0x30a   : > { %5490 = vrcp.f32 %v2503_v34  ;;  %v3407_v34 = vmul.f32 %v8140_v7, %v3405_v59  ;;  %v3408_v11 = vmul.f32 %v8207_v41, %v3405_v59 }
 0x30b   : > { %v8163_v32 = vpop.permute.xlu1 %2834  ;;  %v3392_v54 = vsel %vm3343_vm7, %v3389_v30, %v3391_v26 }
 0x30c   : > { %9695 = vst [vmem:[#allocation47_spill] sm:$0xff] %v8163_v32  ;;  %v8165_v37 = vpop.permute.xlu0 %2832 }
 0x30d   : > { %9696 = vst [vmem:[#allocation40_spill] sm:$0xff] %v8165_v37  ;;  %3330 = vrot.lane.b32.xlu1 %v3327_v20, %s5672_s8  ;;  %3328 = vrot.lane.b32.xlu0 %v3325_v15, %s5672_s8  ;;  %s5300_s8 = sld [smem:[#allocation8 + $0xd5]]  ;;  %v3412_v20 = vrot.slane %v3406_v28, 7  ;;  %v3413_v15 = vrot.slane %v3407_v34, 7  ;;  %v3501_v28 = vstv %s5303_s17  ;;  %s8542_s17 = sld [smem:[#allocation8 + $0xd7]] }
 0x30f   : > { %v8172_v40 = vpop.permute.xlu1 %2856  ;;  %v3414_v48 = vsel %vm3343_vm7, %v3412_v20, %v3413_v15 }
 0x310   : > { %9697 = vst [vmem:[#allocation49_spill] sm:$0xff] %v8172_v40  ;;  %v8174_v4 = vpop.permute.xlu0 %2836 }
 0x311   : > { %9698 = vst [vmem:[#allocation52_spill] sm:$0xff] %v8174_v4  ;;  %3349 = vrot.lane.b32.xlu1 %v3346_v39, %s5673_s29  ;;  %3347 = vrot.lane.b32.xlu0 %v3344_v8, %s5673_s29  ;;  %v3415_v8 = vrot.slane %v3408_v11, 7 }
 0x313   : > { %v8181_v19 = vpop.permute.xlu1 %2860  ;;  %v3431_v18 = vstv %s5300_s8  ;;  %s5261_s8 = sld [smem:[#allocation8 + $0x10a]]  ;;  %v4047_v32 = vstv %s8542_s17  ;;  %s9012_s17 = sld [smem:[#allocation8 + $0xe6]] }
 0x314   : > { %v5491_v45 = vpop.eup %5490  ;;  %9699 = vst [vmem:[#allocation46_spill] sm:$0xff] %v8181_v19  ;;  %v8183_v38 = vpop.permute.xlu0 %2858  ;;  %v3432_v31 = vmul.f32 %v8131_v25, %v3431_v18  ;;  %v3433_v23 = vmul.f32 %v8126_v17, %v3431_v18  ;;  %v3434_v35 = vmul.f32 %v8195_v63, %v3431_v18  ;;  %v4048_v40 = vmul.f32 %v8131_v25, %v4047_v32 }
 0x315   : > { %9700 = vst [vmem:[#allocation54_spill] sm:$0xff] %v8183_v38  ;;  %2506 = vst.msk [vmem:[#allocation6] sm:$0xf] %vm1532_vm4, %v5491_v45  ;;  %3367 = vrot.lane.b32.xlu1 %v3364_v16, %s5673_s29  ;;  %3351 = vrot.lane.b32.xlu0 %v3345_v46, %s5673_s29  ;;  %v5359_v46 = vsel %vm4689_vm8, 1.0, %v9690_v14  ;;  %v3416_v14 = vsel %vm3343_vm7, %v3413_v15, %v3415_v8 }
 0x316   : > { %v3438_v45 = vrot.slane %v3432_v31, 7  ;;  %v3439_v16 = vrot.slane %v3433_v23, 7  ;;  %v3441_v55 = vrot.slane %v3434_v35, 7 }
 0x317   : > { %v8190_v13 = vpop.permute.xlu1 %2884 }
 0x318   : > { %9701 = vst [vmem:[#allocation39_spill] sm:$0xff] %v8190_v13  ;;  %v8192_v3 = vpop.permute.xlu0 %2882  ;;  %v3440_v59 = vsel %vm3343_vm7, %v3438_v45, %v3439_v16  ;;  %v3442_v15 = vsel %vm3343_vm7, %v3439_v16, %v3441_v55 }
 0x319   : > { %9702 = vst [vmem:[#allocation48_spill] sm:$0xff] %v8192_v3  ;;  %3371 = vrot.lane.b32.xlu1 %v3365_v58, %s5673_s29  ;;  %3369 = vrot.lane.b32.xlu0 %v3366_v12, %s5673_s29  ;;  %v3455_v58 = vstv %s5301_s13  ;;  %s5327_s13 = sld [smem:[#allocation8 + $0x101]] }
 0x31a   : > { %v3457_v30 = vmul.f32 %v8140_v7, %v3455_v58  ;;  %v3458_v60 = vmul.f32 %v8207_v41, %v3455_v58 }
 0x31b   : > { %v8201_v47 = vpop.permute.xlu1 %2906 }
 0x31c   : > { %9703 = vst [vmem:[#allocation51_spill] sm:$0xff] %v8201_v47  ;;  %v8203_v56 = vpop.permute.xlu0 %2886  ;;  %v4705_v2 = vld [vmem:[#allocation6] sm:$0xf]  ;;  %v3463_v8 = vrot.slane %v3457_v30, 7  ;;  %v3523_v30 = vstv %s5304_s19  ;;  %s8544_s19 = sld [smem:[#allocation8 + $0xc4]] }
 0x31d   : > { %9704 = vst [vmem:[#allocation53_spill] sm:$0xff] %v8203_v56  ;;  %5379 = vmatprep.subr.msk.mxu0 %vm224_vm0, %v4705_v2  ;;  %3395 = vrot.lane.b32.xlu1 %v3390_v36, %s5673_s29 }
 0x31e   : > { %3393 = vrot.lane.b32.xlu0 %v3388_v5, %s5673_s29  ;;  %5380 = vmatpush3.xpose.msk.msra.mxu0 %vm224_vm0, %v4705_v2  ;;  %v3456_v5 = vmul.f32 %v8145_v62, %v3455_v58  ;;  %v3481_v2 = vstv %s5302_s10  ;;  %v3504_v58 = vmul.f32 %v8207_v41, %v3501_v28  ;;  %s5262_s10 = sld [smem:[#allocation8 + $0xe0]] }
 0x31f   : > { %v8216_v27 = vpop.permute.xlu1 %2910  ;;  %v3483_v26 = vmul.f32 %v8126_v17, %v3481_v2  ;;  %v3484_v18 = vmul.f32 %v8195_v63, %v3481_v2 }
 0x320   : > { %9705 = vst [vmem:[#allocation55_spill] sm:$0xff] %v8216_v27  ;;  %v8218_v61 = vpop.permute.xlu0 %2908  ;;  %v3462_v36 = vrot.slane %v3456_v5, 7  ;;  %v3502_v5 = vmul.f32 %v8145_v62, %v3501_v28  ;;  %v3720_v27 = vstv %s5313_s0  ;;  %s8702_s0 = sld [smem:[#allocation8 + $0xe5]] }
 0x321   : > { %9706 = vst [vmem:[#allocation31_spill] sm:$0xff] %v8218_v61  ;;  %3417 = vrot.lane.b32.xlu1 %v3412_v20, %s5673_s29  ;;  %5382 = vmatmul.mubr.msk.f32.vlgmr.msra.gmra.mrb[0].mxu0 %vm224_vm0, %v5359_v46  ;;  %v3482_v20 = vmul.f32 %v8131_v25, %v3481_v2  ;;  %v3465_v46 = vrot.slane %v3458_v60, 7 }
 0x322   : > { %3397 = vrot.lane.b32.xlu0 %v3392_v54, %s5673_s29  ;;  %v3503_v54 = vmul.f32 %v8140_v7, %v3501_v28  ;;  %v3464_v16 = vsel %vm3343_vm7, %v3462_v36, %v3463_v8  ;;  %v3526_v28 = vmul.f32 %v8195_v63, %v3523_v30 }
 0x323   : > { %v8227_v10 = vpop.permute.xlu1 %2934  ;;  %v3466_v35 = vsel %vm3343_vm7, %v3463_v8, %v3465_v46  ;;  %v3524_v8 = vmul.f32 %v8131_v25, %v3523_v30 }
 0x324   : > { %9707 = vst [vmem:[#allocation56_spill] sm:$0xff] %v8227_v10  ;;  %v8229_v39 = vpop.permute.xlu0 %2932 }
 0x325   : > { %3421 = vrot.lane.b32.xlu1 %v3416_v14, %s5673_s29  ;;  %v3489_v14 = vrot.slane %v3483_v26, 3 }
 0x326   : > { %3419 = vrot.lane.b32.xlu0 %v3414_v48, %s5673_s29  ;;  %v3491_v48 = vrot.slane %v3484_v18, 3  ;;  %v3511_v18 = vrot.slane %v3504_v58, 3 }
 0x327   : > { %v8236_v1 = vpop.permute.xlu1 %2954 }
 0x328   : > { %9708 = vst [vmem:[#allocation57_spill] sm:$0xff] %v8236_v1  ;;  %v8238_v12 = vpop.permute.xlu0 %2952  ;;  %v3492_v2 = vsel %vm1034_vm3, %v3489_v14, %v3491_v48 }
 0x329   : > { %3445 = vrot.lane.b32.xlu1 %v3440_v59, %s5673_s29  ;;  %v3509_v59 = vrot.slane %v3503_v54, 3 }
 0x32a   : > { %3443 = vrot.lane.b32.xlu0 %v3438_v45, %s5673_s29  ;;  %v3488_v45 = vrot.slane %v3482_v20, 3  ;;  %v3547_v20 = vstv %s5305_s11  ;;  %s8550_s11 = sld [smem:[#allocation8 + $0x111]] }
 0x32b   : > { %v8246_v34 = vpop.permute.xlu1 %2976  ;;  %v3548_v48 = vmul.f32 %v8145_v62, %v3547_v20  ;;  %v3550_v10 = vmul.f32 %v8207_v41, %v3547_v20 }
 0x32c   : > { %v8248_v11 = vpop.permute.xlu0 %2974  ;;  %v3490_v26 = vsel %vm1034_vm3, %v3488_v45, %v3489_v14  ;;  %v3512_v14 = vsel %vm1034_vm3, %v3509_v59, %v3511_v18  ;;  %v3549_v45 = vmul.f32 %v8140_v7, %v3547_v20 }
 0x32d   : > { %3467 = vrot.lane.b32.xlu1 %v3462_v36, %s5673_s29  ;;  %v3525_v36 = vmul.f32 %v8126_v17, %v3523_v30 }
 0x32e   : > { %3447 = vrot.lane.b32.xlu0 %v3442_v15, %s5673_s29  ;;  %v3508_v15 = vrot.slane %v3502_v5, 3  ;;  %v3530_v5 = vrot.slane %v3524_v8, 3  ;;  %v3555_v18 = vrot.slane %v3549_v45, 3  ;;  %v3597_v8 = vstv %s5307_s22  ;;  %s8587_s22 = sld [smem:[#allocation8 + $0xe7]] }
 0x32f   : > { %v8257_v31 = vpop.permute.xlu1 %2998  ;;  %v3599_v29 = vmul.f32 %v8140_v7, %v3597_v8 }
 0x330   : > { %v8259_v23 = vpop.permute.xlu0 %2978  ;;  %v3510_v58 = vsel %vm1034_vm3, %v3508_v15, %v3509_v59  ;;  %v3573_v59 = vstv %s5306_s20  ;;  %s8563_s20 = sld [smem:[#allocation8 + $0x108]] }
 0x331   : > { %3471 = vrot.lane.b32.xlu1 %v3466_v35, %s5673_s29  ;;  %v3531_v35 = vrot.slane %v3525_v36, 3  ;;  %v3576_v45 = vmul.f32 %v8195_v63, %v3573_v59 }
 0x332   : > { %3469 = vrot.lane.b32.xlu0 %v3464_v16, %s5673_s29  ;;  %v3533_v16 = vrot.slane %v3526_v28, 3  ;;  %v3575_v28 = vmul.f32 %v8126_v17, %v3573_v59 }
 0x333   : > { %v8267_v55 = vpop.permute.xlu1 %3002  ;;  %v3532_v1 = vsel %vm1034_vm3, %v3530_v5, %v3531_v35 }
 0x334   : > { %9709 = vst [vmem:[#allocation58_spill] sm:$0xff] %v8267_v55  ;;  %v8269_v60 = vpop.permute.xlu0 %3000  ;;  %v3534_v9 = vsel %vm1034_vm3, %v3531_v35, %v3533_v16  ;;  %v3581_v20 = vrot.slane %v3575_v28, 3  ;;  %v3598_v35 = vmul.f32 %v8145_v62, %v3597_v8  ;;  %v3600_v28 = vmul.f32 %v8207_v41, %v3597_v8 }
 0x335   : > { %9710 = vst [vmem:[#allocation59_spill] sm:$0xff] %v8269_v60  ;;  %3495 = vrot.lane.b32.xlu1 %v3492_v2, %s5673_s29 }
 0x336   : > { %3493 = vrot.lane.b32.xlu0 %v3490_v26, %s5673_s29  ;;  %v3554_v26 = vrot.slane %v3548_v48, 3  ;;  %v3557_v48 = vrot.slane %v3550_v10, 3  ;;  %v3607_v44 = vrot.slane %v3600_v28, 3 }
 0x337   : > { %v8278_v46 = vpop.permute.xlu1 %3022 }
 0x338   : > { %9711 = vst [vmem:[#allocation60_spill] sm:$0xff] %v8278_v46  ;;  %v8280_v54 = vpop.permute.xlu0 %3020  ;;  %v3558_v5 = vsel %vm1034_vm3, %v3555_v18, %v3557_v48 }
 0x339   : > { %9712 = vst [vmem:[#allocation61_spill] sm:$0xff] %v8280_v54  ;;  %3515 = vrot.lane.b32.xlu1 %v3512_v14, %s5673_s29  ;;  %v3556_v14 = vsel %vm1034_vm3, %v3554_v26, %v3555_v18  ;;  %v3583_v26 = vrot.slane %v3576_v45, 3  ;;  %v3605_v45 = vrot.slane %v3599_v29, 3  ;;  %v3647_v29 = vstv %s5309_s7  ;;  %s8601_s7 = sld [smem:[#allocation8 + $0xfc]] }
 0x33a   : > { %3513 = vrot.lane.b32.xlu0 %v3510_v58, %s5673_s29  ;;  %v3574_v58 = vmul.f32 %v8131_v25, %v3573_v59 }
 0x33b   : > { %v8288_v30 = vpop.permute.xlu1 %3040 }
 0x33c   : > { %9713 = vst [vmem:[#allocation62_spill] sm:$0xff] %v8288_v30  ;;  %v8290_v2 = vpop.permute.xlu0 %3024  ;;  %v3580_v10 = vrot.slane %v3574_v58, 3  ;;  %v3623_v58 = vstv %s5308_s27  ;;  %s8599_s27 = sld [smem:[#allocation8 + $0xcb]] }
 0x33d   : > { %9714 = vst [vmem:[#allocation63_spill] sm:$0xff] %v8290_v2  ;;  %3537 = vrot.lane.b32.xlu1 %v3534_v9, %s5673_s29  ;;  %v3626_v8 = vmul.f32 %v8195_v63, %v3623_v58 }
 0x33e   : > { %3535 = vrot.lane.b32.xlu0 %v3532_v1, %s5673_s29  ;;  %v3582_v18 = vsel %vm1034_vm3, %v3580_v10, %v3581_v20  ;;  %v3608_v10 = vsel %vm1034_vm3, %v3605_v45, %v3607_v44 }
 0x33f   : > { %v8297_v15 = vpop.permute.xlu1 %3044 }
 0x340   : > { %9715 = vst [vmem:[#allocation64_spill] sm:$0xff] %v8297_v15  ;;  %v8299_v36 = vpop.permute.xlu0 %3042 }
 0x341   : > { %9716 = vst [vmem:[#allocation65_spill] sm:$0xff] %v8299_v36  ;;  %3559 = vrot.lane.b32.xlu1 %v3556_v14, %s5673_s29  ;;  %v3604_v14 = vrot.slane %v3598_v35, 3  ;;  %v3841_v36 = vstv %s5319_s14  ;;  %s8796_s14 = sld [smem:[#allocation8 + $0xec]] }
 0x342   : > { %3539 = vrot.lane.b32.xlu0 %v3533_v16, %s5673_s29  ;;  %v3843_v13 = vmul.f32 %v8140_v7, %v3841_v36  ;;  %v3844_v52 = vmul.f32 %v8207_v41, %v3841_v36 }
 0x343   : > { %v8307_v9 = vpop.permute.xlu1 %3068  ;;  %v3606_v35 = vsel %vm1034_vm3, %v3604_v14, %v3605_v45  ;;  %v3648_v14 = vmul.f32 %v8145_v62, %v3647_v29 }
 0x344   : > { %9717 = vst [vmem:[#allocation66_spill] sm:$0xff] %v8307_v9  ;;  %v8309_v1 = vpop.permute.xlu0 %3066  ;;  %v3584_v9 = vsel %vm1034_vm3, %v3581_v20, %v3583_v26  ;;  %v3849_v30 = vrot.slane %v3843_v13, 4 }
 0x345   : > { %9718 = vst [vmem:[#allocation67_spill] sm:$0xff] %v8309_v1  ;;  %3563 = vrot.lane.b32.xlu1 %v3557_v48, %s5673_s29  ;;  %v3654_v45 = vrot.slane %v3648_v14, 3 }
 0x346   : > { %3561 = vrot.lane.b32.xlu0 %v3558_v5, %s5673_s29 }
 0x347   : > { %v8316_v59 = vpop.permute.xlu1 %3090 }
 0x348   : > { %9719 = vst [vmem:[#allocation68_spill] sm:$0xff] %v8316_v59  ;;  %v8318_v16 = vpop.permute.xlu0 %3070  ;;  %v3624_v59 = vmul.f32 %v8131_v25, %v3623_v58 }
 0x349   : > { %9720 = vst [vmem:[#allocation69_spill] sm:$0xff] %v8318_v16  ;;  %3587 = vrot.lane.b32.xlu1 %v3584_v9, %s5673_s29  ;;  %v3625_v16 = vmul.f32 %v8126_v17, %v3623_v58 }
 0x34a   : > { %3585 = vrot.lane.b32.xlu0 %v3582_v18, %s5673_s29  ;;  %v3633_v18 = vrot.slane %v3626_v8, 3 }
 0x34b   : > { %v8325_v48 = vpop.permute.xlu1 %3094  ;;  %v3631_v28 = vrot.slane %v3625_v16, 3 }
 0x34c   : > { %9721 = vst [vmem:[#allocation70_spill] sm:$0xff] %v8325_v48  ;;  %v8327_v5 = vpop.permute.xlu0 %3092  ;;  %v3649_v48 = vmul.f32 %v8140_v7, %v3647_v29 }
 0x34d   : > { %9722 = vst [vmem:[#allocation71_spill] sm:$0xff] %v8327_v5  ;;  %3609 = vrot.lane.b32.xlu1 %v3606_v35, %s5673_s29  ;;  %v3630_v5 = vrot.slane %v3624_v59, 3  ;;  %v3650_v35 = vmul.f32 %v8207_v41, %v3647_v29 }
 0x34e   : > { %3589 = vrot.lane.b32.xlu0 %v3583_v26, %s5673_s29  ;;  %v3655_v59 = vrot.slane %v3649_v48, 3 }
 0x34f   : > { %v8335_v9 = vpop.permute.xlu1 %3118  ;;  %v3632_v16 = vsel %vm1034_vm3, %v3630_v5, %v3631_v28 }
 0x350   : > { %9723 = vst [vmem:[#allocation72_spill] sm:$0xff] %v8335_v9  ;;  %v8337_v20 = vpop.permute.xlu0 %3116  ;;  %v3634_v9 = vsel %vm1034_vm3, %v3631_v28, %v3633_v18 }
 0x351   : > { %3613 = vrot.lane.b32.xlu1 %v3607_v44, %s5673_s29 }
 0x352   : > { %3611 = vrot.lane.b32.xlu0 %v3608_v10, %s5673_s29  ;;  %v3656_v10 = vsel %vm1034_vm3, %v3654_v45, %v3655_v59 }
 0x353   : > { %v8344_v58 = vpop.permute.xlu1 %3138 }
 0x354   : > { %9724 = vst [vmem:[#allocation73_spill] sm:$0xff] %v8344_v58  ;;  %v8346_v26 = vpop.permute.xlu0 %3136  ;;  %v3657_v58 = vrot.slane %v3650_v35, 3 }
 0x355   : > { %3637 = vrot.lane.b32.xlu1 %v3634_v9, %s5673_s29  ;;  %v3673_v9 = vstv %s5310_s4  ;;  %s8608_s4 = sld [smem:[#allocation8 + $0xde]] }
 0x356   : > { %3635 = vrot.lane.b32.xlu0 %v3632_v16, %s5673_s29  ;;  %v3658_v29 = vsel %vm1034_vm3, %v3655_v59, %v3657_v58  ;;  %v3675_v35 = vmul.f32 %v8126_v17, %v3673_v9  ;;  %v3686_v16 = vstv %s5311_s23  ;;  %s8630_s23 = sld [smem:[#allocation8 + $0x118]] }
 0x357   : > { %v8353_v44 = vpop.permute.xlu1 %3160 }
 0x358   : > { %9725 = vst [vmem:[#allocation74_spill] sm:$0xff] %v8353_v44  ;;  %v8355_v8 = vpop.permute.xlu0 %3158 }
 0x359   : > { %3659 = vrot.lane.b32.xlu1 %v3656_v10, %s5673_s29  ;;  %v3687_v10 = vmul.f32 %v8145_v62, %v3686_v16 }
 0x35a   : > { %3639 = vrot.lane.b32.xlu0 %v3633_v18, %s5673_s29  ;;  %v3674_v18 = vmul.f32 %v8131_v25, %v3673_v9 }
 0x35b   : > { %v8360_v5 = vpop.permute.xlu1 %3182 }
 0x35c   : > { %9726 = vst [vmem:[#allocation75_spill] sm:$0xff] %v8360_v5  ;;  %v8362_v48 = vpop.permute.xlu0 %3162 }
 0x35d   : > { %9727 = vst [vmem:[#allocation76_spill] sm:$0xff] %v8362_v48  ;;  %3663 = vrot.lane.b32.xlu1 %v3657_v58, %s5673_s29  ;;  %v3688_v58 = vmul.f32 %v8140_v7, %v3686_v16 }
 0x35e   : > { %3661 = vrot.lane.b32.xlu0 %v3658_v29, %s5673_s29  ;;  %v3701_v29 = vstv %s5312_s5  ;;  %s5314_s29 = sld [smem:[#allocation8 + $0xd6]]  ;;  %s8650_s5 = sld [smem:[#allocation8 + $0x10f]] }
 0x35f   : > { %v8367_v28 = vpop.permute.xlu1 %3186 }
 0x360   : > { %9728 = vst [vmem:[#allocation77_spill] sm:$0xff] %v8367_v28  ;;  %v8369_v14 = vpop.permute.xlu0 %3184  ;;  %v8613_v28 = vmul.f32 %v8195_v63, %v4047_v32 }
 0x361   : > { %9729 = vst [vmem:[#allocation78_spill] sm:$0xff] %v8369_v14  ;;  %3680 = vrot.lane.b32.xlu1 %v3675_v35, %s9623_s26  ;;  %v3703_v35 = vmul.f32 %v8126_v17, %v3701_v29 }
 0x362   : > { %3678 = vrot.lane.b32.xlu0 %v3674_v18, %s9623_s26  ;;  %v3702_v18 = vmul.f32 %v8131_v25, %v3701_v29 }
 0x363   : > { %v8375_v45 = vpop.permute.xlu1 %3210 }
 0x364   : > { %9730 = vst [vmem:[#allocation79_spill] sm:$0xff] %v8375_v45  ;;  %v8377_v59 = vpop.permute.xlu0 %3208 }
 0x365   : > { %9731 = vst [vmem:[#allocation80_spill] sm:$0xff] %v8377_v59  ;;  %3693 = vrot.lane.b32.xlu1 %v3688_v58, %s9623_s26  ;;  %v3721_v58 = vmul.f32 %v8145_v62, %v3720_v27  ;;  %v3863_v59 = vstv %s5320_s15  ;;  %s8820_s15 = sld [smem:[#allocation8 + $0xf3]] }
 0x366   : > { %3691 = vrot.lane.b32.xlu0 %v3687_v10, %s9623_s26  ;;  %v3704_v10 = vmul.f32 %v8195_v63, %v3701_v29  ;;  %v3865_v38 = vmul.f32 %v8126_v17, %v3863_v59  ;;  %v3866_v19 = vmul.f32 %v8195_v63, %v3863_v59 }
 0x367   : > { %v8383_v9 = vpop.permute.xlu1 %3232 }
 0x368   : > { %9732 = vst [vmem:[#allocation81_spill] sm:$0xff] %v8383_v9  ;;  %v8385_v61 = vpop.permute.xlu0 %3212 }
 0x369   : > { %9733 = vst [vmem:[#allocation82_spill] sm:$0xff] %v8385_v61  ;;  %3710 = vrot.lane.b32.xlu1 %v3703_v35, %s9623_s26  ;;  %v3723_v35 = vmul.f32 %v8207_v41, %v3720_v27 }
 0x36a   : > { %3708 = vrot.lane.b32.xlu0 %v3702_v18, %s9623_s26  ;;  %v3722_v18 = vmul.f32 %v8140_v7, %v3720_v27 }
 0x36b   : > { %v8391_v16 = vpop.permute.xlu1 %3236 }
 0x36c   : > { %9734 = vst [vmem:[#allocation83_spill] sm:$0xff] %v8391_v16  ;;  %v8393_v1 = vpop.permute.xlu0 %3234  ;;  %v3741_v16 = vstv %s5314_s29  ;;  %s8721_s29 = sld [smem:[#allocation8 + $0xd2]] }
 0x36d   : > { %9735 = vst [vmem:[#allocation84_spill] sm:$0xff] %v8393_v1  ;;  %3727 = vrot.lane.b32.xlu1 %v3721_v58, %s9623_s26  ;;  %v3743_v58 = vmul.f32 %v8126_v17, %v3741_v16 }
 0x36e   : > { %3712 = vrot.lane.b32.xlu0 %v3704_v10, %s9623_s26  ;;  %v3742_v10 = vmul.f32 %v8131_v25, %v3741_v16 }
 0x36f   : > { %v8399_v56 = vpop.permute.xlu1 %3260 }
 0x370   : > { %9736 = vst [vmem:[#allocation85_spill] sm:$0xff] %v8399_v56  ;;  %v8401_v47 = vpop.permute.xlu0 %3258  ;;  %v3760_v56 = vstv %s5315_s1  ;;  %s8725_s1 = sld [smem:[#allocation8 + $0x103]] }
 0x371   : > { %9737 = vst [vmem:[#allocation86_spill] sm:$0xff] %v8401_v47  ;;  %3731 = vrot.lane.b32.xlu1 %v3723_v35, %s9623_s26  ;;  %v3761_v35 = vmul.f32 %v8145_v62, %v3760_v56 }
 0x372   : > { %3729 = vrot.lane.b32.xlu0 %v3722_v18, %s9623_s26  ;;  %v3744_v18 = vmul.f32 %v8195_v63, %v3741_v16 }
 0x373   : > { %v8407_v1 = vpop.permute.xlu1 %3282 }
 0x374   : > { %9738 = vst [vmem:[#allocation87_spill] sm:$0xff] %v8407_v1  ;;  %v8409_v29 = vpop.permute.xlu0 %3262 }
 0x375   : > { %9739 = vst [vmem:[#allocation88_spill] sm:$0xff] %v8409_v29  ;;  %3750 = vrot.lane.b32.xlu1 %v3743_v58, %s9623_s26  ;;  %v3763_v58 = vmul.f32 %v8207_v41, %v3760_v56 }
 0x376   : > { %3748 = vrot.lane.b32.xlu0 %v3742_v10, %s9623_s26  ;;  %v3762_v10 = vmul.f32 %v8140_v7, %v3760_v56  ;;  %v3821_v56 = vstv %s5318_s12  ;;  %s8760_s12 = sld [smem:[#allocation8 + $0x11f]] }
 0x377   : > { %v8415_v27 = vpop.permute.xlu1 %3286  ;;  %v3823_v45 = vmul.f32 %v8126_v17, %v3821_v56  ;;  %v3824_v3 = vmul.f32 %v8195_v63, %v3821_v56  ;;  %v3822_v9 = vmul.f32 %v8131_v25, %v3821_v56 }
 0x378   : > { %9740 = vst [vmem:[#allocation89_spill] sm:$0xff] %v8415_v27  ;;  %v8417_v47 = vpop.permute.xlu0 %3284  ;;  %v3781_v27 = vstv %s5316_s2  ;;  %s8727_s2 = sld [smem:[#allocation8 + $0xee]] }
 0x379   : > { %9741 = vst [vmem:[#allocation90_spill] sm:$0xff] %v8417_v47  ;;  %3767 = vrot.lane.b32.xlu1 %v3761_v35, %s9623_s26  ;;  %v3800_v47 = vstv %s5317_s3  ;;  %v3829_v56 = vrot.slane %v3823_v45, 4  ;;  %v3831_v2 = vrot.slane %v3824_v3, 4  ;;  %v3828_v46 = vrot.slane %v3822_v9, 4  ;;  %s8746_s3 = sld [smem:[#allocation8 + $0x116]] }
 0x37a   : > { %3752 = vrot.lane.b32.xlu0 %v3744_v18, %s9623_s26  ;;  %v3783_v18 = vmul.f32 %v8126_v17, %v3781_v27 }
 0x37b   : > { %v8423_v29 = vpop.permute.xlu1 %3310  ;;  %v3832_v45 = vsel %vm612_vm14, %v3829_v56, %v3831_v2  ;;  %v3830_v3 = vsel %vm612_vm14, %v3828_v46, %v3829_v56 }
 0x37c   : > { %9742 = vst [vmem:[#allocation91_spill] sm:$0xff] %v8423_v29  ;;  %v8425_v1 = vpop.permute.xlu0 %3308  ;;  %v3782_v29 = vmul.f32 %v8131_v25, %v3781_v27 }
 0x37d   : > { %3771 = vrot.lane.b32.xlu1 %v3763_v58, %s9623_s26 }
 0x37e   : > { %3769 = vrot.lane.b32.xlu0 %v3762_v10, %s9623_s26  ;;  %v3801_v10 = vmul.f32 %v8145_v62, %v3800_v47 }
 0x37f   : > { %v8431_v16 = vpop.permute.xlu1 %3330 }
 0x380   : > { %9743 = vst [vmem:[#allocation92_spill] sm:$0xff] %v8431_v16  ;;  %v8433_v35 = vpop.permute.xlu0 %3328  ;;  %v3784_v16 = vmul.f32 %v8195_v63, %v3781_v27  ;;  %v3802_v27 = vmul.f32 %v8140_v7, %v3800_v47 }
 0x381   : > { %3790 = vrot.lane.b32.xlu1 %v3783_v18, %s9623_s26 }
 0x382   : > { %3788 = vrot.lane.b32.xlu0 %v3782_v29, %s9623_s26  ;;  %v3803_v29 = vmul.f32 %v8207_v41, %v3800_v47  ;;  %v3851_v47 = vrot.slane %v3844_v52, 4 }
 0x383   : > { %v8439_v61 = vpop.permute.xlu1 %3349 }
 0x384   : > { %9744 = vst [vmem:[#allocation93_spill] sm:$0xff] %v8439_v61  ;;  %v8441_v58 = vpop.permute.xlu0 %3347  ;;  %v3852_v13 = vsel %vm612_vm14, %v3849_v30, %v3851_v47 }
 0x385   : > { %9745 = vst [vmem:[#allocation94_spill] sm:$0xff] %v8441_v58  ;;  %3807 = vrot.lane.b32.xlu1 %v3801_v10, %s9623_s26  ;;  %v3842_v10 = vmul.f32 %v8145_v62, %v3841_v36  ;;  %v3864_v36 = vmul.f32 %v8131_v25, %v3863_v59  ;;  %v8665_v58 = vstv %s8601_s7  ;;  %s5352_s7 = sld [smem:[#allocation12 + $0x8]] }
 0x386   : > { %3792 = vrot.lane.b32.xlu0 %v3784_v16, %s9623_s26 }
 0x387   : > { %v8451_v18 = vpop.permute.xlu1 %3367  ;;  %v3848_v9 = vrot.slane %v3842_v10, 4  ;;  %v3870_v2 = vrot.slane %v3864_v36, 4 }
 0x388   : > { %9746 = vst [vmem:[#allocation95_spill] sm:$0xff] %v8451_v18  ;;  %v8453_v15 = vpop.permute.xlu0 %3351 }
 0x389   : > { %9747 = vst [vmem:[#allocation96_spill] sm:$0xff] %v8453_v15  ;;  %3811 = vrot.lane.b32.xlu1 %v3803_v29, %s9623_s26  ;;  %v3887_v29 = vstv %s5321_s16  ;;  %v3850_v46 = vsel %vm612_vm14, %v3848_v9, %v3849_v30  ;;  %v3913_v9 = vstv %s5322_s21  ;;  %s8831_s16 = sld [smem:[#allocation8 + $0x11d]]  ;;  %s8845_s21 = sld [smem:[#allocation8 + $0x124]] }
 0x38a   : > { %3809 = vrot.lane.b32.xlu0 %v3802_v27, %s9623_s26  ;;  %v3888_v59 = vmul.f32 %v8145_v62, %v3887_v29  ;;  %v3889_v56 = vmul.f32 %v8140_v7, %v3887_v29  ;;  %v3890_v47 = vmul.f32 %v8207_v41, %v3887_v29  ;;  %v3915_v29 = vmul.f32 %v8126_v17, %v3913_v9 }
 0x38b   : > { %v8461_v16 = vpop.permute.xlu1 %3371 }
 0x38c   : > { %9748 = vst [vmem:[#allocation97_spill] sm:$0xff] %v8461_v16  ;;  %v8463_v22 = vpop.permute.xlu0 %3369  ;;  %v3873_v16 = vrot.slane %v3866_v19, 4  ;;  %v3894_v30 = vrot.slane %v3888_v59, 4 }
 0x38d   : > { %9749 = vst [vmem:[#allocation98_spill] sm:$0xff] %v8463_v22  ;;  %3835 = vrot.lane.b32.xlu1 %v3832_v45, %s9623_s26  ;;  %v3871_v22 = vrot.slane %v3865_v38, 4 }
 0x38e   : > { %3833 = vrot.lane.b32.xlu0 %v3830_v3, %s9623_s26  ;;  %v3895_v3 = vrot.slane %v3889_v56, 4 }
 0x38f   : > { %v8472_v27 = vpop.permute.xlu1 %3395  ;;  %v3874_v19 = vsel %vm612_vm14, %v3871_v22, %v3873_v16  ;;  %v3872_v38 = vsel %vm612_vm14, %v3870_v2, %v3871_v22  ;;  %v3914_v22 = vmul.f32 %v8131_v25, %v3913_v9 }
 0x390   : > { %9750 = vst [vmem:[#allocation99_spill] sm:$0xff] %v8472_v27  ;;  %v8474_v52 = vpop.permute.xlu0 %3393  ;;  %v3937_v27 = vstv %s5323_s24  ;;  %s8854_s24 = sld [smem:[#allocation8 + $0xca]] }
 0x391   : > { %9751 = vst [vmem:[#allocation100_spill] sm:$0xff] %v8474_v52  ;;  %3855 = vrot.lane.b32.xlu1 %v3852_v13, %s9623_s26  ;;  %v8567_v52 = vstv %s5262_s10  ;;  %s9003_s10 = sld [smem:[#allocation8 + $0x110]] }
 0x392   : > { %3853 = vrot.lane.b32.xlu0 %v3850_v46, %s9623_s26  ;;  %v3897_v46 = vrot.slane %v3890_v47, 4  ;;  %v3938_v47 = vmul.f32 %v8145_v62, %v3937_v27 }
 0x393   : > { %v8482_v10 = vpop.permute.xlu1 %3417 }
 0x394   : > { %9752 = vst [vmem:[#allocation101_spill] sm:$0xff] %v8482_v10  ;;  %v8484_v45 = vpop.permute.xlu0 %3397  ;;  %v3916_v10 = vmul.f32 %v8195_v63, %v3913_v9  ;;  %v3898_v56 = vsel %vm612_vm14, %v3895_v3, %v3897_v46  ;;  %v3944_v9 = vrot.slane %v3938_v47, 4 }
 0x395   : > { %9753 = vst [vmem:[#allocation102_spill] sm:$0xff] %v8484_v45  ;;  %3877 = vrot.lane.b32.xlu1 %v3874_v19, %s9623_s26  ;;  %v3896_v45 = vsel %vm612_vm14, %v3894_v30, %v3895_v3  ;;  %v3921_v19 = vrot.slane %v3915_v29, 4  ;;  %v3920_v30 = vrot.slane %v3914_v22, 4  ;;  %v3940_v29 = vmul.f32 %v8207_v41, %v3937_v27 }
 0x396   : > { %3875 = vrot.lane.b32.xlu0 %v3872_v38, %s9623_s26  ;;  %v3923_v38 = vrot.slane %v3916_v10, 4  ;;  %v3963_v10 = vstv %s5324_s25  ;;  %s8874_s25 = sld [smem:[#allocation8 + $0xd8]] }
 0x397   : > { %v8491_v36 = vpop.permute.xlu1 %3421  ;;  %v3922_v3 = vsel %vm612_vm14, %v3920_v30, %v3921_v19  ;;  %v3947_v47 = vrot.slane %v3940_v29, 4 }
 0x398   : > { %9754 = vst [vmem:[#allocation103_spill] sm:$0xff] %v8491_v36  ;;  %v8493_v13 = vpop.permute.xlu0 %3419 }
 0x399   : > { %9755 = vst [vmem:[#allocation104_spill] sm:$0xff] %v8493_v13  ;;  %3899 = vrot.lane.b32.xlu1 %v3896_v45, %s9623_s26  ;;  %v3939_v13 = vmul.f32 %v8140_v7, %v3937_v27 }
 0x39a   : > { %3879 = vrot.lane.b32.xlu0 %v3873_v16, %s9623_s26 }
 0x39b   : > { %v8501_v2 = vpop.permute.xlu1 %3445 }
 0x39c   : > { %9756 = vst [vmem:[#allocation105_spill] sm:$0xff] %v8501_v2  ;;  %v8503_v59 = vpop.permute.xlu0 %3443  ;;  %v3924_v2 = vsel %vm612_vm14, %v3921_v19, %v3923_v38  ;;  %v3965_v19 = vmul.f32 %v8126_v17, %v3963_v10 }
 0x39d   : > { %9757 = vst [vmem:[#allocation106_spill] sm:$0xff] %v8503_v59  ;;  %3903 = vrot.lane.b32.xlu1 %v3897_v46, %s9623_s26  ;;  %v3945_v59 = vrot.slane %v3939_v13, 4 }
 0x39e   : > { %3901 = vrot.lane.b32.xlu0 %v3898_v56, %s9623_s26 }
 0x39f   : > { %v8510_v45 = vpop.permute.xlu1 %3467  ;;  %v3946_v56 = vsel %vm612_vm14, %v3944_v9, %v3945_v59  ;;  %v3969_v9 = vrot.slane %v3965_v19, 5 }
 0x3a0   : > { %9758 = vst [vmem:[#allocation107_spill] sm:$0xff] %v8510_v45  ;;  %v8512_v16 = vpop.permute.xlu0 %3447  ;;  %v4025_v45 = vstv %s5327_s13  ;;  %s8943_s13 = sld [smem:[#allocation8 + $0x102]] }
 0x3a1   : > { %9759 = vst [vmem:[#allocation108_spill] sm:$0xff] %v8512_v16  ;;  %3927 = vrot.lane.b32.xlu1 %v3924_v2, %s9623_s26  ;;  %v3964_v16 = vmul.f32 %v8131_v25, %v3963_v10  ;;  %v3948_v2 = vsel %vm612_vm14, %v3945_v59, %v3947_v47  ;;  %v4005_v59 = vstv %s5326_s6  ;;  %v4028_v15 = vmul.f32 %v8207_v41, %v4025_v45  ;;  %s8897_s6 = sld [smem:[#allocation8 + $0xd1]] }
 0x3a2   : > { %3925 = vrot.lane.b32.xlu0 %v3922_v3, %s9623_s26  ;;  %v3983_v3 = vstv %s5325_s30  ;;  %s8891_s30 = sld [smem:[#allocation8 + $0xfb]] }
 0x3a3   : > { %v8519_v46 = vpop.permute.xlu1 %3471  ;;  %v3968_v30 = vrot.slane %v3964_v16, 5  ;;  %v3984_v10 = vmul.f32 %v8145_v62, %v3983_v3  ;;  %v2559_v16 = vstv %s5260_s9  ;;  %s8899_s9 = sld [smem:[#allocation8 + $0xdf]] }
 0x3a4   : > { %9760 = vst [vmem:[#allocation109_spill] sm:$0xff] %v8519_v46  ;;  %v8521_v22 = vpop.permute.xlu0 %3469  ;;  %v4008_v46 = vmul.f32 %v8195_v63, %v4005_v59 }
 0x3a5   : > { %9761 = vst [vmem:[#allocation110_spill] sm:$0xff] %v8521_v22  ;;  %3949 = vrot.lane.b32.xlu1 %v3946_v56, %s9623_s26  ;;  %v3970_v56 = vsel %vm747_vm15, %v3968_v30, %v3969_v9 }
 0x3a6   : > { %3929 = vrot.lane.b32.xlu0 %v3923_v38, %s9623_s26  ;;  %v4015_v54 = vrot.slane %v4008_v46, 1  ;;  %v2591_v46 = vstv %s8550_s11  ;;  %s9281_s11 = sld [smem:[#allocation8 + $0x117]] }
 0x3a7   : > { %v8528_v27 = vpop.permute.xlu1 %3495  ;;  %v2592_v37 = vmul.f32 %v8642_v33, %v2591_v46 }
 0x3a8   : > { %9762 = vst [vmem:[#allocation111_spill] sm:$0xff] %v8528_v27  ;;  %v8530_v13 = vpop.permute.xlu0 %3493  ;;  %v3985_v27 = vmul.f32 %v8140_v7, %v3983_v3  ;;  %v3988_v3 = vrot.slane %v3984_v10, 5  ;;  %v2560_v10 = vmul.f32 %v8131_v25, %v2559_v16 }
 0x3a9   : > { %3953 = vrot.lane.b32.xlu1 %v3947_v47, %s9623_s26  ;;  %v2566_v47 = vstv %s5261_s8  ;;  %s8931_s8 = sld [smem:[#allocation8 + $0x109]] }
 0x3aa   : > { %3951 = vrot.lane.b32.xlu0 %v3948_v2, %s9623_s26  ;;  %s8548_s26 = sld [smem:[#allocation8 + $0xf5]]  ;;  %v3989_v22 = vrot.slane %v3985_v27, 5  ;;  %v2568_v36 = vmul.f32 %v8140_v7, %v2566_v47  ;;  %v2567_v27 = vmul.f32 %v8145_v62, %v2566_v47 }
 0x3ab   : > { %v8535_v29 = vpop.permute.xlu1 %3515 }
 0x3ac   : > { %9763 = vst [vmem:[#allocation112_spill] sm:$0xff] %v8535_v29  ;;  %v8537_v38 = vpop.permute.xlu0 %3513  ;;  %v4007_v29 = vmul.f32 %v8126_v17, %v4005_v59  ;;  %v3990_v61 = vsel %vm747_vm15, %v3988_v3, %v3989_v22 }
 0x3ad   : > { %9764 = vst [vmem:[#allocation113_spill] sm:$0xff] %v8537_v38  ;;  %3973 = vrot.lane.b32.xlu1 %v3970_v56, %s5674_s28  ;;  %v4006_v56 = vmul.f32 %v8131_v25, %v4005_v59  ;;  %v2594_v25 = vmul.f32 %v8207_v41, %v2591_v46 }
 0x3ae   : > { %3971 = vrot.lane.b32.xlu0 %v3968_v30, %s5674_s28  ;;  %v2561_v30 = vmul.f32 %v8126_v17, %v2559_v16  ;;  %v4013_v53 = vrot.slane %v4007_v29, 1  ;;  %v2515_v29 = vstv %s8544_s19 }
 0x3af   : > { %v8552_v19 = vpop.permute.xlu1 %3537  ;;  %v4012_v4 = vrot.slane %v4006_v56, 1  ;;  %v4049_v56 = vmul.f32 %v8126_v17, %v4047_v32  ;;  %v8632_v32 = vld [vmem:[#allocation4] sm:$0xff] }
 0x3b0   : > { %9765 = vst [vmem:[#allocation114_spill] sm:$0xff] %v8552_v19  ;;  %v8554_v2 = vpop.permute.xlu0 %3535  ;;  %v8578_v18 = vadd.f32 %v2568_v36, %v2561_v30  ;;  %v2578_v36 = vmul.f32 %v8195_v63, %v8567_v52  ;;  %v4016_v30 = vsel %vm2734_vm5, %v4013_v53, %v4015_v54  ;;  %v8627_v54 = vmul.f32 %v8140_v7, %v2591_v46 }
 0x3b1   : > { %9766 = vst [vmem:[#allocation115_spill] sm:$0xff] %v8554_v2  ;;  %3991 = vrot.lane.b32.xlu1 %v3988_v3, %s5674_s28  ;;  %v4027_v2 = vmul.f32 %v8140_v7, %v4025_v45  ;;  %v4014_v14 = vsel %vm2734_vm5, %v4012_v4, %v4013_v53  ;;  %9773 = vst [vmem:[#allocation122_spill] sm:$0xff] %v8632_v32  ;;  %v4054_v53 = vrot.slane %v4048_v40, 1 }
 0x3b2   : > { %3975 = vrot.lane.b32.xlu0 %v3969_v9, %s5674_s28  ;;  %v4026_v9 = vmul.f32 %v8145_v62, %v4025_v45  ;;  %9769 = vst [vmem:[#allocation118_spill] sm:$0xff] %v8578_v18  ;;  %v2520_v62 = vstv %s8548_s26  ;;  %v8594_v45 = vmul.f32 %v8126_v17, %v8567_v52  ;;  %v4071_v17 = vstv %s8563_s20  ;;  %s9250_s26 = sld [smem:[#allocation8 + $0xf4]]  ;;  %s9328_s20 = sld [smem:[#allocation8 + $0xed]] }
 0x3b3   : > { %v8569_v59 = vpop.permute.xlu1 %3559  ;;  %v2585_v4 = vrot.slane %v2578_v36, 4  ;;  %v4055_v36 = vrot.slane %v4049_v56, 1  ;;  %v4072_v51 = vmul.f32 %v8642_v33, %v4071_v17  ;;  %v8662_v18 = vstv %s8599_s27  ;;  %s5349_s27 = sld [smem:[#allocation8 + $0x11e]] }
 0x3b4   : > { %9767 = vst [vmem:[#allocation116_spill] sm:$0xff] %v8569_v59  ;;  %v8571_v19 = vpop.permute.xlu0 %3539  ;;  %v8581_v59 = vmul.f32 %v8195_v63, %v2559_v16  ;;  %v4032_v3 = vrot.slane %v4026_v9, 1  ;;  %v9776_v40 = vrot.slane %v8594_v45, 4 }
 0x3b5   : > { %9768 = vst [vmem:[#allocation117_spill] sm:$0xff] %v8571_v19  ;;  %v8584_v19 = vmul.f32 %v8207_v41, %v2566_v47  ;;  %3995 = vrot.lane.b32.xlu1 %v3989_v22, %s5674_s28  ;;  %v4033_v22 = vrot.slane %v4027_v2, 1  ;;  %v2522_v2 = vmul.f32 %v8140_v7, %v2520_v62  ;;  %v4057_v7 = vrot.slane %v8613_v28, 1 }
 0x3b6   : > { %3993 = vrot.lane.b32.xlu0 %v3990_v61, %s5674_s28  ;;  %v4035_v61 = vrot.slane %v4028_v15, 1  ;;  %v2576_v28 = vmul.f32 %v8632_v32, %v8567_v52  ;;  %v4074_v52 = vmul.f32 %v8207_v41, %v4071_v17 }
 0x3b7   : > { %v8603_v16 = vpop.permute.xlu1 %3563 }
 0x3b8   : > { %9770 = vst [vmem:[#allocation119_spill] sm:$0xff] %v8603_v16  ;;  %v8605_v47 = vpop.permute.xlu0 %3561  ;;  %v8616_v16 = vadd.f32 %v2567_v27, %v2560_v10  ;;  %v2516_v10 = vmul.f32 %v8632_v32, %v2515_v29  ;;  %v2582_v44 = vrot.slane %v2576_v28, 4 }
 0x3b9   : > { %9771 = vst [vmem:[#allocation120_spill] sm:$0xff] %v8605_v47  ;;  %v8618_v47 = vld [vmem:[#allocation4 + $0x8] sm:$0xff]  ;;  %4019 = vrot.lane.b32.xlu1 %v4016_v30, %s5674_s28  ;;  %v4034_v30 = vsel %vm2734_vm5, %v4032_v3, %v4033_v22  ;;  %v2586_v3 = vsel %vm612_vm14, %v9776_v40, %v2585_v4  ;;  %v4056_v4 = vsel %vm2734_vm5, %v4054_v53, %v4055_v36  ;;  %v4078_v40 = vrot.slane %v4072_v51, 1 }
 0x3ba   : > { %9772 = vst [vmem:[#allocation121_spill] sm:$0xff] %v8616_v16  ;;  %v2517_v15 = vmul.f32 %v8618_v47, %v2515_v29  ;;  %4017 = vrot.lane.b32.xlu0 %v4014_v14, %s5674_s28  ;;  %v4036_v14 = vsel %vm2734_vm5, %v4033_v22, %v4035_v61  ;;  %v8645_v29 = vld [vmem:[#allocation4 + $0x20] sm:$0xff]  ;;  %v2521_v61 = vmul.f32 %v8642_v33, %v2520_v62  ;;  %v2627_v53 = vstv %s8630_s23 }
 0x3bb   : > { %v8635_v27 = vpop.permute.xlu1 %3587 }
 0x3bc   : > { %9774 = vst [vmem:[#allocation123_spill] sm:$0xff] %v8635_v27  ;;  %v8637_v9 = vpop.permute.xlu0 %3585  ;;  %v8648_v27 = vmul.f32 %v8645_v29, %v4071_v17  ;;  %v2524_v22 = vadd.f32 %v2522_v2, %v2517_v15  ;;  %v2609_v15 = vstv %s8587_s22  ;;  %v2523_v48 = vadd.f32 %v2521_v61, %v2516_v10  ;;  %s9348_s22 = sld [smem:[#allocation8 + $0x125]] }
 0x3bd   : > { %9775 = vst [vmem:[#allocation124_spill] sm:$0xff] %v8637_v9  ;;  %4039 = vrot.lane.b32.xlu1 %v4036_v14, %s5674_s28  ;;  %v2601_v9 = vrot.slane %v2594_v25, 4  ;;  %v4097_v14 = vstv %s8608_s4  ;;  %v2529_v17 = vmul.f32 %v8618_v47, %v8662_v18  ;;  %v8686_v51 = vmul.f32 %v8195_v63, %v2609_v15  ;;  %s5353_s4 = sld [smem:[#allocation12 + $0x9]] }
 0x3be   : > { %4037 = vrot.lane.b32.xlu0 %v4034_v30, %s5674_s28  ;;  %v4058_v30 = vsel %vm2734_vm5, %v4055_v36, %v4057_v7  ;;  %v4079_v25 = vrot.slane %v8648_v27, 1  ;;  %v2590_v56 = vadd.f32 %v2586_v3, %v2524_v22  ;;  %v2536_v10 = vmul.f32 %v8645_v29, %v8665_v58 }
 0x3bf   : > { %v8668_v62 = vpop.permute.xlu1 %3609  ;;  %v4081_v36 = vrot.slane %v4074_v52, 1  ;;  %v4099_v22 = vmul.f32 %v8618_v47, %v4097_v14  ;;  %v8697_v61 = vmul.f32 %v8195_v63, %v4097_v14  ;;  %v4098_v3 = vmul.f32 %v8632_v32, %v4097_v14 }
 0x3c0   : > { %9777 = vst [vmem:[#allocation125_spill] sm:$0xff] %v8668_v62  ;;  %v8670_v2 = vpop.permute.xlu0 %3589  ;;  %v4080_v28 = vsel %vm2734_vm5, %v4078_v40, %v4079_v25  ;;  %v8711_v52 = vmul.f32 %v8207_v41, %v2627_v53  ;;  %v9782_v63 = vrot.slane %v8594_v45, 4  ;;  %v2528_v41 = vmul.f32 %v8632_v32, %v8662_v18 }
 0x3c1   : > { %9778 = vst [vmem:[#allocation126_spill] sm:$0xff] %v8670_v2  ;;  %4061 = vrot.lane.b32.xlu1 %v4058_v30, %s5674_s28  ;;  %v8683_v2 = vmul.f32 %v8618_v47, %v2609_v15  ;;  %v4121_v30 = vstv %s8650_s5  ;;  %s9933_s5 = sld [smem:[#allocation30_spill]] }
 0x3c2   : > { %4059 = vrot.lane.b32.xlu0 %v4056_v4, %s5674_s28  ;;  %v9781_v4 = vrot.slane %v8627_v54, 4  ;;  %v2584_v14 = vsel %vm612_vm14, %v2582_v44, %v9782_v63  ;;  %v4104_v63 = vrot.slane %v4098_v3, 1 }
 0x3c3   : > { %v8691_v27 = vpop.permute.xlu1 %3613  ;;  %v2617_v40 = vrot.slane %v8683_v2, 4  ;;  %v4107_v2 = vrot.slane %v8697_v61, 1  ;;  %v2589_v3 = vadd.f32 %v2584_v14, %v2523_v48  ;;  %v8769_v48 = vld [vmem:[#allocation4 + $0x28] sm:$0x3f] }
 0x3c4   : > { %9779 = vst [vmem:[#allocation127_spill] sm:$0xff] %v8691_v27  ;;  %v8693_v46 = vpop.permute.xlu0 %3611  ;;  %v2602_v62 = vsel %vm612_vm14, %v9781_v4, %v2601_v9  ;;  %v2598_v27 = vrot.slane %v2592_v37, 4  ;;  %v2610_v37 = vmul.f32 %v8632_v32, %v2609_v15  ;;  %v5676_v9 = vmov 0  }
 0x3c5   : > { %9780 = vst [vmem:[#allocation128_spill] sm:$0xff] %v8693_v46  ;;  %v8708_v46 = vmul.f32 %v8645_v29, %v2627_v53  ;;  %4083 = vrot.lane.b32.xlu1 %v4080_v28, %s5674_s28  ;;  %5473 = vset.pattern.permute.xlu0 %v5676_v9  ;;  %v4122_v15 = vmul.f32 %v8642_v33, %v4121_v30 }
 0x3c6   : > { %4063 = vrot.lane.b32.xlu0 %v4057_v7, %s5674_s28  ;;  %5474 = vset.pattern.permute.xlu1 %v5676_v9  ;;  %v4105_v7 = vrot.slane %v4099_v22, 1  ;;  %v2539_v28 = vadd.f32 %v2536_v10, %v2529_v17  ;;  %v4082_v4 = vsel %vm2734_vm5, %v4079_v25, %v4081_v36  ;;  %v8737_v9 = vmul.f32 %v8645_v29, %v4121_v30 }
 0x3c7   : > { %v8729_v45 = vpop.permute.xlu1 %3637  ;;  %v2635_v43 = vrot.slane %v8708_v46, 4  ;;  %v2628_v22 = vmul.f32 %v8642_v33, %v2627_v53  ;;  %v8750_v25 = vadd.f32 %v8584_v19, %v8581_v59  ;;  %v8752_v17 = vadd.f32 %v2602_v62, %v2590_v56 }
 0x3c8   : > { %9783 = vst [vmem:[#allocation129_spill] sm:$0xff] %v8729_v45  ;;  %v8731_v44 = vpop.permute.xlu0 %3635  ;;  %v2535_v45 = vmul.f32 %v8642_v33, %v8665_v58  ;;  %v9787_v10 = vrot.slane %v8686_v51, 4  ;;  %v2616_v61 = vrot.slane %v2610_v37, 4  ;;  %v9788_v53 = vrot.slane %v8627_v54, 4 }
 0x3c9   : > { %9784 = vst [vmem:[#allocation130_spill] sm:$0xff] %v8731_v44  ;;  %4087 = vrot.lane.b32.xlu1 %v4081_v36, %s5674_s28  ;;  %9785 = vst [vmem:[#allocation131_spill] sm:$0xff] %v8750_v25  ;;  %v4108_v19 = vsel %vm2734_vm5, %v4105_v7, %v4107_v2  ;;  %v4128_v59 = vrot.slane %v4122_v15, 1  ;;  %v4106_v56 = vsel %vm2734_vm5, %v4104_v63, %v4105_v7  ;;  %v4129_v62 = vrot.slane %v8737_v9, 1  ;;  %v8779_v15 = vld [vmem:[#allocation4 + $0x10] sm:$0x3f] }
 0x3ca   : > { %4085 = vrot.lane.b32.xlu0 %v4082_v4, %s5674_s28  ;;  %9786 = vst [vmem:[#allocation132_spill] sm:$0xff] %v8752_v17  ;;  %v2620_v46 = vsel %vm612_vm14, %v2617_v40, %v9787_v10  ;;  %v2600_v36 = vsel %vm612_vm14, %v2598_v27, %v9788_v53  ;;  %v4124_v54 = vmul.f32 %v8769_v48, %v4121_v30  ;;  %v4147_v27 = vstv %s8702_s0  ;;  %s9935_s0 = sld [smem:[#allocation29_spill]] }
 0x3cb   : > { %v8762_v4 = vpop.permute.xlu1 %3659  ;;  %v2625_v14 = vadd.f32 %v2620_v46, %v2539_v28  ;;  %v9791_v37 = vrot.slane %v8711_v52, 4  ;;  %v2538_v53 = vadd.f32 %v2535_v45, %v2528_v41  ;;  %v2618_v7 = vsel %vm612_vm14, %v2616_v61, %v2617_v40 }
 0x3cc   : > { %9789 = vst [vmem:[#allocation133_spill] sm:$0xff] %v8762_v4  ;;  %v8764_v16 = vpop.permute.xlu0 %3639  ;;  %v2530_v63 = vmul.f32 %v8779_v15, %v8662_v18  ;;  %v2537_v30 = vmul.f32 %v8769_v48, %v8665_v58  ;;  %v2543_v28 = vstv %s8721_s29  ;;  %v2550_v9 = vstv %s8725_s1  ;;  %s9936_s29 = sld [smem:[#allocation24_spill]] }
 0x3cd   : > { %9790 = vst [vmem:[#allocation134_spill] sm:$0xff] %v8764_v16  ;;  %v2638_v10 = vsel %vm612_vm14, %v2635_v43, %v9791_v37  ;;  %v2634_v16 = vrot.slane %v2628_v22, 4  ;;  %4111 = vrot.lane.b32.xlu1 %v4108_v19, %s5674_s28  ;;  %v2647_v46 = vstv %s8727_s2  ;;  %v4149_v22 = vmul.f32 %v8618_v47, %v4147_v27 }
 0x3ce   : > { %4109 = vrot.lane.b32.xlu0 %v4106_v56, %s5674_s28  ;;  %v8794_v40 = vmul.f32 %v8779_v15, %v4147_v27  ;;  %v8798_v18 = vadd.f32 %v2600_v36, %v2589_v3  ;;  %v4130_v58 = vsel %vm2734_vm5, %v4128_v59, %v4129_v62  ;;  %v4131_v61 = vrot.slane %v4124_v54, 1 }
 0x3cf   : > { %v8788_v41 = vpop.permute.xlu1 %3663  ;;  %v4148_v19 = vmul.f32 %v8632_v32, %v4147_v27  ;;  %v8802_v56 = vadd.f32 %v2638_v10, %v2625_v14  ;;  %v2624_v37 = vadd.f32 %v2618_v7, %v2538_v53  ;;  %v2545_v4 = vmul.f32 %v8618_v47, %v2543_v28 }
 0x3d0   : > { %9792 = vst [vmem:[#allocation135_spill] sm:$0xff] %v8788_v41  ;;  %v8790_v45 = vpop.permute.xlu0 %3661  ;;  %v4171_v41 = vstv %s8746_s3  ;;  %v2552_v3 = vmul.f32 %v8645_v29, %v2550_v9  ;;  %v2649_v36 = vmul.f32 %v8618_v47, %v2647_v46  ;;  %v8812_v59 = vmul.f32 %v8779_v15, %v2647_v46  ;;  %s9937_s1 = sshll.u32 %s9935_s0, 6  ;;  %s9938_s3 = sld [smem:[#allocation27_spill]] }
 0x3d1   : > { %9793 = vst [vmem:[#allocation136_spill] sm:$0xff] %v8790_v45  ;;  %v2636_v45 = vsel %vm612_vm14, %v2634_v16, %v2635_v43  ;;  %4133 = vrot.lane.b32.xlu1 %v4130_v58, %s5674_s28  ;;  %v2540_v54 = vadd.f32 %v2537_v30, %v2530_v63  ;;  %v2665_v27 = vstv %s8760_s12  ;;  %v4155_v43 = vrot.slane %v4149_v22, 1  ;;  %s215_s2 = scalar_lea.vmem [#allocation15], %s9937_s1 }
 0x3d2   : > { %4113 = vrot.lane.b32.xlu0 %v4107_v2, %s5674_s28  ;;  %v4157_v16 = vrot.slane %v8794_v40, 1  ;;  %v4132_v2 = vsel %vm2734_vm5, %v4129_v62, %v4131_v61  ;;  %v4154_v53 = vrot.slane %v4148_v19, 1  ;;  %v4172_v7 = vmul.f32 %v8642_v33, %v4171_v41  ;;  %s5375_s12 = sshll.u32 %s9936_s29, 10 }
 0x3d3   : > { %v8815_v14 = vpop.permute.xlu1 %3680  ;;  %v4173_v58 = vmul.f32 %v8645_v29, %v4171_v41  ;;  %v8825_v44 = vadd.f32 %v2636_v45, %v2624_v37  ;;  %v2544_v63 = vmul.f32 %v8632_v32, %v2543_v28  ;;  %v2551_v30 = vmul.f32 %v8642_v33, %v2550_v9 }
 0x3d4   : > { %9794 = vst [vmem:[#allocation137_spill] sm:$0xff] %v8815_v14  ;;  %v8817_v10 = vpop.permute.xlu0 %3678  ;;  %v2555_v22 = vadd.f32 %v2552_v3, %v2545_v4  ;;  %v2655_v62 = vrot.slane %v2649_v36, 4  ;;  %v2657_v40 = vrot.slane %v8812_v59, 4  ;;  %v2648_v19 = vmul.f32 %v8632_v32, %v2647_v46 }
 0x3d5   : > { %9795 = vst [vmem:[#allocation138_spill] sm:$0xff] %v8817_v10  ;;  %4137 = vrot.lane.b32.xlu1 %v4131_v61, %s5674_s28  ;;  %v2667_v14 = vmul.f32 %v8645_v29, %v2665_v27  ;;  %v8837_v45 = vmul.f32 %v8769_v48, %v2665_v27  ;;  %v4158_v61 = vsel %vm2734_vm5, %v4155_v43, %v4157_v16  ;;  %v4178_v3 = vrot.slane %v4172_v7, 1 }
 0x3d6   : > { %4135 = vrot.lane.b32.xlu0 %v4132_v2, %s5674_s28  ;;  %v4197_v2 = vstv %s8796_s14  ;;  %v4156_v4 = vsel %vm2734_vm5, %v4154_v53, %v4155_v43  ;;  %v4179_v36 = vrot.slane %v4173_v58, 1  ;;  %v4174_v46 = vmul.f32 %v8769_v48, %v4171_v41  ;;  %s4939_s14 = sshll.u32 %s215_s2, 4  ;;  %p9940_p2 = scmp.ne.s32.totalorder %s9938_s3, 0  ;;  %s9482_s14 = int_to_ptr.vmem [resolvable:$true] %s4939_s14 }
 0x3d7   : > { %v8839_v37 = vpop.permute.xlu1 %3693  ;;  %v2666_v59 = vmul.f32 %v8642_v33, %v2665_v27  ;;  %v2546_v25 = vmul.f32 %v8779_v15, %v2543_v28  ;;  %v2654_v43 = vrot.slane %v2648_v19, 4  ;;  %v4199_v53 = vmul.f32 %v8618_v47, %v4197_v2 }
 0x3d8   : > { %9796 = vst [vmem:[#allocation139_spill] sm:$0xff] %v8839_v37  ;;  %v8841_v17 = vpop.permute.xlu0 %3691  ;;  %v2553_v37 = vmul.f32 %v8769_v48, %v2550_v9  ;;  %v4200_v41 = vmul.f32 %v8779_v15, %v4197_v2  ;;  %v2673_v7 = vrot.slane %v2667_v14, 4  ;;  %v4198_v58 = vmul.f32 %v8632_v32, %v4197_v2 }
 0x3d9   : > { %9797 = vst [vmem:[#allocation140_spill] sm:$0xff] %v8841_v17  ;;  %4161 = vrot.lane.b32.xlu1 %v4158_v61, %s5674_s28  ;;  %v2658_v17 = vsel %vm612_vm14, %v2655_v62, %v2657_v40  ;;  %v4239_v61 = vstv %s8820_s15  ;;  %v2554_v38 = vadd.f32 %v2551_v30, %v2544_v63  ;;  %v4180_v19 = vsel %vm2734_vm5, %v4178_v3, %v4179_v36 }
 0x3da   : > { %4159 = vrot.lane.b32.xlu0 %v4156_v4, %s5674_s28  ;;  %v9800_v4 = vrot.slane %v8686_v51, 4  ;;  %v4181_v5 = vrot.slane %v4174_v46, 1  ;;  %v2663_v60 = vadd.f32 %v2658_v17, %v2555_v22  ;;  %v2672_v55 = vrot.slane %v2666_v59, 4 }
 0x3db   : > { %v8860_v28 = vpop.permute.xlu1 %3710  ;;  %v2556_v14 = vadd.f32 %v2553_v37, %v2546_v25  ;;  %v4217_v27 = vstv %s8831_s16  ;;  %v4205_v2 = vrot.slane %v4199_v53, 5  ;;  %v4241_v51 = vmul.f32 %v8618_v47, %v4239_v61 }
 0x3dc   : > { %9798 = vst [vmem:[#allocation141_spill] sm:$0xff] %v8860_v28  ;;  %v8862_v9 = vpop.permute.xlu0 %3708  ;;  %v2626_v10 = vadd.f32 %v9800_v4, %v2540_v54  ;;  %v2656_v28 = vsel %vm612_vm14, %v2654_v43, %v2655_v62  ;;  %v9801_v54 = vrot.slane %v8837_v45, 4  ;;  %v4204_v30 = vrot.slane %v4198_v58, 5 }
 0x3dd   : > { %9799 = vst [vmem:[#allocation142_spill] sm:$0xff] %v8862_v9  ;;  %4183 = vrot.lane.b32.xlu1 %v4180_v19, %s5674_s28  ;;  %v4207_v9 = vrot.slane %v4200_v41, 5  ;;  %v4263_v22 = vstv %s8845_s21  ;;  %v4182_v62 = vsel %vm2734_vm5, %v4179_v36, %v4181_v5  ;;  %v4240_v37 = vmul.f32 %v8632_v32, %v4239_v61  ;;  %s9939_s21 = sld [smem:[#allocation152_spill]] }
 0x3de   : > { %4163 = vrot.lane.b32.xlu0 %v4157_v16, %s5674_s28  ;;  %v2676_v17 = vsel %vm612_vm14, %v2673_v7, %v9801_v54  ;;  %v8884_v16 = vmul.f32 %v8779_v15, %v4239_v61  ;;  %v4218_v3 = vmul.f32 %v8642_v33, %v4217_v27  ;;  %v4219_v46 = vmul.f32 %v8645_v29, %v4217_v27 }
 0x3df   : > { %v8879_v63 = vpop.permute.xlu1 %3727  ;;  %v2662_v59 = vadd.f32 %v2656_v28, %v2554_v38  ;;  %v2674_v43 = vsel %vm612_vm14, %v2672_v55, %v2673_v7  ;;  %v2664_v53 = vadd.f32 %v2657_v40, %v2556_v14  ;;  %v4289_v41 = vstv %s8854_s24 }
 0x3e0   : > { %v8881_v25 = vpop.permute.xlu0 %3712  ;;  %v4208_v36 = vsel %vm747_vm15, %v4205_v2, %v4207_v9  ;;  %v4247_v58 = vrot.slane %v4241_v51, 5  ;;  %v4264_v61 = vmul.f32 %v8642_v33, %v4263_v22  ;;  %v4265_v4 = vmul.f32 %v8645_v29, %v4263_v22 }
 0x3e1   : > { %4187 = vrot.lane.b32.xlu1 %v4181_v5, %s5674_s28  ;;  %v4206_v5 = vsel %vm747_vm15, %v4204_v30, %v4205_v2  ;;  %v4249_v40 = vrot.slane %v8884_v16, 5  ;;  %v4220_v7 = vmul.f32 %v8769_v48, %v4217_v27  ;;  %v8912_v28 = vmul.f32 %v8769_v48, %v4263_v22 }
 0x3e2   : > { %4185 = vrot.lane.b32.xlu0 %v4182_v62, %s5674_s28  ;;  %v4246_v9 = vrot.slane %v4240_v37, 5  ;;  %v4224_v19 = vrot.slane %v4218_v3, 5  ;;  %v4225_v14 = vrot.slane %v4219_v46, 5  ;;  %v8915_v51 = vmul.f32 %v8632_v32, %v4289_v41 }
 0x3e3   : > { %v8904_v38 = vpop.permute.xlu1 %3731  ;;  %v9803_v54 = vrot.slane %v8711_v52, 4  ;;  %v8926_v27 = vmul.f32 %v8618_v47, %v4289_v41  ;;  %v8928_v2 = vadd.f32 %v2674_v43, %v2662_v59  ;;  %v4270_v30 = vrot.slane %v4264_v61, 5  ;;  %s9480_s24 = scalar_lea.hbm %s9939_s21, %s5375_s12 }
 0x3e4   : > { %v8906_v55 = vpop.permute.xlu0 %3729  ;;  %v4271_v16 = vrot.slane %v4265_v4, 5  ;;  %v4381_v22 = vstv %s8874_s25  ;;  %v9804_v52 = vrot.slane %v8837_v45, 4  ;;  %v4250_v37 = vsel %vm747_vm15, %v4247_v58, %v4249_v40  ;;  %s4926_s25 = scalar_lea.sflag [#allocation10], %s9935_s0 }
 0x3e5   : > { %9802 = vst [vmem:[#allocation143_spill] sm:$0xff] %v8906_v55  ;;  %v8919_v62 = vadd.f32 %v9803_v54, %v2626_v10  ;;  %v8921_v55 = vadd.f32 %v2676_v17, %v2663_v60  ;;  %4211 = vrot.lane.b32.xlu1 %v4208_v36, %s5674_s28  ;;  %v4227_v3 = vrot.slane %v4220_v7, 5  ;;  %v9567_v46 = vrot.slane %v8912_v28, 5 }
 0x3e6   : > { %4209 = vrot.lane.b32.xlu0 %v4206_v5, %s5674_s28  ;;  %v8935_v60 = vadd.f32 %v9804_v52, %v2664_v53  ;;  %v4248_v59 = vsel %vm747_vm15, %v4246_v9, %v4247_v58  ;;  %v4226_v43 = vsel %vm747_vm15, %v4224_v19, %v4225_v14  ;;  %v9570_v45 = vrot.slane %v8915_v51, 6 }
 0x3e7   : > { %v8937_v10 = vpop.permute.xlu1 %3750  ;;  %v4309_v53 = vstv %s8891_s30  ;;  %v9569_v41 = vrot.slane %v8926_v27, 6  ;;  %v4382_v36 = vmul.f32 %v8632_v32, %v4381_v22  ;;  %v4331_v61 = vstv %s8897_s6  ;;  %s5587_s30 = scalar_lea.vmem %s9482_s14, 1024  ;;  %s5680_s6 = smov [#allocation15]  }
 0x3e8   : > { %9805 = vst [vmem:[#allocation144_spill] sm:$0xff] %v8937_v10  ;;  %v8939_v17 = vpop.permute.xlu0 %3748  ;;  %v4423_v4 = vstv %s8899_s9  ;;  %v2746_v5 = vadd.f32 %v8104_v6, %v8798_v18  ;;  %v4272_v58 = vsel %vm747_vm15, %v4270_v30, %v4271_v16  ;;  %v4383_v7 = vmul.f32 %v8618_v47, %v4381_v22  ;;  %p5588_p5 = scmp.ne.s32.totalorder %s9482_s14, %s5587_s30  ;;  %s5591_s9 = sshll.u32 %s5680_s6, 4  ;;  %s5592_s9 = int_to_ptr.vmem [resolvable:$false] %s5591_s9 }
 0x3e9   : > { %4253 = vrot.lane.b32.xlu1 %v4250_v37, %s5674_s28  ;;  %v4384_v9 = vmul.f32 %v8779_v15, %v4381_v22  ;;  %v4228_v52 = vsel %vm747_vm15, %v4225_v14, %v4227_v3  ;;  %v4274_v37 = vsel %vm747_vm15, %v4271_v16, %v9567_v46  ;;  %v8972_v6 = vmul.f32 %v8645_v29, %v4309_v53  ;;  %p5594_p4 = scmp.lt.s32.totalorder %s9482_s14, %s5592_s9 }
 0x3ea   : > { %4251 = vrot.lane.b32.xlu0 %v4248_v59, %s5674_s28  ;;  %v8969_v59 = vmul.f32 %v8642_v33, %v4309_v53  ;;  %v2766_v18 = vadd.f32 %v8113_v21, %v2746_v5  ;;  %v8976_v30 = vmul.f32 %v8632_v32, %v4331_v61  ;;  %v4333_v22 = vmul.f32 %v8618_v47, %v4331_v61  ;;  %p5589_p8 = pnand %p5588_p5, %p9940_p2 }
 0x3eb   : > { %v8960_v19 = vpop.permute.xlu1 %3767  ;;  %v4424_v14 = vmul.f32 %v8632_v32, %v4423_v4  ;;  %v4296_v16 = vsel %vm917_vm2, %v9570_v45, %v9569_v41  ;;  %v4388_v3 = vrot.slane %v4382_v36, 2  ;;  %v8988_v21 = vmul.f32 %v8618_v47, %v4423_v4 }
 0x3ec   : > { %9806 = vst [vmem:[#allocation145_spill] sm:$0xff] %v8960_v19  ;;  %v8962_v54 = vpop.permute.xlu0 %3752  ;;  %v4334_v53 = vmul.f32 %v8779_v15, %v4331_v61  ;;  %v2938_v5 = vadd.f32 %v8229_v39, %v2766_v18  ;;  %v4389_v46 = vrot.slane %v4383_v7, 2  ;;  %v4391_v32 = vrot.slane %v4384_v9, 2  ;;  %p5590_p10 = pneg %p5589_p8 }
 0x3ed   : > { %9807 = vst [vmem:[#allocation146_spill] sm:$0xff] %v8962_v54  ;;  %4229 = vrot.lane.b32.xlu1 %v4226_v43, %s5674_s28  ;;  %v4401_v54 = vstv %s8931_s8  ;;  %v9572_v19 = vrot.slane %v8972_v6, 6  ;;  %v9000_v36 = vmul.f32 %v8779_v15, %v4423_v4  ;;  %v4355_v41 = vstv %s8943_s13  ;;  %s5593_s8 = scalar_lea.vmem %s5592_s9, 2048 }
 0x3ee   : > { %4255 = vrot.lane.b32.xlu0 %v4249_v40, %s5674_s28  ;;  %v2958_v61 = vadd.f32 %v8238_v12, %v2938_v5  ;;  %v9571_v39 = vrot.slane %v8976_v30, 6  ;;  %v4339_v7 = vrot.slane %v4333_v22, 6  ;;  %v4430_v9 = vrot.slane %v4424_v14, 2  ;;  %p5595_p12 = scmp.lt.s32.totalorder %s5593_s8, %s5587_s30 }
 0x3ef   : > { %v8993_v43 = vpop.permute.xlu1 %3771  ;;  %v4431_v18 = vrot.slane %v8988_v21, 2  ;;  %v4341_v45 = vrot.slane %v4334_v53, 6  ;;  %v4403_v10 = vmul.f32 %v8645_v29, %v4401_v54  ;;  %v4404_v4 = vmul.f32 %v8769_v48, %v4401_v54 }
 0x3f0   : > { %v8995_v40 = vpop.permute.xlu0 %3769  ;;  %v2791_v12 = vadd.f32 %v8124_v42, %v8825_v44  ;;  %v3122_v5 = vadd.f32 %v8337_v20, %v2958_v61  ;;  %v4390_v22 = vsel %vm890_vm1, %v4388_v3, %v4389_v46  ;;  %v9808_v21 = vrot.slane %v8969_v59, 6  ;;  %p5596_p0 = por %p5595_p12, %p5594_p4 }
 0x3f1   : > { %4275 = vrot.lane.b32.xlu1 %v4272_v58, %s5674_s28  ;;  %v9019_v58 = vsel %vm890_vm1, %v4389_v46, %v4391_v32  ;;  %v4402_v42 = vmul.f32 %v8642_v33, %v4401_v54  ;;  %v9034_v20 = vmul.f32 %v8642_v33, %v4355_v41  ;;  %v9037_v44 = vmul.f32 %v8645_v29, %v4355_v41 }
 0x3f2   : > { %4231 = vrot.lane.b32.xlu0 %v4228_v52, %s5674_s28  ;;  %v9030_v53 = vsel %vm917_vm2, %v9808_v21, %v9572_v19  ;;  %v2815_v32 = vadd.f32 %v8136_v49, %v2791_v12  ;;  %v3142_v46 = vadd.f32 %v8346_v26, %v3122_v5  ;;  %v9044_v3 = vsel %vm917_vm2, %v9571_v39, %v4339_v7  ;;  %p5597_p7 = pnand %p5596_p0, %p5590_p10 }
 0x3f3   : > { %v9021_v52 = vpop.permute.xlu1 %3790  ;;  %v9575_v61 = vrot.slane %v9000_v36, 2  ;;  %v9809_v54 = vrot.slane %v8912_v28, 5  ;;  %v9052_v21 = vsel %vm890_vm1, %v4430_v9, %v4431_v18  ;;  %v9055_v49 = vsel %vm917_vm2, %v4339_v7, %v4341_v45 }
 0x3f4   : > { %v9023_v14 = vpop.permute.xlu0 %3788  ;;  %v4409_v26 = vrot.slane %v4403_v10, 2  ;;  %v4411_v12 = vrot.slane %v4404_v4, 2  ;;  %v9057_v5 = vpop.f32.mrb[0].mxu0  ;;  %v2792_v39 = vadd.f32 %v8122_v57, %v8802_v56  ;;  %v2793_v28 = vadd.f32 %v8138_v0, %v8919_v62 }
 0x3f5   : > { %4279 = vrot.lane.b32.xlu1 %v9809_v54, %s5674_s28  ;;  %9810 = vst [vmem:[#allocation147_spill] sm:$0xff] %v9057_v5  ;;  %v2983_v54 = vadd.f32 %v8248_v11, %v2815_v32  ;;  %v9065_v19 = vpop.f32.mrb[1].mxu0  ;;  %v4408_v10 = vrot.slane %v4402_v42, 2  ;;  %v9573_v7 = vrot.slane %v9034_v20, 6  ;;  %v9574_v4 = vrot.slane %v9037_v44, 6 }
 0x3f6   : > { %4277 = vrot.lane.b32.xlu0 %v4274_v37, %s5674_s28  ;;  %v3314_v37 = vadd.f32 %v8425_v1, %v3142_v46  ;;  %9811 = vst [vmem:[#allocation148_spill] sm:$0xff] %v9065_v19  ;;  %v4447_v57 = vstv %s9003_s10  ;;  %v2817_v56 = vadd.f32 %v8153_v50, %v2793_v28  ;;  %v2816_v0 = vadd.f32 %v8155_v24, %v2792_v39  ;;  %s9198_s28 = sld [smem:[#allocation12 + $0xb]] }
 0x3f7   : > { %v9067_v9 = vpop.permute.xlu1 %3807  ;;  %v3007_v11 = vadd.f32 %v8257_v31, %v2983_v54  ;;  %v9812_v62 = vrot.slane %v8915_v51, 6  ;;  %v9085_v42 = vsel %vm890_vm1, %v4431_v18, %v9575_v61  ;;  %v9088_v32 = vsel %vm890_vm1, %v4409_v26, %v4411_v12  ;;  %v9814_v12 = vld [vmem:[#allocation59_spill] sm:$0xff]  ;;  %v9844_v61 = vld [vmem:[#allocation62_spill] sm:$0xff] }
 0x3f8   : > { %v9069_v45 = vpop.permute.xlu0 %3792  ;;  %v3334_v1 = vadd.f32 %v8433_v35, %v3314_v37  ;;  %v9091_v50 = vmul.f32 %v8769_v48, %v4355_v41  ;;  %v9094_v24 = vstv %s9012_s17  ;;  %v2984_v31 = vadd.f32 %v8246_v34, %v2816_v0  ;;  %v9815_v54 = vld [vmem:[#allocation75_spill] sm:$0xff]  ;;  %v9816_v37 = vld [vmem:[#allocation113_spill] sm:$0xff]  ;;  %v9818_v0 = vld [vmem:[#allocation38_spill] sm:$0xff] }
 0x3f9   : > { %4299 = vrot.lane.b32.xlu1 %v4296_v16, %s5675_s18  ;;  %v2985_v35 = vadd.f32 %v8259_v23, %v2817_v56  ;;  %v3167_v51 = vadd.f32 %v8355_v8, %v3007_v11  ;;  %v9105_v46 = vsel %vm890_vm1, %v4408_v10, %v4409_v26  ;;  %v9112_v41 = vsel %vm917_vm2, %v9573_v7, %v9574_v4  ;;  %v9813_v8 = vld [vmem:[#allocation58_spill] sm:$0xff]  ;;  %v9817_v56 = vld [vmem:[#allocation121_spill] sm:$0xff] }
 0x3fa   : > { %4297 = vrot.lane.b32.xlu0 %v9812_v62, %s5675_s18  ;;  %v3499_v16 = vadd.f32 %v8530_v13, %v3334_v1  ;;  %v9115_v34 = vmul.f32 %v8642_v33, %v4447_v57  ;;  %v9118_v23 = vmul.f32 %v8645_v29, %v4447_v57  ;;  %v3008_v28 = vadd.f32 %v9814_v12, %v2984_v31  ;;  %v9819_v1 = vld [vmem:[#allocation40_spill] sm:$0xff]  ;;  %v9821_v31 = vld [vmem:[#allocation74_spill] sm:$0xff]  ;;  %v9828_v7 = vld [vmem:[#allocation49_spill] sm:$0xff] }
 0x3fb   : > { %v9100_v39 = vpop.permute.xlu1 %3811  ;;  %v3009_v13 = vadd.f32 %v9813_v8, %v2985_v35  ;;  %v3191_v26 = vadd.f32 %v9815_v54, %v3167_v51  ;;  %v2702_v11 = vadd.f32 %v9818_v0, %v9817_v56  ;;  %v2841_v62 = vadd.f32 %v9819_v1, %v8928_v2  ;;  %v9822_v51 = vld [vmem:[#allocation76_spill] sm:$0xff]  ;;  %v9824_v54 = vld [vmem:[#allocation138_spill] sm:$0xff]  ;;  %v9826_v0 = vld [vmem:[#allocation37_spill] sm:$0xff] }
 0x3fc   : > { %v9102_v18 = vpop.permute.xlu0 %3809  ;;  %v3519_v10 = vadd.f32 %v9816_v37, %v3499_v16  ;;  %v9820_v33 = vrot.slane %v8926_v27, 6  ;;  %v9133_v29 = vmul.f32 %v8769_v48, %v4447_v57  ;;  %v3168_v35 = vadd.f32 %v9821_v31, %v3008_v28  ;;  %v9823_v16 = vld [vmem:[#allocation94_spill] sm:$0xff]  ;;  %v9827_v1 = vld [vmem:[#allocation45_spill] sm:$0xff]  ;;  %s4656_s19 = sadd.f32 1e-05, %s9198_s28 }
 0x3fd   : > { %4393 = vrot.lane.b32.xlu1 %v4390_v22, %s5675_s18  ;;  %v3169_v8 = vadd.f32 %v9822_v51, %v3009_v13  ;;  %v3356_v12 = vadd.f32 %v9823_v16, %v3191_v26  ;;  %v9825_v56 = vld [vmem:[#allocation118_spill] sm:$0xff]  ;;  %v2722_v22 = vadd.f32 %v9827_v1, %v2702_v11  ;;  %v2865_v4 = vadd.f32 %v9828_v7, %v2841_v62  ;;  %v9829_v28 = vld [vmem:[#allocation77_spill] sm:$0xff]  ;;  %v9831_v51 = vld [vmem:[#allocation95_spill] sm:$0xff] }
 0x3fe   : > { %4301 = vrot.lane.b32.xlu0 %v9820_v33, %s5675_s18  ;;  %v3684_v37 = vadd.f32 %v9824_v54, %v3519_v10  ;;  %v2703_v2 = vadd.f32 %v9826_v0, %v9825_v56  ;;  %v9147_v57 = vmul.f32 %v8618_v47, %v9094_v24  ;;  %v9830_v31 = vld [vmem:[#allocation78_spill] sm:$0xff]  ;;  %v9832_v16 = vld [vmem:[#allocation140_spill] sm:$0xff]  ;;  %v9833_v56 = vld [vmem:[#allocation47_spill] sm:$0xff]  ;;  %v9836_v47 = vrot.slane %v8969_v59, 6 }
 0x3ff   : > { %v9143_v27 = vpop.permute.xlu1 %3835  ;;  %v3193_v13 = vadd.f32 %v9829_v28, %v3169_v8  ;;  %v3192_v26 = vadd.f32 %v9830_v31, %v3168_v35  ;;  %v3376_v10 = vadd.f32 %v9831_v51, %v3356_v12  ;;  %v2842_v11 = vadd.f32 %v9833_v56, %v8921_v55  ;;  %v9834_v7 = vld [vmem:[#allocation52_spill] sm:$0xff]  ;;  %v9835_v0 = vld [vmem:[#allocation61_spill] sm:$0xff]  ;;  %v9840_v55 = vld [vmem:[#allocation131_spill] sm:$0xff] }
 0x400   : > { %v3834_v33 = vpop.permute.xlu0 %3833  ;;  %v3697_v54 = vadd.f32 %v9832_v16, %v3684_v37  ;;  %v2843_v62 = vadd.f32 %v9834_v7, %v8935_v60  ;;  %v3029_v1 = vadd.f32 %v9835_v0, %v2865_v4  ;;  %v9837_v35 = vld [vmem:[#allocation93_spill] sm:$0xff]  ;;  %v9838_v12 = vld [vmem:[#allocation96_spill] sm:$0xff]  ;;  %v9839_v37 = vld [vmem:[#allocation115_spill] sm:$0xff] }
 0x401   : > { %4317 = vrot.lane.b32.xlu1 %v9836_v47, %s5675_s18  ;;  %v3357_v8 = vadd.f32 %v9837_v35, %v3192_v26  ;;  %v3358_v28 = vadd.f32 %v9838_v12, %v3193_v13  ;;  %v3544_v31 = vadd.f32 %v9839_v37, %v3376_v10  ;;  %v9841_v16 = vld [vmem:[#allocation42_spill] sm:$0xff]  ;;  %v9847_v13 = vld [vmem:[#allocation116_spill] sm:$0xff] }
 0x402   : > { %4395 = vrot.lane.b32.xlu0 %v9019_v58, %s5675_s18  ;;  %v3839_v51 = vadd.f32 %v3834_v33, %v3697_v54  ;;  %v2704_v56 = vadd.f32 %v9841_v16, %v9840_v55  ;;  %v9842_v60 = vld [vmem:[#allocation46_spill] sm:$0xff]  ;;  %v3049_v59 = vadd.f32 %v9844_v61, %v3029_v1  ;;  %v9845_v58 = vld [vmem:[#allocation97_spill] sm:$0xff]  ;;  %v9849_v37 = vld [vmem:[#allocation60_spill] sm:$0xff]  ;;  %v9851_v61 = vrot.slane %v8972_v6, 6 }
 0x403   : > { %v2867_v7 = vadd.f32 %v9842_v60, %v2843_v62  ;;  %v9843_v4 = vld [vmem:[#allocation54_spill] sm:$0xff]  ;;  %v9171_v47 = vpop.permute.xlu1 %3855  ;;  %v3378_v5 = vadd.f32 %v9845_v58, %v3358_v28  ;;  %v3568_v12 = vadd.f32 %v9847_v13, %v3544_v31  ;;  %v9850_v62 = vld [vmem:[#allocation63_spill] sm:$0xff]  ;;  %v9854_v31 = vld [vmem:[#allocation117_spill] sm:$0xff] }
 0x404   : > { %v2866_v0 = vadd.f32 %v9843_v4, %v2842_v11  ;;  %v3854_v19 = vpop.permute.xlu0 %3853  ;;  %v9846_v26 = vld [vmem:[#allocation98_spill] sm:$0xff]  ;;  %v9852_v11 = vld [vmem:[#allocation80_spill] sm:$0xff]  ;;  %v9859_v13 = vld [vmem:[#allocation65_spill] sm:$0xff] }
 0x405   : > { %v3377_v35 = vadd.f32 %v9846_v26, %v3357_v8  ;;  %v9176_v10 = vadd.f32 %v3854_v19, %v3839_v51  ;;  %v9848_v33 = vld [vmem:[#allocation50_spill] sm:$0xff]  ;;  %v3031_v16 = vadd.f32 %v9850_v62, %v2867_v7  ;;  %4321 = vrot.lane.b32.xlu1 %v9851_v61, %s5675_s18  ;;  %v3217_v1 = vadd.f32 %v9852_v11, %v3049_v59  ;;  %v9858_v7 = vld [vmem:[#allocation64_spill] sm:$0xff]  ;;  %v9860_v62 = vld [vmem:[#allocation81_spill] sm:$0xff] }
 0x406   : > { %v2723_v54 = vadd.f32 %v9848_v33, %v2703_v2  ;;  %v3030_v55 = vadd.f32 %v9849_v37, %v2866_v0  ;;  %4319 = vrot.lane.b32.xlu0 %v9030_v53, %s5675_s18  ;;  %v9853_v8 = vld [vmem:[#allocation114_spill] sm:$0xff]  ;;  %v3546_v19 = vadd.f32 %v9854_v31, %v3378_v5  ;;  %v9856_v2 = vld [vmem:[#allocation43_spill] sm:$0xff]  ;;  %v9862_v11 = vld [vmem:[#allocation120_spill] sm:$0xff] }
 0x407   : > { %v3545_v28 = vadd.f32 %v9853_v8, %v3377_v35  ;;  %v9855_v51 = vld [vmem:[#allocation142_spill] sm:$0xff]  ;;  %v2724_v4 = vadd.f32 %v9856_v2, %v2704_v56  ;;  %v9857_v0 = vld [vmem:[#allocation39_spill] sm:$0xff]  ;;  %v3051_v26 = vadd.f32 %v9858_v7, %v3031_v16  ;;  %v3878_v33 = vpop.permute.xlu1 %3877  ;;  %v3241_v53 = vadd.f32 %v9860_v62, %v3217_v1  ;;  %v9870_v7 = vld [vmem:[#allocation53_spill] sm:$0xff] }
 0x408   : > { %v3717_v60 = vadd.f32 %v9855_v51, %v3568_v12  ;;  %v2892_v58 = vadd.f32 %v9857_v0, %v2723_v54  ;;  %v3050_v6 = vadd.f32 %v9859_v13, %v3030_v55  ;;  %v3876_v37 = vpop.permute.xlu0 %3875  ;;  %v9861_v61 = vld [vmem:[#allocation119_spill] sm:$0xff]  ;;  %v9863_v12 = vld [vmem:[#allocation48_spill] sm:$0xff]  ;;  %v9865_v31 = vld [vmem:[#allocation82_spill] sm:$0xff]  ;;  %v9866_v55 = vrot.slane %v8976_v30, 6 }
 0x409   : > { %v3570_v59 = vadd.f32 %v9861_v61, %v3546_v19  ;;  %v3569_v35 = vadd.f32 %v9862_v11, %v3545_v28  ;;  %v2891_v56 = vadd.f32 %v9863_v12, %v2722_v22  ;;  %v9864_v8 = vld [vmem:[#allocation79_spill] sm:$0xff]  ;;  %v3219_v16 = vadd.f32 %v9865_v31, %v3051_v26  ;;  %4345 = vrot.lane.b32.xlu1 %v9044_v3, %s5675_s18  ;;  %v9867_v28 = vld [vmem:[#allocation100_spill] sm:$0xff]  ;;  %v9873_v11 = vld [vmem:[#allocation101_spill] sm:$0xff] }
 0x40a   : > { %v3736_v5 = vadd.f32 %v8879_v63, %v3717_v60  ;;  %v3218_v54 = vadd.f32 %v9864_v8, %v3050_v6  ;;  %4343 = vrot.lane.b32.xlu0 %v9866_v55, %s5675_s18  ;;  %v4365_v1 = vrot.slane %v9091_v50, 6  ;;  %v3402_v19 = vadd.f32 %v9867_v28, %v3241_v53  ;;  %v9868_v63 = vld [vmem:[#allocation141_spill] sm:$0xff]  ;;  %v9869_v2 = vld [vmem:[#allocation51_spill] sm:$0xff]  ;;  %v9872_v3 = vld [vmem:[#allocation84_spill] sm:$0xff] }
 0x40b   : > { %v3718_v51 = vadd.f32 %v9868_v63, %v3569_v35  ;;  %v3719_v60 = vadd.f32 %v8881_v25, %v3570_v59  ;;  %v2915_v0 = vadd.f32 %v9869_v2, %v2891_v56  ;;  %v2893_v26 = vadd.f32 %v9870_v7, %v2724_v4  ;;  %v9871_v13 = vld [vmem:[#allocation83_spill] sm:$0xff]  ;;  %v3900_v61 = vpop.permute.xlu1 %3899  ;;  %v9877_v4 = vld [vmem:[#allocation102_spill] sm:$0xff]  ;;  %v9883_v7 = vld [vmem:[#allocation104_spill] sm:$0xff] }
 0x40c   : > { %v3884_v22 = vadd.f32 %v3876_v37, %v3736_v5  ;;  %v3243_v6 = vadd.f32 %v9871_v13, %v3219_v16  ;;  %v3242_v62 = vadd.f32 %v9872_v3, %v3218_v54  ;;  %v3880_v30 = vpop.permute.xlu0 %3879  ;;  %v3426_v50 = vadd.f32 %v9873_v11, %v3402_v19  ;;  %v9874_v12 = vld [vmem:[#allocation143_spill] sm:$0xff]  ;;  %v9879_v16 = vld [vmem:[#allocation124_spill] sm:$0xff] }
 0x40d   : > { %v3738_v53 = vadd.f32 %v8904_v38, %v3719_v60  ;;  %v3737_v35 = vadd.f32 %v9874_v12, %v3718_v51  ;;  %v9875_v25 = vld [vmem:[#allocation67_spill] sm:$0xff]  ;;  %4435 = vrot.lane.b32.xlu1 %v9052_v21, %s5675_s18  ;;  %v4454_v54 = vrot.slane %v9115_v34, 2  ;;  %v9881_v60 = vld [vmem:[#allocation68_spill] sm:$0xff]  ;;  %v4481_v34 = vrot.slane %v9147_v57, 2 }
 0x40e   : > { %v9219_v8 = vadd.f32 %v3900_v61, %v3884_v22  ;;  %v3075_v37 = vadd.f32 %v9875_v25, %v2915_v0  ;;  %v9876_v59 = vld [vmem:[#allocation99_spill] sm:$0xff]  ;;  %v3404_v56 = vadd.f32 %v9877_v4, %v3243_v6  ;;  %4347 = vrot.lane.b32.xlu0 %v9055_v49, %s5675_s18  ;;  %v3594_v55 = vadd.f32 %v9879_v16, %v3426_v50  ;;  %v9884_v49 = vld [vmem:[#allocation125_spill] sm:$0xff]  ;;  %v9887_v50 = vld [vmem:[#allocation66_spill] sm:$0xff] }
 0x40f   : > { %v3403_v5 = vadd.f32 %v9876_v59, %v3242_v62  ;;  %v9878_v31 = vld [vmem:[#allocation55_spill] sm:$0xff]  ;;  %v3885_v28 = vadd.f32 %v3878_v33, %v3737_v35  ;;  %v3886_v19 = vadd.f32 %v3880_v30, %v3738_v53  ;;  %v3904_v13 = vpop.permute.xlu1 %3903  ;;  %v4657_v61 = vstv %s4656_s19  ;;  %v9885_v33 = vld [vmem:[#allocation132_spill] sm:$0xff]  ;;  %v9888_v53 = vld [vmem:[#allocation69_spill] sm:$0xff] }
 0x410   : > { %v2917_v38 = vadd.f32 %v9878_v31, %v2893_v26  ;;  %v9880_v63 = vld [vmem:[#allocation31_spill] sm:$0xff]  ;;  %v3099_v22 = vadd.f32 %v9881_v60, %v3075_v37  ;;  %v3902_v6 = vpop.permute.xlu0 %3901  ;;  %v3618_v3 = vadd.f32 %v9884_v49, %v3594_v55  ;;  %v9886_v30 = vld [vmem:[#allocation44_spill] sm:$0xff]  ;;  %v9889_v35 = vrot.slane %v9000_v36, 2  ;;  %v9890_v25 = vld [vmem:[#allocation86_spill] sm:$0xff] }
 0x411   : > { %v2916_v51 = vadd.f32 %v9880_v63, %v2892_v58  ;;  %v9882_v2 = vld [vmem:[#allocation103_spill] sm:$0xff]  ;;  %v3427_v21 = vadd.f32 %v9883_v7, %v3403_v5  ;;  %v9237_v62 = vadd.f32 %v3904_v13, %v3886_v19  ;;  %v9239_v26 = vadd.f32 %v3902_v6, %v3885_v28  ;;  %v9892_v4 = vld [vmem:[#allocation126_spill] sm:$0xff]  ;;  %v9893_v16 = vld [vmem:[#allocation41_spill] sm:$0xff] }
 0x412   : > { %v3428_v0 = vadd.f32 %v9882_v2, %v3404_v56  ;;  %v2747_v11 = vadd.f32 %v9886_v30, %v9885_v33  ;;  %v3077_v12 = vadd.f32 %v9888_v53, %v2917_v38  ;;  %4439 = vrot.lane.b32.xlu1 %v9889_v35, %s5675_s18  ;;  %4437 = vrot.lane.b32.xlu0 %v9085_v42, %s5675_s18  ;;  %5492 = vrsqrt.f32 %v4657_v61  ;;  %v9891_v59 = vld [vmem:[#allocation123_spill] sm:$0xff]  ;;  %v9894_v55 = vld [vmem:[#allocation70_spill] sm:$0xff]  ;;  %v9899_v13 = vld [vmem:[#allocation128_spill] sm:$0xff] }
 0x413   : > { %v3076_v58 = vadd.f32 %v9887_v50, %v2916_v51  ;;  %v3267_v37 = vadd.f32 %v9890_v25, %v3099_v22  ;;  %v3595_v5 = vadd.f32 %v9891_v59, %v3427_v21  ;;  %v3757_v31 = vadd.f32 %v8939_v17, %v3618_v3  ;;  %v9895_v36 = vld [vmem:[#allocation71_spill] sm:$0xff]  ;;  %v3928_v63 = vpop.permute.xlu1 %3927  ;;  %v9900_v6 = vld [vmem:[#allocation145_spill] sm:$0xff]  ;;  %v9901_v49 = vld [vmem:[#allocation56_spill] sm:$0xff] }
 0x414   : > { %v3596_v56 = vadd.f32 %v9892_v4, %v3428_v0  ;;  %v2767_v38 = vadd.f32 %v9893_v16, %v2747_v11  ;;  %v3101_v28 = vadd.f32 %v9894_v55, %v3077_v12  ;;  %v3926_v51 = vpop.permute.xlu0 %3925  ;;  %v9896_v42 = vrot.slane %v9037_v44, 6  ;;  %v9897_v2 = vld [vmem:[#allocation87_spill] sm:$0xff]  ;;  %v9902_v61 = vld [vmem:[#allocation85_spill] sm:$0xff]  ;;  %v9903_v30 = vld [vmem:[#allocation88_spill] sm:$0xff] }
 0x415   : > { %v3100_v19 = vadd.f32 %v9895_v36, %v3076_v58  ;;  %v3291_v22 = vadd.f32 %v9897_v2, %v3267_v37  ;;  %v9898_v7 = vld [vmem:[#allocation127_spill] sm:$0xff]  ;;  %v3619_v0 = vadd.f32 %v9899_v13, %v3595_v5  ;;  %v3776_v17 = vadd.f32 %v9900_v6, %v3757_v31  ;;  %v9905_v58 = vld [vmem:[#allocation144_spill] sm:$0xff]  ;;  %v9906_v12 = vld [vmem:[#allocation146_spill] sm:$0xff] }
 0x416   : > { %v4366_v60 = vsel %vm917_vm2, %v9896_v42, %v4365_v1  ;;  %v3620_v21 = vadd.f32 %v9898_v7, %v3596_v56  ;;  %v2939_v3 = vadd.f32 %v9901_v49, %v2767_v38  ;;  %v3269_v11 = vadd.f32 %v9903_v30, %v3101_v28  ;;  %4415 = vrot.lane.b32.xlu1 %v9088_v32, %s5675_s18  ;;  %v9904_v1 = vld [vmem:[#allocation106_spill] sm:$0xff]  ;;  %v9907_v37 = vld [vmem:[#allocation57_spill] sm:$0xff]  ;;  %v9912_v42 = vld [vmem:[#allocation108_spill] sm:$0xff] }
 0x417   : > { %v3268_v33 = vadd.f32 %v9902_v61, %v3100_v19  ;;  %4413 = vrot.lane.b32.xlu0 %v9105_v46, %s5675_s18  ;;  %v4455_v44 = vrot.slane %v9118_v23, 2  ;;  %v3452_v50 = vadd.f32 %v9904_v1, %v3291_v22  ;;  %v3758_v53 = vadd.f32 %v9905_v58, %v3619_v0  ;;  %v9908_v5 = vld [vmem:[#allocation89_spill] sm:$0xff]  ;;  %v9909_v56 = vld [vmem:[#allocation90_spill] sm:$0xff]  ;;  %v3950_v32 = vpop.permute.xlu1 %3949  ;;  %v9910_v23 = vld [vmem:[#allocation107_spill] sm:$0xff] }
 0x418   : > { %v3759_v35 = vadd.f32 %v9906_v12, %v3620_v21  ;;  %v3934_v25 = vadd.f32 %v3926_v51, %v3776_v17  ;;  %v2959_v59 = vadd.f32 %v9907_v37, %v2939_v3  ;;  %v3293_v4 = vadd.f32 %v9908_v5, %v3269_v11  ;;  %v3930_v16 = vpop.permute.xlu0 %3929  ;;  %v9911_v19 = vld [vmem:[#allocation72_spill] sm:$0xff]  ;;  %v9914_v7 = vld [vmem:[#allocation105_spill] sm:$0xff]  ;;  %v9915_v21 = vld [vmem:[#allocation130_spill] sm:$0xff] }
 0x419   : > { %v3292_v31 = vadd.f32 %v9909_v56, %v3268_v33  ;;  %v4457_v46 = vrot.slane %v9133_v29, 2  ;;  %v3476_v38 = vadd.f32 %v9910_v23, %v3452_v50  ;;  %v3777_v28 = vadd.f32 %v8995_v40, %v3758_v53  ;;  %v9916_v49 = vld [vmem:[#allocation73_spill] sm:$0xff]  ;;  %v9918_v11 = vld [vmem:[#allocation122_spill] sm:$0xff]  ;;  %v9921_v37 = vld [vmem:[#allocation91_spill] sm:$0xff] }
 0x41a   : > { %v3778_v55 = vadd.f32 %v8993_v43, %v3759_v35  ;;  %v9286_v36 = vadd.f32 %v3950_v32, %v3934_v25  ;;  %v3123_v51 = vadd.f32 %v9911_v19, %v2959_v59  ;;  %v3454_v2 = vadd.f32 %v9912_v42, %v3293_v4  ;;  %4369 = vrot.lane.b32.xlu1 %v9112_v41, %s5675_s18  ;;  %v9917_v61 = vld [vmem:[#allocation109_spill] sm:$0xff]  ;;  %v9919_v50 = vld [vmem:[#allocation110_spill] sm:$0xff]  ;;  %v5523_v57 = vld [vmem:[#allocation4 + $0x8] sm:$0xff] }
 0x41b   : > { %v9913_v29 = vrot.slane %v9034_v20, 6  ;;  %v9297_v22 = vmul.f32 %v8779_v15, %v9094_v24  ;;  %v4573_v43 = vstv %s9250_s26  ;;  %v3453_v40 = vadd.f32 %v9914_v7, %v3292_v31  ;;  %v3954_v33 = vpop.permute.xlu1 %3953  ;;  %v9920_v53 = vld [vmem:[#allocation133_spill] sm:$0xff]  ;;  %v9319_v25 = vld [vmem:[#allocation4] sm:$0xff]  ;;  %v9924_v19 = vld [vmem:[#allocation92_spill] sm:$0xff] }
 0x41c   : > { %v3644_v13 = vadd.f32 %v9915_v21, %v3476_v38  ;;  %v3935_v0 = vadd.f32 %v3928_v63, %v3777_v28  ;;  %v3936_v6 = vadd.f32 %v3930_v16, %v3778_v55  ;;  %v5493_v17 = vpop.eup %5492  ;;  %v3143_v3 = vadd.f32 %v9916_v49, %v3123_v51  ;;  %v3952_v30 = vpop.permute.xlu0 %3951  ;;  %v9922_v5 = vld [vmem:[#allocation129_spill] sm:$0xff]  ;;  %v9923_v56 = vld [vmem:[#allocation134_spill] sm:$0xff]  ;;  %v9925_v42 = vld [vmem:[#allocation135_spill] sm:$0xff] }
 0x41d   : > { %4367 = vrot.lane.b32.xlu0 %v9913_v29, %s5675_s18  ;;  %v3478_v41 = vadd.f32 %v9917_v61, %v3454_v2  ;;  %v4456_v20 = vsel %vm890_vm1, %v4454_v54, %v4455_v44  ;;  %v4474_v1 = vmul.f32 %v9918_v11, %v9094_v24  ;;  %v3477_v58 = vadd.f32 %v9919_v50, %v3453_v40  ;;  %v9926_v29 = vld [vmem:[#allocation136_spill] sm:$0xff]  ;;  %v9927_v21 = vld [vmem:[#allocation111_spill] sm:$0xff] }
 0x41e   : > { %v3668_v12 = vadd.f32 %v9920_v53, %v3644_v13  ;;  %v9311_v63 = vadd.f32 %v3954_v33, %v3936_v6  ;;  %v9313_v35 = vadd.f32 %v3952_v30, %v3935_v0  ;;  %5388 = vpush %v5493_v17  ;;  %4459 = vrot.lane.b32.xlu1 %v4456_v20, %s5675_s18  ;;  %v4483_v54 = vrot.slane %v9297_v22, 2  ;;  %v9345_v33 = vld [vmem:[#allocation4 + $0x20] sm:$0xff]  ;;  %v9928_v30 = vld [vmem:[#allocation112_spill] sm:$0xff] }
 0x41f   : > { %v4574_v24 = vmul.f32 %v9319_v25, %v4573_v43  ;;  %v3315_v59 = vadd.f32 %v9921_v37, %v3143_v3  ;;  %v3645_v4 = vadd.f32 %v9922_v5, %v3477_v58  ;;  %v3646_v31 = vadd.f32 %v9923_v56, %v3478_v41  ;;  %v3974_v16 = vpop.permute.xlu1 %3973  ;;  %v9930_v5 = vld [vmem:[#allocation139_spill] sm:$0xff] }
 0x420   : > { %v3797_v32 = vadd.f32 %v9023_v14, %v3668_v12  ;;  %v3972_v23 = vpop.permute.xlu0 %3971  ;;  %v4480_v38 = vrot.slane %v4474_v1, 2  ;;  %v4575_v55 = vmul.f32 %v5523_v57, %v4573_v43  ;;  %v4497_v28 = vstv %s9281_s11  ;;  %v9929_v1 = vld [vmem:[#allocation137_spill] sm:$0xff] }
 0x421   : > { %4371 = vrot.lane.b32.xlu0 %v4366_v60, %s5675_s18  ;;  %v4458_v60 = vsel %vm890_vm1, %v4455_v44, %v4457_v46  ;;  %v3335_v51 = vadd.f32 %v9924_v19, %v3315_v59  ;;  %v3670_v2 = vadd.f32 %v9925_v42, %v3646_v31  ;;  %v3669_v22 = vadd.f32 %v9926_v29, %v3645_v4 }
 0x422   : > { %v3816_v7 = vadd.f32 %v9067_v9, %v3797_v32  ;;  %4463 = vrot.lane.b32.xlu1 %v4457_v46, %s5675_s18  ;;  %v4484_v14 = vsel %vm890_vm1, %v4481_v34, %v4483_v54  ;;  %v4580_v44 = vrot.slane %v4574_v24, 6  ;;  %v4576_v40 = vmul.f32 %v8779_v15, %v4573_v43  ;;  %v9342_v46 = vld [vmem:[#allocation4 + $0x18] sm:$0xff] }
 0x423   : > { %v3500_v13 = vadd.f32 %v9927_v21, %v3335_v51  ;;  %v3798_v0 = vadd.f32 %v9021_v52, %v3669_v22  ;;  %v3799_v6 = vadd.f32 %v9069_v45, %v3670_v2  ;;  %v3992_v49 = vpop.permute.xlu1 %3991  ;;  %v4482_v9 = vsel %vm890_vm1, %v4480_v38, %v4481_v34 }
 0x424   : > { %v3980_v17 = vadd.f32 %v3972_v23, %v3816_v7  ;;  %v3976_v3 = vpop.permute.xlu0 %3975  ;;  %v4581_v61 = vrot.slane %v4575_v55, 6  ;;  %v4498_v41 = vmul.f32 %v9342_v46, %v4497_v28  ;;  %v4499_v43 = vmul.f32 %v9345_v33, %v4497_v28 }
 0x425   : > { %4461 = vrot.lane.b32.xlu0 %v4458_v60, %s5675_s18  ;;  %v3520_v52 = vadd.f32 %v9928_v30, %v3500_v13  ;;  %v3818_v45 = vadd.f32 %v9100_v39, %v3799_v6  ;;  %v3817_v20 = vadd.f32 %v9102_v18, %v3798_v0  ;;  %v4583_v12 = vrot.slane %v4576_v40, 6 }
 0x426   : > { %v9353_v11 = vadd.f32 %v3992_v49, %v3980_v17  ;;  %4487 = vrot.lane.b32.xlu1 %v4484_v14, %s5675_s18  ;;  %v4582_v37 = vsel %vm917_vm2, %v4580_v44, %v4581_v61  ;;  %v4504_v59 = vrot.slane %v4498_v41, 2  ;;  %v4500_v39 = vmul.f32 %v8769_v48, %v4497_v28 }
 0x427   : > { %v3685_v50 = vadd.f32 %v9929_v1, %v3520_v52  ;;  %v3981_v58 = vadd.f32 %v3974_v16, %v3817_v20  ;;  %v3982_v53 = vadd.f32 %v3976_v3, %v3818_v45  ;;  %v3996_v34 = vpop.permute.xlu1 %3995  ;;  %v4523_v18 = vstv %s9328_s20 }
 0x428   : > { %v3994_v24 = vpop.permute.xlu0 %3993  ;;  %v4505_v32 = vrot.slane %v4499_v43, 2  ;;  %v4584_v23 = vsel %vm917_vm2, %v4581_v61, %v4583_v12  ;;  %v4525_v55 = vmul.f32 %v5523_v57, %v4523_v18  ;;  %v4526_v28 = vmul.f32 %v8779_v15, %v4523_v18 }
 0x429   : > { %4485 = vrot.lane.b32.xlu0 %v4482_v9, %s5675_s18  ;;  %v3698_v4 = vadd.f32 %v9930_v5, %v3685_v50  ;;  %v9362_v56 = vadd.f32 %v3996_v34, %v3982_v53  ;;  %v9364_v31 = vadd.f32 %v3994_v24, %v3981_v58  ;;  %v4524_v19 = vmul.f32 %v9319_v25, %v4523_v18  ;;  %v5526_v50 = vld [vmem:[#allocation4 + $0x28] sm:$0x3f] }
 0x42a   : > { %4585 = vrot.lane.b32.xlu1 %v4582_v37, %s5675_s18  ;;  %v4593_v51 = vstv %s9348_s22  ;;  %v4506_v29 = vsel %vm890_vm1, %v4504_v59, %v4505_v32  ;;  %v4531_v15 = vrot.slane %v4525_v55, 2  ;;  %v4533_v14 = vrot.slane %v4526_v28, 2  ;;  %v9932_v55 = vld [vmem:[#allocation148_spill] sm:$0xff] }
 0x42b   : > { %v3840_v16 = vadd.f32 %v9143_v27, %v3698_v4  ;;  %v4020_v60 = vpop.permute.xlu1 %4019  ;;  %v4594_v22 = vmul.f32 %v9342_v46, %v4593_v51  ;;  %v4530_v25 = vrot.slane %v4524_v19, 2  ;;  %v4595_v44 = vmul.f32 %v9345_v33, %v4593_v51 }
 0x42c   : > { %v4018_v38 = vpop.permute.xlu0 %4017  ;;  %v4547_v21 = vstv %s5349_s27  ;;  %v4534_v17 = vsel %vm890_vm1, %v4531_v15, %v4533_v14  ;;  %v4596_v9 = vmul.f32 %v8769_v48, %v4593_v51  ;;  %v5677_v51 = vmov 1  }
 0x42d   : > { %4489 = vrot.lane.b32.xlu0 %v4483_v54, %s5675_s18  ;;  %v3860_v42 = vadd.f32 %v9171_v47, %v3840_v16  ;;  %v4023_v2 = vadd.f32 %v4018_v38, %v9176_v10  ;;  %v4507_v54 = vrot.slane %v4500_v39, 2  ;;  %v4600_v13 = vrot.slane %v4594_v22, 6  ;;  %v9931_v38 = vld [vmem:[#allocation147_spill] sm:$0xff] }
 0x42e   : > { %4509 = vrot.lane.b32.xlu1 %v4506_v29, %s5675_s18  ;;  %v4532_v49 = vsel %vm890_vm1, %v4530_v25, %v4531_v15  ;;  %v4601_v3 = vrot.slane %v4595_v44, 6  ;;  %v4548_v43 = vmul.f32 %v9342_v46, %v4547_v21  ;;  %v4549_v30 = vmul.f32 %v9345_v33, %v4547_v21 }
 0x42f   : > { %v4024_v27 = vadd.f32 %v4020_v60, %v3860_v42  ;;  %v4040_v57 = vpop.permute.xlu1 %4039  ;;  %v4508_v40 = vsel %vm890_vm1, %v4505_v32, %v4507_v54  ;;  %v4603_v1 = vrot.slane %v4596_v9, 6  ;;  %v4550_v58 = vmul.f32 %v5526_v50, %v4547_v21 }
 0x430   : > { %v4038_v7 = vpop.permute.xlu0 %4037  ;;  %v4602_v20 = vsel %vm917_vm2, %v4600_v13, %v4601_v3  ;;  %v4555_v53 = vrot.slane %v4549_v30, 2 }
 0x431   : > { %4587 = vrot.lane.b32.xlu0 %v4584_v23, %s5675_s18  ;;  %v9380_v47 = vadd.f32 %v4040_v57, %v4024_v27  ;;  %v9382_v10 = vadd.f32 %v4038_v7, %v4023_v2  ;;  %v4604_v12 = vsel %vm917_vm2, %v4601_v3, %v4603_v1  ;;  %v4557_v59 = vrot.slane %v4550_v58, 2 }
 0x432   : > { %4513 = vrot.lane.b32.xlu1 %v4507_v54, %s5675_s18  ;;  %v5678_v54 = vmov 2   ;;  %v5679_v27 = vmov 3  }
 0x433   : > { %v4062_v0 = vpop.permute.xlu1 %4061  ;;  %v4558_v4 = vsel %vm890_vm1, %v4555_v53, %v4557_v59 }
 0x434   : > { %v4060_v6 = vpop.permute.xlu0 %4059  ;;  %v4069_v61 = vadd.f32 %v4062_v0, %v9239_v26 }
 0x435   : > { %4511 = vrot.lane.b32.xlu0 %v4508_v40, %s5675_s18  ;;  %v4068_v41 = vadd.f32 %v4060_v6, %v9219_v8  ;;  %v4554_v8 = vrot.slane %v4548_v43, 2 }
 0x436   : > { %4537 = vrot.lane.b32.xlu1 %v4534_v17, %s5675_s18 }
 0x437   : > { %v4084_v52 = vpop.permute.xlu1 %4083  ;;  %v4556_v37 = vsel %vm890_vm1, %v4554_v8, %v4555_v53 }
 0x438   : > { %v4064_v45 = vpop.permute.xlu0 %4063  ;;  %v9397_v48 = vadd.f32 %v4084_v52, %v4068_v41 }
 0x439   : > { %4535 = vrot.lane.b32.xlu0 %v4532_v49, %s5675_s18  ;;  %v4070_v26 = vadd.f32 %v4064_v45, %v9237_v62 }
 0x43a   : > { %4605 = vrot.lane.b32.xlu1 %v4602_v20, %s5675_s18 }
 0x43b   : > { %v4088_v46 = vpop.permute.xlu1 %4087 }
 0x43c   : > { %v4086_v33 = vpop.permute.xlu0 %4085  ;;  %v4094_v34 = vadd.f32 %v4088_v46, %v4070_v26 }
 0x43d   : > { %4539 = vrot.lane.b32.xlu0 %v4533_v14, %s5675_s18  ;;  %v4093_v24 = vadd.f32 %v4086_v33, %v4069_v61 }
 0x43e   : > { %4559 = vrot.lane.b32.xlu1 %v4556_v37, %s5675_s18 }
 0x43f   : > { %v4112_v62 = vpop.permute.xlu1 %4111 }
 0x440   : > { %v4110_v39 = vpop.permute.xlu0 %4109  ;;  %v4119_v18 = vadd.f32 %v4112_v62, %v9313_v35 }
 0x441   : > { %4607 = vrot.lane.b32.xlu0 %v4604_v12, %s5675_s18  ;;  %v4118_v5 = vadd.f32 %v4110_v39, %v9286_v36 }
 0x442   : > { %4563 = vrot.lane.b32.xlu1 %v4557_v59, %s5675_s18 }
 0x443   : > { %v4134_v32 = vpop.permute.xlu1 %4133 }
 0x444   : > { %v4114_v16 = vpop.permute.xlu0 %4113  ;;  %v4142_v23 = vadd.f32 %v4134_v32, %v4118_v5 }
 0x445   : > { %4561 = vrot.lane.b32.xlu0 %v4558_v4, %s5675_s18  ;;  %v4120_v60 = vadd.f32 %v4114_v16, %v9311_v63  ;;  %s5354_s18 = sld [smem:[#allocation12 + $0xa]] }
 0x446   : > { %4806 = vperm.xlu1 %5474, %v9931_v38  }
 0x447   : > { %v4138_v28 = vpop.permute.xlu1 %4137 }
 0x448   : > { %v4136_v19 = vpop.permute.xlu0 %4135  ;;  %v9414_v35 = vadd.f32 %v4138_v28, %v4120_v60 }
 0x449   : > { %4801 = vperm.xlu0 %5473, %v9932_v55   ;;  %v9416_v36 = vadd.f32 %v4136_v19, %v4119_v18 }
 0x44a   : > { %5475 = vset.pattern.permute.xlu1 %v5677_v51 }
 0x44b   : > { %4833 = vperm.xlu1 %5475, %v9932_v55   ;;  %v4162_v42 = vpop.permute.xlu1 %4161 }
 0x44c   : > { %v4160_v2 = vpop.permute.xlu0 %4159  ;;  %v4169_v63 = vadd.f32 %v4162_v42, %v9364_v31 }
 0x44d   : > { %5476 = vset.pattern.permute.xlu0 %v5677_v51  ;;  %v4168_v29 = vadd.f32 %v4160_v2, %v9353_v11 }
 0x44e   : > { %4837 = vperm.xlu0 %5476, %v9931_v38  }
 0x44f   : > { %5477 = vset.pattern.permute.xlu1 %v5678_v54  ;;  %v4184_v22 = vpop.permute.xlu1 %4183  ;;  %s5389_s23 = spop %5388 }
 0x450   : > { %4866 = vperm.xlu1 %5477, %v9932_v55   ;;  %v4164_v57 = vpop.permute.xlu0 %4163  ;;  %v9424_v7 = vadd.f32 %v4184_v22, %v4168_v29 }
 0x451   : > { %v4170_v15 = vadd.f32 %v4164_v57, %v9362_v56 }
 0x452   : > { %5478 = vset.pattern.permute.xlu0 %v5679_v27 }
 0x453   : > { %4899 = vperm.xlu0 %5478, %v9932_v55   ;;  %v4188_v14 = vpop.permute.xlu1 %4187 }
 0x454   : > { %4870 = vperm.xlu1 %5477, %v9931_v38   ;;  %v4186_v31 = vpop.permute.xlu0 %4185  ;;  %v9428_v25 = vadd.f32 %v4188_v14, %v4170_v15 }
 0x455   : > { %v9430_v11 = vadd.f32 %v4186_v31, %v4169_v63 }
 0x457   : > { %v4212_v44 = vpop.permute.xlu1 %4211 }
 0x458   : > { %5479 = vset.pattern.permute.xlu1 %v5679_v27  ;;  %v4210_v40 = vpop.permute.xlu0 %4209  ;;  %v4216_v21 = vadd.f32 %v4212_v44, %v9380_v47 }
 0x459   : > { %v4215_v13 = vadd.f32 %v4210_v40, %v9382_v10  ;;  %4903 = vperm.xlu1 %5479, %v9931_v38  }
 0x45b   : > { %v4254_v0 = vpop.permute.xlu1 %4253 }
 0x45c   : > { %v4252_v6 = vpop.permute.xlu0 %4251  ;;  %v4261_v56 = vadd.f32 %v4254_v0, %v4093_v24 }
 0x45d   : > { %v4260_v17 = vadd.f32 %v4252_v6, %v9397_v48 }
 0x45f   : > { %v4230_v49 = vpop.permute.xlu1 %4229 }
 0x460   : > { %v4256_v3 = vpop.permute.xlu0 %4255  ;;  %v9436_v9 = vadd.f32 %v4230_v49, %v4215_v13 }
 0x461   : > { %v4262_v61 = vadd.f32 %v4256_v3, %v4094_v34 }
 0x463   : > { %v4276_v41 = vpop.permute.xlu1 %4275 }
 0x464   : > { %v4232_v43 = vpop.permute.xlu0 %4231  ;;  %v4284_v30 = vadd.f32 %v4276_v41, %v4260_v17 }
 0x465   : > { %v9438_v52 = vadd.f32 %v4232_v43, %v4216_v21 }
 0x467   : > { %v4280_v47 = vpop.permute.xlu1 %4279 }
 0x468   : > { %v4278_v45 = vpop.permute.xlu0 %4277  ;;  %v4286_v10 = vadd.f32 %v4280_v47, %v4262_v61 }
 0x469   : > { %v4285_v20 = vadd.f32 %v4278_v45, %v4261_v56 }
 0x46b   : > { %v4300_v1 = vpop.permute.xlu1 %4299 }
 0x46c   : > { %v4298_v50 = vpop.permute.xlu0 %4297  ;;  %v4307_v31 = vadd.f32 %v4300_v1, %v9416_v36 }
 0x46d   : > { %v4306_v58 = vadd.f32 %v4298_v50, %v4142_v23 }
 0x46f   : > { %v4394_v26 = vpop.permute.xlu1 %4393 }
 0x470   : > { %v4302_v8 = vpop.permute.xlu0 %4301  ;;  %v4399_v47 = vadd.f32 %v4394_v26, %v9436_v9 }
 0x471   : > { %v4308_v44 = vadd.f32 %v4302_v8, %v9414_v35 }
 0x473   : > { %v4318_v48 = vpop.permute.xlu1 %4317 }
 0x474   : > { %v4396_v53 = vpop.permute.xlu0 %4395  ;;  %v4326_v40 = vadd.f32 %v4318_v48, %v4306_v58 }
 0x475   : > { %v4400_v8 = vadd.f32 %v4396_v53, %v9438_v52 }
 0x477   : > { %v4322_v46 = vpop.permute.xlu1 %4321 }
 0x478   : > { %v4320_v33 = vpop.permute.xlu0 %4319  ;;  %v4328_v0 = vadd.f32 %v4322_v46, %v4308_v44 }
 0x479   : > { %v4327_v6 = vadd.f32 %v4320_v33, %v4307_v31 }
 0x47b   : > { %v4346_v12 = vpop.permute.xlu1 %4345 }
 0x47c   : > { %v4344_v34 = vpop.permute.xlu0 %4343  ;;  %v4353_v9 = vadd.f32 %v4346_v12, %v9430_v11 }
 0x47f   : > { %v4436_v24 = vpop.permute.xlu1 %4435 }
 0x480   : > { %v4348_v37 = vpop.permute.xlu0 %4347  ;;  %v4444_v60 = vadd.f32 %v4436_v24, %v4284_v30  ;;  %v4352_v24 = vadd.f32 %v4344_v34, %v9424_v7 }
 0x481   : > { %v4354_v26 = vadd.f32 %v4348_v37, %v9428_v25 }
 0x484   : > { %v4440_v59 = vpop.permute.xlu1 %4439  ;;  %v4438_v62 = vpop.permute.xlu0 %4437 }
 0x485   : > { %v4446_v23 = vadd.f32 %v4440_v59, %v4286_v10  ;;  %v4445_v38 = vadd.f32 %v4438_v62, %v4285_v20 }
 0x488   : > { %v4416_v39 = vpop.permute.xlu1 %4415 }
 0x489   : > { %v4414_v18 = vpop.permute.xlu0 %4413  ;;  %v4420_v59 = vadd.f32 %v4416_v39, %v4400_v8 }
 0x48a   : > { %v4419_v1 = vadd.f32 %v4414_v18, %v4399_v47 }
 0x48c   : > { %v4370_v5 = vpop.permute.xlu1 %4369 }
 0x48f   : > { %v4368_v4 = vpop.permute.xlu0 %4367 }
 0x490   : > { %v4460_v32 = vpop.permute.xlu1 %4459 }
 0x491   : > { %v4468_v55 = vadd.f32 %v4460_v32, %v4444_v60  ;;  %v4376_v32 = vadd.f32 %v4368_v4, %v4352_v24  ;;  %v4698_v24 = vld [vmem:[%s9933_s5 + $0x10] sm:$0xff] }
 0x493   : > { %v4372_v16 = vpop.permute.xlu0 %4371  ;;  %v4616_v2 = vrot.slane %v4468_v55, 1 }
 0x494   : > { %v4464_v28 = vpop.permute.xlu1 %4463 }
 0x495   : > { %v4470_v51 = vadd.f32 %v4464_v28, %v4446_v23  ;;  %v4377_v23 = vadd.f32 %v4370_v5, %v4353_v9  ;;  %v4378_v28 = vadd.f32 %v4372_v16, %v4354_v26 }
 0x497   : > { %v4462_v19 = vpop.permute.xlu0 %4461  ;;  %v4619_v63 = vrot.slane %v4470_v51, 1 }
 0x498   : > { %v4469_v42 = vadd.f32 %v4462_v19, %v4445_v38  ;;  %v4488_v54 = vpop.permute.xlu1 %4487 }
 0x499   : > { %v4495_v17 = vadd.f32 %v4488_v54, %v4327_v6 }
 0x49a   : > { %v4617_v29 = vrot.slane %v4469_v42, 1 }
 0x49b   : > { %v4486_v27 = vpop.permute.xlu0 %4485 }
 0x49c   : > { %v4618_v22 = vsel %vm2734_vm5, %v4616_v2, %v4617_v29  ;;  %v4620_v57 = vsel %vm2734_vm5, %v4617_v29, %v4619_v63  ;;  %v4586_v15 = vpop.permute.xlu1 %4585  ;;  %v4494_v56 = vadd.f32 %v4486_v27, %v4326_v40  ;;  %v4653_v29 = vstv %s5354_s18 }
 0x49d   : > { %v4591_v48 = vadd.f32 %v4586_v15, %v4419_v1  ;;  %v4666_v40 = vstv %s5353_s4 }
 0x49f   : > { %v4490_v14 = vpop.permute.xlu0 %4489 }
 0x4a0   : > { %v4510_v21 = vpop.permute.xlu1 %4509  ;;  %v4496_v49 = vadd.f32 %v4490_v14, %v4328_v0  ;;  %v4663_v14 = vstv %s5352_s7 }
 0x4a1   : > { %v4518_v3 = vadd.f32 %v4510_v21, %v4494_v56 }
 0x4a3   : > { %v4588_v13 = vpop.permute.xlu0 %4587  ;;  %v4628_v45 = vrot.slane %v4518_v3, 2 }
 0x4a4   : > { %v4514_v61 = vpop.permute.xlu1 %4513  ;;  %v4592_v60 = vadd.f32 %v4588_v13, %v4420_v59  ;;  %v4696_v59 = vld [vmem:[%s9933_s5] sm:$0xff] }
 0x4a5   : > { %v4520_v43 = vadd.f32 %v4514_v61, %v4496_v49 }
 0x4a7   : > { %v4512_v41 = vpop.permute.xlu0 %4511  ;;  %v4631_v10 = vrot.slane %v4520_v43, 2 }
 0x4a8   : > { %v4519_v30 = vadd.f32 %v4512_v41, %v4495_v17  ;;  %v4538_v20 = vpop.permute.xlu1 %4537 }
 0x4a9   : > { %v4545_v51 = vadd.f32 %v4538_v20, %v4377_v23  ;;  %v4701_v23 = vld [vmem:[%s9933_s5 + $0x28] sm:$0xff] }
 0x4aa   : > { %v4629_v36 = vrot.slane %v4519_v30, 2 }
 0x4ab   : > { %v4536_v35 = vpop.permute.xlu0 %4535 }
 0x4ac   : > { %v4630_v50 = vsel %vm890_vm1, %v4628_v45, %v4629_v36  ;;  %v4632_v58 = vsel %vm890_vm1, %v4629_v36, %v4631_v10  ;;  %v4606_v46 = vpop.permute.xlu1 %4605  ;;  %v4544_v19 = vadd.f32 %v4536_v35, %v4376_v32  ;;  %v4704_v10 = vld [vmem:[#allocation5] sm:$0xf] }
 0x4ad   : > { %v4611_v62 = vadd.f32 %v4606_v46, %v4591_v48  ;;  %v9934_v35 = vld [vmem:[#allocation32_spill] sm:$0xff]  ;;  %v4708_v8 = vmul.f32 0.33333334, %v4704_v10 }
 0x4ae   : > { %v4795_v1 = vsub.s32 0, %v9934_v35  ;;  %v4894_v46 = vsub.s32 3, %v9934_v35 }
 0x4af   : > { %v4540_v33 = vpop.permute.xlu0 %4539  ;;  %v4623_v18 = vadd.f32 %v4618_v22, %v4611_v62  ;;  %v4660_v22 = vstv %s5389_s23  ;;  %v4700_v62 = vld [vmem:[%s9933_s5 + $0x20] sm:$0xff] }
 0x4b0   : > { %v4560_v38 = vpop.permute.xlu1 %4559  ;;  %v4546_v42 = vadd.f32 %v4540_v33, %v4378_v28  ;;  %v4697_v33 = vld [vmem:[%s9933_s5 + $0x8] sm:$0xff]  ;;  %v4814_v9 = vrot.slane %v4704_v10, %v4795_v1 }
 0x4b1   : > { %v4635_v52 = vadd.f32 %v4630_v50, %v4623_v18  ;;  %v4568_v7 = vadd.f32 %v4560_v38, %v4544_v19  ;;  %v4828_v50 = vsub.s32 1, %v9934_v35  ;;  %v4699_v18 = vld [vmem:[%s9933_s5 + $0x18] sm:$0xff]  ;;  %v4702_v38 = vld [vmem:[%s9933_s5 + $0x30] sm:$0xff] }
 0x4b3   : > { %v4608_v55 = vpop.permute.xlu0 %4607  ;;  %v4640_v37 = vrot.slane %v4568_v7, 3  ;;  %v4845_v26 = vrot.slane %v4704_v10, %v4828_v50  ;;  %v4829_v28 = vrot.slane %v4708_v8, %v4828_v50  ;;  %v4895_v7 = vrot.slane %v4708_v8, %v4894_v46 }
 0x4b4   : > { %v4612_v53 = vadd.f32 %v4608_v55, %v4592_v60  ;;  %v4564_v39 = vpop.permute.xlu1 %4563  ;;  %v4796_v55 = vrot.slane %v4708_v8, %v4795_v1 }
 0x4b5   : > { %v4570_v12 = vadd.f32 %v4564_v39, %v4546_v42  ;;  %v4819_v42 = vmul.f32 %v4696_v59, %v4696_v59  ;;  %v4883_v39 = vmul.f32 %v4700_v62, %v4700_v62 }
 0x4b6   : > { %v4624_v34 = vadd.f32 %v4620_v57, %v4612_v53  ;;  %v4820_v53 = vmul.f32 %v4697_v33, %v4697_v33 }
 0x4b7   : > { %v4562_v2 = vpop.permute.xlu0 %4561  ;;  %v4643_v4 = vrot.slane %v4570_v12, 3  ;;  %v4884_v12 = vmul.f32 %v4701_v23, %v4701_v23 }
 0x4b8   : > { %v4636_v11 = vadd.f32 %v4632_v58, %v4624_v34  ;;  %v4569_v25 = vadd.f32 %v4562_v2, %v4545_v51  ;;  %v4861_v58 = vsub.s32 2, %v9934_v35  ;;  %v4850_v51 = vmul.f32 %v4698_v24, %v4698_v24  ;;  %v4703_v35 = vld [vmem:[%s9933_s5 + $0x38] sm:$0xff] }
 0x4b9   : > { %v4851_v2 = vmul.f32 %v4699_v18, %v4699_v18  ;;  %v4917_v24 = vmul.f32 %v4703_v35, %v4703_v35 }
 0x4ba   : > { %v4641_v5 = vrot.slane %v4569_v25, 3  ;;  %v4878_v32 = vrot.slane %v4704_v10, %v4861_v58  ;;  %v4862_v19 = vrot.slane %v4708_v8, %v4861_v58  ;;  %v4916_v25 = vmul.f32 %v4702_v38, %v4702_v38 }
 0x4bc   : > { %v4642_v16 = vsel %vm1034_vm3, %v4640_v37, %v4641_v5  ;;  %v4644_v63 = vsel %vm1034_vm3, %v4641_v5, %v4643_v4 }
 0x4bd   : > { %v4647_v54 = vadd.f32 %v4642_v16, %v4635_v52  ;;  %v4648_v27 = vadd.f32 %v4644_v63, %v4636_v11  ;;  %v4911_v52 = vrot.slane %v4704_v10, %v4894_v46 }
 0x4bf   : > { %v4654_v57 = vsub.f32 %v4647_v54, %v4653_v29  ;;  %v4655_v15 = vsub.f32 %v4648_v27, %v4653_v29 }
 0x4c1   : > { %v4661_v31 = vmul.f32 %v4660_v22, %v4654_v57  ;;  %v4662_v44 = vmul.f32 %v4660_v22, %v4655_v15 }
 0x4c3   : > { %v4664_v21 = vmul.f32 %v4663_v14, %v4661_v31  ;;  %v4665_v13 = vmul.f32 %v4663_v14, %v4662_v44 }
 0x4c5   : > { %v4667_v0 = vadd.f32 %v4666_v40, %v4664_v21  ;;  %v4668_v6 = vadd.f32 %v4666_v40, %v4665_v13  ;;  %v4807_v43 = vpop.permute.xlu1 %4806 }
 0x4c7   : > { %v5356_v56 = vmul.f32 -1.442695, %v4667_v0  ;;  %v5357_v17 = vmul.f32 -1.442695, %v4668_v6 }
 0x4c8   : > { %v4802_v48 = vpop.permute.xlu0 %4801 }
 0x4c9   : > { %5494 = vpow2.f32 %v5356_v56 }
 0x4ca   : > { %5496 = vpow2.f32 %v5357_v17  ;;  %v4834_v36 = vpop.permute.xlu1 %4833 }
 0x4cd   : > { %v4838_v11 = vpop.permute.xlu0 %4837 }
 0x4cf   : > { %v4867_v60 = vpop.permute.xlu1 %4866 }
 0x4d3   : > { %v5495_v49 = vpop.eup %5494  ;;  %v4871_v44 = vpop.permute.xlu1 %4870 }
 0x4d4   : > { %v5497_v3 = vpop.eup %5496  ;;  %v4675_v61 = vadd.f32 1.0, %v5495_v49 }
 0x4d5   : > { %v4676_v41 = vadd.f32 1.0, %v5497_v3 }
 0x4d6   : > { %5498 = vrcp.f32 %v4675_v61 }
 0x4d7   : > { %5500 = vrcp.f32 %v4676_v41 }
 0x4d8   : > { %v4904_v46 = vpop.permute.xlu1 %4903 }
 0x4e0   : > { %v5499_v30 = vpop.eup %5498 }
 0x4e1   : > { %v5501_v47 = vpop.eup %5500  ;;  %v4681_v45 = vmul.f32 0.33333334, %v5499_v30 }
 0x4e2   : > { %v4682_v20 = vmul.f32 0.33333334, %v5501_v47  ;;  %v4900_v47 = vpop.permute.xlu0 %4899 }
 0x4e3   : > { %4683 = vst.msk [vmem:[#allocation7] sm:$0xff] %vm224_vm0, %v4681_v45 }
 0x4e4   : > { %4684 = vst.msk [vmem:[#allocation7 + $0x8] sm:$0xff] %vm224_vm0, %v4682_v20 }
 0x4ea   : > { %v4706_v34 = vld [vmem:[#allocation7] sm:$0xff] }
 0x4eb   : > { %v4707_v37 = vld [vmem:[#allocation7 + $0x8] sm:$0xff]  ;;  %v4830_v4 = vadd.f32 %v4829_v28, %v4706_v34  ;;  %v4846_v5 = vmul.f32 %v4845_v26, %v4706_v34  ;;  %v4797_v16 = vadd.f32 %v4796_v55, %v4706_v34  ;;  %v4815_v63 = vmul.f32 %v4814_v9, %v4706_v34 }
 0x4ec   : > { %v4798_v29 = vadd.f32 %v4796_v55, %v4707_v37  ;;  %v4816_v54 = vmul.f32 %v4814_v9, %v4707_v37  ;;  %v4863_v27 = vadd.f32 %v4862_v19, %v4706_v34  ;;  %v4879_v22 = vmul.f32 %v4878_v32, %v4706_v34 }
 0x4ed   : > { %v4840_v57 = vmul.f32 %v4834_v36, %v4830_v4  ;;  %v4809_v15 = vmul.f32 %v4802_v48, %v4797_v16  ;;  %v4831_v14 = vadd.f32 %v4829_v28, %v4707_v37  ;;  %v4847_v31 = vmul.f32 %v4845_v26, %v4707_v37 }
 0x4ee   : > { %v4810_v40 = vmul.f32 %v4807_v43, %v4798_v29  ;;  %v4873_v21 = vmul.f32 %v4867_v60, %v4863_v27  ;;  %v4864_v13 = vadd.f32 %v4862_v19, %v4707_v37  ;;  %v4880_v0 = vmul.f32 %v4878_v32, %v4707_v37 }
 0x4ef   : > { %v4848_v6 = vadd.f32 %v4846_v5, %v4840_v57  ;;  %v4817_v56 = vadd.f32 %v4815_v63, %v4809_v15  ;;  %v4841_v17 = vmul.f32 %v4838_v11, %v4831_v14  ;;  %v4896_v49 = vadd.f32 %v4895_v7, %v4706_v34 }
 0x4f0   : > { %v4818_v3 = vadd.f32 %v4816_v54, %v4810_v40  ;;  %v4881_v61 = vadd.f32 %v4879_v22, %v4873_v21  ;;  %v4874_v41 = vmul.f32 %v4871_v44, %v4864_v13  ;;  %v4912_v30 = vmul.f32 %v4911_v52, %v4706_v34 }
 0x4f1   : > { %v4852_v45 = vmul.f32 %v4850_v51, %v4848_v6  ;;  %v4821_v10 = vmul.f32 %v4819_v42, %v4817_v56  ;;  %v4849_v36 = vadd.f32 %v4847_v31, %v4841_v17  ;;  %v4906_v20 = vmul.f32 %v4900_v47, %v4896_v49 }
 0x4f2   : > { %v4822_v43 = vmul.f32 %v4820_v53, %v4818_v3  ;;  %v4885_v1 = vmul.f32 %v4883_v39, %v4881_v61  ;;  %v4882_v50 = vadd.f32 %v4880_v0, %v4874_v41  ;;  %v4897_v58 = vadd.f32 %v4895_v7, %v4707_v37 }
 0x4f3   : > { %5363 = vst.msk [vmem:[%s215_s2 + $0x10] sm:$0xff] %vm224_vm0, %v4852_v45  ;;  %4824 = vst.msk [vmem:[%s215_s2] sm:$0xff] %vm224_vm0, %v4821_v10  ;;  %v4853_v8 = vmul.f32 %v4851_v2, %v4849_v36  ;;  %v4914_v48 = vadd.f32 %v4912_v30, %v4906_v20  ;;  %v4913_v62 = vmul.f32 %v4911_v52, %v4707_v37 }
 0x4f4   : > { %4825 = vst.msk [vmem:[%s215_s2 + $0x8] sm:$0xff] %vm224_vm0, %v4822_v43  ;;  %5365 = vst.msk [vmem:[%s215_s2 + $0x20] sm:$0xff] %vm224_vm0, %v4885_v1  ;;  %v4886_v33 = vmul.f32 %v4884_v12, %v4882_v50  ;;  %v4907_v59 = vmul.f32 %v4904_v46, %v4897_v58 }
 0x4f5   : > { %5364 = vst.msk [vmem:[%s215_s2 + $0x18] sm:$0xff] %vm224_vm0, %v4853_v8  ;;  %v4918_v9 = vmul.f32 %v4916_v25, %v4914_v48 }
 0x4f6   : > { %5366 = vst.msk [vmem:[%s215_s2 + $0x28] sm:$0xff] %vm224_vm0, %v4886_v33  ;;  %v4915_v26 = vadd.f32 %v4913_v62, %v4907_v59 }
 0x4f7   : > { %5367 = vst.msk [vmem:[%s215_s2 + $0x30] sm:$0xff] %vm224_vm0, %v4918_v9 }
 0x4f8   : > { %v4919_v32 = vmul.f32 %v4917_v24, %v4915_v26 }
 0x4fa   : > { %5368 = vst.msk [vmem:[%s215_s2 + $0x38] sm:$0xff] %vm224_vm0, %v4919_v32 }
 0x4fb   : > { %5600 = shalt.err (!%p5597_p7)
}
 0x4fc   : > { %s5601_s13 = scalar_lea.hbm %s9480_s24, 1024  ;;  %s5605_s28 = scalar_lea.hbm %s9939_s21, 2048 }
 0x4fd   : > { %p5602_p11 = scmp.ne.s32.totalorder %s9480_s24, %s5601_s13  ;;  %p5606_p9 = scmp.lt.u32.totalorder %s9480_s24, %s9939_s21 }
 0x4fe   : > { %p5607_p1 = scmp.lt.u32.totalorder %s5605_s28, %s5601_s13  ;;  %p5609_p5 = scmp.lt.u32.totalorder %s5601_s13, %s9480_s24 }
 0x4ff   : > { %p5603_p13 = pnand %p5602_p11, %p9940_p2 }
 0x500   : > { %p5608_p6 = por %p5607_p1, %p5606_p9 }
 0x501   : > { %p5604_p3 = pneg %p5603_p13 }
 0x502   : > { %p5610_p8 = por %p5609_p5, %p5608_p6 }
 0x504   : > { %p5611_p10 = pnand %p5610_p8, %p5604_p3 }
 0x506   : > { %5614 = shalt.err (!%p5611_p10)
}
 0x507   : > { %s5681_s11 = smov 128   ;;  %s5682_s20 = smov 8  }
 0x508   : > { %5400 = dma.vmem_to_hbm [thread:$0]  (%p9940_p2), %s9482_s14, 1024, %s9480_s24, %s4926_s25, %s5681_s11, %s5681_s11, %s5682_s20  }
 0x509 PF: > { %s9941_s22 = sld [smem:[#allocation20_spill]]  ;;  %s9942_s27 = sld [smem:[#allocation28_spill]] }
 0x50a   : > { %s9943_s18 = sld [smem:[#allocation23_spill]] }
 0x50f   : > { %s4954_s7 = sand.u32 1, %s9941_s22   ;;  %p9944_p4 = scmp.ne.s32.totalorder %s9942_s27, 0 }
 0x510   : > { %p9945_p12 = scmp.ge.s32.totalorder %s9943_s18, 2  ;;  %s4955_s4 = scalar_lea.sflag [#allocation10], %s4954_s7 }
 0x512   : > { %p5414_p0 = pnand %p9945_p12, %p9944_p4 }
 0x514   : > { %5644 = dma.done.wait (!%p5414_p0), %s4955_s4, 1024  }
 0x515   : > { %5646 = vsyncadd (!%p5414_p0), %s4955_s4, 4294966272  ;;  %s9946_s15 = sld [smem:[#allocation25_spill]]  ;;  %s9947_s12 = sld [smem:[#allocation21_spill]] }
 0x516   : > { %s9948_s13 = sld [smem:[#allocation22_spill]]  ;;  %s9949_s14 = sld [smem:[#allocation26_spill]] }
 0x51b   : > { %p18_p7 = scmp.ge.s32.totalorder %s9946_s15, 4  }
 0x51d   :  { %20 = sbr.rel (!%p18_p7) target bundleno = 12 (0xc), region = 94 }
 0x524   :  { %4960 = vsyncpa [#allocation9], 1 }
 0x525   :  { %4962 = vsyncpa [#allocation9 + $0x1], 1 }
 0x526   :  { %4963 = vsyncpa [#allocation10], 1 }
 0x527   :  { %4965 = vsyncpa [#allocation10 + $0x1], 1 }
 0x528   :  { %4966 = vsyncpa [#allocation11], 1 }
 0x529   :  { %4968 = vsyncpa [#allocation11 + $0x1], 1 }
 0x52a   :  { %4969 = vsyncpa [#allocation13], 1 }

</bundles_post_ra>
